<compile_context>
chip_gen: v5e
topology: v5e:2x2
jax: 0.10.0
libtpu: 0.0.40
codegen_flags: <defaults>
</compile_context>

<pallas_src>
import math

import jax
import jax.numpy as jnp
from jax import lax
from jax.experimental import pallas as pl
from jax.experimental.pallas import tpu as pltpu


LANE = 128                      # lane width: pad all kernel output widths to this
_VMEM_LIMIT = 32 * 1024 * 1024  # 32 MiB scoped VMEM (safe on v5e/v6e/v7x)


def _round_up(x, m):
    return (x + m - 1) // m * m


def _pad2(a, rows, cols, dtype):
    r, c = a.shape
    return jnp.pad(a, ((0, rows - r), (0, cols - c))).astype(dtype)


# ----------------------------- Pallas kernels ------------------------------ #

def _conv_pool_kernel(a_ref, w_ref, b_ref, o_ref):
    """Fused conv (as 4 quadrant matmuls) + max-pool + bias + ReLU.

    a_ref: (4, tm, K) bf16 im2col patches, one slab per 2x2 pool quadrant
    w_ref: (K, 128)  bf16 conv weight, Cout zero-padded to 128 lanes
    b_ref: (1, 128)  f32 bias (zero-padded)
    o_ref: (tm, 128) bf16 pooled/activated output (lane-dense, unmasked stores)
    """
    w = w_ref[...]
    d0 = jnp.dot(a_ref[0], w, preferred_element_type=jnp.float32)
    d1 = jnp.dot(a_ref[1], w, preferred_element_type=jnp.float32)
    d2 = jnp.dot(a_ref[2], w, preferred_element_type=jnp.float32)
    d3 = jnp.dot(a_ref[3], w, preferred_element_type=jnp.float32)
    m = jnp.maximum(jnp.maximum(d0, d1), jnp.maximum(d2, d3))
    o_ref[...] = jnp.maximum(m + b_ref[...], 0.0).astype(o_ref.dtype)


def _mlp_kernel(x_ref, w1_ref, b1_ref, w2_ref, b2_ref, w3_ref, b3_ref, o_ref):
    """Fused fc1->relu->fc2->relu->fc3. All widths padded to 128 lanes."""
    h = jnp.dot(x_ref[...], w1_ref[...], preferred_element_type=jnp.float32)
    h = jnp.maximum(h + b1_ref[...], 0.0).astype(jnp.bfloat16)
    h = jnp.dot(h, w2_ref[...], preferred_element_type=jnp.float32)
    h = jnp.maximum(h + b2_ref[...], 0.0).astype(jnp.bfloat16)
    o_ref[...] = (jnp.dot(h, w3_ref[...], preferred_element_type=jnp.float32)
                  + b3_ref[...])


# ------------------------------ conv wrapper ------------------------------- #

def _pooled_patches(x_nhwc, kh, kw):
    """im2col patches grouped by 2x2 pool quadrant: (4, N*PH*PW, kh*kw*C) bf16.

    Quadrant q=(dy,dx) row (n,ph,pw) holds the patch of conv-output pixel
    (2*ph+dy, 2*pw+dx), feature order (i, j, c) to match the weight layout.
    """
    N, H, W, C = x_nhwc.shape
    OH, OW = H - kh + 1, W - kw + 1
    assert OH % 2 == 0 and OW % 2 == 0
    PH, PW = OH // 2, OW // 2
    quads = []
    for dy in (0, 1):
        for dx in (0, 1):
            feats = []
            for i in range(kh):
                for j in range(kw):
                    r0, c0 = dy + i, dx + j
                    feats.append(
                        x_nhwc[:, r0:r0 + 2 * (PH - 1) + 1:2,
                               c0:c0 + 2 * (PW - 1) + 1:2, :])
            q = jnp.concatenate(feats, axis=-1)           # (N, PH, PW, kh*kw*C)
            quads.append(q.reshape(N * PH * PW, kh * kw * C))
    return jnp.stack(quads, 0).astype(jnp.bfloat16), (N, PH, PW)


def conv_relu_pool(x_nhwc, w_oihw, b):
    """VALID conv -> +bias -> relu -> 2x2/2 max-pool, as ONE Pallas kernel."""
    cout, cin, kh, kw = w_oihw.shape
    a, (N, PH, PW) = _pooled_patches(x_nhwc, kh, kw)
    K = a.shape[-1]
    M = N * PH * PW

    # PyTorch conv weight (Cout, Cin, KH, KW) -> (KH*KW*Cin, Cout), lane-padded.
    w_mat = jnp.transpose(w_oihw, (2, 3, 1, 0)).reshape(kh * kw * cin, cout)
    w_mat = jnp.pad(w_mat, ((0, 0), (0, LANE - cout))).astype(jnp.bfloat16)
    b_row = jnp.pad(b.reshape(1, cout).astype(jnp.float32),
                    ((0, 0), (0, LANE - cout)))

    tm = 1024 if M > 1024 else _round_up(M, 16)
    M_pad = _round_up(M, tm)
    if M_pad != M:
        a = jnp.pad(a, ((0, 0), (0, M_pad - M), (0, 0)))

    out = pl.pallas_call(
        _conv_pool_kernel,
        out_shape=jax.ShapeDtypeStruct((M_pad, LANE), jnp.bfloat16),
        grid=(M_pad // tm,),
        in_specs=[
            pl.BlockSpec((4, tm, K), lambda i: (0, i, 0)),
            pl.BlockSpec((K, LANE), lambda i: (0, 0)),     # weight stays resident
            pl.BlockSpec((1, LANE), lambda i: (0, 0)),
        ],
        out_specs=pl.BlockSpec((tm, LANE), lambda i: (i, 0)),
        compiler_params=pltpu.CompilerParams(
            dimension_semantics=("parallel",),
            vmem_limit_bytes=_VMEM_LIMIT),
    )(a, w_mat, b_row)
    return out[:M, :cout].reshape(N, PH, PW, cout)         # NHWC, bf16


# ------------------------------- MLP wrapper ------------------------------- #

def mlp(x, w1, b1, w2, b2, w3, b3):
    """Fused fc stack, tiled over batch rows; weights VMEM-resident."""
    N, K1 = x.shape
    if N <= 256:
        tn, N_pad = N, N
    else:
        tn = 256
        N_pad = _round_up(N, tn)
        x = jnp.pad(x, ((0, N_pad - N), (0, 0)))
    H1, H2, DO = w1.shape[1], w2.shape[1], w3.shape[1]

    out = pl.pallas_call(
        _mlp_kernel,
        out_shape=jax.ShapeDtypeStruct((N_pad, DO), jnp.float32),
        grid=(N_pad // tn,),
        in_specs=[
            pl.BlockSpec((tn, K1), lambda i: (i, 0)),
            pl.BlockSpec((K1, H1), lambda i: (0, 0)),
            pl.BlockSpec((1, H1), lambda i: (0, 0)),
            pl.BlockSpec((H1, H2), lambda i: (0, 0)),
            pl.BlockSpec((1, H2), lambda i: (0, 0)),
            pl.BlockSpec((H2, DO), lambda i: (0, 0)),
            pl.BlockSpec((1, DO), lambda i: (0, 0)),
        ],
        out_specs=pl.BlockSpec((tn, DO), lambda i: (i, 0)),
        compiler_params=pltpu.CompilerParams(
            dimension_semantics=("parallel",),
            vmem_limit_bytes=_VMEM_LIMIT),
    )(x, w1, b1, w2, b2, w3, b3)
    return out[:N]


# ------------------------------ full forward ------------------------------- #

def net_forward(params, x_nchw):
    x = jnp.transpose(x_nchw, (0, 2, 3, 1)).astype(jnp.bfloat16)   # NCHW -> NHWC
    x = conv_relu_pool(x, params["conv1_w"], params["conv1_b"])    # (N,30,30,6)
    x = conv_relu_pool(x, params["conv2_w"], params["conv2_b"])    # (N,13,13,16)
    N, PH, PW, C = x.shape
    x = x.reshape(N, PH * PW * C)                                  # (h,w,c) order

    # PyTorch's x.view(-1, 16*13*13) flattens in (c,h,w) order; fold that
    # permutation into fc1's weight rows instead of transposing activations.
    w1 = params["fc1_w"].reshape(-1, C, PH, PW).transpose(2, 3, 1, 0)
    w1 = w1.reshape(PH * PW * C, -1)                               # (2704, 120)
    out_dim = params["fc3_w"].shape[0]

    out = mlp(
        x,
        _pad2(w1, w1.shape[0], LANE, jnp.bfloat16),
        _pad2(params["fc1_b"].reshape(1, -1), 1, LANE, jnp.float32),
        _pad2(params["fc2_w"].T, LANE, LANE, jnp.bfloat16),
        _pad2(params["fc2_b"].reshape(1, -1), 1, LANE, jnp.float32),
        _pad2(params["fc3_w"].T, LANE, LANE, jnp.bfloat16),
        _pad2(params["fc3_b"].reshape(1, -1), 1, LANE, jnp.float32),
    )
    return out[:, :out_dim]


# --------------------------- params & reference ---------------------------- #

def init_params(key):
    ks = jax.random.split(key, 10)

    def u(k, shape, fan_in):
        bound = 1.0 / math.sqrt(fan_in)
        return jax.random.uniform(k, shape, jnp.float32, -bound, bound)

    return {
        "conv1_w": u(ks[0], (6, 3, 5, 5), 3 * 25),
        "conv1_b": u(ks[1], (6,), 3 * 25),
        "conv2_w": u(ks[2], (16, 6, 5, 5), 6 * 25),
        "conv2_b": u(ks[3], (16,), 6 * 25),
        "fc1_w": u(ks[4], (120, 16 * 13 * 13), 16 * 13 * 13),
        "fc1_b": u(ks[5], (120,), 16 * 13 * 13),
        "fc2_w": u(ks[6], (84, 120), 120),
        "fc2_b": u(ks[7], (84,), 120),
        "fc3_w": u(ks[8], (5, 84), 84),
        "fc3_b": u(ks[9], (5,), 84),
    }


def net_forward_reference(params, x_nchw):
    """Pure-JAX f32 reference of the PyTorch forward pass (validation only)."""
    x = jnp.transpose(x_nchw, (0, 2, 3, 1))

    def conv_relu(x, w, b):
        w_hwio = jnp.transpose(w, (2, 3, 1, 0))
        y = lax.conv_general_dilated(
            x, w_hwio, window_strides=(1, 1), padding="VALID",
            dimension_numbers=("NHWC", "HWIO", "NHWC"))
        return jnp.maximum(y + b, 0.0)

    def pool(y):
        return lax.reduce_window(y, -jnp.inf, lax.max,
                                 (1, 2, 2, 1), (1, 2, 2, 1), "VALID")

    x = pool(conv_relu(x, params["conv1_w"], params["conv1_b"]))
    x = pool(conv_relu(x, params["conv2_w"], params["conv2_b"]))
    N = x.shape[0]
    x = jnp.transpose(x, (0, 3, 1, 2)).reshape(N, -1)
    x = jnp.maximum(x @ params["fc1_w"].T + params["fc1_b"], 0.0)
    x = jnp.maximum(x @ params["fc2_w"].T + params["fc2_b"], 0.0)
    return x @ params["fc3_w"].T + params["fc3_b"]


if __name__ == "__main__":
    key = jax.random.PRNGKey(0)
    pkey, xkey = jax.random.split(key)
    params = init_params(pkey)
    # Input spatial size 64 so the conv/pool stack yields 16*13*13 before fc1.
    x = jax.random.normal(xkey, (2, 3, 64, 64), jnp.float32)   # NCHW, like PyTorch

    fwd = jax.jit(net_forward)
    out = jax.block_until_ready(fwd(params, x))
    assert out.shape == (2, 5), out.shape

    ref = jax.block_until_ready(net_forward_reference(params, x))
    assert jnp.allclose(out, ref, rtol=2e-2, atol=2e-2), (out, ref)

    print("KERNEL_OK")
</pallas_src>

<mosaic_0001>
module attributes {stable_mosaic.version = 11 : i64} {
  func.func @_conv_pool_kernel(%arg0: i32, %arg1: memref<4x1024x75xbf16, #tpu.memory_space<vmem>>, %arg2: memref<75x128xbf16, #tpu.memory_space<vmem>>, %arg3: memref<1x128xf32, #tpu.memory_space<vmem>>, %arg4: memref<1024x128xbf16, #tpu.memory_space<vmem>>) attributes {dimension_semantics = [#tpu.dimension_semantics<parallel>], iteration_bounds = array<i64: 2>, scalar_prefetch = 0 : i64, scratch_operands = 0 : i64, tpu.core_type = #tpu.core_type<tc>, window_params = [{transform_indices = @transform_0, window_bounds = array<i64: 4, 1024, 75>}, {pipeline_mode = #tpu.pipeline_mode<synchronous>, transform_indices = @transform_1, window_bounds = array<i64: 75, 128>}, {pipeline_mode = #tpu.pipeline_mode<synchronous>, transform_indices = @transform_2, window_bounds = array<i64: 1, 128>}, {transform_indices = @transform_3, window_bounds = array<i64: 1024, 128>}]} {
    %c0 = arith.constant 0 : index
    %c0_0 = arith.constant 0 : index
    %0 = vector.load %arg2[%c0, %c0_0] : memref<75x128xbf16, #tpu.memory_space<vmem>>, vector<75x128xbf16>
    %c0_1 = arith.constant 0 : index
    %c0_2 = arith.constant 0 : index
    %c0_3 = arith.constant 0 : index
    %1 = vector.load %arg1[%c0_1, %c0_2, %c0_3] : memref<4x1024x75xbf16, #tpu.memory_space<vmem>>, vector<1x1024x75xbf16>
    %2 = vector.shape_cast %1 : vector<1x1024x75xbf16> to vector<1024x75xbf16>
    %cst = arith.constant dense<0.000000e+00> : vector<1024x128xf32>
    %3 = tpu.matmul %2, %0, %cst {dimension_numbers = #tpu.dot_dimension_numbers<[1], [0], [0], [1], [0, 0, 1, 1], [], []>} : vector<1024x75xbf16>, vector<75x128xbf16>, vector<1024x128xf32> -> vector<1024x128xf32>
    %c1 = arith.constant 1 : index
    %c0_4 = arith.constant 0 : index
    %c0_5 = arith.constant 0 : index
    %4 = vector.load %arg1[%c1, %c0_4, %c0_5] : memref<4x1024x75xbf16, #tpu.memory_space<vmem>>, vector<1x1024x75xbf16>
    %5 = vector.shape_cast %4 : vector<1x1024x75xbf16> to vector<1024x75xbf16>
    %cst_6 = arith.constant dense<0.000000e+00> : vector<1024x128xf32>
    %6 = tpu.matmul %5, %0, %cst_6 {dimension_numbers = #tpu.dot_dimension_numbers<[1], [0], [0], [1], [0, 0, 1, 1], [], []>} : vector<1024x75xbf16>, vector<75x128xbf16>, vector<1024x128xf32> -> vector<1024x128xf32>
    %c2 = arith.constant 2 : index
    %c0_7 = arith.constant 0 : index
    %c0_8 = arith.constant 0 : index
    %7 = vector.load %arg1[%c2, %c0_7, %c0_8] : memref<4x1024x75xbf16, #tpu.memory_space<vmem>>, vector<1x1024x75xbf16>
    %8 = vector.shape_cast %7 : vector<1x1024x75xbf16> to vector<1024x75xbf16>
    %cst_9 = arith.constant dense<0.000000e+00> : vector<1024x128xf32>
    %9 = tpu.matmul %8, %0, %cst_9 {dimension_numbers = #tpu.dot_dimension_numbers<[1], [0], [0], [1], [0, 0, 1, 1], [], []>} : vector<1024x75xbf16>, vector<75x128xbf16>, vector<1024x128xf32> -> vector<1024x128xf32>
    %c3 = arith.constant 3 : index
    %c0_10 = arith.constant 0 : index
    %c0_11 = arith.constant 0 : index
    %10 = vector.load %arg1[%c3, %c0_10, %c0_11] : memref<4x1024x75xbf16, #tpu.memory_space<vmem>>, vector<1x1024x75xbf16>
    %11 = vector.shape_cast %10 : vector<1x1024x75xbf16> to vector<1024x75xbf16>
    %cst_12 = arith.constant dense<0.000000e+00> : vector<1024x128xf32>
    %12 = tpu.matmul %11, %0, %cst_12 {dimension_numbers = #tpu.dot_dimension_numbers<[1], [0], [0], [1], [0, 0, 1, 1], [], []>} : vector<1024x75xbf16>, vector<75x128xbf16>, vector<1024x128xf32> -> vector<1024x128xf32>
    %13 = arith.maximumf %3, %6 : vector<1024x128xf32>
    %14 = arith.maximumf %9, %12 : vector<1024x128xf32>
    %15 = arith.maximumf %13, %14 : vector<1024x128xf32>
    %c0_13 = arith.constant 0 : index
    %c0_14 = arith.constant 0 : index
    %16 = vector.load %arg3[%c0_13, %c0_14] : memref<1x128xf32, #tpu.memory_space<vmem>>, vector<1x128xf32>
    %17 = vector.broadcast %16 : vector<1x128xf32> to vector<1024x128xf32>
    %18 = arith.addf %15, %17 : vector<1024x128xf32>
    %cst_15 = arith.constant 0.000000e+00 : f32
    %19 = vector.broadcast %cst_15 : f32 to vector<1024x128xf32>
    %20 = arith.maximumf %18, %19 : vector<1024x128xf32>
    %21 = arith.truncf %20 : vector<1024x128xf32> to vector<1024x128xbf16>
    %c0_16 = arith.constant 0 : index
    %c0_17 = arith.constant 0 : index
    %22 = vector.load %arg4[%c0_16, %c0_17] : memref<1024x128xbf16, #tpu.memory_space<vmem>>, vector<1024x128xbf16>
    tpu.vector_store %arg4[%c0_16, %c0_17], %21 {strides = array<i32>} : memref<1024x128xbf16, #tpu.memory_space<vmem>>, vector<1024x128xbf16>,
    return
  }
  func.func @transform_0(%arg0: i32) -> (i32, i32, i32) {
    %c0_i32 = arith.constant 0 : i32
    %c0_i32_0 = arith.constant 0 : i32
    %c0_i32_1 = arith.constant 0 : i32
    return %c0_i32, %arg0, %c0_i32_0 : i32, i32, i32
  }
  func.func @transform_1(%arg0: i32) -> (i32, i32) {
    %c0_i32 = arith.constant 0 : i32
    %c0_i32_0 = arith.constant 0 : i32
    %c0_i32_1 = arith.constant 0 : i32
    return %c0_i32, %c0_i32_0 : i32, i32
  }
  func.func @transform_2(%arg0: i32) -> (i32, i32) {
    %c0_i32 = arith.constant 0 : i32
    %c0_i32_0 = arith.constant 0 : i32
    %c0_i32_1 = arith.constant 0 : i32
    return %c0_i32, %c0_i32_0 : i32, i32
  }
  func.func @transform_3(%arg0: i32) -> (i32, i32) {
    %c0_i32 = arith.constant 0 : i32
    %c0_i32_0 = arith.constant 0 : i32
    return %arg0, %c0_i32 : i32, i32
  }
}

module attributes {stable_mosaic.version = 11 : i64} {
  func.func @_conv_pool_kernel(%arg0: i32, %arg1: memref<4x352x150xbf16, #tpu.memory_space<vmem>>, %arg2: memref<150x128xbf16, #tpu.memory_space<vmem>>, %arg3: memref<1x128xf32, #tpu.memory_space<vmem>>, %arg4: memref<352x128xbf16, #tpu.memory_space<vmem>>) attributes {dimension_semantics = [#tpu.dimension_semantics<parallel>], iteration_bounds = array<i64: 1>, scalar_prefetch = 0 : i64, scratch_operands = 0 : i64, tpu.core_type = #tpu.core_type<tc>, window_params = [{transform_indices = @transform_0, window_bounds = array<i64: 4, 352, 150>}, {pipeline_mode = #tpu.pipeline_mode<synchronous>, transform_indices = @transform_1, window_bounds = array<i64: 150, 128>}, {pipeline_mode = #tpu.pipeline_mode<synchronous>, transform_indices = @transform_2, window_bounds = array<i64: 1, 128>}, {transform_indices = @transform_3, window_bounds = array<i64: 352, 128>}]} {
    %c0 = arith.constant 0 : index
    %c0_0 = arith.constant 0 : index
    %0 = vector.load %arg2[%c0, %c0_0] : memref<150x128xbf16, #tpu.memory_space<vmem>>, vector<150x128xbf16>
    %c0_1 = arith.constant 0 : index
    %c0_2 = arith.constant 0 : index
    %c0_3 = arith.constant 0 : index
    %1 = vector.load %arg1[%c0_1, %c0_2, %c0_3] : memref<4x352x150xbf16, #tpu.memory_space<vmem>>, vector<1x352x150xbf16>
    %2 = vector.shape_cast %1 : vector<1x352x150xbf16> to vector<352x150xbf16>
    %cst = arith.constant dense<0.000000e+00> : vector<352x128xf32>
    %3 = tpu.matmul %2, %0, %cst {dimension_numbers = #tpu.dot_dimension_numbers<[1], [0], [0], [1], [0, 0, 1, 1], [], []>} : vector<352x150xbf16>, vector<150x128xbf16>, vector<352x128xf32> -> vector<352x128xf32>
    %c1 = arith.constant 1 : index
    %c0_4 = arith.constant 0 : index
    %c0_5 = arith.constant 0 : index
    %4 = vector.load %arg1[%c1, %c0_4, %c0_5] : memref<4x352x150xbf16, #tpu.memory_space<vmem>>, vector<1x352x150xbf16>
    %5 = vector.shape_cast %4 : vector<1x352x150xbf16> to vector<352x150xbf16>
    %cst_6 = arith.constant dense<0.000000e+00> : vector<352x128xf32>
    %6 = tpu.matmul %5, %0, %cst_6 {dimension_numbers = #tpu.dot_dimension_numbers<[1], [0], [0], [1], [0, 0, 1, 1], [], []>} : vector<352x150xbf16>, vector<150x128xbf16>, vector<352x128xf32> -> vector<352x128xf32>
    %c2 = arith.constant 2 : index
    %c0_7 = arith.constant 0 : index
    %c0_8 = arith.constant 0 : index
    %7 = vector.load %arg1[%c2, %c0_7, %c0_8] : memref<4x352x150xbf16, #tpu.memory_space<vmem>>, vector<1x352x150xbf16>
    %8 = vector.shape_cast %7 : vector<1x352x150xbf16> to vector<352x150xbf16>
    %cst_9 = arith.constant dense<0.000000e+00> : vector<352x128xf32>
    %9 = tpu.matmul %8, %0, %cst_9 {dimension_numbers = #tpu.dot_dimension_numbers<[1], [0], [0], [1], [0, 0, 1, 1], [], []>} : vector<352x150xbf16>, vector<150x128xbf16>, vector<352x128xf32> -> vector<352x128xf32>
    %c3 = arith.constant 3 : index
    %c0_10 = arith.constant 0 : index
    %c0_11 = arith.constant 0 : index
    %10 = vector.load %arg1[%c3, %c0_10, %c0_11] : memref<4x352x150xbf16, #tpu.memory_space<vmem>>, vector<1x352x150xbf16>
    %11 = vector.shape_cast %10 : vector<1x352x150xbf16> to vector<352x150xbf16>
    %cst_12 = arith.constant dense<0.000000e+00> : vector<352x128xf32>
    %12 = tpu.matmul %11, %0, %cst_12 {dimension_numbers = #tpu.dot_dimension_numbers<[1], [0], [0], [1], [0, 0, 1, 1], [], []>} : vector<352x150xbf16>, vector<150x128xbf16>, vector<352x128xf32> -> vector<352x128xf32>
    %13 = arith.maximumf %3, %6 : vector<352x128xf32>
    %14 = arith.maximumf %9, %12 : vector<352x128xf32>
    %15 = arith.maximumf %13, %14 : vector<352x128xf32>
    %c0_13 = arith.constant 0 : index
    %c0_14 = arith.constant 0 : index
    %16 = vector.load %arg3[%c0_13, %c0_14] : memref<1x128xf32, #tpu.memory_space<vmem>>, vector<1x128xf32>
    %17 = vector.broadcast %16 : vector<1x128xf32> to vector<352x128xf32>
    %18 = arith.addf %15, %17 : vector<352x128xf32>
    %cst_15 = arith.constant 0.000000e+00 : f32
    %19 = vector.broadcast %cst_15 : f32 to vector<352x128xf32>
    %20 = arith.maximumf %18, %19 : vector<352x128xf32>
    %21 = arith.truncf %20 : vector<352x128xf32> to vector<352x128xbf16>
    %c0_16 = arith.constant 0 : index
    %c0_17 = arith.constant 0 : index
    %22 = vector.load %arg4[%c0_16, %c0_17] : memref<352x128xbf16, #tpu.memory_space<vmem>>, vector<352x128xbf16>
    tpu.vector_store %arg4[%c0_16, %c0_17], %21 {strides = array<i32>} : memref<352x128xbf16, #tpu.memory_space<vmem>>, vector<352x128xbf16>,
    return
  }
  func.func @transform_0(%arg0: i32) -> (i32, i32, i32) {
    %c0_i32 = arith.constant 0 : i32
    %c0_i32_0 = arith.constant 0 : i32
    %c0_i32_1 = arith.constant 0 : i32
    return %c0_i32, %arg0, %c0_i32_0 : i32, i32, i32
  }
  func.func @transform_1(%arg0: i32) -> (i32, i32) {
    %c0_i32 = arith.constant 0 : i32
    %c0_i32_0 = arith.constant 0 : i32
    %c0_i32_1 = arith.constant 0 : i32
    return %c0_i32, %c0_i32_0 : i32, i32
  }
  func.func @transform_2(%arg0: i32) -> (i32, i32) {
    %c0_i32 = arith.constant 0 : i32
    %c0_i32_0 = arith.constant 0 : i32
    %c0_i32_1 = arith.constant 0 : i32
    return %c0_i32, %c0_i32_0 : i32, i32
  }
  func.func @transform_3(%arg0: i32) -> (i32, i32) {
    %c0_i32 = arith.constant 0 : i32
    %c0_i32_0 = arith.constant 0 : i32
    return %arg0, %c0_i32 : i32, i32
  }
}

module attributes {stable_mosaic.version = 11 : i64} {
  func.func @_mlp_kernel(%arg0: i32, %arg1: memref<2x2704xbf16, #tpu.memory_space<vmem>>, %arg2: memref<2704x128xbf16, #tpu.memory_space<vmem>>, %arg3: memref<1x128xf32, #tpu.memory_space<vmem>>, %arg4: memref<128x128xbf16, #tpu.memory_space<vmem>>, %arg5: memref<1x128xf32, #tpu.memory_space<vmem>>, %arg6: memref<128x128xbf16, #tpu.memory_space<vmem>>, %arg7: memref<1x128xf32, #tpu.memory_space<vmem>>, %arg8: memref<2x128xf32, #tpu.memory_space<vmem>>) attributes {dimension_semantics = [#tpu.dimension_semantics<parallel>], iteration_bounds = array<i64: 1>, scalar_prefetch = 0 : i64, scratch_operands = 0 : i64, tpu.core_type = #tpu.core_type<tc>, window_params = [{transform_indices = @transform_0, window_bounds = array<i64: 2, 2704>}, {pipeline_mode = #tpu.pipeline_mode<synchronous>, transform_indices = @transform_1, window_bounds = array<i64: 2704, 128>}, {pipeline_mode = #tpu.pipeline_mode<synchronous>, transform_indices = @transform_2, window_bounds = array<i64: 1, 128>}, {pipeline_mode = #tpu.pipeline_mode<synchronous>, transform_indices = @transform_3, window_bounds = array<i64: 128, 128>}, {pipeline_mode = #tpu.pipeline_mode<synchronous>, transform_indices = @transform_4, window_bounds = array<i64: 1, 128>}, {pipeline_mode = #tpu.pipeline_mode<synchronous>, transform_indices = @transform_5, window_bounds = array<i64: 128, 128>}, {pipeline_mode = #tpu.pipeline_mode<synchronous>, transform_indices = @transform_6, window_bounds = array<i64: 1, 128>}, {transform_indices = @transform_7, window_bounds = array<i64: 2, 128>}]} {
    %c0 = arith.constant 0 : index
    %c0_0 = arith.constant 0 : index
    %0 = vector.load %arg1[%c0, %c0_0] : memref<2x2704xbf16, #tpu.memory_space<vmem>>, vector<2x2704xbf16>
    %c0_1 = arith.constant 0 : index
    %c0_2 = arith.constant 0 : index
    %1 = vector.load %arg2[%c0_1, %c0_2] : memref<2704x128xbf16, #tpu.memory_space<vmem>>, vector<2704x128xbf16>
    %cst = arith.constant dense<0.000000e+00> : vector<2x128xf32>
    %2 = tpu.matmul %0, %1, %cst {dimension_numbers = #tpu.dot_dimension_numbers<[1], [0], [0], [1], [0, 0, 1, 1], [], []>} : vector<2x2704xbf16>, vector<2704x128xbf16>, vector<2x128xf32> -> vector<2x128xf32>
    %c0_3 = arith.constant 0 : index
    %c0_4 = arith.constant 0 : index
    %3 = vector.load %arg3[%c0_3, %c0_4] : memref<1x128xf32, #tpu.memory_space<vmem>>, vector<1x128xf32>
    %4 = vector.broadcast %3 : vector<1x128xf32> to vector<2x128xf32>
    %5 = arith.addf %2, %4 : vector<2x128xf32>
    %cst_5 = arith.constant 0.000000e+00 : f32
    %6 = vector.broadcast %cst_5 : f32 to vector<2x128xf32>
    %7 = arith.maximumf %5, %6 : vector<2x128xf32>
    %8 = arith.truncf %7 : vector<2x128xf32> to vector<2x128xbf16>
    %c0_6 = arith.constant 0 : index
    %c0_7 = arith.constant 0 : index
    %9 = vector.load %arg4[%c0_6, %c0_7] : memref<128x128xbf16, #tpu.memory_space<vmem>>, vector<128x128xbf16>
    %cst_8 = arith.constant dense<0.000000e+00> : vector<2x128xf32>
    %10 = tpu.matmul %8, %9, %cst_8 {dimension_numbers = #tpu.dot_dimension_numbers<[1], [0], [0], [1], [0, 0, 1, 1], [], []>} : vector<2x128xbf16>, vector<128x128xbf16>, vector<2x128xf32> -> vector<2x128xf32>
    %c0_9 = arith.constant 0 : index
    %c0_10 = arith.constant 0 : index
    %11 = vector.load %arg5[%c0_9, %c0_10] : memref<1x128xf32, #tpu.memory_space<vmem>>, vector<1x128xf32>
    %12 = vector.broadcast %11 : vector<1x128xf32> to vector<2x128xf32>
    %13 = arith.addf %10, %12 : vector<2x128xf32>
    %cst_11 = arith.constant 0.000000e+00 : f32
    %14 = vector.broadcast %cst_11 : f32 to vector<2x128xf32>
    %15 = arith.maximumf %13, %14 : vector<2x128xf32>
    %16 = arith.truncf %15 : vector<2x128xf32> to vector<2x128xbf16>
    %c0_12 = arith.constant 0 : index
    %c0_13 = arith.constant 0 : index
    %17 = vector.load %arg6[%c0_12, %c0_13] : memref<128x128xbf16, #tpu.memory_space<vmem>>, vector<128x128xbf16>
    %cst_14 = arith.constant dense<0.000000e+00> : vector<2x128xf32>
    %18 = tpu.matmul %16, %17, %cst_14 {dimension_numbers = #tpu.dot_dimension_numbers<[1], [0], [0], [1], [0, 0, 1, 1], [], []>} : vector<2x128xbf16>, vector<128x128xbf16>, vector<2x128xf32> -> vector<2x128xf32>
    %c0_15 = arith.constant 0 : index
    %c0_16 = arith.constant 0 : index
    %19 = vector.load %arg7[%c0_15, %c0_16] : memref<1x128xf32, #tpu.memory_space<vmem>>, vector<1x128xf32>
    %20 = vector.broadcast %19 : vector<1x128xf32> to vector<2x128xf32>
    %21 = arith.addf %18, %20 : vector<2x128xf32>
    %c0_17 = arith.constant 0 : index
    %c0_18 = arith.constant 0 : index
    %22 = vector.load %arg8[%c0_17, %c0_18] : memref<2x128xf32, #tpu.memory_space<vmem>>, vector<2x128xf32>
    tpu.vector_store %arg8[%c0_17, %c0_18], %21 {strides = array<i32>} : memref<2x128xf32, #tpu.memory_space<vmem>>, vector<2x128xf32>,
    return
  }
  func.func @transform_0(%arg0: i32) -> (i32, i32) {
    %c0_i32 = arith.constant 0 : i32
    %c0_i32_0 = arith.constant 0 : i32
    return %arg0, %c0_i32 : i32, i32
  }
  func.func @transform_1(%arg0: i32) -> (i32, i32) {
    %c0_i32 = arith.constant 0 : i32
    %c0_i32_0 = arith.constant 0 : i32
    %c0_i32_1 = arith.constant 0 : i32
    return %c0_i32, %c0_i32_0 : i32, i32
  }
  func.func @transform_2(%arg0: i32) -> (i32, i32) {
    %c0_i32 = arith.constant 0 : i32
    %c0_i32_0 = arith.constant 0 : i32
    %c0_i32_1 = arith.constant 0 : i32
    return %c0_i32, %c0_i32_0 : i32, i32
  }
  func.func @transform_3(%arg0: i32) -> (i32, i32) {
    %c0_i32 = arith.constant 0 : i32
    %c0_i32_0 = arith.constant 0 : i32
    %c0_i32_1 = arith.constant 0 : i32
    return %c0_i32, %c0_i32_0 : i32, i32
  }
  func.func @transform_4(%arg0: i32) -> (i32, i32) {
    %c0_i32 = arith.constant 0 : i32
    %c0_i32_0 = arith.constant 0 : i32
    %c0_i32_1 = arith.constant 0 : i32
    return %c0_i32, %c0_i32_0 : i32, i32
  }
  func.func @transform_5(%arg0: i32) -> (i32, i32) {
    %c0_i32 = arith.constant 0 : i32
    %c0_i32_0 = arith.constant 0 : i32
    %c0_i32_1 = arith.constant 0 : i32
    return %c0_i32, %c0_i32_0 : i32, i32
  }
  func.func @transform_6(%arg0: i32) -> (i32, i32) {
    %c0_i32 = arith.constant 0 : i32
    %c0_i32_0 = arith.constant 0 : i32
    %c0_i32_1 = arith.constant 0 : i32
    return %c0_i32, %c0_i32_0 : i32, i32
  }
  func.func @transform_7(%arg0: i32) -> (i32, i32) {
    %c0_i32 = arith.constant 0 : i32
    %c0_i32_0 = arith.constant 0 : i32
    return %arg0, %c0_i32 : i32, i32
  }
}

</mosaic_0001>

<bundles_post_ra>
// kernel: net_forward.3
= control target key start
LH: loop header
LB: loop body
LE: loop exit
PB: predicated region body
PF: predicated region fallthrough
CT: control target
= control target key end

     0   :  { %s11648_s12 = smov 0   ;;  %s11650_s13 = smov 0   ;;  %s12962_s0 = inlined_call_operand.vmem [shape: bf16[4,2048,75], index: 0, kind: input, shape index: {}]   ;;  %s12963_s1 = inlined_call_operand.vmem [shape: bf16[75,128], index: 1, kind: input, shape index: {}]   ;;  %s12964_s2 = inlined_call_operand.vmem [shape: f32[1,128], index: 2, kind: input, shape index: {}]   ;;  %s12965_s3 = inlined_call_operand.vmem [shape: bf16[2048,128], index: 3, kind: output, shape index: {}]  }
   0x1   :  { %s11652_s14 = smov 0  }
   0x2 LB: > { %s9232_s15 = sadd.s32 4294967295, %s11625_s14   ;;  %s11665_s16 = sadd.s32 1, %s11625_s14   ;;  %s11625_s14 = sphi %s11652_s14, %s12968_s14   ;;  %s11621_s13 = sphi %s11650_s13, %s12967_s13   ;;  %s11617_s12 = sphi %s11648_s12, %s12966_s12  }
   0x3   : > { %s17_s17 = ssub.s32 %s11625_s14, %s11665_s16  ;;  %s20_s18 = sadd.s32 1, %s11621_s13 }
   0x4   : > { %p18_p0 = scmp.eq.s32.totalorder %s17_s17, 0  ;;  %p27_p1 = scmp.ne.s32.totalorder %s11621_s13, %s11617_s12 }
   0x5   : > { %p28_p2 = scmp.eq.s32.totalorder %s11625_s14, 0  ;;  %p9235_p4 = scmp.ge.s32.totalorder %s11625_s14, 2 }
   0x6   : > { %s11674_s19 = scalar_select %p18_p0, %s11621_s13, %s20_s18  }
   0x7   : > { %p29_p3 = por %p28_p2, %p27_p1  ;;  %127 = sbr.rel (%p9235_p4) target bundleno = 272 (0x110), region = 24 }
   0xc   : > { %130 = sbr.rel (!%p29_p3) target bundleno = 272 (0x110), region = 28  ;;  %s132_s20 = sand.u32 (%p29_p3), 1, %s11621_s13  }
   0xd   : > { %s10929_s21 = sshll.u32 (%p29_p3), %s11625_s14, 9  ;;  %s9236_s22 = sshll.u32 (%p29_p3), %s132_s20, 11 }
   0xe   : > { %s11682_s25 = scalar_lea.vmem (%p29_p3), %s12962_s0, %s10929_s21  ;;  %s11687_s26 = scalar_lea.vmem (%p29_p3), [#allocation2], %s9236_s22 }
   0xf   : > { %v154_v0 = vld [vmem:[%s11682_s25] sm:$0xff] (%p29_p3)   ;;  %v158_v1 = vld [vmem:[%s11682_s25 + $0x8] sm:$0xff] (%p29_p3)   ;;  %v162_v2 = vld [vmem:[%s11682_s25 + $0x10] sm:$0xff] (%p29_p3)  }
  0x10   : > { %155 = vst [vmem:[%s11687_s26] sm:$0xff] (%p29_p3), %v154_v0   ;;  %v166_v3 = vld [vmem:[%s11682_s25 + $0x18] sm:$0xff] (%p29_p3)   ;;  %v170_v4 = vld [vmem:[%s11682_s25 + $0x20] sm:$0xff] (%p29_p3)   ;;  %v174_v5 = vld [vmem:[%s11682_s25 + $0x28] sm:$0xff] (%p29_p3)  }
  0x11   : > { %159 = vst [vmem:[%s11687_s26 + $0x8] sm:$0xff] %v158_v1   ;;  %v178_v6 = vld [vmem:[%s11682_s25 + $0x30] sm:$0xff]   ;;  %v182_v7 = vld [vmem:[%s11682_s25 + $0x38] sm:$0xff]   ;;  %v186_v8 = vld [vmem:[%s11682_s25 + $0x40] sm:$0xff]  }
  0x12   : > { %163 = vst [vmem:[%s11687_s26 + $0x10] sm:$0xff] %v162_v2   ;;  %v190_v9 = vld [vmem:[%s11682_s25 + $0x48] sm:$0xff]   ;;  %v194_v10 = vld [vmem:[%s11682_s25 + $0x50] sm:$0xff]   ;;  %v198_v11 = vld [vmem:[%s11682_s25 + $0x58] sm:$0xff]  }
  0x13   : > { %167 = vst [vmem:[%s11687_s26 + $0x18] sm:$0xff] %v166_v3   ;;  %v202_v12 = vld [vmem:[%s11682_s25 + $0x60] sm:$0xff]   ;;  %v206_v13 = vld [vmem:[%s11682_s25 + $0x68] sm:$0xff]   ;;  %v210_v14 = vld [vmem:[%s11682_s25 + $0x70] sm:$0xff]  }
  0x14   : > { %171 = vst [vmem:[%s11687_s26 + $0x20] sm:$0xff] %v170_v4   ;;  %v214_v15 = vld [vmem:[%s11682_s25 + $0x78] sm:$0xff]   ;;  %v218_v16 = vld [vmem:[%s11682_s25 + $0x80] sm:$0xff]   ;;  %v222_v17 = vld [vmem:[%s11682_s25 + $0x88] sm:$0xff]  }
  0x15   : > { %175 = vst [vmem:[%s11687_s26 + $0x28] sm:$0xff] %v174_v5   ;;  %v226_v18 = vld [vmem:[%s11682_s25 + $0x90] sm:$0xff]   ;;  %v230_v19 = vld [vmem:[%s11682_s25 + $0x98] sm:$0xff]   ;;  %v234_v20 = vld [vmem:[%s11682_s25 + $0xa0] sm:$0xff]  }
  0x16   : > { %179 = vst [vmem:[%s11687_s26 + $0x30] sm:$0xff] %v178_v6   ;;  %v238_v21 = vld [vmem:[%s11682_s25 + $0xa8] sm:$0xff]   ;;  %v242_v22 = vld [vmem:[%s11682_s25 + $0xb0] sm:$0xff]   ;;  %v246_v23 = vld [vmem:[%s11682_s25 + $0xb8] sm:$0xff]  }
  0x17   : > { %183 = vst [vmem:[%s11687_s26 + $0x38] sm:$0xff] %v182_v7   ;;  %v250_v24 = vld [vmem:[%s11682_s25 + $0xc0] sm:$0xff]   ;;  %v254_v25 = vld [vmem:[%s11682_s25 + $0xc8] sm:$0xff]   ;;  %v258_v26 = vld [vmem:[%s11682_s25 + $0xd0] sm:$0xff]  }
  0x18   : > { %187 = vst [vmem:[%s11687_s26 + $0x40] sm:$0xff] %v186_v8   ;;  %v262_v27 = vld [vmem:[%s11682_s25 + $0xd8] sm:$0xff]   ;;  %v266_v28 = vld [vmem:[%s11682_s25 + $0xe0] sm:$0xff]   ;;  %v270_v29 = vld [vmem:[%s11682_s25 + $0xe8] sm:$0xff]  }
  0x19   : > { %191 = vst [vmem:[%s11687_s26 + $0x48] sm:$0xff] %v190_v9   ;;  %v274_v30 = vld [vmem:[%s11682_s25 + $0xf0] sm:$0xff]   ;;  %v278_v31 = vld [vmem:[%s11682_s25 + $0xf8] sm:$0xff]   ;;  %v282_v32 = vld [vmem:[%s11682_s25 + $0x100] sm:$0xff]  }
  0x1a   : > { %195 = vst [vmem:[%s11687_s26 + $0x50] sm:$0xff] %v194_v10   ;;  %v286_v33 = vld [vmem:[%s11682_s25 + $0x108] sm:$0xff]   ;;  %v290_v34 = vld [vmem:[%s11682_s25 + $0x110] sm:$0xff]   ;;  %v294_v35 = vld [vmem:[%s11682_s25 + $0x118] sm:$0xff]  }
  0x1b   : > { %199 = vst [vmem:[%s11687_s26 + $0x58] sm:$0xff] %v198_v11   ;;  %v298_v36 = vld [vmem:[%s11682_s25 + $0x120] sm:$0xff]   ;;  %v302_v37 = vld [vmem:[%s11682_s25 + $0x128] sm:$0xff]   ;;  %v306_v38 = vld [vmem:[%s11682_s25 + $0x130] sm:$0xff]  }
  0x1c   : > { %203 = vst [vmem:[%s11687_s26 + $0x60] sm:$0xff] %v202_v12   ;;  %v310_v39 = vld [vmem:[%s11682_s25 + $0x138] sm:$0xff]   ;;  %v314_v40 = vld [vmem:[%s11682_s25 + $0x140] sm:$0xff]   ;;  %v318_v41 = vld [vmem:[%s11682_s25 + $0x148] sm:$0xff]  }
  0x1d   : > { %207 = vst [vmem:[%s11687_s26 + $0x68] sm:$0xff] %v206_v13   ;;  %v322_v42 = vld [vmem:[%s11682_s25 + $0x150] sm:$0xff]   ;;  %v326_v43 = vld [vmem:[%s11682_s25 + $0x158] sm:$0xff]   ;;  %v330_v44 = vld [vmem:[%s11682_s25 + $0x160] sm:$0xff]  }
  0x1e   : > { %211 = vst [vmem:[%s11687_s26 + $0x70] sm:$0xff] %v210_v14   ;;  %v334_v45 = vld [vmem:[%s11682_s25 + $0x168] sm:$0xff]   ;;  %v338_v46 = vld [vmem:[%s11682_s25 + $0x170] sm:$0xff]   ;;  %v342_v47 = vld [vmem:[%s11682_s25 + $0x178] sm:$0xff]  }
  0x1f   : > { %215 = vst [vmem:[%s11687_s26 + $0x78] sm:$0xff] %v214_v15   ;;  %v346_v48 = vld [vmem:[%s11682_s25 + $0x180] sm:$0xff]   ;;  %v350_v49 = vld [vmem:[%s11682_s25 + $0x188] sm:$0xff]   ;;  %v354_v50 = vld [vmem:[%s11682_s25 + $0x190] sm:$0xff]  }
  0x20   : > { %219 = vst [vmem:[%s11687_s26 + $0x80] sm:$0xff] %v218_v16   ;;  %v358_v51 = vld [vmem:[%s11682_s25 + $0x198] sm:$0xff]   ;;  %v362_v52 = vld [vmem:[%s11682_s25 + $0x1a0] sm:$0xff]   ;;  %v366_v53 = vld [vmem:[%s11682_s25 + $0x1a8] sm:$0xff]  }
  0x21   : > { %223 = vst [vmem:[%s11687_s26 + $0x88] sm:$0xff] %v222_v17   ;;  %v370_v54 = vld [vmem:[%s11682_s25 + $0x1b0] sm:$0xff]   ;;  %v374_v55 = vld [vmem:[%s11682_s25 + $0x1b8] sm:$0xff]   ;;  %v378_v56 = vld [vmem:[%s11682_s25 + $0x1c0] sm:$0xff]  }
  0x22   : > { %227 = vst [vmem:[%s11687_s26 + $0x90] sm:$0xff] %v226_v18   ;;  %v382_v57 = vld [vmem:[%s11682_s25 + $0x1c8] sm:$0xff]   ;;  %v386_v58 = vld [vmem:[%s11682_s25 + $0x1d0] sm:$0xff]   ;;  %v390_v59 = vld [vmem:[%s11682_s25 + $0x1d8] sm:$0xff]  }
  0x23   : > { %231 = vst [vmem:[%s11687_s26 + $0x98] sm:$0xff] %v230_v19   ;;  %v394_v60 = vld [vmem:[%s11682_s25 + $0x1e0] sm:$0xff]   ;;  %v398_v61 = vld [vmem:[%s11682_s25 + $0x1e8] sm:$0xff]   ;;  %v402_v62 = vld [vmem:[%s11682_s25 + $0x1f0] sm:$0xff]  }
  0x24   : > { %235 = vst [vmem:[%s11687_s26 + $0xa0] sm:$0xff] %v234_v20   ;;  %v406_v63 = vld [vmem:[%s11682_s25 + $0x1f8] sm:$0xff]   ;;  %v410_v0 = vld [vmem:[%s11682_s25 + $0x400] sm:$0xff]   ;;  %v414_v1 = vld [vmem:[%s11682_s25 + $0x408] sm:$0xff]  }
  0x25   : > { %239 = vst [vmem:[%s11687_s26 + $0xa8] sm:$0xff] %v238_v21   ;;  %v418_v2 = vld [vmem:[%s11682_s25 + $0x410] sm:$0xff]   ;;  %v422_v3 = vld [vmem:[%s11682_s25 + $0x418] sm:$0xff]   ;;  %v426_v4 = vld [vmem:[%s11682_s25 + $0x420] sm:$0xff]  }
  0x26   : > { %243 = vst [vmem:[%s11687_s26 + $0xb0] sm:$0xff] %v242_v22   ;;  %v430_v5 = vld [vmem:[%s11682_s25 + $0x428] sm:$0xff]   ;;  %v434_v6 = vld [vmem:[%s11682_s25 + $0x430] sm:$0xff]   ;;  %v438_v7 = vld [vmem:[%s11682_s25 + $0x438] sm:$0xff]  }
  0x27   : > { %247 = vst [vmem:[%s11687_s26 + $0xb8] sm:$0xff] %v246_v23   ;;  %v442_v8 = vld [vmem:[%s11682_s25 + $0x440] sm:$0xff]   ;;  %v446_v9 = vld [vmem:[%s11682_s25 + $0x448] sm:$0xff]   ;;  %v450_v10 = vld [vmem:[%s11682_s25 + $0x450] sm:$0xff]  }
  0x28   : > { %251 = vst [vmem:[%s11687_s26 + $0xc0] sm:$0xff] %v250_v24   ;;  %v454_v11 = vld [vmem:[%s11682_s25 + $0x458] sm:$0xff]   ;;  %v458_v12 = vld [vmem:[%s11682_s25 + $0x460] sm:$0xff]   ;;  %v462_v13 = vld [vmem:[%s11682_s25 + $0x468] sm:$0xff]  }
  0x29   : > { %255 = vst [vmem:[%s11687_s26 + $0xc8] sm:$0xff] %v254_v25   ;;  %v466_v14 = vld [vmem:[%s11682_s25 + $0x470] sm:$0xff]   ;;  %v470_v15 = vld [vmem:[%s11682_s25 + $0x478] sm:$0xff]   ;;  %v474_v16 = vld [vmem:[%s11682_s25 + $0x480] sm:$0xff]  }
  0x2a   : > { %259 = vst [vmem:[%s11687_s26 + $0xd0] sm:$0xff] %v258_v26   ;;  %v478_v17 = vld [vmem:[%s11682_s25 + $0x488] sm:$0xff]   ;;  %v482_v18 = vld [vmem:[%s11682_s25 + $0x490] sm:$0xff]   ;;  %v486_v19 = vld [vmem:[%s11682_s25 + $0x498] sm:$0xff]  }
  0x2b   : > { %263 = vst [vmem:[%s11687_s26 + $0xd8] sm:$0xff] %v262_v27   ;;  %v490_v20 = vld [vmem:[%s11682_s25 + $0x4a0] sm:$0xff]   ;;  %v494_v21 = vld [vmem:[%s11682_s25 + $0x4a8] sm:$0xff]   ;;  %v498_v22 = vld [vmem:[%s11682_s25 + $0x4b0] sm:$0xff]  }
  0x2c   : > { %267 = vst [vmem:[%s11687_s26 + $0xe0] sm:$0xff] %v266_v28   ;;  %v502_v23 = vld [vmem:[%s11682_s25 + $0x4b8] sm:$0xff]   ;;  %v506_v24 = vld [vmem:[%s11682_s25 + $0x4c0] sm:$0xff]   ;;  %v510_v25 = vld [vmem:[%s11682_s25 + $0x4c8] sm:$0xff]  }
  0x2d   : > { %271 = vst [vmem:[%s11687_s26 + $0xe8] sm:$0xff] %v270_v29   ;;  %v514_v26 = vld [vmem:[%s11682_s25 + $0x4d0] sm:$0xff]   ;;  %v518_v27 = vld [vmem:[%s11682_s25 + $0x4d8] sm:$0xff]   ;;  %v522_v28 = vld [vmem:[%s11682_s25 + $0x4e0] sm:$0xff]  }
  0x2e   : > { %275 = vst [vmem:[%s11687_s26 + $0xf0] sm:$0xff] %v274_v30   ;;  %v526_v29 = vld [vmem:[%s11682_s25 + $0x4e8] sm:$0xff]   ;;  %v530_v30 = vld [vmem:[%s11682_s25 + $0x4f0] sm:$0xff]  }
  0x2f   : > { %279 = vst [vmem:[%s11687_s26 + $0xf8] sm:$0xff] %v278_v31   ;;  %v534_v31 = vld [vmem:[%s11682_s25 + $0x4f8] sm:$0xff]  }
  0x30   : > { %283 = vst [vmem:[%s11687_s26 + $0x100] sm:$0xff] %v282_v32   ;;  %v538_v32 = vld [vmem:[%s11682_s25 + $0x500] sm:$0xff]  }
  0x31   : > { %287 = vst [vmem:[%s11687_s26 + $0x108] sm:$0xff] %v286_v33   ;;  %v542_v33 = vld [vmem:[%s11682_s25 + $0x508] sm:$0xff]  }
  0x32   : > { %291 = vst [vmem:[%s11687_s26 + $0x110] sm:$0xff] %v290_v34   ;;  %v546_v34 = vld [vmem:[%s11682_s25 + $0x510] sm:$0xff]  }
  0x33   : > { %295 = vst [vmem:[%s11687_s26 + $0x118] sm:$0xff] %v294_v35   ;;  %v550_v35 = vld [vmem:[%s11682_s25 + $0x518] sm:$0xff]  }
  0x34   : > { %299 = vst [vmem:[%s11687_s26 + $0x120] sm:$0xff] %v298_v36   ;;  %v554_v36 = vld [vmem:[%s11682_s25 + $0x520] sm:$0xff]  }
  0x35   : > { %303 = vst [vmem:[%s11687_s26 + $0x128] sm:$0xff] %v302_v37   ;;  %v558_v37 = vld [vmem:[%s11682_s25 + $0x528] sm:$0xff]  }
  0x36   : > { %307 = vst [vmem:[%s11687_s26 + $0x130] sm:$0xff] %v306_v38   ;;  %v562_v38 = vld [vmem:[%s11682_s25 + $0x530] sm:$0xff]  }
  0x37   : > { %311 = vst [vmem:[%s11687_s26 + $0x138] sm:$0xff] %v310_v39   ;;  %v566_v39 = vld [vmem:[%s11682_s25 + $0x538] sm:$0xff]  }
  0x38   : > { %315 = vst [vmem:[%s11687_s26 + $0x140] sm:$0xff] %v314_v40   ;;  %v570_v40 = vld [vmem:[%s11682_s25 + $0x540] sm:$0xff]  }
  0x39   : > { %319 = vst [vmem:[%s11687_s26 + $0x148] sm:$0xff] %v318_v41   ;;  %v574_v41 = vld [vmem:[%s11682_s25 + $0x548] sm:$0xff]  }
  0x3a   : > { %323 = vst [vmem:[%s11687_s26 + $0x150] sm:$0xff] %v322_v42   ;;  %v578_v42 = vld [vmem:[%s11682_s25 + $0x550] sm:$0xff]  }
  0x3b   : > { %327 = vst [vmem:[%s11687_s26 + $0x158] sm:$0xff] %v326_v43   ;;  %v582_v43 = vld [vmem:[%s11682_s25 + $0x558] sm:$0xff]  }
  0x3c   : > { %331 = vst [vmem:[%s11687_s26 + $0x160] sm:$0xff] %v330_v44   ;;  %v586_v44 = vld [vmem:[%s11682_s25 + $0x560] sm:$0xff]  }
  0x3d   : > { %335 = vst [vmem:[%s11687_s26 + $0x168] sm:$0xff] %v334_v45   ;;  %v590_v45 = vld [vmem:[%s11682_s25 + $0x568] sm:$0xff]  }
  0x3e   : > { %339 = vst [vmem:[%s11687_s26 + $0x170] sm:$0xff] %v338_v46   ;;  %v594_v46 = vld [vmem:[%s11682_s25 + $0x570] sm:$0xff]  }
  0x3f   : > { %343 = vst [vmem:[%s11687_s26 + $0x178] sm:$0xff] %v342_v47   ;;  %v598_v47 = vld [vmem:[%s11682_s25 + $0x578] sm:$0xff]  }
  0x40   : > { %347 = vst [vmem:[%s11687_s26 + $0x180] sm:$0xff] %v346_v48   ;;  %v602_v48 = vld [vmem:[%s11682_s25 + $0x580] sm:$0xff]  }
  0x41   : > { %351 = vst [vmem:[%s11687_s26 + $0x188] sm:$0xff] %v350_v49   ;;  %v606_v49 = vld [vmem:[%s11682_s25 + $0x588] sm:$0xff]  }
  0x42   : > { %355 = vst [vmem:[%s11687_s26 + $0x190] sm:$0xff] %v354_v50   ;;  %v610_v50 = vld [vmem:[%s11682_s25 + $0x590] sm:$0xff]  }
  0x43   : > { %359 = vst [vmem:[%s11687_s26 + $0x198] sm:$0xff] %v358_v51   ;;  %v614_v51 = vld [vmem:[%s11682_s25 + $0x598] sm:$0xff]  }
  0x44   : > { %363 = vst [vmem:[%s11687_s26 + $0x1a0] sm:$0xff] %v362_v52   ;;  %v618_v52 = vld [vmem:[%s11682_s25 + $0x5a0] sm:$0xff]  }
  0x45   : > { %367 = vst [vmem:[%s11687_s26 + $0x1a8] sm:$0xff] %v366_v53   ;;  %v622_v53 = vld [vmem:[%s11682_s25 + $0x5a8] sm:$0xff]  }
  0x46   : > { %371 = vst [vmem:[%s11687_s26 + $0x1b0] sm:$0xff] %v370_v54   ;;  %v626_v54 = vld [vmem:[%s11682_s25 + $0x5b0] sm:$0xff]  }
  0x47   : > { %375 = vst [vmem:[%s11687_s26 + $0x1b8] sm:$0xff] %v374_v55   ;;  %v630_v55 = vld [vmem:[%s11682_s25 + $0x5b8] sm:$0xff]  }
  0x48   : > { %379 = vst [vmem:[%s11687_s26 + $0x1c0] sm:$0xff] %v378_v56   ;;  %v634_v56 = vld [vmem:[%s11682_s25 + $0x5c0] sm:$0xff]  }
  0x49   : > { %383 = vst [vmem:[%s11687_s26 + $0x1c8] sm:$0xff] %v382_v57   ;;  %v638_v57 = vld [vmem:[%s11682_s25 + $0x5c8] sm:$0xff]  }
  0x4a   : > { %387 = vst [vmem:[%s11687_s26 + $0x1d0] sm:$0xff] %v386_v58   ;;  %v642_v58 = vld [vmem:[%s11682_s25 + $0x5d0] sm:$0xff]  }
  0x4b   : > { %391 = vst [vmem:[%s11687_s26 + $0x1d8] sm:$0xff] %v390_v59   ;;  %v646_v59 = vld [vmem:[%s11682_s25 + $0x5d8] sm:$0xff]  }
  0x4c   : > { %395 = vst [vmem:[%s11687_s26 + $0x1e0] sm:$0xff] %v394_v60   ;;  %v650_v60 = vld [vmem:[%s11682_s25 + $0x5e0] sm:$0xff]  }
  0x4d   : > { %399 = vst [vmem:[%s11687_s26 + $0x1e8] sm:$0xff] %v398_v61   ;;  %v654_v61 = vld [vmem:[%s11682_s25 + $0x5e8] sm:$0xff]  }
  0x4e   : > { %403 = vst [vmem:[%s11687_s26 + $0x1f0] sm:$0xff] %v402_v62   ;;  %v658_v62 = vld [vmem:[%s11682_s25 + $0x5f0] sm:$0xff]  }
  0x4f   : > { %407 = vst [vmem:[%s11687_s26 + $0x1f8] sm:$0xff] %v406_v63   ;;  %v662_v63 = vld [vmem:[%s11682_s25 + $0x5f8] sm:$0xff]  }
  0x50   : > { %411 = vst [vmem:[%s11687_s26 + $0x200] sm:$0xff] %v410_v0   ;;  %v666_v0 = vld [vmem:[%s11682_s25 + $0x800] sm:$0xff]  }
  0x51   : > { %415 = vst [vmem:[%s11687_s26 + $0x208] sm:$0xff] %v414_v1   ;;  %v670_v1 = vld [vmem:[%s11682_s25 + $0x808] sm:$0xff]  }
  0x52   : > { %419 = vst [vmem:[%s11687_s26 + $0x210] sm:$0xff] %v418_v2   ;;  %v674_v2 = vld [vmem:[%s11682_s25 + $0x810] sm:$0xff]  }
  0x53   : > { %423 = vst [vmem:[%s11687_s26 + $0x218] sm:$0xff] %v422_v3   ;;  %v678_v3 = vld [vmem:[%s11682_s25 + $0x818] sm:$0xff]  }
  0x54   : > { %427 = vst [vmem:[%s11687_s26 + $0x220] sm:$0xff] %v426_v4   ;;  %v682_v4 = vld [vmem:[%s11682_s25 + $0x820] sm:$0xff]  }
  0x55   : > { %431 = vst [vmem:[%s11687_s26 + $0x228] sm:$0xff] %v430_v5   ;;  %v686_v5 = vld [vmem:[%s11682_s25 + $0x828] sm:$0xff]  }
  0x56   : > { %435 = vst [vmem:[%s11687_s26 + $0x230] sm:$0xff] %v434_v6   ;;  %v690_v6 = vld [vmem:[%s11682_s25 + $0x830] sm:$0xff]  }
  0x57   : > { %439 = vst [vmem:[%s11687_s26 + $0x238] sm:$0xff] %v438_v7   ;;  %v694_v7 = vld [vmem:[%s11682_s25 + $0x838] sm:$0xff]  }
  0x58   : > { %443 = vst [vmem:[%s11687_s26 + $0x240] sm:$0xff] %v442_v8   ;;  %v698_v8 = vld [vmem:[%s11682_s25 + $0x840] sm:$0xff]  }
  0x59   : > { %447 = vst [vmem:[%s11687_s26 + $0x248] sm:$0xff] %v446_v9   ;;  %v702_v9 = vld [vmem:[%s11682_s25 + $0x848] sm:$0xff]  }
  0x5a   : > { %451 = vst [vmem:[%s11687_s26 + $0x250] sm:$0xff] %v450_v10   ;;  %v706_v10 = vld [vmem:[%s11682_s25 + $0x850] sm:$0xff]  }
  0x5b   : > { %455 = vst [vmem:[%s11687_s26 + $0x258] sm:$0xff] %v454_v11   ;;  %v710_v11 = vld [vmem:[%s11682_s25 + $0x858] sm:$0xff]  }
  0x5c   : > { %459 = vst [vmem:[%s11687_s26 + $0x260] sm:$0xff] %v458_v12   ;;  %v714_v12 = vld [vmem:[%s11682_s25 + $0x860] sm:$0xff]  }
  0x5d   : > { %463 = vst [vmem:[%s11687_s26 + $0x268] sm:$0xff] %v462_v13   ;;  %v718_v13 = vld [vmem:[%s11682_s25 + $0x868] sm:$0xff]  }
  0x5e   : > { %467 = vst [vmem:[%s11687_s26 + $0x270] sm:$0xff] %v466_v14   ;;  %v722_v14 = vld [vmem:[%s11682_s25 + $0x870] sm:$0xff]  }
  0x5f   : > { %471 = vst [vmem:[%s11687_s26 + $0x278] sm:$0xff] %v470_v15   ;;  %v726_v15 = vld [vmem:[%s11682_s25 + $0x878] sm:$0xff]  }
  0x60   : > { %475 = vst [vmem:[%s11687_s26 + $0x280] sm:$0xff] %v474_v16   ;;  %v730_v16 = vld [vmem:[%s11682_s25 + $0x880] sm:$0xff]  }
  0x61   : > { %479 = vst [vmem:[%s11687_s26 + $0x288] sm:$0xff] %v478_v17   ;;  %v734_v17 = vld [vmem:[%s11682_s25 + $0x888] sm:$0xff]  }
  0x62   : > { %483 = vst [vmem:[%s11687_s26 + $0x290] sm:$0xff] %v482_v18   ;;  %v738_v18 = vld [vmem:[%s11682_s25 + $0x890] sm:$0xff]  }
  0x63   : > { %487 = vst [vmem:[%s11687_s26 + $0x298] sm:$0xff] %v486_v19   ;;  %v742_v19 = vld [vmem:[%s11682_s25 + $0x898] sm:$0xff]  }
  0x64   : > { %491 = vst [vmem:[%s11687_s26 + $0x2a0] sm:$0xff] %v490_v20   ;;  %v746_v20 = vld [vmem:[%s11682_s25 + $0x8a0] sm:$0xff]  }
  0x65   : > { %495 = vst [vmem:[%s11687_s26 + $0x2a8] sm:$0xff] %v494_v21   ;;  %v750_v21 = vld [vmem:[%s11682_s25 + $0x8a8] sm:$0xff]  }
  0x66   : > { %499 = vst [vmem:[%s11687_s26 + $0x2b0] sm:$0xff] %v498_v22   ;;  %v754_v22 = vld [vmem:[%s11682_s25 + $0x8b0] sm:$0xff]  }
  0x67   : > { %503 = vst [vmem:[%s11687_s26 + $0x2b8] sm:$0xff] %v502_v23   ;;  %v758_v23 = vld [vmem:[%s11682_s25 + $0x8b8] sm:$0xff]  }
  0x68   : > { %507 = vst [vmem:[%s11687_s26 + $0x2c0] sm:$0xff] %v506_v24   ;;  %v762_v24 = vld [vmem:[%s11682_s25 + $0x8c0] sm:$0xff]  }
  0x69   : > { %511 = vst [vmem:[%s11687_s26 + $0x2c8] sm:$0xff] %v510_v25   ;;  %v766_v25 = vld [vmem:[%s11682_s25 + $0x8c8] sm:$0xff]  }
  0x6a   : > { %515 = vst [vmem:[%s11687_s26 + $0x2d0] sm:$0xff] %v514_v26   ;;  %v770_v26 = vld [vmem:[%s11682_s25 + $0x8d0] sm:$0xff]  }
  0x6b   : > { %519 = vst [vmem:[%s11687_s26 + $0x2d8] sm:$0xff] %v518_v27   ;;  %v774_v27 = vld [vmem:[%s11682_s25 + $0x8d8] sm:$0xff]  }
  0x6c   : > { %523 = vst [vmem:[%s11687_s26 + $0x2e0] sm:$0xff] %v522_v28   ;;  %v778_v28 = vld [vmem:[%s11682_s25 + $0x8e0] sm:$0xff]  }
  0x6d   : > { %527 = vst [vmem:[%s11687_s26 + $0x2e8] sm:$0xff] %v526_v29   ;;  %v782_v29 = vld [vmem:[%s11682_s25 + $0x8e8] sm:$0xff]  }
  0x6e   : > { %531 = vst [vmem:[%s11687_s26 + $0x2f0] sm:$0xff] %v530_v30   ;;  %v786_v30 = vld [vmem:[%s11682_s25 + $0x8f0] sm:$0xff]  }
  0x6f   : > { %535 = vst [vmem:[%s11687_s26 + $0x2f8] sm:$0xff] %v534_v31   ;;  %v790_v31 = vld [vmem:[%s11682_s25 + $0x8f8] sm:$0xff]  }
  0x70   : > { %539 = vst [vmem:[%s11687_s26 + $0x300] sm:$0xff] %v538_v32   ;;  %v794_v32 = vld [vmem:[%s11682_s25 + $0x900] sm:$0xff]  }
  0x71   : > { %543 = vst [vmem:[%s11687_s26 + $0x308] sm:$0xff] %v542_v33   ;;  %v798_v33 = vld [vmem:[%s11682_s25 + $0x908] sm:$0xff]  }
  0x72   : > { %547 = vst [vmem:[%s11687_s26 + $0x310] sm:$0xff] %v546_v34   ;;  %v802_v34 = vld [vmem:[%s11682_s25 + $0x910] sm:$0xff]  }
  0x73   : > { %551 = vst [vmem:[%s11687_s26 + $0x318] sm:$0xff] %v550_v35   ;;  %v806_v35 = vld [vmem:[%s11682_s25 + $0x918] sm:$0xff]  }
  0x74   : > { %555 = vst [vmem:[%s11687_s26 + $0x320] sm:$0xff] %v554_v36   ;;  %v810_v36 = vld [vmem:[%s11682_s25 + $0x920] sm:$0xff]  }
  0x75   : > { %559 = vst [vmem:[%s11687_s26 + $0x328] sm:$0xff] %v558_v37   ;;  %v814_v37 = vld [vmem:[%s11682_s25 + $0x928] sm:$0xff]  }
  0x76   : > { %563 = vst [vmem:[%s11687_s26 + $0x330] sm:$0xff] %v562_v38   ;;  %v818_v38 = vld [vmem:[%s11682_s25 + $0x930] sm:$0xff]  }
  0x77   : > { %567 = vst [vmem:[%s11687_s26 + $0x338] sm:$0xff] %v566_v39   ;;  %v822_v39 = vld [vmem:[%s11682_s25 + $0x938] sm:$0xff]  }
  0x78   : > { %571 = vst [vmem:[%s11687_s26 + $0x340] sm:$0xff] %v570_v40   ;;  %v826_v40 = vld [vmem:[%s11682_s25 + $0x940] sm:$0xff]  }
  0x79   : > { %575 = vst [vmem:[%s11687_s26 + $0x348] sm:$0xff] %v574_v41   ;;  %v830_v41 = vld [vmem:[%s11682_s25 + $0x948] sm:$0xff]  }
  0x7a   : > { %579 = vst [vmem:[%s11687_s26 + $0x350] sm:$0xff] %v578_v42   ;;  %v834_v42 = vld [vmem:[%s11682_s25 + $0x950] sm:$0xff]  }
  0x7b   : > { %583 = vst [vmem:[%s11687_s26 + $0x358] sm:$0xff] %v582_v43   ;;  %v838_v43 = vld [vmem:[%s11682_s25 + $0x958] sm:$0xff]  }
  0x7c   : > { %587 = vst [vmem:[%s11687_s26 + $0x360] sm:$0xff] %v586_v44   ;;  %v842_v44 = vld [vmem:[%s11682_s25 + $0x960] sm:$0xff]  }
  0x7d   : > { %591 = vst [vmem:[%s11687_s26 + $0x368] sm:$0xff] %v590_v45   ;;  %v846_v45 = vld [vmem:[%s11682_s25 + $0x968] sm:$0xff]  }
  0x7e   : > { %595 = vst [vmem:[%s11687_s26 + $0x370] sm:$0xff] %v594_v46   ;;  %v850_v46 = vld [vmem:[%s11682_s25 + $0x970] sm:$0xff]  }
  0x7f   : > { %599 = vst [vmem:[%s11687_s26 + $0x378] sm:$0xff] %v598_v47   ;;  %v854_v47 = vld [vmem:[%s11682_s25 + $0x978] sm:$0xff]  }
  0x80   : > { %603 = vst [vmem:[%s11687_s26 + $0x380] sm:$0xff] %v602_v48   ;;  %v858_v48 = vld [vmem:[%s11682_s25 + $0x980] sm:$0xff]  }
  0x81   : > { %607 = vst [vmem:[%s11687_s26 + $0x388] sm:$0xff] %v606_v49   ;;  %v862_v49 = vld [vmem:[%s11682_s25 + $0x988] sm:$0xff]  }
  0x82   : > { %611 = vst [vmem:[%s11687_s26 + $0x390] sm:$0xff] %v610_v50   ;;  %v866_v50 = vld [vmem:[%s11682_s25 + $0x990] sm:$0xff]  }
  0x83   : > { %615 = vst [vmem:[%s11687_s26 + $0x398] sm:$0xff] %v614_v51   ;;  %v870_v51 = vld [vmem:[%s11682_s25 + $0x998] sm:$0xff]  }
  0x84   : > { %619 = vst [vmem:[%s11687_s26 + $0x3a0] sm:$0xff] %v618_v52   ;;  %v874_v52 = vld [vmem:[%s11682_s25 + $0x9a0] sm:$0xff]  }
  0x85   : > { %623 = vst [vmem:[%s11687_s26 + $0x3a8] sm:$0xff] %v622_v53   ;;  %v878_v53 = vld [vmem:[%s11682_s25 + $0x9a8] sm:$0xff]  }
  0x86   : > { %627 = vst [vmem:[%s11687_s26 + $0x3b0] sm:$0xff] %v626_v54   ;;  %v882_v54 = vld [vmem:[%s11682_s25 + $0x9b0] sm:$0xff]  }
  0x87   : > { %631 = vst [vmem:[%s11687_s26 + $0x3b8] sm:$0xff] %v630_v55   ;;  %v886_v55 = vld [vmem:[%s11682_s25 + $0x9b8] sm:$0xff]  }
  0x88   : > { %635 = vst [vmem:[%s11687_s26 + $0x3c0] sm:$0xff] %v634_v56   ;;  %v890_v56 = vld [vmem:[%s11682_s25 + $0x9c0] sm:$0xff]  }
  0x89   : > { %639 = vst [vmem:[%s11687_s26 + $0x3c8] sm:$0xff] %v638_v57   ;;  %v894_v57 = vld [vmem:[%s11682_s25 + $0x9c8] sm:$0xff]  }
  0x8a   : > { %643 = vst [vmem:[%s11687_s26 + $0x3d0] sm:$0xff] %v642_v58   ;;  %v898_v58 = vld [vmem:[%s11682_s25 + $0x9d0] sm:$0xff]  }
  0x8b   : > { %647 = vst [vmem:[%s11687_s26 + $0x3d8] sm:$0xff] %v646_v59   ;;  %v902_v59 = vld [vmem:[%s11682_s25 + $0x9d8] sm:$0xff]  }
  0x8c   : > { %651 = vst [vmem:[%s11687_s26 + $0x3e0] sm:$0xff] %v650_v60   ;;  %v906_v60 = vld [vmem:[%s11682_s25 + $0x9e0] sm:$0xff]  }
  0x8d   : > { %655 = vst [vmem:[%s11687_s26 + $0x3e8] sm:$0xff] %v654_v61   ;;  %v910_v61 = vld [vmem:[%s11682_s25 + $0x9e8] sm:$0xff]  }
  0x8e   : > { %659 = vst [vmem:[%s11687_s26 + $0x3f0] sm:$0xff] %v658_v62   ;;  %v914_v62 = vld [vmem:[%s11682_s25 + $0x9f0] sm:$0xff]  }
  0x8f   : > { %663 = vst [vmem:[%s11687_s26 + $0x3f8] sm:$0xff] %v662_v63   ;;  %v918_v63 = vld [vmem:[%s11682_s25 + $0x9f8] sm:$0xff]  }
  0x90   : > { %667 = vst [vmem:[%s11687_s26 + $0x400] sm:$0xff] %v666_v0   ;;  %v922_v0 = vld [vmem:[%s11682_s25 + $0xc00] sm:$0xff]  }
  0x91   : > { %671 = vst [vmem:[%s11687_s26 + $0x408] sm:$0xff] %v670_v1   ;;  %v926_v1 = vld [vmem:[%s11682_s25 + $0xc08] sm:$0xff]  }
  0x92   : > { %675 = vst [vmem:[%s11687_s26 + $0x410] sm:$0xff] %v674_v2   ;;  %v930_v2 = vld [vmem:[%s11682_s25 + $0xc10] sm:$0xff]  }
  0x93   : > { %679 = vst [vmem:[%s11687_s26 + $0x418] sm:$0xff] %v678_v3   ;;  %v934_v3 = vld [vmem:[%s11682_s25 + $0xc18] sm:$0xff]  }
  0x94   : > { %683 = vst [vmem:[%s11687_s26 + $0x420] sm:$0xff] %v682_v4   ;;  %v938_v4 = vld [vmem:[%s11682_s25 + $0xc20] sm:$0xff]  }
  0x95   : > { %687 = vst [vmem:[%s11687_s26 + $0x428] sm:$0xff] %v686_v5   ;;  %v942_v5 = vld [vmem:[%s11682_s25 + $0xc28] sm:$0xff]  }
  0x96   : > { %691 = vst [vmem:[%s11687_s26 + $0x430] sm:$0xff] %v690_v6   ;;  %v946_v6 = vld [vmem:[%s11682_s25 + $0xc30] sm:$0xff]  }
  0x97   : > { %695 = vst [vmem:[%s11687_s26 + $0x438] sm:$0xff] %v694_v7   ;;  %v950_v7 = vld [vmem:[%s11682_s25 + $0xc38] sm:$0xff]  }
  0x98   : > { %699 = vst [vmem:[%s11687_s26 + $0x440] sm:$0xff] %v698_v8   ;;  %v954_v8 = vld [vmem:[%s11682_s25 + $0xc40] sm:$0xff]  }
  0x99   : > { %703 = vst [vmem:[%s11687_s26 + $0x448] sm:$0xff] %v702_v9   ;;  %v958_v9 = vld [vmem:[%s11682_s25 + $0xc48] sm:$0xff]  }
  0x9a   : > { %707 = vst [vmem:[%s11687_s26 + $0x450] sm:$0xff] %v706_v10   ;;  %v962_v10 = vld [vmem:[%s11682_s25 + $0xc50] sm:$0xff]  }
  0x9b   : > { %711 = vst [vmem:[%s11687_s26 + $0x458] sm:$0xff] %v710_v11   ;;  %v966_v11 = vld [vmem:[%s11682_s25 + $0xc58] sm:$0xff]  }
  0x9c   : > { %715 = vst [vmem:[%s11687_s26 + $0x460] sm:$0xff] %v714_v12   ;;  %v970_v12 = vld [vmem:[%s11682_s25 + $0xc60] sm:$0xff]  }
  0x9d   : > { %719 = vst [vmem:[%s11687_s26 + $0x468] sm:$0xff] %v718_v13   ;;  %v974_v13 = vld [vmem:[%s11682_s25 + $0xc68] sm:$0xff]  }
  0x9e   : > { %723 = vst [vmem:[%s11687_s26 + $0x470] sm:$0xff] %v722_v14   ;;  %v978_v14 = vld [vmem:[%s11682_s25 + $0xc70] sm:$0xff]  }
  0x9f   : > { %727 = vst [vmem:[%s11687_s26 + $0x478] sm:$0xff] %v726_v15   ;;  %v982_v15 = vld [vmem:[%s11682_s25 + $0xc78] sm:$0xff]  }
  0xa0   : > { %731 = vst [vmem:[%s11687_s26 + $0x480] sm:$0xff] %v730_v16   ;;  %v986_v16 = vld [vmem:[%s11682_s25 + $0xc80] sm:$0xff]  }
  0xa1   : > { %735 = vst [vmem:[%s11687_s26 + $0x488] sm:$0xff] %v734_v17   ;;  %v990_v17 = vld [vmem:[%s11682_s25 + $0xc88] sm:$0xff]  }
  0xa2   : > { %739 = vst [vmem:[%s11687_s26 + $0x490] sm:$0xff] %v738_v18   ;;  %v994_v18 = vld [vmem:[%s11682_s25 + $0xc90] sm:$0xff]  }
  0xa3   : > { %743 = vst [vmem:[%s11687_s26 + $0x498] sm:$0xff] %v742_v19   ;;  %v998_v19 = vld [vmem:[%s11682_s25 + $0xc98] sm:$0xff]  }
  0xa4   : > { %747 = vst [vmem:[%s11687_s26 + $0x4a0] sm:$0xff] %v746_v20   ;;  %v1002_v20 = vld [vmem:[%s11682_s25 + $0xca0] sm:$0xff]  }
  0xa5   : > { %751 = vst [vmem:[%s11687_s26 + $0x4a8] sm:$0xff] %v750_v21   ;;  %v1006_v21 = vld [vmem:[%s11682_s25 + $0xca8] sm:$0xff]  }
  0xa6   : > { %755 = vst [vmem:[%s11687_s26 + $0x4b0] sm:$0xff] %v754_v22   ;;  %v1010_v22 = vld [vmem:[%s11682_s25 + $0xcb0] sm:$0xff]  }
  0xa7   : > { %759 = vst [vmem:[%s11687_s26 + $0x4b8] sm:$0xff] %v758_v23   ;;  %v1014_v23 = vld [vmem:[%s11682_s25 + $0xcb8] sm:$0xff]  }
  0xa8   : > { %763 = vst [vmem:[%s11687_s26 + $0x4c0] sm:$0xff] %v762_v24   ;;  %v1018_v24 = vld [vmem:[%s11682_s25 + $0xcc0] sm:$0xff]  }
  0xa9   : > { %767 = vst [vmem:[%s11687_s26 + $0x4c8] sm:$0xff] %v766_v25   ;;  %v1022_v25 = vld [vmem:[%s11682_s25 + $0xcc8] sm:$0xff]  }
  0xaa   : > { %771 = vst [vmem:[%s11687_s26 + $0x4d0] sm:$0xff] %v770_v26   ;;  %v1026_v26 = vld [vmem:[%s11682_s25 + $0xcd0] sm:$0xff]  }
  0xab   : > { %775 = vst [vmem:[%s11687_s26 + $0x4d8] sm:$0xff] %v774_v27   ;;  %v1030_v27 = vld [vmem:[%s11682_s25 + $0xcd8] sm:$0xff]  }
  0xac   : > { %779 = vst [vmem:[%s11687_s26 + $0x4e0] sm:$0xff] %v778_v28   ;;  %v1034_v28 = vld [vmem:[%s11682_s25 + $0xce0] sm:$0xff]  }
  0xad   : > { %783 = vst [vmem:[%s11687_s26 + $0x4e8] sm:$0xff] %v782_v29   ;;  %v1038_v29 = vld [vmem:[%s11682_s25 + $0xce8] sm:$0xff]  }
  0xae   : > { %787 = vst [vmem:[%s11687_s26 + $0x4f0] sm:$0xff] %v786_v30   ;;  %v1042_v30 = vld [vmem:[%s11682_s25 + $0xcf0] sm:$0xff]  }
  0xaf   : > { %791 = vst [vmem:[%s11687_s26 + $0x4f8] sm:$0xff] %v790_v31   ;;  %v1046_v31 = vld [vmem:[%s11682_s25 + $0xcf8] sm:$0xff]  }
  0xb0   : > { %795 = vst [vmem:[%s11687_s26 + $0x500] sm:$0xff] %v794_v32   ;;  %v1050_v32 = vld [vmem:[%s11682_s25 + $0xd00] sm:$0xff]  }
  0xb1   : > { %799 = vst [vmem:[%s11687_s26 + $0x508] sm:$0xff] %v798_v33   ;;  %v1054_v33 = vld [vmem:[%s11682_s25 + $0xd08] sm:$0xff]  }
  0xb2   : > { %803 = vst [vmem:[%s11687_s26 + $0x510] sm:$0xff] %v802_v34   ;;  %v1058_v34 = vld [vmem:[%s11682_s25 + $0xd10] sm:$0xff]  }
  0xb3   : > { %807 = vst [vmem:[%s11687_s26 + $0x518] sm:$0xff] %v806_v35   ;;  %v1062_v35 = vld [vmem:[%s11682_s25 + $0xd18] sm:$0xff]  }
  0xb4   : > { %811 = vst [vmem:[%s11687_s26 + $0x520] sm:$0xff] %v810_v36   ;;  %v1066_v36 = vld [vmem:[%s11682_s25 + $0xd20] sm:$0xff]  }
  0xb5   : > { %815 = vst [vmem:[%s11687_s26 + $0x528] sm:$0xff] %v814_v37   ;;  %v1070_v37 = vld [vmem:[%s11682_s25 + $0xd28] sm:$0xff]  }
  0xb6   : > { %819 = vst [vmem:[%s11687_s26 + $0x530] sm:$0xff] %v818_v38   ;;  %v1074_v38 = vld [vmem:[%s11682_s25 + $0xd30] sm:$0xff]  }
  0xb7   : > { %823 = vst [vmem:[%s11687_s26 + $0x538] sm:$0xff] %v822_v39   ;;  %v1078_v39 = vld [vmem:[%s11682_s25 + $0xd38] sm:$0xff]  }
  0xb8   : > { %827 = vst [vmem:[%s11687_s26 + $0x540] sm:$0xff] %v826_v40   ;;  %v1082_v40 = vld [vmem:[%s11682_s25 + $0xd40] sm:$0xff]  }
  0xb9   : > { %831 = vst [vmem:[%s11687_s26 + $0x548] sm:$0xff] %v830_v41   ;;  %v1086_v41 = vld [vmem:[%s11682_s25 + $0xd48] sm:$0xff]  }
  0xba   : > { %835 = vst [vmem:[%s11687_s26 + $0x550] sm:$0xff] %v834_v42   ;;  %v1090_v42 = vld [vmem:[%s11682_s25 + $0xd50] sm:$0xff]  }
  0xbb   : > { %839 = vst [vmem:[%s11687_s26 + $0x558] sm:$0xff] %v838_v43   ;;  %v1094_v43 = vld [vmem:[%s11682_s25 + $0xd58] sm:$0xff]  }
  0xbc   : > { %843 = vst [vmem:[%s11687_s26 + $0x560] sm:$0xff] %v842_v44   ;;  %v1098_v44 = vld [vmem:[%s11682_s25 + $0xd60] sm:$0xff]  }
  0xbd   : > { %847 = vst [vmem:[%s11687_s26 + $0x568] sm:$0xff] %v846_v45   ;;  %v1102_v45 = vld [vmem:[%s11682_s25 + $0xd68] sm:$0xff]  }
  0xbe   : > { %851 = vst [vmem:[%s11687_s26 + $0x570] sm:$0xff] %v850_v46   ;;  %v1106_v46 = vld [vmem:[%s11682_s25 + $0xd70] sm:$0xff]  }
  0xbf   : > { %855 = vst [vmem:[%s11687_s26 + $0x578] sm:$0xff] %v854_v47   ;;  %v1110_v47 = vld [vmem:[%s11682_s25 + $0xd78] sm:$0xff]  }
  0xc0   : > { %859 = vst [vmem:[%s11687_s26 + $0x580] sm:$0xff] %v858_v48   ;;  %v1114_v48 = vld [vmem:[%s11682_s25 + $0xd80] sm:$0xff]  }
  0xc1   : > { %863 = vst [vmem:[%s11687_s26 + $0x588] sm:$0xff] %v862_v49   ;;  %v1118_v49 = vld [vmem:[%s11682_s25 + $0xd88] sm:$0xff]  }
  0xc2   : > { %867 = vst [vmem:[%s11687_s26 + $0x590] sm:$0xff] %v866_v50   ;;  %v1122_v50 = vld [vmem:[%s11682_s25 + $0xd90] sm:$0xff]  }
  0xc3   : > { %871 = vst [vmem:[%s11687_s26 + $0x598] sm:$0xff] %v870_v51   ;;  %v1126_v51 = vld [vmem:[%s11682_s25 + $0xd98] sm:$0xff]  }
  0xc4   : > { %875 = vst [vmem:[%s11687_s26 + $0x5a0] sm:$0xff] %v874_v52   ;;  %v1130_v52 = vld [vmem:[%s11682_s25 + $0xda0] sm:$0xff]  }
  0xc5   : > { %879 = vst [vmem:[%s11687_s26 + $0x5a8] sm:$0xff] %v878_v53   ;;  %v1134_v53 = vld [vmem:[%s11682_s25 + $0xda8] sm:$0xff]  }
  0xc6   : > { %883 = vst [vmem:[%s11687_s26 + $0x5b0] sm:$0xff] %v882_v54   ;;  %v1138_v54 = vld [vmem:[%s11682_s25 + $0xdb0] sm:$0xff]  }
  0xc7   : > { %887 = vst [vmem:[%s11687_s26 + $0x5b8] sm:$0xff] %v886_v55   ;;  %v1142_v55 = vld [vmem:[%s11682_s25 + $0xdb8] sm:$0xff]  }
  0xc8   : > { %891 = vst [vmem:[%s11687_s26 + $0x5c0] sm:$0xff] %v890_v56   ;;  %v1146_v56 = vld [vmem:[%s11682_s25 + $0xdc0] sm:$0xff]  }
  0xc9   : > { %895 = vst [vmem:[%s11687_s26 + $0x5c8] sm:$0xff] %v894_v57   ;;  %v1150_v57 = vld [vmem:[%s11682_s25 + $0xdc8] sm:$0xff]  }
  0xca   : > { %899 = vst [vmem:[%s11687_s26 + $0x5d0] sm:$0xff] %v898_v58   ;;  %v1154_v58 = vld [vmem:[%s11682_s25 + $0xdd0] sm:$0xff]  }
  0xcb   : > { %903 = vst [vmem:[%s11687_s26 + $0x5d8] sm:$0xff] %v902_v59   ;;  %v1158_v59 = vld [vmem:[%s11682_s25 + $0xdd8] sm:$0xff]  }
  0xcc   : > { %907 = vst [vmem:[%s11687_s26 + $0x5e0] sm:$0xff] %v906_v60   ;;  %v1162_v60 = vld [vmem:[%s11682_s25 + $0xde0] sm:$0xff]  }
  0xcd   : > { %911 = vst [vmem:[%s11687_s26 + $0x5e8] sm:$0xff] %v910_v61   ;;  %v1166_v61 = vld [vmem:[%s11682_s25 + $0xde8] sm:$0xff]  }
  0xce   : > { %915 = vst [vmem:[%s11687_s26 + $0x5f0] sm:$0xff] %v914_v62   ;;  %v1170_v62 = vld [vmem:[%s11682_s25 + $0xdf0] sm:$0xff]  }
  0xcf   : > { %919 = vst [vmem:[%s11687_s26 + $0x5f8] sm:$0xff] %v918_v63   ;;  %v1174_v63 = vld [vmem:[%s11682_s25 + $0xdf8] sm:$0xff]  }
  0xd0   : > { %923 = vst [vmem:[%s11687_s26 + $0x600] sm:$0xff] %v922_v0  }
  0xd1   : > { %927 = vst [vmem:[%s11687_s26 + $0x608] sm:$0xff] %v926_v1  }
  0xd2   : > { %931 = vst [vmem:[%s11687_s26 + $0x610] sm:$0xff] %v930_v2  }
  0xd3   : > { %935 = vst [vmem:[%s11687_s26 + $0x618] sm:$0xff] %v934_v3  }
  0xd4   : > { %939 = vst [vmem:[%s11687_s26 + $0x620] sm:$0xff] %v938_v4  }
  0xd5   : > { %943 = vst [vmem:[%s11687_s26 + $0x628] sm:$0xff] %v942_v5  }
  0xd6   : > { %947 = vst [vmem:[%s11687_s26 + $0x630] sm:$0xff] %v946_v6  }
  0xd7   : > { %951 = vst [vmem:[%s11687_s26 + $0x638] sm:$0xff] %v950_v7  }
  0xd8   : > { %955 = vst [vmem:[%s11687_s26 + $0x640] sm:$0xff] %v954_v8  }
  0xd9   : > { %959 = vst [vmem:[%s11687_s26 + $0x648] sm:$0xff] %v958_v9  }
  0xda   : > { %963 = vst [vmem:[%s11687_s26 + $0x650] sm:$0xff] %v962_v10  }
  0xdb   : > { %967 = vst [vmem:[%s11687_s26 + $0x658] sm:$0xff] %v966_v11  }
  0xdc   : > { %971 = vst [vmem:[%s11687_s26 + $0x660] sm:$0xff] %v970_v12  }
  0xdd   : > { %975 = vst [vmem:[%s11687_s26 + $0x668] sm:$0xff] %v974_v13  }
  0xde   : > { %979 = vst [vmem:[%s11687_s26 + $0x670] sm:$0xff] %v978_v14  }
  0xdf   : > { %983 = vst [vmem:[%s11687_s26 + $0x678] sm:$0xff] %v982_v15  }
  0xe0   : > { %987 = vst [vmem:[%s11687_s26 + $0x680] sm:$0xff] %v986_v16  }
  0xe1   : > { %991 = vst [vmem:[%s11687_s26 + $0x688] sm:$0xff] %v990_v17  }
  0xe2   : > { %995 = vst [vmem:[%s11687_s26 + $0x690] sm:$0xff] %v994_v18  }
  0xe3   : > { %999 = vst [vmem:[%s11687_s26 + $0x698] sm:$0xff] %v998_v19  }
  0xe4   : > { %1003 = vst [vmem:[%s11687_s26 + $0x6a0] sm:$0xff] %v1002_v20  }
  0xe5   : > { %1007 = vst [vmem:[%s11687_s26 + $0x6a8] sm:$0xff] %v1006_v21  }
  0xe6   : > { %1011 = vst [vmem:[%s11687_s26 + $0x6b0] sm:$0xff] %v1010_v22  }
  0xe7   : > { %1015 = vst [vmem:[%s11687_s26 + $0x6b8] sm:$0xff] %v1014_v23  }
  0xe8   : > { %1019 = vst [vmem:[%s11687_s26 + $0x6c0] sm:$0xff] %v1018_v24  }
  0xe9   : > { %1023 = vst [vmem:[%s11687_s26 + $0x6c8] sm:$0xff] %v1022_v25  }
  0xea   : > { %1027 = vst [vmem:[%s11687_s26 + $0x6d0] sm:$0xff] %v1026_v26  }
  0xeb   : > { %1031 = vst [vmem:[%s11687_s26 + $0x6d8] sm:$0xff] %v1030_v27  }
  0xec   : > { %1035 = vst [vmem:[%s11687_s26 + $0x6e0] sm:$0xff] %v1034_v28  }
  0xed   : > { %1039 = vst [vmem:[%s11687_s26 + $0x6e8] sm:$0xff] %v1038_v29  }
  0xee   : > { %1043 = vst [vmem:[%s11687_s26 + $0x6f0] sm:$0xff] %v1042_v30  }
  0xef   : > { %1047 = vst [vmem:[%s11687_s26 + $0x6f8] sm:$0xff] %v1046_v31  }
  0xf0   : > { %1051 = vst [vmem:[%s11687_s26 + $0x700] sm:$0xff] %v1050_v32  }
  0xf1   : > { %1055 = vst [vmem:[%s11687_s26 + $0x708] sm:$0xff] %v1054_v33  }
  0xf2   : > { %1059 = vst [vmem:[%s11687_s26 + $0x710] sm:$0xff] %v1058_v34  }
  0xf3   : > { %1063 = vst [vmem:[%s11687_s26 + $0x718] sm:$0xff] %v1062_v35  }
  0xf4   : > { %1067 = vst [vmem:[%s11687_s26 + $0x720] sm:$0xff] %v1066_v36  }
  0xf5   : > { %1071 = vst [vmem:[%s11687_s26 + $0x728] sm:$0xff] %v1070_v37  }
  0xf6   : > { %1075 = vst [vmem:[%s11687_s26 + $0x730] sm:$0xff] %v1074_v38  }
  0xf7   : > { %1079 = vst [vmem:[%s11687_s26 + $0x738] sm:$0xff] %v1078_v39  }
  0xf8   : > { %1083 = vst [vmem:[%s11687_s26 + $0x740] sm:$0xff] %v1082_v40  }
  0xf9   : > { %1087 = vst [vmem:[%s11687_s26 + $0x748] sm:$0xff] %v1086_v41  }
  0xfa   : > { %1091 = vst [vmem:[%s11687_s26 + $0x750] sm:$0xff] %v1090_v42  }
  0xfb   : > { %1095 = vst [vmem:[%s11687_s26 + $0x758] sm:$0xff] %v1094_v43  }
  0xfc   : > { %1099 = vst [vmem:[%s11687_s26 + $0x760] sm:$0xff] %v1098_v44  }
  0xfd   : > { %1103 = vst [vmem:[%s11687_s26 + $0x768] sm:$0xff] %v1102_v45  }
  0xfe   : > { %1107 = vst [vmem:[%s11687_s26 + $0x770] sm:$0xff] %v1106_v46  }
  0xff   : > { %1111 = vst [vmem:[%s11687_s26 + $0x778] sm:$0xff] %v1110_v47  }
 0x100   : > { %1115 = vst [vmem:[%s11687_s26 + $0x780] sm:$0xff] %v1114_v48  }
 0x101   : > { %1119 = vst [vmem:[%s11687_s26 + $0x788] sm:$0xff] %v1118_v49  }
 0x102   : > { %1123 = vst [vmem:[%s11687_s26 + $0x790] sm:$0xff] %v1122_v50  }
 0x103   : > { %1127 = vst [vmem:[%s11687_s26 + $0x798] sm:$0xff] %v1126_v51  }
 0x104   : > { %1131 = vst [vmem:[%s11687_s26 + $0x7a0] sm:$0xff] %v1130_v52  }
 0x105   : > { %1135 = vst [vmem:[%s11687_s26 + $0x7a8] sm:$0xff] %v1134_v53  }
 0x106   : > { %1139 = vst [vmem:[%s11687_s26 + $0x7b0] sm:$0xff] %v1138_v54  }
 0x107   : > { %1143 = vst [vmem:[%s11687_s26 + $0x7b8] sm:$0xff] %v1142_v55  }
 0x108   : > { %1147 = vst [vmem:[%s11687_s26 + $0x7c0] sm:$0xff] %v1146_v56  }
 0x109   : > { %1151 = vst [vmem:[%s11687_s26 + $0x7c8] sm:$0xff] %v1150_v57  }
 0x10a   : > { %1155 = vst [vmem:[%s11687_s26 + $0x7d0] sm:$0xff] %v1154_v58  }
 0x10b   : > { %1159 = vst [vmem:[%s11687_s26 + $0x7d8] sm:$0xff] %v1158_v59  }
 0x10c   : > { %1163 = vst [vmem:[%s11687_s26 + $0x7e0] sm:$0xff] %v1162_v60  }
 0x10d   : > { %1167 = vst [vmem:[%s11687_s26 + $0x7e8] sm:$0xff] %v1166_v61  }
 0x10e   : > { %1171 = vst [vmem:[%s11687_s26 + $0x7f0] sm:$0xff] %v1170_v62  }
 0x10f   : > { %1175 = vst [vmem:[%s11687_s26 + $0x7f8] sm:$0xff] %v1174_v63  }
 0x110 PF: > { %p9239_p5 = scmp.ge.s32.totalorder %s11625_s14, 1  ;;  %p4298_p6 = scmp.lt.s32.totalorder %s11625_s14, 3 }
 0x112   : > { %p4299_p7 = pnand %p9239_p5, %p4298_p6 }
 0x113   : > { %s4305_s8 = sand.u32 (!%p4299_p7), 1, %s11617_s12   ;;  %s9241_s12 = sshll.u32 (!%p4299_p7), %s9232_s15, 7 }
 0x114   : > { %4302 = sbr.rel (%p4299_p7) target bundleno = 1466 (0x5ba), region = 80  ;;  %s9240_s11 = sshll.u32 (!%p4299_p7), %s4305_s8, 11 }
 0x115   : > { %s12219_s20 = scalar_lea.vmem (!%p4299_p7), [#allocation2], %s9240_s11  ;;  %p4330_p8 = scmp.lt.s32.totalorder (!%p4299_p7), %s9241_s12, 255 }
 0x119   : > { %v9517_v0 = vld [vmem:[%s12963_s1 + $0x20] sm:$0xf]  ;;  %v10934_v1 = vld [vmem:[%s12963_s1 + $0x20] sm:$0x30]  ;;  %vm5016_vm0 = vcmask 1044480   ;;  %vm5017_vm1 = vcmask 1045504  }
 0x11a   : > { %v9518_v2 = vor.u32 %v10934_v1, %v9517_v0  ;;  %v11627_v3 = vmov 65535   ;;  %v10933_v7 = vld [vmem:[%s12963_s1 + $0x18] sm:$0xff]  ;;  %v10932_v8 = vld [vmem:[%s12963_s1 + $0x10] sm:$0xff]  ;;  %v10931_v9 = vld [vmem:[%s12963_s1 + $0x8] sm:$0xff]  ;;  %vm4823_vm2 = vcmask 613376   ;;  %s12970_s12 = smov (!%p4330_p8, %s9241_s12), 255 }
 0x11b   : > { %v5018_v4 = vsel %vm5016_vm0, 4294967295, %v11627_v3  ;;  %v10930_v10 = vld [vmem:[%s12963_s1] sm:$0xff]  ;;  %v10936_v15 = vld [vmem:[%s12219_s20 + $0x8] sm:$0xff]  ;;  %v10937_v19 = vld [vmem:[%s12219_s20 + $0x10] sm:$0xff]  ;;  %s9242_s14 = sshll.u32 %s12970_s12, 2 }
 0x11c   : > { %v5019_v5 = vsel %vm5017_vm1, %v5018_v4, 0  ;;  %v10935_v11 = vld [vmem:[%s12219_s20] sm:$0xff]  ;;  %v11000_v16 = vld [vmem:[%s12219_s20 + $0x208] sm:$0xff]  ;;  %v11001_v20 = vld [vmem:[%s12219_s20 + $0x210] sm:$0xff]  ;;  %s12313_s24 = scalar_lea.vmem %s12965_s3, %s9242_s14 }
 0x11d   : > { %v5021_v6 = vand.u32 %v9518_v2, %v5019_v5  ;;  %v10999_v12 = vld [vmem:[%s12219_s20 + $0x200] sm:$0xff]  ;;  %v11064_v17 = vld [vmem:[%s12219_s20 + $0x408] sm:$0xff]  ;;  %v11065_v21 = vld [vmem:[%s12219_s20 + $0x410] sm:$0xff] }
 0x11e   : > { %v11063_v13 = vld [vmem:[%s12219_s20 + $0x400] sm:$0xff]  ;;  %v11128_v18 = vld [vmem:[%s12219_s20 + $0x608] sm:$0xff]  ;;  %v11129_v22 = vld [vmem:[%s12219_s20 + $0x610] sm:$0xff] }
 0x11f   : > { %5026 = vmatpush.bf16.msra.mxu0 %v5021_v6  ;;  %5996 = vmatpush.bf16.msra.mxu1 %v5021_v6  ;;  %v11127_v14 = vld [vmem:[%s12219_s20 + $0x600] sm:$0xff]  ;;  %v10938_v23 = vld [vmem:[%s12219_s20 + $0x18] sm:$0xff]  ;;  %v10940_v31 = vld [vmem:[%s12219_s20 + $0x28] sm:$0xff] }
 0x120   : > { %6966 = vmatpush.bf16.msra.mxu2 %v5021_v6  ;;  %7936 = vmatpush.bf16.msra.mxu3 %v5021_v6  ;;  %v11002_v24 = vld [vmem:[%s12219_s20 + $0x218] sm:$0xff]  ;;  %v10939_v27 = vld [vmem:[%s12219_s20 + $0x20] sm:$0xff]  ;;  %v11004_v32 = vld [vmem:[%s12219_s20 + $0x228] sm:$0xff] }
 0x121   : > { %v11066_v25 = vld [vmem:[%s12219_s20 + $0x418] sm:$0xff]  ;;  %v11003_v28 = vld [vmem:[%s12219_s20 + $0x220] sm:$0xff]  ;;  %v11068_v33 = vld [vmem:[%s12219_s20 + $0x428] sm:$0xff] }
 0x122   : > { %v11130_v26 = vld [vmem:[%s12219_s20 + $0x618] sm:$0xff]  ;;  %v11067_v29 = vld [vmem:[%s12219_s20 + $0x420] sm:$0xff]  ;;  %v11132_v34 = vld [vmem:[%s12219_s20 + $0x628] sm:$0xff] }
 0x123   : > { %5027 = vmatpush.bf16.msra.mxu0 %v10933_v7  ;;  %5997 = vmatpush.bf16.msra.mxu1 %v10933_v7  ;;  %v11131_v30 = vld [vmem:[%s12219_s20 + $0x620] sm:$0xff]  ;;  %v10941_v35 = vld [vmem:[%s12219_s20 + $0x30] sm:$0xff]  ;;  %v10942_v39 = vld [vmem:[%s12219_s20 + $0x38] sm:$0xff] }
 0x124   : > { %6967 = vmatpush.bf16.msra.mxu2 %v10933_v7  ;;  %7937 = vmatpush.bf16.msra.mxu3 %v10933_v7  ;;  %v11005_v36 = vld [vmem:[%s12219_s20 + $0x230] sm:$0xff]  ;;  %v11006_v40 = vld [vmem:[%s12219_s20 + $0x238] sm:$0xff]  ;;  %v10943_v43 = vld [vmem:[%s12219_s20 + $0x40] sm:$0xff] }
 0x125   : > { %v11069_v37 = vld [vmem:[%s12219_s20 + $0x430] sm:$0xff]  ;;  %v11070_v41 = vld [vmem:[%s12219_s20 + $0x438] sm:$0xff]  ;;  %v11007_v44 = vld [vmem:[%s12219_s20 + $0x240] sm:$0xff] }
 0x126   : > { %v11133_v38 = vld [vmem:[%s12219_s20 + $0x630] sm:$0xff]  ;;  %v11134_v42 = vld [vmem:[%s12219_s20 + $0x638] sm:$0xff]  ;;  %v11071_v47 = vld [vmem:[%s12219_s20 + $0x440] sm:$0xff] }
 0x127   : > { %5028 = vmatpush.bf16.msra.mxu0 %v10932_v8  ;;  %5998 = vmatpush.bf16.msra.mxu1 %v10932_v8  ;;  %v11135_v48 = vld [vmem:[%s12219_s20 + $0x640] sm:$0xff]  ;;  %v10944_v59 = vld [vmem:[%s12219_s20 + $0x48] sm:$0xff] }
 0x128   : > { %6968 = vmatpush.bf16.msra.mxu2 %v10932_v8  ;;  %7938 = vmatpush.bf16.msra.mxu3 %v10932_v8  ;;  %v12298_v56 = vld [vmem:[%s12964_s2] ss:$0 sm:$0xff]  ;;  %v11008_v60 = vld [vmem:[%s12219_s20 + $0x248] sm:$0xff] }
 0x129   : > { %v11072_v1 = vld [vmem:[%s12219_s20 + $0x448] sm:$0xff] }
 0x12a   : > { %v11136_v2 = vld [vmem:[%s12219_s20 + $0x648] sm:$0xff] }
 0x12b   : > { %5029 = vmatpush.bf16.msra.mxu0 %v10931_v9  ;;  %5999 = vmatpush.bf16.msra.mxu1 %v10931_v9 }
 0x12c   : > { %6969 = vmatpush.bf16.msra.mxu2 %v10931_v9  ;;  %7939 = vmatpush.bf16.msra.mxu3 %v10931_v9 }
 0x12f   : > { %5030 = vmatpush.bf16.msra.mxu0 %v10930_v10  ;;  %6000 = vmatpush.bf16.msra.mxu1 %v10930_v10 }
 0x130   : > { %6970 = vmatpush.bf16.msra.mxu2 %v10930_v10  ;;  %7940 = vmatpush.bf16.msra.mxu3 %v10930_v10 }
 0x132   : > { %9519 = vmatmul.msk.bf16.vlgmr.msra.gmra.mxu0 %vm4823_vm2, %v10935_v11  ;;  %9967 = vmatmul.msk.bf16.vlgmr.msra.gmra.mxu1 %vm4823_vm2, %v10999_v12 }
 0x133   : > { %10415 = vmatmul.msk.bf16.vlgmr.msra.gmra.mxu2 %vm4823_vm2, %v11063_v13  ;;  %10863 = vmatmul.msk.bf16.vlgmr.msra.gmra.mxu3 %vm4823_vm2, %v11127_v14 }
 0x142   : > { %9520 = vmatmul.msk.bf16.gmra.mxu0 %vm4823_vm2, %v10936_v15  ;;  %9968 = vmatmul.msk.bf16.gmra.mxu1 %vm4823_vm2, %v11000_v16 }
 0x143   : > { %10416 = vmatmul.msk.bf16.gmra.mxu2 %vm4823_vm2, %v11064_v17  ;;  %10864 = vmatmul.msk.bf16.gmra.mxu3 %vm4823_vm2, %v11128_v18  ;;  %v10945_v18 = vld [vmem:[%s12219_s20 + $0x50] sm:$0xff] }
 0x152   : > { %9521 = vmatmul.msk.bf16.gmra.mxu0 %vm4823_vm2, %v10937_v19  ;;  %9969 = vmatmul.msk.bf16.gmra.mxu1 %vm4823_vm2, %v11001_v20  ;;  %v11009_v19 = vld [vmem:[%s12219_s20 + $0x250] sm:$0xff] }
 0x153   : > { %10417 = vmatmul.msk.bf16.gmra.mxu2 %vm4823_vm2, %v11065_v21  ;;  %10865 = vmatmul.msk.bf16.gmra.mxu3 %vm4823_vm2, %v11129_v22 }
 0x162   : > { %9522 = vmatmul.msk.bf16.gmra.mxu0 %vm4823_vm2, %v10938_v23  ;;  %9970 = vmatmul.msk.bf16.gmra.mxu1 %vm4823_vm2, %v11002_v24  ;;  %v11073_v24 = vld [vmem:[%s12219_s20 + $0x450] sm:$0xff] }
 0x163   : > { %10418 = vmatmul.msk.bf16.gmra.mxu2 %vm4823_vm2, %v11066_v25  ;;  %10866 = vmatmul.msk.bf16.gmra.mxu3 %vm4823_vm2, %v11130_v26  ;;  %v11137_v25 = vld [vmem:[%s12219_s20 + $0x650] sm:$0xff] }
 0x172   : > { %9523 = vmatmul.msk.bf16.gmra.mxu0 %vm4823_vm2, %v10939_v27  ;;  %9971 = vmatmul.msk.bf16.gmra.mxu1 %vm4823_vm2, %v11003_v28 }
 0x173   : > { %10419 = vmatmul.msk.bf16.gmra.mxu2 %vm4823_vm2, %v11067_v29  ;;  %10867 = vmatmul.msk.bf16.gmra.mxu3 %vm4823_vm2, %v11131_v30 }
 0x182   : > { %9524 = vmatmul.msk.bf16.gmra.mxu0 %vm4823_vm2, %v10940_v31  ;;  %9972 = vmatmul.msk.bf16.gmra.mxu1 %vm4823_vm2, %v11004_v32 }
 0x183   : > { %10420 = vmatmul.msk.bf16.gmra.mxu2 %vm4823_vm2, %v11068_v33  ;;  %10868 = vmatmul.msk.bf16.gmra.mxu3 %vm4823_vm2, %v11132_v34 }
 0x192   : > { %9525 = vmatmul.msk.bf16.gmra.mxu0 %vm4823_vm2, %v10941_v35  ;;  %9973 = vmatmul.msk.bf16.gmra.mxu1 %vm4823_vm2, %v11005_v36 }
 0x193   : > { %10421 = vmatmul.msk.bf16.gmra.mxu2 %vm4823_vm2, %v11069_v37  ;;  %10869 = vmatmul.msk.bf16.gmra.mxu3 %vm4823_vm2, %v11133_v38 }
 0x1a2   : > { %9526 = vmatmul.msk.bf16.gmra.mxu0 %vm4823_vm2, %v10942_v39  ;;  %9974 = vmatmul.msk.bf16.gmra.mxu1 %vm4823_vm2, %v11006_v40 }
 0x1a3   : > { %10422 = vmatmul.msk.bf16.gmra.mxu2 %vm4823_vm2, %v11070_v41  ;;  %10870 = vmatmul.msk.bf16.gmra.mxu3 %vm4823_vm2, %v11134_v42  ;;  %v10946_v41 = vld [vmem:[%s12219_s20 + $0x58] sm:$0xff] }
 0x1a4   : > { %v11010_v42 = vld [vmem:[%s12219_s20 + $0x258] sm:$0xff] }
 0x1af   : > { %v5032_v45 = vpop.f32.mrf.mxu0  ;;  %v6002_v46 = vpop.f32.mrf.mxu1 }
 0x1b0   : > { %v8262_v53 = vmax.f32 %v5032_v45, %v6002_v46 }
 0x1b2   : > { %9527 = vmatmul.msk.bf16.gmra.mxu0 %vm4823_vm2, %v10943_v43  ;;  %9975 = vmatmul.msk.bf16.gmra.mxu1 %vm4823_vm2, %v11007_v44 }
 0x1b3   : > { %10423 = vmatmul.msk.bf16.gmra.mxu2 %vm4823_vm2, %v11071_v47  ;;  %10871 = vmatmul.msk.bf16.gmra.mxu3 %vm4823_vm2, %v11135_v48  ;;  %v11074_v47 = vld [vmem:[%s12219_s20 + $0x458] sm:$0xff] }
 0x1b4   : > { %v11138_v48 = vld [vmem:[%s12219_s20 + $0x658] sm:$0xff] }
 0x1b6   : > { %v6972_v49 = vpop.f32.mrf.mxu2  ;;  %v7942_v50 = vpop.f32.mrf.mxu3 }
 0x1b7   : > { %v5034_v51 = vpop.f32.mrf.mxu0  ;;  %v6004_v52 = vpop.f32.mrf.mxu1  ;;  %v8390_v54 = vmax.f32 %v6972_v49, %v7942_v50 }
 0x1b8   : > { %v8263_v61 = vmax.f32 %v5034_v51, %v6004_v52 }
 0x1b9   : > { %v8518_v55 = vmax.f32 %v8262_v53, %v8390_v54 }
 0x1bb   : > { %v8650_v3 = vadd.f32 %v12298_v56, %v8518_v55 }
 0x1bd   : > { %v8778_v6 = vmax.f32 %v8650_v3, 0.0 }
 0x1be   : > { %v6974_v57 = vpop.f32.mrf.mxu2  ;;  %v7944_v58 = vpop.f32.mrf.mxu3 }
 0x1bf   : > { %v8391_v62 = vmax.f32 %v6974_v57, %v7944_v58  ;;  %v5037_v63 = vpop.f32.mrf.mxu0  ;;  %v6007_v0 = vpop.f32.mrf.mxu1 }
 0x1c0   : > { %v8264_v13 = vmax.f32 %v5037_v63, %v6007_v0 }
 0x1c1   : > { %v8519_v4 = vmax.f32 %v8263_v61, %v8391_v62 }
 0x1c2   : > { %9528 = vmatmul.msk.bf16.gmra.mxu0 %vm4823_vm2, %v10944_v59  ;;  %9976 = vmatmul.msk.bf16.gmra.mxu1 %vm4823_vm2, %v11008_v60 }
 0x1c3   : > { %v8651_v5 = vadd.f32 %v12298_v56, %v8519_v4  ;;  %10424 = vmatmul.msk.bf16.gmra.mxu2 %vm4823_vm2, %v11072_v1  ;;  %10872 = vmatmul.msk.bf16.gmra.mxu3 %vm4823_vm2, %v11136_v2  ;;  %v10947_v1 = vld [vmem:[%s12219_s20 + $0x60] sm:$0xff] }
 0x1c4   : > { %v11011_v2 = vld [vmem:[%s12219_s20 + $0x260] sm:$0xff] }
 0x1c5   : > { %v8779_v7 = vmax.f32 %v8651_v5, 0.0 }
 0x1c6   : > { %v6977_v8 = vpop.f32.mrf.mxu2  ;;  %v7947_v9 = vpop.f32.mrf.mxu3 }
 0x1c7   : > { %v11194_v10 = vpack.c.bf16 %v8779_v7, %v8778_v6  ;;  %v5039_v11 = vpop.f32.mrf.mxu0  ;;  %v6009_v12 = vpop.f32.mrf.mxu1  ;;  %v8392_v14 = vmax.f32 %v6977_v8, %v7947_v9  ;;  %v11075_v7 = vld [vmem:[%s12219_s20 + $0x460] sm:$0xff] }
 0x1c8   : > { %v8265_v20 = vmax.f32 %v5039_v11, %v6009_v12  ;;  %v11139_v8 = vld [vmem:[%s12219_s20 + $0x660] sm:$0xff] }
 0x1c9   : > { %11195 = vst [vmem:[%s12313_s24] sm:$0xff] %v11194_v10   ;;  %v8520_v15 = vmax.f32 %v8264_v13, %v8392_v14 }
 0x1cb   : > { %v8652_v26 = vadd.f32 %v12298_v56, %v8520_v15 }
 0x1cd   : > { %v8780_v29 = vmax.f32 %v8652_v26, 0.0 }
 0x1ce   : > { %v6979_v16 = vpop.f32.mrf.mxu2  ;;  %v7949_v17 = vpop.f32.mrf.mxu3 }
 0x1cf   : > { %v8393_v21 = vmax.f32 %v6979_v16, %v7949_v17  ;;  %v5042_v22 = vpop.f32.mrf.mxu0  ;;  %v6012_v23 = vpop.f32.mrf.mxu1 }
 0x1d0   : > { %v8266_v36 = vmax.f32 %v5042_v22, %v6012_v23 }
 0x1d1   : > { %v8521_v27 = vmax.f32 %v8265_v20, %v8393_v21 }
 0x1d2   : > { %9529 = vmatmul.msk.bf16.gmra.mxu0 %vm4823_vm2, %v10945_v18  ;;  %9977 = vmatmul.msk.bf16.gmra.mxu1 %vm4823_vm2, %v11009_v19 }
 0x1d3   : > { %v8653_v28 = vadd.f32 %v12298_v56, %v8521_v27  ;;  %10425 = vmatmul.msk.bf16.gmra.mxu2 %vm4823_vm2, %v11073_v24  ;;  %10873 = vmatmul.msk.bf16.gmra.mxu3 %vm4823_vm2, %v11137_v25  ;;  %v10948_v24 = vld [vmem:[%s12219_s20 + $0x68] sm:$0xff] }
 0x1d4   : > { %v11012_v25 = vld [vmem:[%s12219_s20 + $0x268] sm:$0xff] }
 0x1d5   : > { %v8781_v30 = vmax.f32 %v8653_v28, 0.0 }
 0x1d6   : > { %v6982_v31 = vpop.f32.mrf.mxu2  ;;  %v7952_v32 = vpop.f32.mrf.mxu3 }
 0x1d7   : > { %v11199_v33 = vpack.c.bf16 %v8781_v30, %v8780_v29  ;;  %v5044_v34 = vpop.f32.mrf.mxu0  ;;  %v6014_v35 = vpop.f32.mrf.mxu1  ;;  %v8394_v37 = vmax.f32 %v6982_v31, %v7952_v32  ;;  %v11076_v30 = vld [vmem:[%s12219_s20 + $0x468] sm:$0xff] }
 0x1d8   : > { %v8267_v43 = vmax.f32 %v5044_v34, %v6014_v35  ;;  %v11140_v31 = vld [vmem:[%s12219_s20 + $0x668] sm:$0xff] }
 0x1d9   : > { %11511 = vst [vmem:[%s12313_s24 + $0x8] sm:$0xff] %v11199_v33   ;;  %v8522_v38 = vmax.f32 %v8266_v36, %v8394_v37 }
 0x1db   : > { %v8654_v49 = vadd.f32 %v12298_v56, %v8522_v38 }
 0x1dd   : > { %v8782_v52 = vmax.f32 %v8654_v49, 0.0 }
 0x1de   : > { %v6984_v39 = vpop.f32.mrf.mxu2  ;;  %v7954_v40 = vpop.f32.mrf.mxu3 }
 0x1df   : > { %v8395_v44 = vmax.f32 %v6984_v39, %v7954_v40  ;;  %v5047_v45 = vpop.f32.mrf.mxu0  ;;  %v6017_v46 = vpop.f32.mrf.mxu1 }
 0x1e0   : > { %v8268_v60 = vmax.f32 %v5047_v45, %v6017_v46 }
 0x1e1   : > { %v8523_v50 = vmax.f32 %v8267_v43, %v8395_v44 }
 0x1e2   : > { %9530 = vmatmul.msk.bf16.gmra.mxu0 %vm4823_vm2, %v10946_v41  ;;  %9978 = vmatmul.msk.bf16.gmra.mxu1 %vm4823_vm2, %v11010_v42 }
 0x1e3   : > { %v8655_v51 = vadd.f32 %v12298_v56, %v8523_v50  ;;  %10426 = vmatmul.msk.bf16.gmra.mxu2 %vm4823_vm2, %v11074_v47  ;;  %10874 = vmatmul.msk.bf16.gmra.mxu3 %vm4823_vm2, %v11138_v48  ;;  %v10949_v47 = vld [vmem:[%s12219_s20 + $0x70] sm:$0xff] }
 0x1e4   : > { %v11013_v48 = vld [vmem:[%s12219_s20 + $0x270] sm:$0xff] }
 0x1e5   : > { %v8783_v53 = vmax.f32 %v8655_v51, 0.0 }
 0x1e6   : > { %v6987_v54 = vpop.f32.mrf.mxu2  ;;  %v7957_v55 = vpop.f32.mrf.mxu3 }
 0x1e7   : > { %v11204_v57 = vpack.c.bf16 %v8783_v53, %v8782_v52  ;;  %v5049_v58 = vpop.f32.mrf.mxu0  ;;  %v6019_v59 = vpop.f32.mrf.mxu1  ;;  %v8396_v61 = vmax.f32 %v6987_v54, %v7957_v55  ;;  %v11077_v53 = vld [vmem:[%s12219_s20 + $0x470] sm:$0xff] }
 0x1e8   : > { %v8269_v3 = vmax.f32 %v5049_v58, %v6019_v59  ;;  %v11141_v54 = vld [vmem:[%s12219_s20 + $0x670] sm:$0xff] }
 0x1e9   : > { %11512 = vst [vmem:[%s12313_s24 + $0x10] sm:$0xff] %v11204_v57   ;;  %v8524_v62 = vmax.f32 %v8268_v60, %v8396_v61 }
 0x1eb   : > { %v8656_v9 = vadd.f32 %v12298_v56, %v8524_v62 }
 0x1ed   : > { %v8784_v12 = vmax.f32 %v8656_v9, 0.0 }
 0x1ee   : > { %v6989_v63 = vpop.f32.mrf.mxu2  ;;  %v7959_v0 = vpop.f32.mrf.mxu3 }
 0x1ef   : > { %v8397_v4 = vmax.f32 %v6989_v63, %v7959_v0  ;;  %v5052_v5 = vpop.f32.mrf.mxu0  ;;  %v6022_v6 = vpop.f32.mrf.mxu1 }
 0x1f0   : > { %v8270_v19 = vmax.f32 %v5052_v5, %v6022_v6 }
 0x1f1   : > { %v8525_v10 = vmax.f32 %v8269_v3, %v8397_v4 }
 0x1f2   : > { %9531 = vmatmul.msk.bf16.gmra.mxu0 %vm4823_vm2, %v10947_v1  ;;  %9979 = vmatmul.msk.bf16.gmra.mxu1 %vm4823_vm2, %v11011_v2 }
 0x1f3   : > { %v8657_v11 = vadd.f32 %v12298_v56, %v8525_v10  ;;  %10427 = vmatmul.msk.bf16.gmra.mxu2 %vm4823_vm2, %v11075_v7  ;;  %10875 = vmatmul.msk.bf16.gmra.mxu3 %vm4823_vm2, %v11139_v8  ;;  %v10950_v7 = vld [vmem:[%s12219_s20 + $0x78] sm:$0xff] }
 0x1f4   : > { %v11014_v8 = vld [vmem:[%s12219_s20 + $0x278] sm:$0xff] }
 0x1f5   : > { %v8785_v13 = vmax.f32 %v8657_v11, 0.0 }
 0x1f6   : > { %v6992_v14 = vpop.f32.mrf.mxu2  ;;  %v7962_v15 = vpop.f32.mrf.mxu3 }
 0x1f7   : > { %v11209_v16 = vpack.c.bf16 %v8785_v13, %v8784_v12  ;;  %v5054_v17 = vpop.f32.mrf.mxu0  ;;  %v6024_v18 = vpop.f32.mrf.mxu1  ;;  %v8398_v20 = vmax.f32 %v6992_v14, %v7962_v15  ;;  %v11078_v13 = vld [vmem:[%s12219_s20 + $0x478] sm:$0xff] }
 0x1f8   : > { %v8271_v26 = vmax.f32 %v5054_v17, %v6024_v18  ;;  %v11142_v14 = vld [vmem:[%s12219_s20 + $0x678] sm:$0xff] }
 0x1f9   : > { %11513 = vst [vmem:[%s12313_s24 + $0x18] sm:$0xff] %v11209_v16   ;;  %v8526_v21 = vmax.f32 %v8270_v19, %v8398_v20 }
 0x1fb   : > { %v8658_v32 = vadd.f32 %v12298_v56, %v8526_v21 }
 0x1fd   : > { %v8786_v35 = vmax.f32 %v8658_v32, 0.0 }
 0x1fe   : > { %v6994_v22 = vpop.f32.mrf.mxu2  ;;  %v7964_v23 = vpop.f32.mrf.mxu3 }
 0x1ff   : > { %v8399_v27 = vmax.f32 %v6994_v22, %v7964_v23  ;;  %v5057_v28 = vpop.f32.mrf.mxu0  ;;  %v6027_v29 = vpop.f32.mrf.mxu1 }
 0x200   : > { %v8272_v42 = vmax.f32 %v5057_v28, %v6027_v29 }
 0x201   : > { %v8527_v33 = vmax.f32 %v8271_v26, %v8399_v27 }
 0x202   : > { %9532 = vmatmul.msk.bf16.gmra.mxu0 %vm4823_vm2, %v10948_v24  ;;  %9980 = vmatmul.msk.bf16.gmra.mxu1 %vm4823_vm2, %v11012_v25 }
 0x203   : > { %v8659_v34 = vadd.f32 %v12298_v56, %v8527_v33  ;;  %10428 = vmatmul.msk.bf16.gmra.mxu2 %vm4823_vm2, %v11076_v30  ;;  %10876 = vmatmul.msk.bf16.gmra.mxu3 %vm4823_vm2, %v11140_v31  ;;  %v10951_v30 = vld [vmem:[%s12219_s20 + $0x80] sm:$0xff] }
 0x204   : > { %v11015_v31 = vld [vmem:[%s12219_s20 + $0x280] sm:$0xff] }
 0x205   : > { %v8787_v36 = vmax.f32 %v8659_v34, 0.0 }
 0x206   : > { %v6997_v37 = vpop.f32.mrf.mxu2  ;;  %v7967_v38 = vpop.f32.mrf.mxu3 }
 0x207   : > { %v11214_v39 = vpack.c.bf16 %v8787_v36, %v8786_v35  ;;  %v5059_v40 = vpop.f32.mrf.mxu0  ;;  %v6029_v41 = vpop.f32.mrf.mxu1  ;;  %v8400_v43 = vmax.f32 %v6997_v37, %v7967_v38  ;;  %v11079_v36 = vld [vmem:[%s12219_s20 + $0x480] sm:$0xff] }
 0x208   : > { %v8273_v49 = vmax.f32 %v5059_v40, %v6029_v41  ;;  %v11143_v37 = vld [vmem:[%s12219_s20 + $0x680] sm:$0xff] }
 0x209   : > { %11514 = vst [vmem:[%s12313_s24 + $0x20] sm:$0xff] %v11214_v39   ;;  %v8528_v44 = vmax.f32 %v8272_v42, %v8400_v43 }
 0x20b   : > { %v8660_v55 = vadd.f32 %v12298_v56, %v8528_v44 }
 0x20d   : > { %v8788_v59 = vmax.f32 %v8660_v55, 0.0 }
 0x20e   : > { %v6999_v45 = vpop.f32.mrf.mxu2  ;;  %v7969_v46 = vpop.f32.mrf.mxu3 }
 0x20f   : > { %v8401_v50 = vmax.f32 %v6999_v45, %v7969_v46  ;;  %v5062_v51 = vpop.f32.mrf.mxu0  ;;  %v6032_v52 = vpop.f32.mrf.mxu1 }
 0x210   : > { %v8274_v2 = vmax.f32 %v5062_v51, %v6032_v52 }
 0x211   : > { %v8529_v57 = vmax.f32 %v8273_v49, %v8401_v50 }
 0x212   : > { %9533 = vmatmul.msk.bf16.gmra.mxu0 %vm4823_vm2, %v10949_v47  ;;  %9981 = vmatmul.msk.bf16.gmra.mxu1 %vm4823_vm2, %v11013_v48 }
 0x213   : > { %v8661_v58 = vadd.f32 %v12298_v56, %v8529_v57  ;;  %10429 = vmatmul.msk.bf16.gmra.mxu2 %vm4823_vm2, %v11077_v53  ;;  %10877 = vmatmul.msk.bf16.gmra.mxu3 %vm4823_vm2, %v11141_v54  ;;  %v10952_v53 = vld [vmem:[%s12219_s20 + $0x88] sm:$0xff] }
 0x214   : > { %v11016_v54 = vld [vmem:[%s12219_s20 + $0x288] sm:$0xff] }
 0x215   : > { %v8789_v60 = vmax.f32 %v8661_v58, 0.0 }
 0x216   : > { %v7002_v61 = vpop.f32.mrf.mxu2  ;;  %v7972_v62 = vpop.f32.mrf.mxu3 }
 0x217   : > { %v11219_v63 = vpack.c.bf16 %v8789_v60, %v8788_v59  ;;  %v5064_v0 = vpop.f32.mrf.mxu0  ;;  %v6034_v1 = vpop.f32.mrf.mxu1  ;;  %v8402_v3 = vmax.f32 %v7002_v61, %v7972_v62  ;;  %v11080_v60 = vld [vmem:[%s12219_s20 + $0x488] sm:$0xff] }
 0x218   : > { %v8275_v9 = vmax.f32 %v5064_v0, %v6034_v1  ;;  %v11144_v61 = vld [vmem:[%s12219_s20 + $0x688] sm:$0xff] }
 0x219   : > { %11515 = vst [vmem:[%s12313_s24 + $0x28] sm:$0xff] %v11219_v63   ;;  %v8530_v4 = vmax.f32 %v8274_v2, %v8402_v3 }
 0x21b   : > { %v8662_v15 = vadd.f32 %v12298_v56, %v8530_v4 }
 0x21d   : > { %v8790_v18 = vmax.f32 %v8662_v15, 0.0 }
 0x21e   : > { %v7004_v5 = vpop.f32.mrf.mxu2  ;;  %v7974_v6 = vpop.f32.mrf.mxu3 }
 0x21f   : > { %v8403_v10 = vmax.f32 %v7004_v5, %v7974_v6  ;;  %v5067_v11 = vpop.f32.mrf.mxu0  ;;  %v6037_v12 = vpop.f32.mrf.mxu1 }
 0x220   : > { %v8276_v25 = vmax.f32 %v5067_v11, %v6037_v12 }
 0x221   : > { %v8531_v16 = vmax.f32 %v8275_v9, %v8403_v10 }
 0x222   : > { %9534 = vmatmul.msk.bf16.gmra.mxu0 %vm4823_vm2, %v10950_v7  ;;  %9982 = vmatmul.msk.bf16.gmra.mxu1 %vm4823_vm2, %v11014_v8 }
 0x223   : > { %v8663_v17 = vadd.f32 %v12298_v56, %v8531_v16  ;;  %10430 = vmatmul.msk.bf16.gmra.mxu2 %vm4823_vm2, %v11078_v13  ;;  %10878 = vmatmul.msk.bf16.gmra.mxu3 %vm4823_vm2, %v11142_v14  ;;  %v10953_v13 = vld [vmem:[%s12219_s20 + $0x90] sm:$0xff] }
 0x224   : > { %v11017_v14 = vld [vmem:[%s12219_s20 + $0x290] sm:$0xff] }
 0x225   : > { %v8791_v19 = vmax.f32 %v8663_v17, 0.0 }
 0x226   : > { %v7007_v20 = vpop.f32.mrf.mxu2  ;;  %v7977_v21 = vpop.f32.mrf.mxu3 }
 0x227   : > { %v11224_v22 = vpack.c.bf16 %v8791_v19, %v8790_v18  ;;  %v5069_v23 = vpop.f32.mrf.mxu0  ;;  %v6039_v24 = vpop.f32.mrf.mxu1  ;;  %v8404_v26 = vmax.f32 %v7007_v20, %v7977_v21  ;;  %v11081_v19 = vld [vmem:[%s12219_s20 + $0x490] sm:$0xff] }
 0x228   : > { %v8277_v32 = vmax.f32 %v5069_v23, %v6039_v24  ;;  %v11145_v20 = vld [vmem:[%s12219_s20 + $0x690] sm:$0xff] }
 0x229   : > { %11516 = vst [vmem:[%s12313_s24 + $0x30] sm:$0xff] %v11224_v22   ;;  %v8532_v27 = vmax.f32 %v8276_v25, %v8404_v26 }
 0x22b   : > { %v8664_v38 = vadd.f32 %v12298_v56, %v8532_v27 }
 0x22d   : > { %v8792_v41 = vmax.f32 %v8664_v38, 0.0 }
 0x22e   : > { %v7009_v28 = vpop.f32.mrf.mxu2  ;;  %v7979_v29 = vpop.f32.mrf.mxu3 }
 0x22f   : > { %v8405_v33 = vmax.f32 %v7009_v28, %v7979_v29  ;;  %v5072_v34 = vpop.f32.mrf.mxu0  ;;  %v6042_v35 = vpop.f32.mrf.mxu1 }
 0x230   : > { %v8278_v48 = vmax.f32 %v5072_v34, %v6042_v35 }
 0x231   : > { %v8533_v39 = vmax.f32 %v8277_v32, %v8405_v33 }
 0x232   : > { %9535 = vmatmul.msk.bf16.gmra.mxu0 %vm4823_vm2, %v10951_v30  ;;  %9983 = vmatmul.msk.bf16.gmra.mxu1 %vm4823_vm2, %v11015_v31 }
 0x233   : > { %v8665_v40 = vadd.f32 %v12298_v56, %v8533_v39  ;;  %10431 = vmatmul.msk.bf16.gmra.mxu2 %vm4823_vm2, %v11079_v36  ;;  %10879 = vmatmul.msk.bf16.gmra.mxu3 %vm4823_vm2, %v11143_v37  ;;  %v10954_v36 = vld [vmem:[%s12219_s20 + $0x98] sm:$0xff] }
 0x234   : > { %v11018_v37 = vld [vmem:[%s12219_s20 + $0x298] sm:$0xff] }
 0x235   : > { %v8793_v42 = vmax.f32 %v8665_v40, 0.0 }
 0x236   : > { %v7012_v43 = vpop.f32.mrf.mxu2  ;;  %v7982_v44 = vpop.f32.mrf.mxu3 }
 0x237   : > { %v11229_v45 = vpack.c.bf16 %v8793_v42, %v8792_v41  ;;  %v5074_v46 = vpop.f32.mrf.mxu0  ;;  %v6044_v47 = vpop.f32.mrf.mxu1  ;;  %v8406_v49 = vmax.f32 %v7012_v43, %v7982_v44  ;;  %v11082_v42 = vld [vmem:[%s12219_s20 + $0x498] sm:$0xff] }
 0x238   : > { %v8279_v55 = vmax.f32 %v5074_v46, %v6044_v47  ;;  %v11146_v43 = vld [vmem:[%s12219_s20 + $0x698] sm:$0xff] }
 0x239   : > { %11517 = vst [vmem:[%s12313_s24 + $0x38] sm:$0xff] %v11229_v45   ;;  %v8534_v50 = vmax.f32 %v8278_v48, %v8406_v49 }
 0x23b   : > { %v8666_v62 = vadd.f32 %v12298_v56, %v8534_v50 }
 0x23d   : > { %v8794_v1 = vmax.f32 %v8666_v62, 0.0 }
 0x23e   : > { %v7014_v51 = vpop.f32.mrf.mxu2  ;;  %v7984_v52 = vpop.f32.mrf.mxu3 }
 0x23f   : > { %v8407_v57 = vmax.f32 %v7014_v51, %v7984_v52  ;;  %v5077_v58 = vpop.f32.mrf.mxu0  ;;  %v6047_v59 = vpop.f32.mrf.mxu1 }
 0x240   : > { %v8280_v8 = vmax.f32 %v5077_v58, %v6047_v59 }
 0x241   : > { %v8535_v63 = vmax.f32 %v8279_v55, %v8407_v57 }
 0x242   : > { %9536 = vmatmul.msk.bf16.gmra.mxu0 %vm4823_vm2, %v10952_v53  ;;  %9984 = vmatmul.msk.bf16.gmra.mxu1 %vm4823_vm2, %v11016_v54 }
 0x243   : > { %v8667_v0 = vadd.f32 %v12298_v56, %v8535_v63  ;;  %10432 = vmatmul.msk.bf16.gmra.mxu2 %vm4823_vm2, %v11080_v60  ;;  %10880 = vmatmul.msk.bf16.gmra.mxu3 %vm4823_vm2, %v11144_v61  ;;  %v10955_v60 = vld [vmem:[%s12219_s20 + $0xa0] sm:$0xff] }
 0x244   : > { %v11019_v61 = vld [vmem:[%s12219_s20 + $0x2a0] sm:$0xff] }
 0x245   : > { %v8795_v2 = vmax.f32 %v8667_v0, 0.0 }
 0x246   : > { %v7017_v3 = vpop.f32.mrf.mxu2  ;;  %v7987_v4 = vpop.f32.mrf.mxu3 }
 0x247   : > { %v11234_v5 = vpack.c.bf16 %v8795_v2, %v8794_v1  ;;  %v5079_v6 = vpop.f32.mrf.mxu0  ;;  %v6049_v7 = vpop.f32.mrf.mxu1  ;;  %v8408_v9 = vmax.f32 %v7017_v3, %v7987_v4  ;;  %v11083_v2 = vld [vmem:[%s12219_s20 + $0x4a0] sm:$0xff] }
 0x248   : > { %v8281_v15 = vmax.f32 %v5079_v6, %v6049_v7  ;;  %v11147_v3 = vld [vmem:[%s12219_s20 + $0x6a0] sm:$0xff] }
 0x249   : > { %11518 = vst [vmem:[%s12313_s24 + $0x40] sm:$0xff] %v11234_v5   ;;  %v8536_v10 = vmax.f32 %v8280_v8, %v8408_v9 }
 0x24b   : > { %v8668_v21 = vadd.f32 %v12298_v56, %v8536_v10 }
 0x24d   : > { %v8796_v24 = vmax.f32 %v8668_v21, 0.0 }
 0x24e   : > { %v7019_v11 = vpop.f32.mrf.mxu2  ;;  %v7989_v12 = vpop.f32.mrf.mxu3 }
 0x24f   : > { %v8409_v16 = vmax.f32 %v7019_v11, %v7989_v12  ;;  %v5082_v17 = vpop.f32.mrf.mxu0  ;;  %v6052_v18 = vpop.f32.mrf.mxu1 }
 0x250   : > { %v8282_v31 = vmax.f32 %v5082_v17, %v6052_v18 }
 0x251   : > { %v8537_v22 = vmax.f32 %v8281_v15, %v8409_v16 }
 0x252   : > { %9537 = vmatmul.msk.bf16.gmra.mxu0 %vm4823_vm2, %v10953_v13  ;;  %9985 = vmatmul.msk.bf16.gmra.mxu1 %vm4823_vm2, %v11017_v14 }
 0x253   : > { %v8669_v23 = vadd.f32 %v12298_v56, %v8537_v22  ;;  %10433 = vmatmul.msk.bf16.gmra.mxu2 %vm4823_vm2, %v11081_v19  ;;  %10881 = vmatmul.msk.bf16.gmra.mxu3 %vm4823_vm2, %v11145_v20  ;;  %v10956_v19 = vld [vmem:[%s12219_s20 + $0xa8] sm:$0xff] }
 0x254   : > { %v11020_v20 = vld [vmem:[%s12219_s20 + $0x2a8] sm:$0xff] }
 0x255   : > { %v8797_v25 = vmax.f32 %v8669_v23, 0.0 }
 0x256   : > { %v7022_v26 = vpop.f32.mrf.mxu2  ;;  %v7992_v27 = vpop.f32.mrf.mxu3 }
 0x257   : > { %v11239_v28 = vpack.c.bf16 %v8797_v25, %v8796_v24  ;;  %v5084_v29 = vpop.f32.mrf.mxu0  ;;  %v6054_v30 = vpop.f32.mrf.mxu1  ;;  %v8410_v32 = vmax.f32 %v7022_v26, %v7992_v27  ;;  %v11084_v25 = vld [vmem:[%s12219_s20 + $0x4a8] sm:$0xff] }
 0x258   : > { %v8283_v38 = vmax.f32 %v5084_v29, %v6054_v30  ;;  %v11148_v26 = vld [vmem:[%s12219_s20 + $0x6a8] sm:$0xff] }
 0x259   : > { %11519 = vst [vmem:[%s12313_s24 + $0x48] sm:$0xff] %v11239_v28   ;;  %v8538_v33 = vmax.f32 %v8282_v31, %v8410_v32 }
 0x25b   : > { %v8670_v44 = vadd.f32 %v12298_v56, %v8538_v33 }
 0x25d   : > { %v8798_v47 = vmax.f32 %v8670_v44, 0.0 }
 0x25e   : > { %v7024_v34 = vpop.f32.mrf.mxu2  ;;  %v7994_v35 = vpop.f32.mrf.mxu3 }
 0x25f   : > { %v8411_v39 = vmax.f32 %v7024_v34, %v7994_v35  ;;  %v5087_v40 = vpop.f32.mrf.mxu0  ;;  %v6057_v41 = vpop.f32.mrf.mxu1 }
 0x260   : > { %v8284_v54 = vmax.f32 %v5087_v40, %v6057_v41 }
 0x261   : > { %v8539_v45 = vmax.f32 %v8283_v38, %v8411_v39 }
 0x262   : > { %9538 = vmatmul.msk.bf16.gmra.mxu0 %vm4823_vm2, %v10954_v36  ;;  %9986 = vmatmul.msk.bf16.gmra.mxu1 %vm4823_vm2, %v11018_v37 }
 0x263   : > { %v8671_v46 = vadd.f32 %v12298_v56, %v8539_v45  ;;  %10434 = vmatmul.msk.bf16.gmra.mxu2 %vm4823_vm2, %v11082_v42  ;;  %10882 = vmatmul.msk.bf16.gmra.mxu3 %vm4823_vm2, %v11146_v43  ;;  %v10957_v42 = vld [vmem:[%s12219_s20 + $0xb0] sm:$0xff] }
 0x264   : > { %v11021_v43 = vld [vmem:[%s12219_s20 + $0x2b0] sm:$0xff] }
 0x265   : > { %v8799_v48 = vmax.f32 %v8671_v46, 0.0 }
 0x266   : > { %v7027_v49 = vpop.f32.mrf.mxu2  ;;  %v7997_v50 = vpop.f32.mrf.mxu3 }
 0x267   : > { %v11244_v51 = vpack.c.bf16 %v8799_v48, %v8798_v47  ;;  %v5089_v52 = vpop.f32.mrf.mxu0  ;;  %v6059_v53 = vpop.f32.mrf.mxu1  ;;  %v8412_v55 = vmax.f32 %v7027_v49, %v7997_v50  ;;  %v11085_v48 = vld [vmem:[%s12219_s20 + $0x4b0] sm:$0xff] }
 0x268   : > { %v8285_v62 = vmax.f32 %v5089_v52, %v6059_v53  ;;  %v11149_v49 = vld [vmem:[%s12219_s20 + $0x6b0] sm:$0xff] }
 0x269   : > { %11520 = vst [vmem:[%s12313_s24 + $0x50] sm:$0xff] %v11244_v51   ;;  %v8540_v57 = vmax.f32 %v8284_v54, %v8412_v55 }
 0x26b   : > { %v8672_v4 = vadd.f32 %v12298_v56, %v8540_v57 }
 0x26d   : > { %v8800_v7 = vmax.f32 %v8672_v4, 0.0 }
 0x26e   : > { %v7029_v58 = vpop.f32.mrf.mxu2  ;;  %v7999_v59 = vpop.f32.mrf.mxu3 }
 0x26f   : > { %v8413_v63 = vmax.f32 %v7029_v58, %v7999_v59  ;;  %v5092_v0 = vpop.f32.mrf.mxu0  ;;  %v6062_v1 = vpop.f32.mrf.mxu1 }
 0x270   : > { %v8286_v14 = vmax.f32 %v5092_v0, %v6062_v1 }
 0x271   : > { %v8541_v5 = vmax.f32 %v8285_v62, %v8413_v63 }
 0x272   : > { %9539 = vmatmul.msk.bf16.gmra.mxu0 %vm4823_vm2, %v10955_v60  ;;  %9987 = vmatmul.msk.bf16.gmra.mxu1 %vm4823_vm2, %v11019_v61 }
 0x273   : > { %v8673_v6 = vadd.f32 %v12298_v56, %v8541_v5  ;;  %10435 = vmatmul.msk.bf16.gmra.mxu2 %vm4823_vm2, %v11083_v2  ;;  %10883 = vmatmul.msk.bf16.gmra.mxu3 %vm4823_vm2, %v11147_v3  ;;  %v10958_v2 = vld [vmem:[%s12219_s20 + $0xb8] sm:$0xff] }
 0x274   : > { %v11022_v3 = vld [vmem:[%s12219_s20 + $0x2b8] sm:$0xff] }
 0x275   : > { %v8801_v8 = vmax.f32 %v8673_v6, 0.0 }
 0x276   : > { %v7032_v9 = vpop.f32.mrf.mxu2  ;;  %v8002_v10 = vpop.f32.mrf.mxu3 }
 0x277   : > { %v11249_v11 = vpack.c.bf16 %v8801_v8, %v8800_v7  ;;  %v5094_v12 = vpop.f32.mrf.mxu0  ;;  %v6064_v13 = vpop.f32.mrf.mxu1  ;;  %v8414_v15 = vmax.f32 %v7032_v9, %v8002_v10  ;;  %v11086_v8 = vld [vmem:[%s12219_s20 + $0x4b8] sm:$0xff] }
 0x278   : > { %v8287_v21 = vmax.f32 %v5094_v12, %v6064_v13  ;;  %v11150_v9 = vld [vmem:[%s12219_s20 + $0x6b8] sm:$0xff] }
 0x279   : > { %11521 = vst [vmem:[%s12313_s24 + $0x58] sm:$0xff] %v11249_v11   ;;  %v8542_v16 = vmax.f32 %v8286_v14, %v8414_v15 }
 0x27b   : > { %v8674_v27 = vadd.f32 %v12298_v56, %v8542_v16 }
 0x27d   : > { %v8802_v30 = vmax.f32 %v8674_v27, 0.0 }
 0x27e   : > { %v7034_v17 = vpop.f32.mrf.mxu2  ;;  %v8004_v18 = vpop.f32.mrf.mxu3 }
 0x27f   : > { %v8415_v22 = vmax.f32 %v7034_v17, %v8004_v18  ;;  %v5097_v23 = vpop.f32.mrf.mxu0  ;;  %v6067_v24 = vpop.f32.mrf.mxu1 }
 0x280   : > { %v8288_v37 = vmax.f32 %v5097_v23, %v6067_v24 }
 0x281   : > { %v8543_v28 = vmax.f32 %v8287_v21, %v8415_v22 }
 0x282   : > { %9540 = vmatmul.msk.bf16.gmra.mxu0 %vm4823_vm2, %v10956_v19  ;;  %9988 = vmatmul.msk.bf16.gmra.mxu1 %vm4823_vm2, %v11020_v20 }
 0x283   : > { %v8675_v29 = vadd.f32 %v12298_v56, %v8543_v28  ;;  %10436 = vmatmul.msk.bf16.gmra.mxu2 %vm4823_vm2, %v11084_v25  ;;  %10884 = vmatmul.msk.bf16.gmra.mxu3 %vm4823_vm2, %v11148_v26  ;;  %v10959_v25 = vld [vmem:[%s12219_s20 + $0xc0] sm:$0xff] }
 0x284   : > { %v11023_v26 = vld [vmem:[%s12219_s20 + $0x2c0] sm:$0xff] }
 0x285   : > { %v8803_v31 = vmax.f32 %v8675_v29, 0.0 }
 0x286   : > { %v7037_v32 = vpop.f32.mrf.mxu2  ;;  %v8007_v33 = vpop.f32.mrf.mxu3 }
 0x287   : > { %v11254_v34 = vpack.c.bf16 %v8803_v31, %v8802_v30  ;;  %v5099_v35 = vpop.f32.mrf.mxu0  ;;  %v6069_v36 = vpop.f32.mrf.mxu1  ;;  %v8416_v38 = vmax.f32 %v7037_v32, %v8007_v33  ;;  %v11087_v31 = vld [vmem:[%s12219_s20 + $0x4c0] sm:$0xff] }
 0x288   : > { %v8289_v44 = vmax.f32 %v5099_v35, %v6069_v36  ;;  %v11151_v32 = vld [vmem:[%s12219_s20 + $0x6c0] sm:$0xff] }
 0x289   : > { %11522 = vst [vmem:[%s12313_s24 + $0x60] sm:$0xff] %v11254_v34   ;;  %v8544_v39 = vmax.f32 %v8288_v37, %v8416_v38 }
 0x28b   : > { %v8676_v50 = vadd.f32 %v12298_v56, %v8544_v39 }
 0x28d   : > { %v8804_v53 = vmax.f32 %v8676_v50, 0.0 }
 0x28e   : > { %v7039_v40 = vpop.f32.mrf.mxu2  ;;  %v8009_v41 = vpop.f32.mrf.mxu3 }
 0x28f   : > { %v8417_v45 = vmax.f32 %v7039_v40, %v8009_v41  ;;  %v5102_v46 = vpop.f32.mrf.mxu0  ;;  %v6072_v47 = vpop.f32.mrf.mxu1 }
 0x290   : > { %v8290_v61 = vmax.f32 %v5102_v46, %v6072_v47 }
 0x291   : > { %v8545_v51 = vmax.f32 %v8289_v44, %v8417_v45 }
 0x292   : > { %9541 = vmatmul.msk.bf16.gmra.mxu0 %vm4823_vm2, %v10957_v42  ;;  %9989 = vmatmul.msk.bf16.gmra.mxu1 %vm4823_vm2, %v11021_v43 }
 0x293   : > { %v8677_v52 = vadd.f32 %v12298_v56, %v8545_v51  ;;  %10437 = vmatmul.msk.bf16.gmra.mxu2 %vm4823_vm2, %v11085_v48  ;;  %10885 = vmatmul.msk.bf16.gmra.mxu3 %vm4823_vm2, %v11149_v49  ;;  %v10960_v48 = vld [vmem:[%s12219_s20 + $0xc8] sm:$0xff] }
 0x294   : > { %v11024_v49 = vld [vmem:[%s12219_s20 + $0x2c8] sm:$0xff] }
 0x295   : > { %v8805_v54 = vmax.f32 %v8677_v52, 0.0 }
 0x296   : > { %v7042_v55 = vpop.f32.mrf.mxu2  ;;  %v8012_v57 = vpop.f32.mrf.mxu3 }
 0x297   : > { %v11259_v58 = vpack.c.bf16 %v8805_v54, %v8804_v53  ;;  %v5104_v59 = vpop.f32.mrf.mxu0  ;;  %v6074_v60 = vpop.f32.mrf.mxu1  ;;  %v8418_v62 = vmax.f32 %v7042_v55, %v8012_v57  ;;  %v11088_v54 = vld [vmem:[%s12219_s20 + $0x4c8] sm:$0xff] }
 0x298   : > { %v8291_v4 = vmax.f32 %v5104_v59, %v6074_v60  ;;  %v11152_v55 = vld [vmem:[%s12219_s20 + $0x6c8] sm:$0xff] }
 0x299   : > { %11523 = vst [vmem:[%s12313_s24 + $0x68] sm:$0xff] %v11259_v58   ;;  %v8546_v63 = vmax.f32 %v8290_v61, %v8418_v62 }
 0x29b   : > { %v8678_v10 = vadd.f32 %v12298_v56, %v8546_v63 }
 0x29d   : > { %v8806_v13 = vmax.f32 %v8678_v10, 0.0 }
 0x29e   : > { %v7044_v0 = vpop.f32.mrf.mxu2  ;;  %v8014_v1 = vpop.f32.mrf.mxu3 }
 0x29f   : > { %v8419_v5 = vmax.f32 %v7044_v0, %v8014_v1  ;;  %v5107_v6 = vpop.f32.mrf.mxu0  ;;  %v6077_v7 = vpop.f32.mrf.mxu1 }
 0x2a0   : > { %v8292_v20 = vmax.f32 %v5107_v6, %v6077_v7 }
 0x2a1   : > { %v8547_v11 = vmax.f32 %v8291_v4, %v8419_v5 }
 0x2a2   : > { %9542 = vmatmul.msk.bf16.gmra.mxu0 %vm4823_vm2, %v10958_v2  ;;  %9990 = vmatmul.msk.bf16.gmra.mxu1 %vm4823_vm2, %v11022_v3 }
 0x2a3   : > { %v8679_v12 = vadd.f32 %v12298_v56, %v8547_v11  ;;  %10438 = vmatmul.msk.bf16.gmra.mxu2 %vm4823_vm2, %v11086_v8  ;;  %10886 = vmatmul.msk.bf16.gmra.mxu3 %vm4823_vm2, %v11150_v9  ;;  %v10961_v8 = vld [vmem:[%s12219_s20 + $0xd0] sm:$0xff] }
 0x2a4   : > { %v11025_v9 = vld [vmem:[%s12219_s20 + $0x2d0] sm:$0xff] }
 0x2a5   : > { %v8807_v14 = vmax.f32 %v8679_v12, 0.0 }
 0x2a6   : > { %v7047_v15 = vpop.f32.mrf.mxu2  ;;  %v8017_v16 = vpop.f32.mrf.mxu3 }
 0x2a7   : > { %v11264_v17 = vpack.c.bf16 %v8807_v14, %v8806_v13  ;;  %v5109_v18 = vpop.f32.mrf.mxu0  ;;  %v6079_v19 = vpop.f32.mrf.mxu1  ;;  %v8420_v21 = vmax.f32 %v7047_v15, %v8017_v16  ;;  %v11089_v14 = vld [vmem:[%s12219_s20 + $0x4d0] sm:$0xff] }
 0x2a8   : > { %v8293_v27 = vmax.f32 %v5109_v18, %v6079_v19  ;;  %v11153_v15 = vld [vmem:[%s12219_s20 + $0x6d0] sm:$0xff] }
 0x2a9   : > { %11524 = vst [vmem:[%s12313_s24 + $0x70] sm:$0xff] %v11264_v17   ;;  %v8548_v22 = vmax.f32 %v8292_v20, %v8420_v21 }
 0x2ab   : > { %v8680_v33 = vadd.f32 %v12298_v56, %v8548_v22 }
 0x2ad   : > { %v8808_v36 = vmax.f32 %v8680_v33, 0.0 }
 0x2ae   : > { %v7049_v23 = vpop.f32.mrf.mxu2  ;;  %v8019_v24 = vpop.f32.mrf.mxu3 }
 0x2af   : > { %v8421_v28 = vmax.f32 %v7049_v23, %v8019_v24  ;;  %v5112_v29 = vpop.f32.mrf.mxu0  ;;  %v6082_v30 = vpop.f32.mrf.mxu1 }
 0x2b0   : > { %v8294_v43 = vmax.f32 %v5112_v29, %v6082_v30  ;;  %v10962_v30 = vld [vmem:[%s12219_s20 + $0xd8] sm:$0xff] }
 0x2b1   : > { %v8549_v34 = vmax.f32 %v8293_v27, %v8421_v28 }
 0x2b2   : > { %9543 = vmatmul.msk.bf16.gmra.mxu0 %vm4823_vm2, %v10959_v25  ;;  %9991 = vmatmul.msk.bf16.gmra.mxu1 %vm4823_vm2, %v11023_v26 }
 0x2b3   : > { %v8681_v35 = vadd.f32 %v12298_v56, %v8549_v34  ;;  %10439 = vmatmul.msk.bf16.gmra.mxu2 %vm4823_vm2, %v11087_v31  ;;  %10887 = vmatmul.msk.bf16.gmra.mxu3 %vm4823_vm2, %v11151_v32  ;;  %v11026_v31 = vld [vmem:[%s12219_s20 + $0x2d8] sm:$0xff] }
 0x2b5   : > { %v8809_v37 = vmax.f32 %v8681_v35, 0.0 }
 0x2b6   : > { %v7052_v38 = vpop.f32.mrf.mxu2  ;;  %v8022_v39 = vpop.f32.mrf.mxu3 }
 0x2b7   : > { %v11269_v40 = vpack.c.bf16 %v8809_v37, %v8808_v36  ;;  %v5114_v41 = vpop.f32.mrf.mxu0  ;;  %v6084_v42 = vpop.f32.mrf.mxu1  ;;  %v8422_v44 = vmax.f32 %v7052_v38, %v8022_v39  ;;  %v11090_v36 = vld [vmem:[%s12219_s20 + $0x4d8] sm:$0xff]  ;;  %v12510_v38 = vld [vmem:[%s12964_s2] ss:$0 sm:$0xff] }
 0x2b8   : > { %v8295_v50 = vmax.f32 %v5114_v41, %v6084_v42  ;;  %v11154_v37 = vld [vmem:[%s12219_s20 + $0x6d8] sm:$0xff] }
 0x2b9   : > { %11525 = vst [vmem:[%s12313_s24 + $0x78] sm:$0xff] %v11269_v40   ;;  %v8550_v45 = vmax.f32 %v8294_v43, %v8422_v44 }
 0x2bb   : > { %v8682_v57 = vadd.f32 %v12298_v56, %v8550_v45 }
 0x2bd   : > { %v8810_v60 = vmax.f32 %v8682_v57, 0.0 }
 0x2be   : > { %v7054_v46 = vpop.f32.mrf.mxu2  ;;  %v8024_v47 = vpop.f32.mrf.mxu3 }
 0x2bf   : > { %v8423_v51 = vmax.f32 %v7054_v46, %v8024_v47  ;;  %v5117_v52 = vpop.f32.mrf.mxu0  ;;  %v6087_v53 = vpop.f32.mrf.mxu1 }
 0x2c0   : > { %v8296_v3 = vmax.f32 %v5117_v52, %v6087_v53 }
 0x2c1   : > { %v8551_v58 = vmax.f32 %v8295_v50, %v8423_v51 }
 0x2c2   : > { %9544 = vmatmul.msk.bf16.gmra.mxu0 %vm4823_vm2, %v10960_v48  ;;  %9992 = vmatmul.msk.bf16.gmra.mxu1 %vm4823_vm2, %v11024_v49 }
 0x2c3   : > { %v8683_v59 = vadd.f32 %v12298_v56, %v8551_v58  ;;  %10440 = vmatmul.msk.bf16.gmra.mxu2 %vm4823_vm2, %v11088_v54  ;;  %10888 = vmatmul.msk.bf16.gmra.mxu3 %vm4823_vm2, %v11152_v55  ;;  %v10963_v54 = vld [vmem:[%s12219_s20 + $0xe0] sm:$0xff] }
 0x2c4   : > { %v11027_v55 = vld [vmem:[%s12219_s20 + $0x2e0] sm:$0xff] }
 0x2c5   : > { %v8811_v61 = vmax.f32 %v8683_v59, 0.0 }
 0x2c6   : > { %v7057_v62 = vpop.f32.mrf.mxu2  ;;  %v8027_v63 = vpop.f32.mrf.mxu3 }
 0x2c7   : > { %v11274_v0 = vpack.c.bf16 %v8811_v61, %v8810_v60  ;;  %v5119_v1 = vpop.f32.mrf.mxu0  ;;  %v6089_v2 = vpop.f32.mrf.mxu1  ;;  %v8424_v4 = vmax.f32 %v7057_v62, %v8027_v63  ;;  %v11091_v61 = vld [vmem:[%s12219_s20 + $0x4e0] sm:$0xff] }
 0x2c8   : > { %v8297_v10 = vmax.f32 %v5119_v1, %v6089_v2  ;;  %v11155_v62 = vld [vmem:[%s12219_s20 + $0x6e0] sm:$0xff] }
 0x2c9   : > { %11526 = vst [vmem:[%s12313_s24 + $0x80] sm:$0xff] %v11274_v0   ;;  %v8552_v5 = vmax.f32 %v8296_v3, %v8424_v4 }
 0x2cb   : > { %v8684_v16 = vadd.f32 %v12298_v56, %v8552_v5 }
 0x2cd   : > { %v8812_v19 = vmax.f32 %v8684_v16, 0.0 }
 0x2ce   : > { %v7059_v6 = vpop.f32.mrf.mxu2  ;;  %v8029_v7 = vpop.f32.mrf.mxu3 }
 0x2cf   : > { %v8425_v11 = vmax.f32 %v7059_v6, %v8029_v7  ;;  %v5122_v12 = vpop.f32.mrf.mxu0  ;;  %v6092_v13 = vpop.f32.mrf.mxu1 }
 0x2d0   : > { %v8298_v26 = vmax.f32 %v5122_v12, %v6092_v13 }
 0x2d1   : > { %v8553_v17 = vmax.f32 %v8297_v10, %v8425_v11 }
 0x2d2   : > { %9545 = vmatmul.msk.bf16.gmra.mxu0 %vm4823_vm2, %v10961_v8  ;;  %9993 = vmatmul.msk.bf16.gmra.mxu1 %vm4823_vm2, %v11025_v9 }
 0x2d3   : > { %v8685_v18 = vadd.f32 %v12298_v56, %v8553_v17  ;;  %10441 = vmatmul.msk.bf16.gmra.mxu2 %vm4823_vm2, %v11089_v14  ;;  %10889 = vmatmul.msk.bf16.gmra.mxu3 %vm4823_vm2, %v11153_v15  ;;  %v10964_v14 = vld [vmem:[%s12219_s20 + $0xe8] sm:$0xff] }
 0x2d4   : > { %v11028_v15 = vld [vmem:[%s12219_s20 + $0x2e8] sm:$0xff] }
 0x2d5   : > { %v8813_v20 = vmax.f32 %v8685_v18, 0.0 }
 0x2d6   : > { %v7062_v21 = vpop.f32.mrf.mxu2  ;;  %v8032_v22 = vpop.f32.mrf.mxu3 }
 0x2d7   : > { %v11279_v23 = vpack.c.bf16 %v8813_v20, %v8812_v19  ;;  %v5124_v24 = vpop.f32.mrf.mxu0  ;;  %v6094_v25 = vpop.f32.mrf.mxu1  ;;  %v8426_v27 = vmax.f32 %v7062_v21, %v8032_v22  ;;  %v11092_v20 = vld [vmem:[%s12219_s20 + $0x4e8] sm:$0xff] }
 0x2d8   : > { %v8299_v32 = vmax.f32 %v5124_v24, %v6094_v25  ;;  %v11156_v21 = vld [vmem:[%s12219_s20 + $0x6e8] sm:$0xff] }
 0x2d9   : > { %11527 = vst [vmem:[%s12313_s24 + $0x88] sm:$0xff] %v11279_v23   ;;  %v8554_v28 = vmax.f32 %v8298_v26, %v8426_v27 }
 0x2db   : > { %v8686_v39 = vadd.f32 %v12510_v38, %v8554_v28 }
 0x2dd   : > { %v8814_v42 = vmax.f32 %v8686_v39, 0.0 }
 0x2de   : > { %v7064_v56 = vpop.f32.mrf.mxu2  ;;  %v8034_v29 = vpop.f32.mrf.mxu3 }
 0x2df   : > { %v8427_v33 = vmax.f32 %v7064_v56, %v8034_v29  ;;  %v5127_v34 = vpop.f32.mrf.mxu0  ;;  %v6097_v35 = vpop.f32.mrf.mxu1 }
 0x2e0   : > { %v8300_v49 = vmax.f32 %v5127_v34, %v6097_v35 }
 0x2e1   : > { %v8555_v40 = vmax.f32 %v8299_v32, %v8427_v33 }
 0x2e2   : > { %9546 = vmatmul.msk.bf16.gmra.mxu0 %vm4823_vm2, %v10962_v30  ;;  %9994 = vmatmul.msk.bf16.gmra.mxu1 %vm4823_vm2, %v11026_v31 }
 0x2e3   : > { %v8687_v41 = vadd.f32 %v12510_v38, %v8555_v40  ;;  %10442 = vmatmul.msk.bf16.gmra.mxu2 %vm4823_vm2, %v11090_v36  ;;  %10890 = vmatmul.msk.bf16.gmra.mxu3 %vm4823_vm2, %v11154_v37  ;;  %v10965_v36 = vld [vmem:[%s12219_s20 + $0xf0] sm:$0xff] }
 0x2e4   : > { %v11029_v37 = vld [vmem:[%s12219_s20 + $0x2f0] sm:$0xff] }
 0x2e5   : > { %v8815_v43 = vmax.f32 %v8687_v41, 0.0 }
 0x2e6   : > { %v7067_v44 = vpop.f32.mrf.mxu2  ;;  %v8037_v45 = vpop.f32.mrf.mxu3 }
 0x2e7   : > { %v11284_v46 = vpack.c.bf16 %v8815_v43, %v8814_v42  ;;  %v5129_v47 = vpop.f32.mrf.mxu0  ;;  %v6099_v48 = vpop.f32.mrf.mxu1  ;;  %v8428_v50 = vmax.f32 %v7067_v44, %v8037_v45  ;;  %v11093_v43 = vld [vmem:[%s12219_s20 + $0x4f0] sm:$0xff] }
 0x2e8   : > { %v8301_v57 = vmax.f32 %v5129_v47, %v6099_v48  ;;  %v11157_v44 = vld [vmem:[%s12219_s20 + $0x6f0] sm:$0xff] }
 0x2e9   : > { %11528 = vst [vmem:[%s12313_s24 + $0x90] sm:$0xff] %v11284_v46   ;;  %v8556_v51 = vmax.f32 %v8300_v49, %v8428_v50 }
 0x2eb   : > { %v8688_v63 = vadd.f32 %v12510_v38, %v8556_v51 }
 0x2ed   : > { %v8816_v2 = vmax.f32 %v8688_v63, 0.0 }
 0x2ee   : > { %v7069_v52 = vpop.f32.mrf.mxu2  ;;  %v8039_v53 = vpop.f32.mrf.mxu3 }
 0x2ef   : > { %v8429_v58 = vmax.f32 %v7069_v52, %v8039_v53  ;;  %v5132_v59 = vpop.f32.mrf.mxu0  ;;  %v6102_v60 = vpop.f32.mrf.mxu1 }
 0x2f0   : > { %v8302_v9 = vmax.f32 %v5132_v59, %v6102_v60 }
 0x2f1   : > { %v8557_v0 = vmax.f32 %v8301_v57, %v8429_v58 }
 0x2f2   : > { %9547 = vmatmul.msk.bf16.gmra.mxu0 %vm4823_vm2, %v10963_v54  ;;  %9995 = vmatmul.msk.bf16.gmra.mxu1 %vm4823_vm2, %v11027_v55 }
 0x2f3   : > { %v8689_v1 = vadd.f32 %v12510_v38, %v8557_v0  ;;  %10443 = vmatmul.msk.bf16.gmra.mxu2 %vm4823_vm2, %v11091_v61  ;;  %10891 = vmatmul.msk.bf16.gmra.mxu3 %vm4823_vm2, %v11155_v62  ;;  %v10966_v61 = vld [vmem:[%s12219_s20 + $0xf8] sm:$0xff] }
 0x2f4   : > { %v11030_v62 = vld [vmem:[%s12219_s20 + $0x2f8] sm:$0xff] }
 0x2f5   : > { %v8817_v3 = vmax.f32 %v8689_v1, 0.0 }
 0x2f6   : > { %v7072_v4 = vpop.f32.mrf.mxu2  ;;  %v8042_v5 = vpop.f32.mrf.mxu3 }
 0x2f7   : > { %v11289_v6 = vpack.c.bf16 %v8817_v3, %v8816_v2  ;;  %v5134_v7 = vpop.f32.mrf.mxu0  ;;  %v6104_v8 = vpop.f32.mrf.mxu1  ;;  %v8430_v10 = vmax.f32 %v7072_v4, %v8042_v5  ;;  %v11094_v3 = vld [vmem:[%s12219_s20 + $0x4f8] sm:$0xff] }
 0x2f8   : > { %v8303_v16 = vmax.f32 %v5134_v7, %v6104_v8  ;;  %v11158_v4 = vld [vmem:[%s12219_s20 + $0x6f8] sm:$0xff] }
 0x2f9   : > { %11529 = vst [vmem:[%s12313_s24 + $0x98] sm:$0xff] %v11289_v6   ;;  %v8558_v11 = vmax.f32 %v8302_v9, %v8430_v10 }
 0x2fb   : > { %v8690_v22 = vadd.f32 %v12510_v38, %v8558_v11 }
 0x2fd   : > { %v8818_v25 = vmax.f32 %v8690_v22, 0.0 }
 0x2fe   : > { %v7074_v12 = vpop.f32.mrf.mxu2  ;;  %v8044_v13 = vpop.f32.mrf.mxu3 }
 0x2ff   : > { %v8431_v17 = vmax.f32 %v7074_v12, %v8044_v13  ;;  %v5137_v18 = vpop.f32.mrf.mxu0  ;;  %v6107_v19 = vpop.f32.mrf.mxu1 }
 0x300   : > { %v8304_v31 = vmax.f32 %v5137_v18, %v6107_v19 }
 0x301   : > { %v8559_v23 = vmax.f32 %v8303_v16, %v8431_v17 }
 0x302   : > { %9548 = vmatmul.msk.bf16.gmra.mxu0 %vm4823_vm2, %v10964_v14  ;;  %9996 = vmatmul.msk.bf16.gmra.mxu1 %vm4823_vm2, %v11028_v15 }
 0x303   : > { %v8691_v24 = vadd.f32 %v12510_v38, %v8559_v23  ;;  %10444 = vmatmul.msk.bf16.gmra.mxu2 %vm4823_vm2, %v11092_v20  ;;  %10892 = vmatmul.msk.bf16.gmra.mxu3 %vm4823_vm2, %v11156_v21  ;;  %v10967_v20 = vld [vmem:[%s12219_s20 + $0x100] sm:$0xff] }
 0x304   : > { %v11031_v21 = vld [vmem:[%s12219_s20 + $0x300] sm:$0xff] }
 0x305   : > { %v8819_v26 = vmax.f32 %v8691_v24, 0.0 }
 0x306   : > { %v7077_v27 = vpop.f32.mrf.mxu2  ;;  %v8047_v28 = vpop.f32.mrf.mxu3 }
 0x307   : > { %v11294_v56 = vpack.c.bf16 %v8819_v26, %v8818_v25  ;;  %v5139_v29 = vpop.f32.mrf.mxu0  ;;  %v6109_v30 = vpop.f32.mrf.mxu1  ;;  %v8432_v32 = vmax.f32 %v7077_v27, %v8047_v28  ;;  %v11095_v26 = vld [vmem:[%s12219_s20 + $0x500] sm:$0xff] }
 0x308   : > { %v8305_v39 = vmax.f32 %v5139_v29, %v6109_v30  ;;  %v11159_v27 = vld [vmem:[%s12219_s20 + $0x700] sm:$0xff] }
 0x309   : > { %11530 = vst [vmem:[%s12313_s24 + $0xa0] sm:$0xff] %v11294_v56   ;;  %v8560_v33 = vmax.f32 %v8304_v31, %v8432_v32 }
 0x30b   : > { %v8692_v45 = vadd.f32 %v12510_v38, %v8560_v33 }
 0x30d   : > { %v8820_v48 = vmax.f32 %v8692_v45, 0.0 }
 0x30e   : > { %v7079_v34 = vpop.f32.mrf.mxu2  ;;  %v8049_v35 = vpop.f32.mrf.mxu3 }
 0x30f   : > { %v8433_v40 = vmax.f32 %v7079_v34, %v8049_v35  ;;  %v5142_v41 = vpop.f32.mrf.mxu0  ;;  %v6112_v42 = vpop.f32.mrf.mxu1 }
 0x310   : > { %v8306_v55 = vmax.f32 %v5142_v41, %v6112_v42 }
 0x311   : > { %v8561_v46 = vmax.f32 %v8305_v39, %v8433_v40 }
 0x312   : > { %9549 = vmatmul.msk.bf16.gmra.mxu0 %vm4823_vm2, %v10965_v36  ;;  %9997 = vmatmul.msk.bf16.gmra.mxu1 %vm4823_vm2, %v11029_v37 }
 0x313   : > { %v8693_v47 = vadd.f32 %v12510_v38, %v8561_v46  ;;  %10445 = vmatmul.msk.bf16.gmra.mxu2 %vm4823_vm2, %v11093_v43  ;;  %10893 = vmatmul.msk.bf16.gmra.mxu3 %vm4823_vm2, %v11157_v44  ;;  %v10968_v43 = vld [vmem:[%s12219_s20 + $0x108] sm:$0xff] }
 0x314   : > { %v11032_v44 = vld [vmem:[%s12219_s20 + $0x308] sm:$0xff] }
 0x315   : > { %v8821_v49 = vmax.f32 %v8693_v47, 0.0 }
 0x316   : > { %v7082_v50 = vpop.f32.mrf.mxu2  ;;  %v8052_v51 = vpop.f32.mrf.mxu3 }
 0x317   : > { %v11299_v52 = vpack.c.bf16 %v8821_v49, %v8820_v48  ;;  %v5144_v53 = vpop.f32.mrf.mxu0  ;;  %v6114_v54 = vpop.f32.mrf.mxu1  ;;  %v8434_v57 = vmax.f32 %v7082_v50, %v8052_v51  ;;  %v11096_v49 = vld [vmem:[%s12219_s20 + $0x508] sm:$0xff] }
 0x318   : > { %v8307_v63 = vmax.f32 %v5144_v53, %v6114_v54  ;;  %v11160_v50 = vld [vmem:[%s12219_s20 + $0x708] sm:$0xff] }
 0x319   : > { %11531 = vst [vmem:[%s12313_s24 + $0xa8] sm:$0xff] %v11299_v52   ;;  %v8562_v58 = vmax.f32 %v8306_v55, %v8434_v57 }
 0x31b   : > { %v8694_v5 = vadd.f32 %v12510_v38, %v8562_v58 }
 0x31d   : > { %v8822_v8 = vmax.f32 %v8694_v5, 0.0 }
 0x31e   : > { %v7084_v59 = vpop.f32.mrf.mxu2  ;;  %v8054_v60 = vpop.f32.mrf.mxu3 }
 0x31f   : > { %v8435_v0 = vmax.f32 %v7084_v59, %v8054_v60  ;;  %v5147_v1 = vpop.f32.mrf.mxu0  ;;  %v6117_v2 = vpop.f32.mrf.mxu1 }
 0x320   : > { %v8308_v15 = vmax.f32 %v5147_v1, %v6117_v2 }
 0x321   : > { %v8563_v6 = vmax.f32 %v8307_v63, %v8435_v0 }
 0x322   : > { %9550 = vmatmul.msk.bf16.gmra.mxu0 %vm4823_vm2, %v10966_v61  ;;  %9998 = vmatmul.msk.bf16.gmra.mxu1 %vm4823_vm2, %v11030_v62 }
 0x323   : > { %v8695_v7 = vadd.f32 %v12510_v38, %v8563_v6  ;;  %10446 = vmatmul.msk.bf16.gmra.mxu2 %vm4823_vm2, %v11094_v3  ;;  %10894 = vmatmul.msk.bf16.gmra.mxu3 %vm4823_vm2, %v11158_v4  ;;  %v10969_v3 = vld [vmem:[%s12219_s20 + $0x110] sm:$0xff] }
 0x324   : > { %v11033_v4 = vld [vmem:[%s12219_s20 + $0x310] sm:$0xff] }
 0x325   : > { %v8823_v9 = vmax.f32 %v8695_v7, 0.0 }
 0x326   : > { %v7087_v10 = vpop.f32.mrf.mxu2  ;;  %v8057_v11 = vpop.f32.mrf.mxu3 }
 0x327   : > { %v11304_v12 = vpack.c.bf16 %v8823_v9, %v8822_v8  ;;  %v5149_v13 = vpop.f32.mrf.mxu0  ;;  %v6119_v14 = vpop.f32.mrf.mxu1  ;;  %v8436_v16 = vmax.f32 %v7087_v10, %v8057_v11  ;;  %v11097_v9 = vld [vmem:[%s12219_s20 + $0x510] sm:$0xff] }
 0x328   : > { %v8309_v22 = vmax.f32 %v5149_v13, %v6119_v14  ;;  %v11161_v10 = vld [vmem:[%s12219_s20 + $0x710] sm:$0xff] }
 0x329   : > { %11532 = vst [vmem:[%s12313_s24 + $0xb0] sm:$0xff] %v11304_v12   ;;  %v8564_v17 = vmax.f32 %v8308_v15, %v8436_v16 }
 0x32b   : > { %v8696_v28 = vadd.f32 %v12510_v38, %v8564_v17 }
 0x32d   : > { %v8824_v30 = vmax.f32 %v8696_v28, 0.0 }
 0x32e   : > { %v7089_v18 = vpop.f32.mrf.mxu2  ;;  %v8059_v19 = vpop.f32.mrf.mxu3 }
 0x32f   : > { %v8437_v23 = vmax.f32 %v7089_v18, %v8059_v19  ;;  %v5152_v24 = vpop.f32.mrf.mxu0  ;;  %v6122_v25 = vpop.f32.mrf.mxu1 }
 0x330   : > { %v8310_v37 = vmax.f32 %v5152_v24, %v6122_v25 }
 0x331   : > { %v8565_v56 = vmax.f32 %v8309_v22, %v8437_v23 }
 0x332   : > { %9551 = vmatmul.msk.bf16.gmra.mxu0 %vm4823_vm2, %v10967_v20  ;;  %9999 = vmatmul.msk.bf16.gmra.mxu1 %vm4823_vm2, %v11031_v21 }
 0x333   : > { %v8697_v29 = vadd.f32 %v12510_v38, %v8565_v56  ;;  %10447 = vmatmul.msk.bf16.gmra.mxu2 %vm4823_vm2, %v11095_v26  ;;  %10895 = vmatmul.msk.bf16.gmra.mxu3 %vm4823_vm2, %v11159_v27  ;;  %v10970_v26 = vld [vmem:[%s12219_s20 + $0x118] sm:$0xff] }
 0x334   : > { %v11034_v27 = vld [vmem:[%s12219_s20 + $0x318] sm:$0xff] }
 0x335   : > { %v8825_v31 = vmax.f32 %v8697_v29, 0.0 }
 0x336   : > { %v7092_v32 = vpop.f32.mrf.mxu2  ;;  %v8062_v33 = vpop.f32.mrf.mxu3 }
 0x337   : > { %v11309_v34 = vpack.c.bf16 %v8825_v31, %v8824_v30  ;;  %v5154_v35 = vpop.f32.mrf.mxu0  ;;  %v6124_v36 = vpop.f32.mrf.mxu1  ;;  %v8438_v39 = vmax.f32 %v7092_v32, %v8062_v33  ;;  %v11098_v31 = vld [vmem:[%s12219_s20 + $0x518] sm:$0xff] }
 0x338   : > { %v8311_v45 = vmax.f32 %v5154_v35, %v6124_v36  ;;  %v11162_v32 = vld [vmem:[%s12219_s20 + $0x718] sm:$0xff] }
 0x339   : > { %11533 = vst [vmem:[%s12313_s24 + $0xb8] sm:$0xff] %v11309_v34   ;;  %v8566_v40 = vmax.f32 %v8310_v37, %v8438_v39 }
 0x33b   : > { %v8698_v51 = vadd.f32 %v12510_v38, %v8566_v40 }
 0x33d   : > { %v8826_v54 = vmax.f32 %v8698_v51, 0.0 }
 0x33e   : > { %v7094_v41 = vpop.f32.mrf.mxu2  ;;  %v8064_v42 = vpop.f32.mrf.mxu3 }
 0x33f   : > { %v8439_v46 = vmax.f32 %v7094_v41, %v8064_v42  ;;  %v5157_v47 = vpop.f32.mrf.mxu0  ;;  %v6127_v48 = vpop.f32.mrf.mxu1 }
 0x340   : > { %v8312_v62 = vmax.f32 %v5157_v47, %v6127_v48 }
 0x341   : > { %v8567_v52 = vmax.f32 %v8311_v45, %v8439_v46 }
 0x342   : > { %9552 = vmatmul.msk.bf16.gmra.mxu0 %vm4823_vm2, %v10968_v43  ;;  %10000 = vmatmul.msk.bf16.gmra.mxu1 %vm4823_vm2, %v11032_v44 }
 0x343   : > { %v8699_v53 = vadd.f32 %v12510_v38, %v8567_v52  ;;  %10448 = vmatmul.msk.bf16.gmra.mxu2 %vm4823_vm2, %v11096_v49  ;;  %10896 = vmatmul.msk.bf16.gmra.mxu3 %vm4823_vm2, %v11160_v50  ;;  %v10971_v49 = vld [vmem:[%s12219_s20 + $0x120] sm:$0xff] }
 0x344   : > { %v11035_v50 = vld [vmem:[%s12219_s20 + $0x320] sm:$0xff] }
 0x345   : > { %v8827_v55 = vmax.f32 %v8699_v53, 0.0 }
 0x346   : > { %v7097_v57 = vpop.f32.mrf.mxu2  ;;  %v8067_v58 = vpop.f32.mrf.mxu3 }
 0x347   : > { %v11314_v59 = vpack.c.bf16 %v8827_v55, %v8826_v54  ;;  %v5159_v60 = vpop.f32.mrf.mxu0  ;;  %v6129_v61 = vpop.f32.mrf.mxu1  ;;  %v8440_v63 = vmax.f32 %v7097_v57, %v8067_v58  ;;  %v11099_v55 = vld [vmem:[%s12219_s20 + $0x520] sm:$0xff] }
 0x348   : > { %v8313_v5 = vmax.f32 %v5159_v60, %v6129_v61  ;;  %v11163_v57 = vld [vmem:[%s12219_s20 + $0x720] sm:$0xff] }
 0x349   : > { %11534 = vst [vmem:[%s12313_s24 + $0xc0] sm:$0xff] %v11314_v59   ;;  %v8568_v0 = vmax.f32 %v8312_v62, %v8440_v63 }
 0x34b   : > { %v8700_v11 = vadd.f32 %v12510_v38, %v8568_v0 }
 0x34d   : > { %v8828_v14 = vmax.f32 %v8700_v11, 0.0 }
 0x34e   : > { %v7099_v1 = vpop.f32.mrf.mxu2  ;;  %v8069_v2 = vpop.f32.mrf.mxu3 }
 0x34f   : > { %v8441_v6 = vmax.f32 %v7099_v1, %v8069_v2  ;;  %v5162_v7 = vpop.f32.mrf.mxu0  ;;  %v6132_v8 = vpop.f32.mrf.mxu1 }
 0x350   : > { %v8314_v21 = vmax.f32 %v5162_v7, %v6132_v8 }
 0x351   : > { %v8569_v12 = vmax.f32 %v8313_v5, %v8441_v6 }
 0x352   : > { %9553 = vmatmul.msk.bf16.gmra.mxu0 %vm4823_vm2, %v10969_v3  ;;  %10001 = vmatmul.msk.bf16.gmra.mxu1 %vm4823_vm2, %v11033_v4 }
 0x353   : > { %v8701_v13 = vadd.f32 %v12510_v38, %v8569_v12  ;;  %10449 = vmatmul.msk.bf16.gmra.mxu2 %vm4823_vm2, %v11097_v9  ;;  %10897 = vmatmul.msk.bf16.gmra.mxu3 %vm4823_vm2, %v11161_v10  ;;  %v10972_v9 = vld [vmem:[%s12219_s20 + $0x128] sm:$0xff] }
 0x354   : > { %v11036_v10 = vld [vmem:[%s12219_s20 + $0x328] sm:$0xff] }
 0x355   : > { %v8829_v15 = vmax.f32 %v8701_v13, 0.0 }
 0x356   : > { %v7102_v16 = vpop.f32.mrf.mxu2  ;;  %v8072_v17 = vpop.f32.mrf.mxu3 }
 0x357   : > { %v11319_v18 = vpack.c.bf16 %v8829_v15, %v8828_v14  ;;  %v5164_v19 = vpop.f32.mrf.mxu0  ;;  %v6134_v20 = vpop.f32.mrf.mxu1  ;;  %v8442_v22 = vmax.f32 %v7102_v16, %v8072_v17  ;;  %v11100_v15 = vld [vmem:[%s12219_s20 + $0x528] sm:$0xff] }
 0x358   : > { %v8315_v28 = vmax.f32 %v5164_v19, %v6134_v20  ;;  %v11164_v16 = vld [vmem:[%s12219_s20 + $0x728] sm:$0xff] }
 0x359   : > { %11535 = vst [vmem:[%s12313_s24 + $0xc8] sm:$0xff] %v11319_v18   ;;  %v8570_v23 = vmax.f32 %v8314_v21, %v8442_v22 }
 0x35b   : > { %v8702_v33 = vadd.f32 %v12510_v38, %v8570_v23 }
 0x35d   : > { %v8830_v36 = vmax.f32 %v8702_v33, 0.0 }
 0x35e   : > { %v7104_v24 = vpop.f32.mrf.mxu2  ;;  %v8074_v25 = vpop.f32.mrf.mxu3 }
 0x35f   : > { %v8443_v56 = vmax.f32 %v7104_v24, %v8074_v25  ;;  %v5167_v29 = vpop.f32.mrf.mxu0  ;;  %v6137_v30 = vpop.f32.mrf.mxu1 }
 0x360   : > { %v8316_v44 = vmax.f32 %v5167_v29, %v6137_v30 }
 0x361   : > { %v8571_v34 = vmax.f32 %v8315_v28, %v8443_v56 }
 0x362   : > { %9554 = vmatmul.msk.bf16.gmra.mxu0 %vm4823_vm2, %v10970_v26  ;;  %10002 = vmatmul.msk.bf16.gmra.mxu1 %vm4823_vm2, %v11034_v27 }
 0x363   : > { %v8703_v35 = vadd.f32 %v12510_v38, %v8571_v34  ;;  %10450 = vmatmul.msk.bf16.gmra.mxu2 %vm4823_vm2, %v11098_v31  ;;  %10898 = vmatmul.msk.bf16.gmra.mxu3 %vm4823_vm2, %v11162_v32  ;;  %v10973_v31 = vld [vmem:[%s12219_s20 + $0x130] sm:$0xff] }
 0x364   : > { %v11037_v32 = vld [vmem:[%s12219_s20 + $0x330] sm:$0xff] }
 0x365   : > { %v8831_v37 = vmax.f32 %v8703_v35, 0.0 }
 0x366   : > { %v7107_v39 = vpop.f32.mrf.mxu2  ;;  %v8077_v40 = vpop.f32.mrf.mxu3 }
 0x367   : > { %v11324_v41 = vpack.c.bf16 %v8831_v37, %v8830_v36  ;;  %v5169_v42 = vpop.f32.mrf.mxu0  ;;  %v6139_v43 = vpop.f32.mrf.mxu1  ;;  %v8444_v45 = vmax.f32 %v7107_v39, %v8077_v40  ;;  %v11101_v37 = vld [vmem:[%s12219_s20 + $0x530] sm:$0xff] }
 0x368   : > { %v8317_v51 = vmax.f32 %v5169_v42, %v6139_v43  ;;  %v11165_v39 = vld [vmem:[%s12219_s20 + $0x730] sm:$0xff] }
 0x369   : > { %11536 = vst [vmem:[%s12313_s24 + $0xd0] sm:$0xff] %v11324_v41   ;;  %v8572_v46 = vmax.f32 %v8316_v44, %v8444_v45 }
 0x36b   : > { %v8704_v58 = vadd.f32 %v12510_v38, %v8572_v46 }
 0x36d   : > { %v8832_v61 = vmax.f32 %v8704_v58, 0.0 }
 0x36e   : > { %v7109_v47 = vpop.f32.mrf.mxu2  ;;  %v8079_v48 = vpop.f32.mrf.mxu3 }
 0x36f   : > { %v8445_v52 = vmax.f32 %v7109_v47, %v8079_v48  ;;  %v5172_v53 = vpop.f32.mrf.mxu0  ;;  %v6142_v54 = vpop.f32.mrf.mxu1 }
 0x370   : > { %v8318_v4 = vmax.f32 %v5172_v53, %v6142_v54 }
 0x371   : > { %v8573_v59 = vmax.f32 %v8317_v51, %v8445_v52 }
 0x372   : > { %9555 = vmatmul.msk.bf16.gmra.mxu0 %vm4823_vm2, %v10971_v49  ;;  %10003 = vmatmul.msk.bf16.gmra.mxu1 %vm4823_vm2, %v11035_v50 }
 0x373   : > { %v8705_v60 = vadd.f32 %v12510_v38, %v8573_v59  ;;  %10451 = vmatmul.msk.bf16.gmra.mxu2 %vm4823_vm2, %v11099_v55  ;;  %10899 = vmatmul.msk.bf16.gmra.mxu3 %vm4823_vm2, %v11163_v57  ;;  %v10974_v55 = vld [vmem:[%s12219_s20 + $0x138] sm:$0xff] }
 0x374   : > { %v11038_v57 = vld [vmem:[%s12219_s20 + $0x338] sm:$0xff] }
 0x375   : > { %v8833_v62 = vmax.f32 %v8705_v60, 0.0 }
 0x376   : > { %v7112_v63 = vpop.f32.mrf.mxu2  ;;  %v8082_v0 = vpop.f32.mrf.mxu3 }
 0x377   : > { %v11329_v1 = vpack.c.bf16 %v8833_v62, %v8832_v61  ;;  %v5174_v2 = vpop.f32.mrf.mxu0  ;;  %v6144_v3 = vpop.f32.mrf.mxu1  ;;  %v8446_v5 = vmax.f32 %v7112_v63, %v8082_v0  ;;  %v11102_v62 = vld [vmem:[%s12219_s20 + $0x538] sm:$0xff] }
 0x378   : > { %v8319_v11 = vmax.f32 %v5174_v2, %v6144_v3  ;;  %v11166_v63 = vld [vmem:[%s12219_s20 + $0x738] sm:$0xff] }
 0x379   : > { %11537 = vst [vmem:[%s12313_s24 + $0xd8] sm:$0xff] %v11329_v1   ;;  %v8574_v6 = vmax.f32 %v8318_v4, %v8446_v5 }
 0x37b   : > { %v8706_v17 = vadd.f32 %v12510_v38, %v8574_v6 }
 0x37d   : > { %v8834_v20 = vmax.f32 %v8706_v17, 0.0 }
 0x37e   : > { %v7114_v7 = vpop.f32.mrf.mxu2  ;;  %v8084_v8 = vpop.f32.mrf.mxu3 }
 0x37f   : > { %v8447_v12 = vmax.f32 %v7114_v7, %v8084_v8  ;;  %v5177_v13 = vpop.f32.mrf.mxu0  ;;  %v6147_v14 = vpop.f32.mrf.mxu1 }
 0x380   : > { %v8320_v27 = vmax.f32 %v5177_v13, %v6147_v14 }
 0x381   : > { %v8575_v18 = vmax.f32 %v8319_v11, %v8447_v12 }
 0x382   : > { %9556 = vmatmul.msk.bf16.gmra.mxu0 %vm4823_vm2, %v10972_v9  ;;  %10004 = vmatmul.msk.bf16.gmra.mxu1 %vm4823_vm2, %v11036_v10 }
 0x383   : > { %v8707_v19 = vadd.f32 %v12510_v38, %v8575_v18  ;;  %10452 = vmatmul.msk.bf16.gmra.mxu2 %vm4823_vm2, %v11100_v15  ;;  %10900 = vmatmul.msk.bf16.gmra.mxu3 %vm4823_vm2, %v11164_v16  ;;  %v10975_v15 = vld [vmem:[%s12219_s20 + $0x140] sm:$0xff] }
 0x384   : > { %v11039_v16 = vld [vmem:[%s12219_s20 + $0x340] sm:$0xff] }
 0x385   : > { %v8835_v21 = vmax.f32 %v8707_v19, 0.0 }
 0x386   : > { %v7117_v22 = vpop.f32.mrf.mxu2  ;;  %v8087_v23 = vpop.f32.mrf.mxu3 }
 0x387   : > { %v11334_v24 = vpack.c.bf16 %v8835_v21, %v8834_v20  ;;  %v5179_v25 = vpop.f32.mrf.mxu0  ;;  %v6149_v26 = vpop.f32.mrf.mxu1  ;;  %v8448_v28 = vmax.f32 %v7117_v22, %v8087_v23  ;;  %v11103_v21 = vld [vmem:[%s12219_s20 + $0x540] sm:$0xff] }
 0x388   : > { %v8321_v33 = vmax.f32 %v5179_v25, %v6149_v26  ;;  %v11167_v22 = vld [vmem:[%s12219_s20 + $0x740] sm:$0xff] }
 0x389   : > { %11538 = vst [vmem:[%s12313_s24 + $0xe0] sm:$0xff] %v11334_v24   ;;  %v8576_v56 = vmax.f32 %v8320_v27, %v8448_v28 }
 0x38b   : > { %v8708_v40 = vadd.f32 %v12510_v38, %v8576_v56 }
 0x38d   : > { %v8836_v43 = vmax.f32 %v8708_v40, 0.0 }
 0x38e   : > { %v7119_v29 = vpop.f32.mrf.mxu2  ;;  %v8089_v30 = vpop.f32.mrf.mxu3 }
 0x38f   : > { %v8449_v34 = vmax.f32 %v7119_v29, %v8089_v30  ;;  %v5182_v35 = vpop.f32.mrf.mxu0  ;;  %v6152_v36 = vpop.f32.mrf.mxu1 }
 0x390   : > { %v8322_v50 = vmax.f32 %v5182_v35, %v6152_v36 }
 0x391   : > { %v8577_v41 = vmax.f32 %v8321_v33, %v8449_v34 }
 0x392   : > { %9557 = vmatmul.msk.bf16.gmra.mxu0 %vm4823_vm2, %v10973_v31  ;;  %10005 = vmatmul.msk.bf16.gmra.mxu1 %vm4823_vm2, %v11037_v32 }
 0x393   : > { %v8709_v42 = vadd.f32 %v12510_v38, %v8577_v41  ;;  %10453 = vmatmul.msk.bf16.gmra.mxu2 %vm4823_vm2, %v11101_v37  ;;  %10901 = vmatmul.msk.bf16.gmra.mxu3 %vm4823_vm2, %v11165_v39  ;;  %v10976_v37 = vld [vmem:[%s12219_s20 + $0x148] sm:$0xff] }
 0x394   : > { %v11040_v39 = vld [vmem:[%s12219_s20 + $0x348] sm:$0xff] }
 0x395   : > { %v8837_v44 = vmax.f32 %v8709_v42, 0.0 }
 0x396   : > { %v7122_v45 = vpop.f32.mrf.mxu2  ;;  %v8092_v46 = vpop.f32.mrf.mxu3 }
 0x397   : > { %v11339_v47 = vpack.c.bf16 %v8837_v44, %v8836_v43  ;;  %v5184_v48 = vpop.f32.mrf.mxu0  ;;  %v6154_v49 = vpop.f32.mrf.mxu1  ;;  %v8450_v51 = vmax.f32 %v7122_v45, %v8092_v46  ;;  %v11104_v44 = vld [vmem:[%s12219_s20 + $0x548] sm:$0xff] }
 0x398   : > { %v8323_v58 = vmax.f32 %v5184_v48, %v6154_v49  ;;  %v11168_v45 = vld [vmem:[%s12219_s20 + $0x748] sm:$0xff] }
 0x399   : > { %11539 = vst [vmem:[%s12313_s24 + $0xe8] sm:$0xff] %v11339_v47   ;;  %v8578_v52 = vmax.f32 %v8322_v50, %v8450_v51 }
 0x39b   : > { %v8710_v0 = vadd.f32 %v12510_v38, %v8578_v52 }
 0x39d   : > { %v8838_v3 = vmax.f32 %v8710_v0, 0.0 }
 0x39e   : > { %v7124_v53 = vpop.f32.mrf.mxu2  ;;  %v8094_v54 = vpop.f32.mrf.mxu3 }
 0x39f   : > { %v8451_v59 = vmax.f32 %v7124_v53, %v8094_v54  ;;  %v5187_v60 = vpop.f32.mrf.mxu0  ;;  %v6157_v61 = vpop.f32.mrf.mxu1 }
 0x3a0   : > { %v8324_v10 = vmax.f32 %v5187_v60, %v6157_v61 }
 0x3a1   : > { %v8579_v1 = vmax.f32 %v8323_v58, %v8451_v59 }
 0x3a2   : > { %9558 = vmatmul.msk.bf16.gmra.mxu0 %vm4823_vm2, %v10974_v55  ;;  %10006 = vmatmul.msk.bf16.gmra.mxu1 %vm4823_vm2, %v11038_v57 }
 0x3a3   : > { %v8711_v2 = vadd.f32 %v12510_v38, %v8579_v1  ;;  %10454 = vmatmul.msk.bf16.gmra.mxu2 %vm4823_vm2, %v11102_v62  ;;  %10902 = vmatmul.msk.bf16.gmra.mxu3 %vm4823_vm2, %v11166_v63  ;;  %v10977_v62 = vld [vmem:[%s12219_s20 + $0x150] sm:$0xff] }
 0x3a4   : > { %v11041_v63 = vld [vmem:[%s12219_s20 + $0x350] sm:$0xff] }
 0x3a5   : > { %v8839_v4 = vmax.f32 %v8711_v2, 0.0 }
 0x3a6   : > { %v7127_v5 = vpop.f32.mrf.mxu2  ;;  %v8097_v6 = vpop.f32.mrf.mxu3 }
 0x3a7   : > { %v11344_v7 = vpack.c.bf16 %v8839_v4, %v8838_v3  ;;  %v5189_v8 = vpop.f32.mrf.mxu0  ;;  %v6159_v9 = vpop.f32.mrf.mxu1  ;;  %v8452_v11 = vmax.f32 %v7127_v5, %v8097_v6  ;;  %v11105_v4 = vld [vmem:[%s12219_s20 + $0x550] sm:$0xff] }
 0x3a8   : > { %v8325_v17 = vmax.f32 %v5189_v8, %v6159_v9  ;;  %v11169_v5 = vld [vmem:[%s12219_s20 + $0x750] sm:$0xff] }
 0x3a9   : > { %11540 = vst [vmem:[%s12313_s24 + $0xf0] sm:$0xff] %v11344_v7   ;;  %v8580_v12 = vmax.f32 %v8324_v10, %v8452_v11 }
 0x3ab   : > { %v8712_v23 = vadd.f32 %v12510_v38, %v8580_v12 }
 0x3ad   : > { %v8840_v26 = vmax.f32 %v8712_v23, 0.0 }
 0x3ae   : > { %v7129_v13 = vpop.f32.mrf.mxu2  ;;  %v8099_v14 = vpop.f32.mrf.mxu3 }
 0x3af   : > { %v8453_v18 = vmax.f32 %v7129_v13, %v8099_v14  ;;  %v5192_v19 = vpop.f32.mrf.mxu0  ;;  %v6162_v20 = vpop.f32.mrf.mxu1 }
 0x3b0   : > { %v8326_v32 = vmax.f32 %v5192_v19, %v6162_v20 }
 0x3b1   : > { %v8581_v24 = vmax.f32 %v8325_v17, %v8453_v18 }
 0x3b2   : > { %9559 = vmatmul.msk.bf16.gmra.mxu0 %vm4823_vm2, %v10975_v15  ;;  %10007 = vmatmul.msk.bf16.gmra.mxu1 %vm4823_vm2, %v11039_v16 }
 0x3b3   : > { %v8713_v25 = vadd.f32 %v12510_v38, %v8581_v24  ;;  %10455 = vmatmul.msk.bf16.gmra.mxu2 %vm4823_vm2, %v11103_v21  ;;  %10903 = vmatmul.msk.bf16.gmra.mxu3 %vm4823_vm2, %v11167_v22  ;;  %v10978_v21 = vld [vmem:[%s12219_s20 + $0x158] sm:$0xff] }
 0x3b4   : > { %v11042_v22 = vld [vmem:[%s12219_s20 + $0x358] sm:$0xff] }
 0x3b5   : > { %v8841_v27 = vmax.f32 %v8713_v25, 0.0 }
 0x3b6   : > { %v7132_v28 = vpop.f32.mrf.mxu2  ;;  %v8102_v56 = vpop.f32.mrf.mxu3 }
 0x3b7   : > { %v11349_v29 = vpack.c.bf16 %v8841_v27, %v8840_v26  ;;  %v5194_v30 = vpop.f32.mrf.mxu0  ;;  %v6164_v31 = vpop.f32.mrf.mxu1  ;;  %v8454_v33 = vmax.f32 %v7132_v28, %v8102_v56  ;;  %v11106_v27 = vld [vmem:[%s12219_s20 + $0x558] sm:$0xff] }
 0x3b8   : > { %v8327_v40 = vmax.f32 %v5194_v30, %v6164_v31  ;;  %v11170_v28 = vld [vmem:[%s12219_s20 + $0x758] sm:$0xff] }
 0x3b9   : > { %11541 = vst [vmem:[%s12313_s24 + $0xf8] sm:$0xff] %v11349_v29   ;;  %v8582_v34 = vmax.f32 %v8326_v32, %v8454_v33 }
 0x3bb   : > { %v8714_v46 = vadd.f32 %v12510_v38, %v8582_v34 }
 0x3bd   : > { %v8842_v49 = vmax.f32 %v8714_v46, 0.0 }
 0x3be   : > { %v7134_v35 = vpop.f32.mrf.mxu2  ;;  %v8104_v36 = vpop.f32.mrf.mxu3 }
 0x3bf   : > { %v8455_v41 = vmax.f32 %v7134_v35, %v8104_v36  ;;  %v5197_v42 = vpop.f32.mrf.mxu0  ;;  %v6167_v43 = vpop.f32.mrf.mxu1 }
 0x3c0   : > { %v8328_v57 = vmax.f32 %v5197_v42, %v6167_v43 }
 0x3c1   : > { %v8583_v47 = vmax.f32 %v8327_v40, %v8455_v41 }
 0x3c2   : > { %9560 = vmatmul.msk.bf16.gmra.mxu0 %vm4823_vm2, %v10976_v37  ;;  %10008 = vmatmul.msk.bf16.gmra.mxu1 %vm4823_vm2, %v11040_v39 }
 0x3c3   : > { %v8715_v48 = vadd.f32 %v12510_v38, %v8583_v47  ;;  %10456 = vmatmul.msk.bf16.gmra.mxu2 %vm4823_vm2, %v11104_v44  ;;  %10904 = vmatmul.msk.bf16.gmra.mxu3 %vm4823_vm2, %v11168_v45  ;;  %v10979_v44 = vld [vmem:[%s12219_s20 + $0x160] sm:$0xff] }
 0x3c4   : > { %v11043_v45 = vld [vmem:[%s12219_s20 + $0x360] sm:$0xff] }
 0x3c5   : > { %v8843_v50 = vmax.f32 %v8715_v48, 0.0 }
 0x3c6   : > { %v7137_v51 = vpop.f32.mrf.mxu2  ;;  %v8107_v52 = vpop.f32.mrf.mxu3 }
 0x3c7   : > { %v11354_v53 = vpack.c.bf16 %v8843_v50, %v8842_v49  ;;  %v5199_v54 = vpop.f32.mrf.mxu0  ;;  %v6169_v55 = vpop.f32.mrf.mxu1  ;;  %v8456_v58 = vmax.f32 %v7137_v51, %v8107_v52  ;;  %v11107_v50 = vld [vmem:[%s12219_s20 + $0x560] sm:$0xff] }
 0x3c8   : > { %v8329_v0 = vmax.f32 %v5199_v54, %v6169_v55  ;;  %v11171_v51 = vld [vmem:[%s12219_s20 + $0x760] sm:$0xff] }
 0x3c9   : > { %11542 = vst [vmem:[%s12313_s24 + $0x100] sm:$0xff] %v11354_v53   ;;  %v8584_v59 = vmax.f32 %v8328_v57, %v8456_v58 }
 0x3cb   : > { %v8716_v6 = vadd.f32 %v12510_v38, %v8584_v59 }
 0x3cd   : > { %v8844_v9 = vmax.f32 %v8716_v6, 0.0 }
 0x3ce   : > { %v7139_v60 = vpop.f32.mrf.mxu2  ;;  %v8109_v61 = vpop.f32.mrf.mxu3 }
 0x3cf   : > { %v8457_v1 = vmax.f32 %v7139_v60, %v8109_v61  ;;  %v5202_v2 = vpop.f32.mrf.mxu0  ;;  %v6172_v3 = vpop.f32.mrf.mxu1 }
 0x3d0   : > { %v8330_v16 = vmax.f32 %v5202_v2, %v6172_v3 }
 0x3d1   : > { %v8585_v7 = vmax.f32 %v8329_v0, %v8457_v1 }
 0x3d2   : > { %9561 = vmatmul.msk.bf16.gmra.mxu0 %vm4823_vm2, %v10977_v62  ;;  %10009 = vmatmul.msk.bf16.gmra.mxu1 %vm4823_vm2, %v11041_v63 }
 0x3d3   : > { %v8717_v8 = vadd.f32 %v12510_v38, %v8585_v7  ;;  %10457 = vmatmul.msk.bf16.gmra.mxu2 %vm4823_vm2, %v11105_v4  ;;  %10905 = vmatmul.msk.bf16.gmra.mxu3 %vm4823_vm2, %v11169_v5  ;;  %v10980_v4 = vld [vmem:[%s12219_s20 + $0x168] sm:$0xff] }
 0x3d4   : > { %v11044_v5 = vld [vmem:[%s12219_s20 + $0x368] sm:$0xff] }
 0x3d5   : > { %v8845_v10 = vmax.f32 %v8717_v8, 0.0 }
 0x3d6   : > { %v7142_v11 = vpop.f32.mrf.mxu2  ;;  %v8112_v12 = vpop.f32.mrf.mxu3 }
 0x3d7   : > { %v11359_v13 = vpack.c.bf16 %v8845_v10, %v8844_v9  ;;  %v5204_v14 = vpop.f32.mrf.mxu0  ;;  %v6174_v15 = vpop.f32.mrf.mxu1  ;;  %v8458_v17 = vmax.f32 %v7142_v11, %v8112_v12  ;;  %v11108_v10 = vld [vmem:[%s12219_s20 + $0x568] sm:$0xff] }
 0x3d8   : > { %v8331_v23 = vmax.f32 %v5204_v14, %v6174_v15  ;;  %v11172_v11 = vld [vmem:[%s12219_s20 + $0x768] sm:$0xff] }
 0x3d9   : > { %11543 = vst [vmem:[%s12313_s24 + $0x108] sm:$0xff] %v11359_v13   ;;  %v8586_v18 = vmax.f32 %v8330_v16, %v8458_v17 }
 0x3db   : > { %v8718_v56 = vadd.f32 %v12510_v38, %v8586_v18 }
 0x3dd   : > { %v8846_v31 = vmax.f32 %v8718_v56, 0.0 }
 0x3de   : > { %v7144_v19 = vpop.f32.mrf.mxu2  ;;  %v8114_v20 = vpop.f32.mrf.mxu3 }
 0x3df   : > { %v8459_v24 = vmax.f32 %v7144_v19, %v8114_v20  ;;  %v5207_v25 = vpop.f32.mrf.mxu0  ;;  %v6177_v26 = vpop.f32.mrf.mxu1 }
 0x3e0   : > { %v8332_v39 = vmax.f32 %v5207_v25, %v6177_v26  ;;  %v10981_v26 = vld [vmem:[%s12219_s20 + $0x170] sm:$0xff] }
 0x3e1   : > { %v8587_v29 = vmax.f32 %v8331_v23, %v8459_v24 }
 0x3e2   : > { %9562 = vmatmul.msk.bf16.gmra.mxu0 %vm4823_vm2, %v10978_v21  ;;  %10010 = vmatmul.msk.bf16.gmra.mxu1 %vm4823_vm2, %v11042_v22 }
 0x3e3   : > { %v8719_v30 = vadd.f32 %v12510_v38, %v8587_v29  ;;  %10458 = vmatmul.msk.bf16.gmra.mxu2 %vm4823_vm2, %v11106_v27  ;;  %10906 = vmatmul.msk.bf16.gmra.mxu3 %vm4823_vm2, %v11170_v28  ;;  %v11045_v27 = vld [vmem:[%s12219_s20 + $0x370] sm:$0xff] }
 0x3e5   : > { %v8847_v32 = vmax.f32 %v8719_v30, 0.0 }
 0x3e6   : > { %v7147_v33 = vpop.f32.mrf.mxu2  ;;  %v8117_v34 = vpop.f32.mrf.mxu3 }
 0x3e7   : > { %v11364_v35 = vpack.c.bf16 %v8847_v32, %v8846_v31  ;;  %v5209_v36 = vpop.f32.mrf.mxu0  ;;  %v6179_v37 = vpop.f32.mrf.mxu1  ;;  %v8460_v40 = vmax.f32 %v7147_v33, %v8117_v34  ;;  %v11109_v31 = vld [vmem:[%s12219_s20 + $0x570] sm:$0xff]  ;;  %v12724_v33 = vld [vmem:[%s12964_s2] ss:$0 sm:$0xff] }
 0x3e8   : > { %v8333_v46 = vmax.f32 %v5209_v36, %v6179_v37  ;;  %v11173_v32 = vld [vmem:[%s12219_s20 + $0x770] sm:$0xff] }
 0x3e9   : > { %11544 = vst [vmem:[%s12313_s24 + $0x110] sm:$0xff] %v11364_v35   ;;  %v8588_v41 = vmax.f32 %v8332_v39, %v8460_v40 }
 0x3eb   : > { %v8720_v52 = vadd.f32 %v12510_v38, %v8588_v41 }
 0x3ed   : > { %v8848_v55 = vmax.f32 %v8720_v52, 0.0 }
 0x3ee   : > { %v7149_v42 = vpop.f32.mrf.mxu2  ;;  %v8119_v43 = vpop.f32.mrf.mxu3 }
 0x3ef   : > { %v8461_v47 = vmax.f32 %v7149_v42, %v8119_v43  ;;  %v5212_v48 = vpop.f32.mrf.mxu0  ;;  %v6182_v49 = vpop.f32.mrf.mxu1 }
 0x3f0   : > { %v8334_v63 = vmax.f32 %v5212_v48, %v6182_v49 }
 0x3f1   : > { %v8589_v53 = vmax.f32 %v8333_v46, %v8461_v47 }
 0x3f2   : > { %9563 = vmatmul.msk.bf16.gmra.mxu0 %vm4823_vm2, %v10979_v44  ;;  %10011 = vmatmul.msk.bf16.gmra.mxu1 %vm4823_vm2, %v11043_v45 }
 0x3f3   : > { %v8721_v54 = vadd.f32 %v12510_v38, %v8589_v53  ;;  %10459 = vmatmul.msk.bf16.gmra.mxu2 %vm4823_vm2, %v11107_v50  ;;  %10907 = vmatmul.msk.bf16.gmra.mxu3 %vm4823_vm2, %v11171_v51  ;;  %v10982_v50 = vld [vmem:[%s12219_s20 + $0x178] sm:$0xff] }
 0x3f4   : > { %v11046_v51 = vld [vmem:[%s12219_s20 + $0x378] sm:$0xff] }
 0x3f5   : > { %v8849_v57 = vmax.f32 %v8721_v54, 0.0 }
 0x3f6   : > { %v7152_v58 = vpop.f32.mrf.mxu2  ;;  %v8122_v59 = vpop.f32.mrf.mxu3 }
 0x3f7   : > { %v11369_v60 = vpack.c.bf16 %v8849_v57, %v8848_v55  ;;  %v5214_v61 = vpop.f32.mrf.mxu0  ;;  %v6184_v62 = vpop.f32.mrf.mxu1  ;;  %v8462_v0 = vmax.f32 %v7152_v58, %v8122_v59  ;;  %v11110_v57 = vld [vmem:[%s12219_s20 + $0x578] sm:$0xff] }
 0x3f8   : > { %v8335_v6 = vmax.f32 %v5214_v61, %v6184_v62  ;;  %v11174_v58 = vld [vmem:[%s12219_s20 + $0x778] sm:$0xff] }
 0x3f9   : > { %11545 = vst [vmem:[%s12313_s24 + $0x118] sm:$0xff] %v11369_v60   ;;  %v8590_v1 = vmax.f32 %v8334_v63, %v8462_v0 }
 0x3fb   : > { %v8722_v12 = vadd.f32 %v12510_v38, %v8590_v1 }
 0x3fd   : > { %v8850_v15 = vmax.f32 %v8722_v12, 0.0 }
 0x3fe   : > { %v7154_v2 = vpop.f32.mrf.mxu2  ;;  %v8124_v3 = vpop.f32.mrf.mxu3 }
 0x3ff   : > { %v8463_v7 = vmax.f32 %v7154_v2, %v8124_v3  ;;  %v5217_v8 = vpop.f32.mrf.mxu0  ;;  %v6187_v9 = vpop.f32.mrf.mxu1 }
 0x400   : > { %v8336_v22 = vmax.f32 %v5217_v8, %v6187_v9 }
 0x401   : > { %v8591_v13 = vmax.f32 %v8335_v6, %v8463_v7 }
 0x402   : > { %9564 = vmatmul.msk.bf16.gmra.mxu0 %vm4823_vm2, %v10980_v4  ;;  %10012 = vmatmul.msk.bf16.gmra.mxu1 %vm4823_vm2, %v11044_v5 }
 0x403   : > { %v8723_v14 = vadd.f32 %v12510_v38, %v8591_v13  ;;  %10460 = vmatmul.msk.bf16.gmra.mxu2 %vm4823_vm2, %v11108_v10  ;;  %10908 = vmatmul.msk.bf16.gmra.mxu3 %vm4823_vm2, %v11172_v11  ;;  %v10983_v10 = vld [vmem:[%s12219_s20 + $0x180] sm:$0xff] }
 0x404   : > { %v11047_v11 = vld [vmem:[%s12219_s20 + $0x380] sm:$0xff] }
 0x405   : > { %v8851_v16 = vmax.f32 %v8723_v14, 0.0 }
 0x406   : > { %v7157_v17 = vpop.f32.mrf.mxu2  ;;  %v8127_v18 = vpop.f32.mrf.mxu3 }
 0x407   : > { %v11374_v19 = vpack.c.bf16 %v8851_v16, %v8850_v15  ;;  %v5219_v20 = vpop.f32.mrf.mxu0  ;;  %v6189_v21 = vpop.f32.mrf.mxu1  ;;  %v8464_v23 = vmax.f32 %v7157_v17, %v8127_v18  ;;  %v11111_v16 = vld [vmem:[%s12219_s20 + $0x580] sm:$0xff] }
 0x408   : > { %v8337_v28 = vmax.f32 %v5219_v20, %v6189_v21  ;;  %v11175_v17 = vld [vmem:[%s12219_s20 + $0x780] sm:$0xff] }
 0x409   : > { %11546 = vst [vmem:[%s12313_s24 + $0x120] sm:$0xff] %v11374_v19   ;;  %v8592_v24 = vmax.f32 %v8336_v22, %v8464_v23 }
 0x40b   : > { %v8724_v34 = vadd.f32 %v12724_v33, %v8592_v24 }
 0x40d   : > { %v8852_v37 = vmax.f32 %v8724_v34, 0.0 }
 0x40e   : > { %v7159_v38 = vpop.f32.mrf.mxu2  ;;  %v8129_v25 = vpop.f32.mrf.mxu3 }
 0x40f   : > { %v8465_v56 = vmax.f32 %v7159_v38, %v8129_v25  ;;  %v5222_v29 = vpop.f32.mrf.mxu0  ;;  %v6192_v30 = vpop.f32.mrf.mxu1 }
 0x410   : > { %v8338_v45 = vmax.f32 %v5222_v29, %v6192_v30 }
 0x411   : > { %v8593_v35 = vmax.f32 %v8337_v28, %v8465_v56 }
 0x412   : > { %9565 = vmatmul.msk.bf16.gmra.mxu0 %vm4823_vm2, %v10981_v26  ;;  %10013 = vmatmul.msk.bf16.gmra.mxu1 %vm4823_vm2, %v11045_v27 }
 0x413   : > { %v8725_v36 = vadd.f32 %v12724_v33, %v8593_v35  ;;  %10461 = vmatmul.msk.bf16.gmra.mxu2 %vm4823_vm2, %v11109_v31  ;;  %10909 = vmatmul.msk.bf16.gmra.mxu3 %vm4823_vm2, %v11173_v32  ;;  %v10984_v31 = vld [vmem:[%s12219_s20 + $0x188] sm:$0xff] }
 0x414   : > { %v11048_v32 = vld [vmem:[%s12219_s20 + $0x388] sm:$0xff] }
 0x415   : > { %v8853_v39 = vmax.f32 %v8725_v36, 0.0 }
 0x416   : > { %v7162_v40 = vpop.f32.mrf.mxu2  ;;  %v8132_v41 = vpop.f32.mrf.mxu3 }
 0x417   : > { %v11379_v42 = vpack.c.bf16 %v8853_v39, %v8852_v37  ;;  %v5224_v43 = vpop.f32.mrf.mxu0  ;;  %v6194_v44 = vpop.f32.mrf.mxu1  ;;  %v8466_v46 = vmax.f32 %v7162_v40, %v8132_v41  ;;  %v11112_v39 = vld [vmem:[%s12219_s20 + $0x588] sm:$0xff] }
 0x418   : > { %v8339_v52 = vmax.f32 %v5224_v43, %v6194_v44  ;;  %v11176_v40 = vld [vmem:[%s12219_s20 + $0x788] sm:$0xff] }
 0x419   : > { %11547 = vst [vmem:[%s12313_s24 + $0x128] sm:$0xff] %v11379_v42   ;;  %v8594_v47 = vmax.f32 %v8338_v45, %v8466_v46 }
 0x41b   : > { %v8726_v59 = vadd.f32 %v12724_v33, %v8594_v47 }
 0x41d   : > { %v8854_v62 = vmax.f32 %v8726_v59, 0.0 }
 0x41e   : > { %v7164_v48 = vpop.f32.mrf.mxu2  ;;  %v8134_v49 = vpop.f32.mrf.mxu3 }
 0x41f   : > { %v8467_v53 = vmax.f32 %v7164_v48, %v8134_v49  ;;  %v5227_v54 = vpop.f32.mrf.mxu0  ;;  %v6197_v55 = vpop.f32.mrf.mxu1 }
 0x420   : > { %v8340_v5 = vmax.f32 %v5227_v54, %v6197_v55 }
 0x421   : > { %v8595_v60 = vmax.f32 %v8339_v52, %v8467_v53 }
 0x422   : > { %9566 = vmatmul.msk.bf16.gmra.mxu0 %vm4823_vm2, %v10982_v50  ;;  %10014 = vmatmul.msk.bf16.gmra.mxu1 %vm4823_vm2, %v11046_v51 }
 0x423   : > { %v8727_v61 = vadd.f32 %v12724_v33, %v8595_v60  ;;  %10462 = vmatmul.msk.bf16.gmra.mxu2 %vm4823_vm2, %v11110_v57  ;;  %10910 = vmatmul.msk.bf16.gmra.mxu3 %vm4823_vm2, %v11174_v58  ;;  %v10985_v57 = vld [vmem:[%s12219_s20 + $0x190] sm:$0xff] }
 0x424   : > { %v11049_v58 = vld [vmem:[%s12219_s20 + $0x390] sm:$0xff] }
 0x425   : > { %v8855_v63 = vmax.f32 %v8727_v61, 0.0 }
 0x426   : > { %v7167_v0 = vpop.f32.mrf.mxu2  ;;  %v8137_v1 = vpop.f32.mrf.mxu3 }
 0x427   : > { %v11384_v2 = vpack.c.bf16 %v8855_v63, %v8854_v62  ;;  %v5229_v3 = vpop.f32.mrf.mxu0  ;;  %v6199_v4 = vpop.f32.mrf.mxu1  ;;  %v8468_v6 = vmax.f32 %v7167_v0, %v8137_v1  ;;  %v11113_v63 = vld [vmem:[%s12219_s20 + $0x590] sm:$0xff] }
 0x428   : > { %v8341_v12 = vmax.f32 %v5229_v3, %v6199_v4  ;;  %v11177_v0 = vld [vmem:[%s12219_s20 + $0x790] sm:$0xff] }
 0x429   : > { %11548 = vst [vmem:[%s12313_s24 + $0x130] sm:$0xff] %v11384_v2   ;;  %v8596_v7 = vmax.f32 %v8340_v5, %v8468_v6 }
 0x42b   : > { %v8728_v18 = vadd.f32 %v12724_v33, %v8596_v7 }
 0x42d   : > { %v8856_v21 = vmax.f32 %v8728_v18, 0.0 }
 0x42e   : > { %v7169_v8 = vpop.f32.mrf.mxu2  ;;  %v8139_v9 = vpop.f32.mrf.mxu3 }
 0x42f   : > { %v8469_v13 = vmax.f32 %v7169_v8, %v8139_v9  ;;  %v5232_v14 = vpop.f32.mrf.mxu0  ;;  %v6202_v15 = vpop.f32.mrf.mxu1 }
 0x430   : > { %v8342_v27 = vmax.f32 %v5232_v14, %v6202_v15 }
 0x431   : > { %v8597_v19 = vmax.f32 %v8341_v12, %v8469_v13 }
 0x432   : > { %9567 = vmatmul.msk.bf16.gmra.mxu0 %vm4823_vm2, %v10983_v10  ;;  %10015 = vmatmul.msk.bf16.gmra.mxu1 %vm4823_vm2, %v11047_v11 }
 0x433   : > { %v8729_v20 = vadd.f32 %v12724_v33, %v8597_v19  ;;  %10463 = vmatmul.msk.bf16.gmra.mxu2 %vm4823_vm2, %v11111_v16  ;;  %10911 = vmatmul.msk.bf16.gmra.mxu3 %vm4823_vm2, %v11175_v17  ;;  %v10986_v16 = vld [vmem:[%s12219_s20 + $0x198] sm:$0xff] }
 0x434   : > { %v11050_v17 = vld [vmem:[%s12219_s20 + $0x398] sm:$0xff] }
 0x435   : > { %v8857_v22 = vmax.f32 %v8729_v20, 0.0 }
 0x436   : > { %v7172_v23 = vpop.f32.mrf.mxu2  ;;  %v8142_v24 = vpop.f32.mrf.mxu3 }
 0x437   : > { %v11389_v38 = vpack.c.bf16 %v8857_v22, %v8856_v21  ;;  %v5234_v25 = vpop.f32.mrf.mxu0  ;;  %v6204_v26 = vpop.f32.mrf.mxu1  ;;  %v8470_v28 = vmax.f32 %v7172_v23, %v8142_v24  ;;  %v11114_v22 = vld [vmem:[%s12219_s20 + $0x598] sm:$0xff] }
 0x438   : > { %v8343_v34 = vmax.f32 %v5234_v25, %v6204_v26  ;;  %v11178_v23 = vld [vmem:[%s12219_s20 + $0x798] sm:$0xff] }
 0x439   : > { %11549 = vst [vmem:[%s12313_s24 + $0x138] sm:$0xff] %v11389_v38   ;;  %v8598_v56 = vmax.f32 %v8342_v27, %v8470_v28 }
 0x43b   : > { %v8730_v41 = vadd.f32 %v12724_v33, %v8598_v56 }
 0x43d   : > { %v8858_v44 = vmax.f32 %v8730_v41, 0.0 }
 0x43e   : > { %v7174_v29 = vpop.f32.mrf.mxu2  ;;  %v8144_v30 = vpop.f32.mrf.mxu3 }
 0x43f   : > { %v8471_v35 = vmax.f32 %v7174_v29, %v8144_v30  ;;  %v5237_v36 = vpop.f32.mrf.mxu0  ;;  %v6207_v37 = vpop.f32.mrf.mxu1 }
 0x440   : > { %v8344_v51 = vmax.f32 %v5237_v36, %v6207_v37 }
 0x441   : > { %v8599_v42 = vmax.f32 %v8343_v34, %v8471_v35 }
 0x442   : > { %9568 = vmatmul.msk.bf16.gmra.mxu0 %vm4823_vm2, %v10984_v31  ;;  %10016 = vmatmul.msk.bf16.gmra.mxu1 %vm4823_vm2, %v11048_v32 }
 0x443   : > { %v8731_v43 = vadd.f32 %v12724_v33, %v8599_v42  ;;  %10464 = vmatmul.msk.bf16.gmra.mxu2 %vm4823_vm2, %v11112_v39  ;;  %10912 = vmatmul.msk.bf16.gmra.mxu3 %vm4823_vm2, %v11176_v40  ;;  %v10987_v39 = vld [vmem:[%s12219_s20 + $0x1a0] sm:$0xff] }
 0x444   : > { %v11051_v40 = vld [vmem:[%s12219_s20 + $0x3a0] sm:$0xff] }
 0x445   : > { %v8859_v45 = vmax.f32 %v8731_v43, 0.0 }
 0x446   : > { %v7177_v46 = vpop.f32.mrf.mxu2  ;;  %v8147_v47 = vpop.f32.mrf.mxu3 }
 0x447   : > { %v11394_v48 = vpack.c.bf16 %v8859_v45, %v8858_v44  ;;  %v5239_v49 = vpop.f32.mrf.mxu0  ;;  %v6209_v50 = vpop.f32.mrf.mxu1  ;;  %v8472_v52 = vmax.f32 %v7177_v46, %v8147_v47  ;;  %v11115_v45 = vld [vmem:[%s12219_s20 + $0x5a0] sm:$0xff] }
 0x448   : > { %v8345_v59 = vmax.f32 %v5239_v49, %v6209_v50  ;;  %v11179_v46 = vld [vmem:[%s12219_s20 + $0x7a0] sm:$0xff] }
 0x449   : > { %11550 = vst [vmem:[%s12313_s24 + $0x140] sm:$0xff] %v11394_v48   ;;  %v8600_v53 = vmax.f32 %v8344_v51, %v8472_v52 }
 0x44b   : > { %v8732_v1 = vadd.f32 %v12724_v33, %v8600_v53 }
 0x44d   : > { %v8860_v4 = vmax.f32 %v8732_v1, 0.0 }
 0x44e   : > { %v7179_v54 = vpop.f32.mrf.mxu2  ;;  %v8149_v55 = vpop.f32.mrf.mxu3 }
 0x44f   : > { %v8473_v60 = vmax.f32 %v7179_v54, %v8149_v55  ;;  %v5242_v61 = vpop.f32.mrf.mxu0  ;;  %v6212_v62 = vpop.f32.mrf.mxu1 }
 0x450   : > { %v8346_v11 = vmax.f32 %v5242_v61, %v6212_v62 }
 0x451   : > { %v8601_v2 = vmax.f32 %v8345_v59, %v8473_v60 }
 0x452   : > { %9569 = vmatmul.msk.bf16.gmra.mxu0 %vm4823_vm2, %v10985_v57  ;;  %10017 = vmatmul.msk.bf16.gmra.mxu1 %vm4823_vm2, %v11049_v58 }
 0x453   : > { %v8733_v3 = vadd.f32 %v12724_v33, %v8601_v2  ;;  %10465 = vmatmul.msk.bf16.gmra.mxu2 %vm4823_vm2, %v11113_v63  ;;  %10913 = vmatmul.msk.bf16.gmra.mxu3 %vm4823_vm2, %v11177_v0  ;;  %v10988_v63 = vld [vmem:[%s12219_s20 + $0x1a8] sm:$0xff] }
 0x454   : > { %v11052_v0 = vld [vmem:[%s12219_s20 + $0x3a8] sm:$0xff] }
 0x455   : > { %v8861_v5 = vmax.f32 %v8733_v3, 0.0 }
 0x456   : > { %v7182_v6 = vpop.f32.mrf.mxu2  ;;  %v8152_v7 = vpop.f32.mrf.mxu3 }
 0x457   : > { %v11399_v8 = vpack.c.bf16 %v8861_v5, %v8860_v4  ;;  %v5244_v9 = vpop.f32.mrf.mxu0  ;;  %v6214_v10 = vpop.f32.mrf.mxu1  ;;  %v8474_v12 = vmax.f32 %v7182_v6, %v8152_v7  ;;  %v11116_v5 = vld [vmem:[%s12219_s20 + $0x5a8] sm:$0xff] }
 0x458   : > { %v8347_v18 = vmax.f32 %v5244_v9, %v6214_v10  ;;  %v11180_v6 = vld [vmem:[%s12219_s20 + $0x7a8] sm:$0xff] }
 0x459   : > { %11551 = vst [vmem:[%s12313_s24 + $0x148] sm:$0xff] %v11399_v8   ;;  %v8602_v13 = vmax.f32 %v8346_v11, %v8474_v12 }
 0x45b   : > { %v8734_v24 = vadd.f32 %v12724_v33, %v8602_v13 }
 0x45d   : > { %v8862_v26 = vmax.f32 %v8734_v24, 0.0 }
 0x45e   : > { %v7184_v14 = vpop.f32.mrf.mxu2  ;;  %v8154_v15 = vpop.f32.mrf.mxu3 }
 0x45f   : > { %v8475_v19 = vmax.f32 %v7184_v14, %v8154_v15  ;;  %v5247_v20 = vpop.f32.mrf.mxu0  ;;  %v6217_v21 = vpop.f32.mrf.mxu1 }
 0x460   : > { %v8348_v32 = vmax.f32 %v5247_v20, %v6217_v21 }
 0x461   : > { %v8603_v38 = vmax.f32 %v8347_v18, %v8475_v19 }
 0x462   : > { %9570 = vmatmul.msk.bf16.gmra.mxu0 %vm4823_vm2, %v10986_v16  ;;  %10018 = vmatmul.msk.bf16.gmra.mxu1 %vm4823_vm2, %v11050_v17 }
 0x463   : > { %v8735_v25 = vadd.f32 %v12724_v33, %v8603_v38  ;;  %10466 = vmatmul.msk.bf16.gmra.mxu2 %vm4823_vm2, %v11114_v22  ;;  %10914 = vmatmul.msk.bf16.gmra.mxu3 %vm4823_vm2, %v11178_v23  ;;  %v10989_v22 = vld [vmem:[%s12219_s20 + $0x1b0] sm:$0xff] }
 0x464   : > { %v11053_v23 = vld [vmem:[%s12219_s20 + $0x3b0] sm:$0xff] }
 0x465   : > { %v8863_v27 = vmax.f32 %v8735_v25, 0.0 }
 0x466   : > { %v7187_v28 = vpop.f32.mrf.mxu2  ;;  %v8157_v56 = vpop.f32.mrf.mxu3 }
 0x467   : > { %v11404_v29 = vpack.c.bf16 %v8863_v27, %v8862_v26  ;;  %v5249_v30 = vpop.f32.mrf.mxu0  ;;  %v6219_v31 = vpop.f32.mrf.mxu1  ;;  %v8476_v34 = vmax.f32 %v7187_v28, %v8157_v56  ;;  %v11117_v27 = vld [vmem:[%s12219_s20 + $0x5b0] sm:$0xff] }
 0x468   : > { %v8349_v41 = vmax.f32 %v5249_v30, %v6219_v31  ;;  %v11181_v28 = vld [vmem:[%s12219_s20 + $0x7b0] sm:$0xff] }
 0x469   : > { %11552 = vst [vmem:[%s12313_s24 + $0x150] sm:$0xff] %v11404_v29   ;;  %v8604_v35 = vmax.f32 %v8348_v32, %v8476_v34 }
 0x46b   : > { %v8736_v47 = vadd.f32 %v12724_v33, %v8604_v35 }
 0x46d   : > { %v8864_v50 = vmax.f32 %v8736_v47, 0.0 }
 0x46e   : > { %v7189_v36 = vpop.f32.mrf.mxu2  ;;  %v8159_v37 = vpop.f32.mrf.mxu3 }
 0x46f   : > { %v8477_v42 = vmax.f32 %v7189_v36, %v8159_v37  ;;  %v5252_v43 = vpop.f32.mrf.mxu0  ;;  %v6222_v44 = vpop.f32.mrf.mxu1 }
 0x470   : > { %v8350_v58 = vmax.f32 %v5252_v43, %v6222_v44 }
 0x471   : > { %v8605_v48 = vmax.f32 %v8349_v41, %v8477_v42 }
 0x472   : > { %9571 = vmatmul.msk.bf16.gmra.mxu0 %vm4823_vm2, %v10987_v39  ;;  %10019 = vmatmul.msk.bf16.gmra.mxu1 %vm4823_vm2, %v11051_v40 }
 0x473   : > { %v8737_v49 = vadd.f32 %v12724_v33, %v8605_v48  ;;  %10467 = vmatmul.msk.bf16.gmra.mxu2 %vm4823_vm2, %v11115_v45  ;;  %10915 = vmatmul.msk.bf16.gmra.mxu3 %vm4823_vm2, %v11179_v46  ;;  %v10990_v45 = vld [vmem:[%s12219_s20 + $0x1b8] sm:$0xff] }
 0x474   : > { %v11054_v46 = vld [vmem:[%s12219_s20 + $0x3b8] sm:$0xff] }
 0x475   : > { %v8865_v51 = vmax.f32 %v8737_v49, 0.0 }
 0x476   : > { %v7192_v52 = vpop.f32.mrf.mxu2  ;;  %v8162_v53 = vpop.f32.mrf.mxu3 }
 0x477   : > { %v11409_v54 = vpack.c.bf16 %v8865_v51, %v8864_v50  ;;  %v5254_v55 = vpop.f32.mrf.mxu0  ;;  %v6224_v57 = vpop.f32.mrf.mxu1  ;;  %v8478_v59 = vmax.f32 %v7192_v52, %v8162_v53  ;;  %v11118_v51 = vld [vmem:[%s12219_s20 + $0x5b8] sm:$0xff] }
 0x478   : > { %v8351_v1 = vmax.f32 %v5254_v55, %v6224_v57  ;;  %v11182_v52 = vld [vmem:[%s12219_s20 + $0x7b8] sm:$0xff] }
 0x479   : > { %11553 = vst [vmem:[%s12313_s24 + $0x158] sm:$0xff] %v11409_v54   ;;  %v8606_v60 = vmax.f32 %v8350_v58, %v8478_v59 }
 0x47b   : > { %v8738_v7 = vadd.f32 %v12724_v33, %v8606_v60 }
 0x47d   : > { %v8866_v10 = vmax.f32 %v8738_v7, 0.0 }
 0x47e   : > { %v7194_v61 = vpop.f32.mrf.mxu2  ;;  %v8164_v62 = vpop.f32.mrf.mxu3 }
 0x47f   : > { %v8479_v2 = vmax.f32 %v7194_v61, %v8164_v62  ;;  %v5257_v3 = vpop.f32.mrf.mxu0  ;;  %v6227_v4 = vpop.f32.mrf.mxu1 }
 0x480   : > { %v8352_v17 = vmax.f32 %v5257_v3, %v6227_v4 }
 0x481   : > { %v8607_v8 = vmax.f32 %v8351_v1, %v8479_v2 }
 0x482   : > { %9572 = vmatmul.msk.bf16.gmra.mxu0 %vm4823_vm2, %v10988_v63  ;;  %10020 = vmatmul.msk.bf16.gmra.mxu1 %vm4823_vm2, %v11052_v0 }
 0x483   : > { %v8739_v9 = vadd.f32 %v12724_v33, %v8607_v8  ;;  %10468 = vmatmul.msk.bf16.gmra.mxu2 %vm4823_vm2, %v11116_v5  ;;  %10916 = vmatmul.msk.bf16.gmra.mxu3 %vm4823_vm2, %v11180_v6  ;;  %v10991_v5 = vld [vmem:[%s12219_s20 + $0x1c0] sm:$0xff] }
 0x484   : > { %v11055_v6 = vld [vmem:[%s12219_s20 + $0x3c0] sm:$0xff] }
 0x485   : > { %v8867_v11 = vmax.f32 %v8739_v9, 0.0 }
 0x486   : > { %v7197_v12 = vpop.f32.mrf.mxu2  ;;  %v8167_v13 = vpop.f32.mrf.mxu3 }
 0x487   : > { %v11414_v14 = vpack.c.bf16 %v8867_v11, %v8866_v10  ;;  %v5259_v15 = vpop.f32.mrf.mxu0  ;;  %v6229_v16 = vpop.f32.mrf.mxu1  ;;  %v8480_v18 = vmax.f32 %v7197_v12, %v8167_v13  ;;  %v11119_v11 = vld [vmem:[%s12219_s20 + $0x5c0] sm:$0xff] }
 0x488   : > { %v8353_v24 = vmax.f32 %v5259_v15, %v6229_v16  ;;  %v11183_v12 = vld [vmem:[%s12219_s20 + $0x7c0] sm:$0xff] }
 0x489   : > { %11554 = vst [vmem:[%s12313_s24 + $0x160] sm:$0xff] %v11414_v14   ;;  %v8608_v19 = vmax.f32 %v8352_v17, %v8480_v18 }
 0x48b   : > { %v8740_v56 = vadd.f32 %v12724_v33, %v8608_v19 }
 0x48d   : > { %v8868_v31 = vmax.f32 %v8740_v56, 0.0 }
 0x48e   : > { %v7199_v20 = vpop.f32.mrf.mxu2  ;;  %v8169_v21 = vpop.f32.mrf.mxu3 }
 0x48f   : > { %v8481_v38 = vmax.f32 %v7199_v20, %v8169_v21  ;;  %v5262_v25 = vpop.f32.mrf.mxu0  ;;  %v6232_v26 = vpop.f32.mrf.mxu1 }
 0x490   : > { %v8354_v40 = vmax.f32 %v5262_v25, %v6232_v26 }
 0x491   : > { %v8609_v29 = vmax.f32 %v8353_v24, %v8481_v38 }
 0x492   : > { %9573 = vmatmul.msk.bf16.gmra.mxu0 %vm4823_vm2, %v10989_v22  ;;  %10021 = vmatmul.msk.bf16.gmra.mxu1 %vm4823_vm2, %v11053_v23 }
 0x493   : > { %v8741_v30 = vadd.f32 %v12724_v33, %v8609_v29  ;;  %10469 = vmatmul.msk.bf16.gmra.mxu2 %vm4823_vm2, %v11117_v27  ;;  %10917 = vmatmul.msk.bf16.gmra.mxu3 %vm4823_vm2, %v11181_v28  ;;  %v10992_v27 = vld [vmem:[%s12219_s20 + $0x1c8] sm:$0xff] }
 0x494   : > { %v11056_v28 = vld [vmem:[%s12219_s20 + $0x3c8] sm:$0xff] }
 0x495   : > { %v8869_v32 = vmax.f32 %v8741_v30, 0.0 }
 0x496   : > { %v7202_v34 = vpop.f32.mrf.mxu2  ;;  %v8172_v35 = vpop.f32.mrf.mxu3 }
 0x497   : > { %v11419_v36 = vpack.c.bf16 %v8869_v32, %v8868_v31  ;;  %v5264_v37 = vpop.f32.mrf.mxu0  ;;  %v6234_v39 = vpop.f32.mrf.mxu1  ;;  %v8482_v41 = vmax.f32 %v7202_v34, %v8172_v35  ;;  %v11120_v32 = vld [vmem:[%s12219_s20 + $0x5c8] sm:$0xff] }
 0x498   : > { %v8355_v47 = vmax.f32 %v5264_v37, %v6234_v39  ;;  %v11184_v34 = vld [vmem:[%s12219_s20 + $0x7c8] sm:$0xff] }
 0x499   : > { %11555 = vst [vmem:[%s12313_s24 + $0x168] sm:$0xff] %v11419_v36   ;;  %v8610_v42 = vmax.f32 %v8354_v40, %v8482_v41 }
 0x49b   : > { %v8742_v53 = vadd.f32 %v12724_v33, %v8610_v42 }
 0x49d   : > { %v8870_v57 = vmax.f32 %v8742_v53, 0.0 }
 0x49e   : > { %v7204_v43 = vpop.f32.mrf.mxu2  ;;  %v8174_v44 = vpop.f32.mrf.mxu3 }
 0x49f   : > { %v8483_v48 = vmax.f32 %v7204_v43, %v8174_v44  ;;  %v5267_v49 = vpop.f32.mrf.mxu0  ;;  %v6237_v50 = vpop.f32.mrf.mxu1 }
 0x4a0   : > { %v8356_v0 = vmax.f32 %v5267_v49, %v6237_v50 }
 0x4a1   : > { %v8611_v54 = vmax.f32 %v8355_v47, %v8483_v48 }
 0x4a2   : > { %9574 = vmatmul.msk.bf16.gmra.mxu0 %vm4823_vm2, %v10990_v45  ;;  %10022 = vmatmul.msk.bf16.gmra.mxu1 %vm4823_vm2, %v11054_v46 }
 0x4a3   : > { %v8743_v55 = vadd.f32 %v12724_v33, %v8611_v54  ;;  %10470 = vmatmul.msk.bf16.gmra.mxu2 %vm4823_vm2, %v11118_v51  ;;  %10918 = vmatmul.msk.bf16.gmra.mxu3 %vm4823_vm2, %v11182_v52  ;;  %v10993_v51 = vld [vmem:[%s12219_s20 + $0x1d0] sm:$0xff] }
 0x4a4   : > { %v11057_v52 = vld [vmem:[%s12219_s20 + $0x3d0] sm:$0xff] }
 0x4a5   : > { %v8871_v58 = vmax.f32 %v8743_v55, 0.0 }
 0x4a6   : > { %v7207_v59 = vpop.f32.mrf.mxu2  ;;  %v8177_v60 = vpop.f32.mrf.mxu3 }
 0x4a7   : > { %v11424_v61 = vpack.c.bf16 %v8871_v58, %v8870_v57  ;;  %v5269_v62 = vpop.f32.mrf.mxu0  ;;  %v6239_v63 = vpop.f32.mrf.mxu1  ;;  %v8484_v1 = vmax.f32 %v7207_v59, %v8177_v60  ;;  %v11121_v58 = vld [vmem:[%s12219_s20 + $0x5d0] sm:$0xff] }
 0x4a8   : > { %v8357_v7 = vmax.f32 %v5269_v62, %v6239_v63  ;;  %v11185_v59 = vld [vmem:[%s12219_s20 + $0x7d0] sm:$0xff] }
 0x4a9   : > { %11556 = vst [vmem:[%s12313_s24 + $0x170] sm:$0xff] %v11424_v61   ;;  %v8612_v2 = vmax.f32 %v8356_v0, %v8484_v1 }
 0x4ab   : > { %v8744_v13 = vadd.f32 %v12724_v33, %v8612_v2 }
 0x4ad   : > { %v8872_v16 = vmax.f32 %v8744_v13, 0.0 }
 0x4ae   : > { %v7209_v3 = vpop.f32.mrf.mxu2  ;;  %v8179_v4 = vpop.f32.mrf.mxu3 }
 0x4af   : > { %v8485_v8 = vmax.f32 %v7209_v3, %v8179_v4  ;;  %v5272_v9 = vpop.f32.mrf.mxu0  ;;  %v6242_v10 = vpop.f32.mrf.mxu1 }
 0x4b0   : > { %v8358_v23 = vmax.f32 %v5272_v9, %v6242_v10 }
 0x4b1   : > { %v8613_v14 = vmax.f32 %v8357_v7, %v8485_v8 }
 0x4b2   : > { %9575 = vmatmul.msk.bf16.gmra.mxu0 %vm4823_vm2, %v10991_v5  ;;  %10023 = vmatmul.msk.bf16.gmra.mxu1 %vm4823_vm2, %v11055_v6 }
 0x4b3   : > { %v8745_v15 = vadd.f32 %v12724_v33, %v8613_v14  ;;  %10471 = vmatmul.msk.bf16.gmra.mxu2 %vm4823_vm2, %v11119_v11  ;;  %10919 = vmatmul.msk.bf16.gmra.mxu3 %vm4823_vm2, %v11183_v12  ;;  %v10994_v11 = vld [vmem:[%s12219_s20 + $0x1d8] sm:$0xff] }
 0x4b4   : > { %v11058_v12 = vld [vmem:[%s12219_s20 + $0x3d8] sm:$0xff] }
 0x4b5   : > { %v8873_v17 = vmax.f32 %v8745_v15, 0.0 }
 0x4b6   : > { %v7212_v18 = vpop.f32.mrf.mxu2  ;;  %v8182_v19 = vpop.f32.mrf.mxu3 }
 0x4b7   : > { %v11429_v20 = vpack.c.bf16 %v8873_v17, %v8872_v16  ;;  %v5274_v21 = vpop.f32.mrf.mxu0  ;;  %v6244_v22 = vpop.f32.mrf.mxu1  ;;  %v8486_v24 = vmax.f32 %v7212_v18, %v8182_v19  ;;  %v11122_v17 = vld [vmem:[%s12219_s20 + $0x5d8] sm:$0xff] }
 0x4b8   : > { %v8359_v56 = vmax.f32 %v5274_v21, %v6244_v22  ;;  %v11186_v18 = vld [vmem:[%s12219_s20 + $0x7d8] sm:$0xff] }
 0x4b9   : > { %11557 = vst [vmem:[%s12313_s24 + $0x178] sm:$0xff] %v11429_v20   ;;  %v8614_v38 = vmax.f32 %v8358_v23, %v8486_v24 }
 0x4bb   : > { %v8746_v35 = vadd.f32 %v12724_v33, %v8614_v38 }
 0x4bd   : > { %v8874_v39 = vmax.f32 %v8746_v35, 0.0 }
 0x4be   : > { %v7214_v25 = vpop.f32.mrf.mxu2  ;;  %v8184_v26 = vpop.f32.mrf.mxu3 }
 0x4bf   : > { %v8487_v29 = vmax.f32 %v7214_v25, %v8184_v26  ;;  %v5277_v30 = vpop.f32.mrf.mxu0  ;;  %v6247_v31 = vpop.f32.mrf.mxu1 }
 0x4c0   : > { %v8360_v46 = vmax.f32 %v5277_v30, %v6247_v31 }
 0x4c1   : > { %v8615_v36 = vmax.f32 %v8359_v56, %v8487_v29 }
 0x4c2   : > { %9576 = vmatmul.msk.bf16.gmra.mxu0 %vm4823_vm2, %v10992_v27  ;;  %10024 = vmatmul.msk.bf16.gmra.mxu1 %vm4823_vm2, %v11056_v28 }
 0x4c3   : > { %v8747_v37 = vadd.f32 %v12724_v33, %v8615_v36  ;;  %10472 = vmatmul.msk.bf16.gmra.mxu2 %vm4823_vm2, %v11120_v32  ;;  %10920 = vmatmul.msk.bf16.gmra.mxu3 %vm4823_vm2, %v11184_v34  ;;  %v10995_v32 = vld [vmem:[%s12219_s20 + $0x1e0] sm:$0xff] }
 0x4c4   : > { %v11059_v34 = vld [vmem:[%s12219_s20 + $0x3e0] sm:$0xff] }
 0x4c5   : > { %v8875_v40 = vmax.f32 %v8747_v37, 0.0 }
 0x4c6   : > { %v7217_v41 = vpop.f32.mrf.mxu2  ;;  %v8187_v42 = vpop.f32.mrf.mxu3 }
 0x4c7   : > { %v11434_v43 = vpack.c.bf16 %v8875_v40, %v8874_v39  ;;  %v5279_v44 = vpop.f32.mrf.mxu0  ;;  %v6249_v45 = vpop.f32.mrf.mxu1  ;;  %v8488_v47 = vmax.f32 %v7217_v41, %v8187_v42  ;;  %v11123_v40 = vld [vmem:[%s12219_s20 + $0x5e0] sm:$0xff] }
 0x4c8   : > { %v8361_v53 = vmax.f32 %v5279_v44, %v6249_v45  ;;  %v11187_v41 = vld [vmem:[%s12219_s20 + $0x7e0] sm:$0xff] }
 0x4c9   : > { %11558 = vst [vmem:[%s12313_s24 + $0x180] sm:$0xff] %v11434_v43   ;;  %v8616_v48 = vmax.f32 %v8360_v46, %v8488_v47 }
 0x4cb   : > { %v8748_v60 = vadd.f32 %v12724_v33, %v8616_v48 }
 0x4cd   : > { %v8876_v63 = vmax.f32 %v8748_v60, 0.0 }
 0x4ce   : > { %v7219_v49 = vpop.f32.mrf.mxu2  ;;  %v8189_v50 = vpop.f32.mrf.mxu3 }
 0x4cf   : > { %v8489_v54 = vmax.f32 %v7219_v49, %v8189_v50  ;;  %v5282_v55 = vpop.f32.mrf.mxu0  ;;  %v6252_v57 = vpop.f32.mrf.mxu1 }
 0x4d0   : > { %v8362_v6 = vmax.f32 %v5282_v55, %v6252_v57 }
 0x4d1   : > { %v8617_v61 = vmax.f32 %v8361_v53, %v8489_v54 }
 0x4d2   : > { %9577 = vmatmul.msk.bf16.gmra.mxu0 %vm4823_vm2, %v10993_v51  ;;  %10025 = vmatmul.msk.bf16.gmra.mxu1 %vm4823_vm2, %v11057_v52 }
 0x4d3   : > { %v8749_v62 = vadd.f32 %v12724_v33, %v8617_v61  ;;  %10473 = vmatmul.msk.bf16.gmra.mxu2 %vm4823_vm2, %v11121_v58  ;;  %10921 = vmatmul.msk.bf16.gmra.mxu3 %vm4823_vm2, %v11185_v59  ;;  %v10996_v58 = vld [vmem:[%s12219_s20 + $0x1e8] sm:$0xff] }
 0x4d4   : > { %v11060_v59 = vld [vmem:[%s12219_s20 + $0x3e8] sm:$0xff] }
 0x4d5   : > { %v8877_v0 = vmax.f32 %v8749_v62, 0.0 }
 0x4d6   : > { %v7222_v1 = vpop.f32.mrf.mxu2  ;;  %v8192_v2 = vpop.f32.mrf.mxu3 }
 0x4d7   : > { %v11439_v3 = vpack.c.bf16 %v8877_v0, %v8876_v63  ;;  %v5284_v4 = vpop.f32.mrf.mxu0  ;;  %v6254_v5 = vpop.f32.mrf.mxu1  ;;  %v8490_v7 = vmax.f32 %v7222_v1, %v8192_v2  ;;  %v11124_v0 = vld [vmem:[%s12219_s20 + $0x5e8] sm:$0xff] }
 0x4d8   : > { %v8363_v13 = vmax.f32 %v5284_v4, %v6254_v5  ;;  %v11188_v1 = vld [vmem:[%s12219_s20 + $0x7e8] sm:$0xff] }
 0x4d9   : > { %11559 = vst [vmem:[%s12313_s24 + $0x188] sm:$0xff] %v11439_v3   ;;  %v8618_v8 = vmax.f32 %v8362_v6, %v8490_v7 }
 0x4db   : > { %v8750_v19 = vadd.f32 %v12724_v33, %v8618_v8 }
 0x4dd   : > { %v8878_v22 = vmax.f32 %v8750_v19, 0.0 }
 0x4de   : > { %v7224_v9 = vpop.f32.mrf.mxu2  ;;  %v8194_v10 = vpop.f32.mrf.mxu3 }
 0x4df   : > { %v8491_v14 = vmax.f32 %v7224_v9, %v8194_v10  ;;  %v5287_v15 = vpop.f32.mrf.mxu0  ;;  %v6257_v16 = vpop.f32.mrf.mxu1 }
 0x4e0   : > { %v8364_v28 = vmax.f32 %v5287_v15, %v6257_v16 }
 0x4e1   : > { %v8619_v20 = vmax.f32 %v8363_v13, %v8491_v14 }
 0x4e2   : > { %9578 = vmatmul.msk.bf16.gmra.mxu0 %vm4823_vm2, %v10994_v11  ;;  %10026 = vmatmul.msk.bf16.gmra.mxu1 %vm4823_vm2, %v11058_v12 }
 0x4e3   : > { %v8751_v21 = vadd.f32 %v12724_v33, %v8619_v20  ;;  %10474 = vmatmul.msk.bf16.gmra.mxu2 %vm4823_vm2, %v11122_v17  ;;  %10922 = vmatmul.msk.bf16.gmra.mxu3 %vm4823_vm2, %v11186_v18  ;;  %v10997_v17 = vld [vmem:[%s12219_s20 + $0x1f0] sm:$0xff] }
 0x4e4   : > { %v11061_v18 = vld [vmem:[%s12219_s20 + $0x3f0] sm:$0xff] }
 0x4e5   : > { %v8879_v23 = vmax.f32 %v8751_v21, 0.0 }
 0x4e6   : > { %v7227_v24 = vpop.f32.mrf.mxu2  ;;  %v8197_v38 = vpop.f32.mrf.mxu3 }
 0x4e7   : > { %v11444_v25 = vpack.c.bf16 %v8879_v23, %v8878_v22  ;;  %v5289_v26 = vpop.f32.mrf.mxu0  ;;  %v6259_v27 = vpop.f32.mrf.mxu1  ;;  %v8492_v56 = vmax.f32 %v7227_v24, %v8197_v38  ;;  %v11125_v23 = vld [vmem:[%s12219_s20 + $0x5f0] sm:$0xff] }
 0x4e8   : > { %v8365_v35 = vmax.f32 %v5289_v26, %v6259_v27  ;;  %v11189_v24 = vld [vmem:[%s12219_s20 + $0x7f0] sm:$0xff] }
 0x4e9   : > { %11560 = vst [vmem:[%s12313_s24 + $0x190] sm:$0xff] %v11444_v25   ;;  %v8620_v29 = vmax.f32 %v8364_v28, %v8492_v56 }
 0x4eb   : > { %v8752_v42 = vadd.f32 %v12724_v33, %v8620_v29 }
 0x4ed   : > { %v8880_v45 = vmax.f32 %v8752_v42, 0.0 }
 0x4ee   : > { %v7229_v30 = vpop.f32.mrf.mxu2  ;;  %v8199_v31 = vpop.f32.mrf.mxu3 }
 0x4ef   : > { %v8493_v36 = vmax.f32 %v7229_v30, %v8199_v31  ;;  %v5292_v37 = vpop.f32.mrf.mxu0  ;;  %v6262_v39 = vpop.f32.mrf.mxu1 }
 0x4f0   : > { %v8366_v52 = vmax.f32 %v5292_v37, %v6262_v39 }
 0x4f1   : > { %v8621_v43 = vmax.f32 %v8365_v35, %v8493_v36 }
 0x4f2   : > { %9579 = vmatmul.msk.bf16.gmra.mxu0 %vm4823_vm2, %v10995_v32  ;;  %10027 = vmatmul.msk.bf16.gmra.mxu1 %vm4823_vm2, %v11059_v34 }
 0x4f3   : > { %v8753_v44 = vadd.f32 %v12724_v33, %v8621_v43  ;;  %10475 = vmatmul.msk.bf16.gmra.mxu2 %vm4823_vm2, %v11123_v40  ;;  %10923 = vmatmul.msk.bf16.gmra.mxu3 %vm4823_vm2, %v11187_v41  ;;  %v10998_v40 = vld [vmem:[%s12219_s20 + $0x1f8] sm:$0xff] }
 0x4f4   : > { %v11062_v41 = vld [vmem:[%s12219_s20 + $0x3f8] sm:$0xff] }
 0x4f5   : > { %v8881_v46 = vmax.f32 %v8753_v44, 0.0 }
 0x4f6   : > { %v7232_v47 = vpop.f32.mrf.mxu2  ;;  %v8202_v48 = vpop.f32.mrf.mxu3 }
 0x4f7   : > { %v11449_v49 = vpack.c.bf16 %v8881_v46, %v8880_v45  ;;  %v5294_v50 = vpop.f32.mrf.mxu0  ;;  %v6264_v51 = vpop.f32.mrf.mxu1  ;;  %v8494_v53 = vmax.f32 %v7232_v47, %v8202_v48  ;;  %v11126_v46 = vld [vmem:[%s12219_s20 + $0x5f8] sm:$0xff] }
 0x4f8   : > { %v8367_v60 = vmax.f32 %v5294_v50, %v6264_v51  ;;  %v11190_v47 = vld [vmem:[%s12219_s20 + $0x7f8] sm:$0xff] }
 0x4f9   : > { %11561 = vst [vmem:[%s12313_s24 + $0x198] sm:$0xff] %v11449_v49   ;;  %v8622_v54 = vmax.f32 %v8366_v52, %v8494_v53 }
 0x4fb   : > { %v8754_v2 = vadd.f32 %v12724_v33, %v8622_v54 }
 0x4fd   : > { %v8882_v5 = vmax.f32 %v8754_v2, 0.0 }
 0x4fe   : > { %v7234_v55 = vpop.f32.mrf.mxu2  ;;  %v8204_v57 = vpop.f32.mrf.mxu3 }
 0x4ff   : > { %v8495_v61 = vmax.f32 %v7234_v55, %v8204_v57  ;;  %v5297_v62 = vpop.f32.mrf.mxu0  ;;  %v6267_v63 = vpop.f32.mrf.mxu1 }
 0x500   : > { %v8368_v12 = vmax.f32 %v5297_v62, %v6267_v63 }
 0x501   : > { %v8623_v3 = vmax.f32 %v8367_v60, %v8495_v61 }
 0x502   : > { %9580 = vmatmul.msk.bf16.gmra.mxu0 %vm4823_vm2, %v10996_v58  ;;  %10028 = vmatmul.msk.bf16.gmra.mxu1 %vm4823_vm2, %v11060_v59 }
 0x503   : > { %v8755_v4 = vadd.f32 %v12724_v33, %v8623_v3  ;;  %10476 = vmatmul.msk.bf16.gmra.mxu2 %vm4823_vm2, %v11124_v0  ;;  %10924 = vmatmul.msk.bf16.gmra.mxu3 %vm4823_vm2, %v11188_v1 }
 0x505   : > { %v8883_v6 = vmax.f32 %v8755_v4, 0.0 }
 0x506   : > { %v7237_v7 = vpop.f32.mrf.mxu2  ;;  %v8207_v8 = vpop.f32.mrf.mxu3 }
 0x507   : > { %v11454_v9 = vpack.c.bf16 %v8883_v6, %v8882_v5  ;;  %v5299_v10 = vpop.f32.mrf.mxu0  ;;  %v6269_v11 = vpop.f32.mrf.mxu1  ;;  %v8496_v13 = vmax.f32 %v7237_v7, %v8207_v8 }
 0x508   : > { %v8369_v19 = vmax.f32 %v5299_v10, %v6269_v11 }
 0x509   : > { %11562 = vst [vmem:[%s12313_s24 + $0x1a0] sm:$0xff] %v11454_v9   ;;  %v8624_v14 = vmax.f32 %v8368_v12, %v8496_v13 }
 0x50b   : > { %v8756_v38 = vadd.f32 %v12724_v33, %v8624_v14 }
 0x50d   : > { %v8884_v27 = vmax.f32 %v8756_v38, 0.0 }
 0x50e   : > { %v7239_v15 = vpop.f32.mrf.mxu2  ;;  %v8209_v16 = vpop.f32.mrf.mxu3 }
 0x50f   : > { %v8497_v20 = vmax.f32 %v7239_v15, %v8209_v16  ;;  %v5302_v21 = vpop.f32.mrf.mxu0  ;;  %v6272_v22 = vpop.f32.mrf.mxu1 }
 0x510   : > { %v8370_v34 = vmax.f32 %v5302_v21, %v6272_v22 }
 0x511   : > { %v8625_v25 = vmax.f32 %v8369_v19, %v8497_v20 }
 0x512   : > { %9581 = vmatmul.msk.bf16.gmra.mxu0 %vm4823_vm2, %v10997_v17  ;;  %10029 = vmatmul.msk.bf16.gmra.mxu1 %vm4823_vm2, %v11061_v18 }
 0x513   : > { %v8757_v26 = vadd.f32 %v12724_v33, %v8625_v25  ;;  %10477 = vmatmul.msk.bf16.gmra.mxu2 %vm4823_vm2, %v11125_v23  ;;  %10925 = vmatmul.msk.bf16.gmra.mxu3 %vm4823_vm2, %v11189_v24 }
 0x515   : > { %v8885_v28 = vmax.f32 %v8757_v26, 0.0 }
 0x516   : > { %v7242_v56 = vpop.f32.mrf.mxu2  ;;  %v8212_v29 = vpop.f32.mrf.mxu3 }
 0x517   : > { %v11459_v30 = vpack.c.bf16 %v8885_v28, %v8884_v27  ;;  %v5304_v31 = vpop.f32.mrf.mxu0  ;;  %v6274_v32 = vpop.f32.mrf.mxu1  ;;  %v8498_v35 = vmax.f32 %v7242_v56, %v8212_v29 }
 0x518   : > { %v8371_v42 = vmax.f32 %v5304_v31, %v6274_v32 }
 0x519   : > { %11563 = vst [vmem:[%s12313_s24 + $0x1a8] sm:$0xff] %v11459_v30   ;;  %v8626_v36 = vmax.f32 %v8370_v34, %v8498_v35 }
 0x51b   : > { %v8758_v48 = vadd.f32 %v12724_v33, %v8626_v36 }
 0x51d   : > { %v8886_v51 = vmax.f32 %v8758_v48, 0.0 }
 0x51e   : > { %v7244_v37 = vpop.f32.mrf.mxu2  ;;  %v8214_v39 = vpop.f32.mrf.mxu3 }
 0x51f   : > { %v8499_v43 = vmax.f32 %v7244_v37, %v8214_v39  ;;  %v5307_v44 = vpop.f32.mrf.mxu0  ;;  %v6277_v45 = vpop.f32.mrf.mxu1 }
 0x520   : > { %v8372_v59 = vmax.f32 %v5307_v44, %v6277_v45 }
 0x521   : > { %v8627_v49 = vmax.f32 %v8371_v42, %v8499_v43 }
 0x522   : > { %9582 = vmatmul.msk.bf16.gmra.mxu0 %vm4823_vm2, %v10998_v40  ;;  %10030 = vmatmul.msk.bf16.gmra.mxu1 %vm4823_vm2, %v11062_v41 }
 0x523   : > { %v8759_v50 = vadd.f32 %v12724_v33, %v8627_v49  ;;  %10478 = vmatmul.msk.bf16.gmra.mxu2 %vm4823_vm2, %v11126_v46  ;;  %10926 = vmatmul.msk.bf16.gmra.mxu3 %vm4823_vm2, %v11190_v47 }
 0x525   : > { %v8887_v52 = vmax.f32 %v8759_v50, 0.0 }
 0x526   : > { %v7247_v53 = vpop.f32.mrf.mxu2  ;;  %v8217_v54 = vpop.f32.mrf.mxu3 }
 0x527   : > { %v11464_v55 = vpack.c.bf16 %v8887_v52, %v8886_v51  ;;  %v5309_v57 = vpop.f32.mrf.mxu0  ;;  %v6279_v58 = vpop.f32.mrf.mxu1  ;;  %v8500_v60 = vmax.f32 %v7247_v53, %v8217_v54 }
 0x528   : > { %v8373_v0 = vmax.f32 %v5309_v57, %v6279_v58 }
 0x529   : > { %11564 = vst [vmem:[%s12313_s24 + $0x1b0] sm:$0xff] %v11464_v55   ;;  %v8628_v61 = vmax.f32 %v8372_v59, %v8500_v60 }
 0x52b   : > { %v8760_v4 = vadd.f32 %v12724_v33, %v8628_v61 }
 0x52d   : > { %v8888_v7 = vmax.f32 %v8760_v4, 0.0 }
 0x52e   : > { %v7249_v62 = vpop.f32.mrf.mxu2  ;;  %v8219_v63 = vpop.f32.mrf.mxu3 }
 0x52f   : > { %v8501_v1 = vmax.f32 %v7249_v62, %v8219_v63  ;;  %v5312_v2 = vpop.f32.mrf.mxu0  ;;  %v6282_v3 = vpop.f32.mrf.mxu1 }
 0x530   : > { %v8374_v14 = vmax.f32 %v5312_v2, %v6282_v3 }
 0x531   : > { %v8629_v5 = vmax.f32 %v8373_v0, %v8501_v1 }
 0x533   : > { %v8761_v6 = vadd.f32 %v12724_v33, %v8629_v5  ;;  %v12926_v33 = vld [vmem:[%s12964_s2] ss:$0 sm:$0xff] }
 0x535   : > { %v8889_v8 = vmax.f32 %v8761_v6, 0.0 }
 0x536   : > { %v7252_v9 = vpop.f32.mrf.mxu2  ;;  %v8222_v10 = vpop.f32.mrf.mxu3 }
 0x537   : > { %v11469_v11 = vpack.c.bf16 %v8889_v8, %v8888_v7  ;;  %v5314_v12 = vpop.f32.mrf.mxu0  ;;  %v6284_v13 = vpop.f32.mrf.mxu1  ;;  %v8502_v15 = vmax.f32 %v7252_v9, %v8222_v10 }
 0x538   : > { %v8375_v19 = vmax.f32 %v5314_v12, %v6284_v13 }
 0x539   : > { %11565 = vst [vmem:[%s12313_s24 + $0x1b8] sm:$0xff] %v11469_v11   ;;  %v8630_v16 = vmax.f32 %v8374_v14, %v8502_v15 }
 0x53b   : > { %v8762_v23 = vadd.f32 %v12926_v33, %v8630_v16 }
 0x53d   : > { %v8890_v25 = vmax.f32 %v8762_v23, 0.0 }
 0x53e   : > { %v7254_v17 = vpop.f32.mrf.mxu2  ;;  %v8224_v18 = vpop.f32.mrf.mxu3 }
 0x53f   : > { %v8503_v20 = vmax.f32 %v7254_v17, %v8224_v18  ;;  %v5317_v21 = vpop.f32.mrf.mxu0  ;;  %v6287_v22 = vpop.f32.mrf.mxu1 }
 0x540   : > { %v8376_v31 = vmax.f32 %v5317_v21, %v6287_v22 }
 0x541   : > { %v8631_v24 = vmax.f32 %v8375_v19, %v8503_v20 }
 0x543   : > { %v8763_v38 = vadd.f32 %v12926_v33, %v8631_v24 }
 0x545   : > { %v8891_v26 = vmax.f32 %v8763_v38, 0.0 }
 0x546   : > { %v7257_v27 = vpop.f32.mrf.mxu2  ;;  %v8227_v28 = vpop.f32.mrf.mxu3 }
 0x547   : > { %v11474_v56 = vpack.c.bf16 %v8891_v26, %v8890_v25  ;;  %v5319_v29 = vpop.f32.mrf.mxu0  ;;  %v6289_v30 = vpop.f32.mrf.mxu1  ;;  %v8504_v32 = vmax.f32 %v7257_v27, %v8227_v28 }
 0x548   : > { %v8377_v37 = vmax.f32 %v5319_v29, %v6289_v30 }
 0x549   : > { %11566 = vst [vmem:[%s12313_s24 + $0x1c0] sm:$0xff] %v11474_v56   ;;  %v8632_v34 = vmax.f32 %v8376_v31, %v8504_v32 }
 0x54b   : > { %v8764_v42 = vadd.f32 %v12926_v33, %v8632_v34 }
 0x54d   : > { %v8892_v45 = vmax.f32 %v8764_v42, 0.0 }
 0x54e   : > { %v7259_v35 = vpop.f32.mrf.mxu2  ;;  %v8229_v36 = vpop.f32.mrf.mxu3 }
 0x54f   : > { %v8505_v39 = vmax.f32 %v7259_v35, %v8229_v36  ;;  %v5322_v40 = vpop.f32.mrf.mxu0  ;;  %v6292_v41 = vpop.f32.mrf.mxu1 }
 0x550   : > { %v8378_v52 = vmax.f32 %v5322_v40, %v6292_v41 }
 0x551   : > { %v8633_v43 = vmax.f32 %v8377_v37, %v8505_v39 }
 0x553   : > { %v8765_v44 = vadd.f32 %v12926_v33, %v8633_v43 }
 0x555   : > { %v8893_v46 = vmax.f32 %v8765_v44, 0.0 }
 0x556   : > { %v7262_v47 = vpop.f32.mrf.mxu2  ;;  %v8232_v48 = vpop.f32.mrf.mxu3 }
 0x557   : > { %v11479_v49 = vpack.c.bf16 %v8893_v46, %v8892_v45  ;;  %v5324_v50 = vpop.f32.mrf.mxu0  ;;  %v6294_v51 = vpop.f32.mrf.mxu1  ;;  %v8506_v53 = vmax.f32 %v7262_v47, %v8232_v48 }
 0x558   : > { %v8379_v58 = vmax.f32 %v5324_v50, %v6294_v51 }
 0x559   : > { %11567 = vst [vmem:[%s12313_s24 + $0x1c8] sm:$0xff] %v11479_v49   ;;  %v8634_v54 = vmax.f32 %v8378_v52, %v8506_v53 }
 0x55b   : > { %v8766_v62 = vadd.f32 %v12926_v33, %v8634_v54 }
 0x55d   : > { %v8894_v1 = vmax.f32 %v8766_v62, 0.0 }
 0x55e   : > { %v7264_v55 = vpop.f32.mrf.mxu2  ;;  %v8234_v57 = vpop.f32.mrf.mxu3 }
 0x55f   : > { %v8507_v59 = vmax.f32 %v7264_v55, %v8234_v57  ;;  %v5327_v60 = vpop.f32.mrf.mxu0  ;;  %v6297_v61 = vpop.f32.mrf.mxu1 }
 0x560   : > { %v8380_v8 = vmax.f32 %v5327_v60, %v6297_v61 }
 0x561   : > { %v8635_v63 = vmax.f32 %v8379_v58, %v8507_v59 }
 0x563   : > { %v8767_v0 = vadd.f32 %v12926_v33, %v8635_v63 }
 0x565   : > { %v8895_v2 = vmax.f32 %v8767_v0, 0.0 }
 0x566   : > { %v7267_v3 = vpop.f32.mrf.mxu2  ;;  %v8237_v4 = vpop.f32.mrf.mxu3 }
 0x567   : > { %v11484_v5 = vpack.c.bf16 %v8895_v2, %v8894_v1  ;;  %v5329_v6 = vpop.f32.mrf.mxu0  ;;  %v6299_v7 = vpop.f32.mrf.mxu1  ;;  %v8508_v9 = vmax.f32 %v7267_v3, %v8237_v4 }
 0x568   : > { %v8381_v13 = vmax.f32 %v5329_v6, %v6299_v7 }
 0x569   : > { %11568 = vst [vmem:[%s12313_s24 + $0x1d0] sm:$0xff] %v11484_v5   ;;  %v8636_v10 = vmax.f32 %v8380_v8, %v8508_v9 }
 0x56b   : > { %v8768_v17 = vadd.f32 %v12926_v33, %v8636_v10 }
 0x56d   : > { %v8896_v20 = vmax.f32 %v8768_v17, 0.0 }
 0x56e   : > { %v7269_v11 = vpop.f32.mrf.mxu2  ;;  %v8239_v12 = vpop.f32.mrf.mxu3 }
 0x56f   : > { %v8509_v14 = vmax.f32 %v7269_v11, %v8239_v12  ;;  %v5332_v15 = vpop.f32.mrf.mxu0  ;;  %v6302_v16 = vpop.f32.mrf.mxu1 }
 0x570   : > { %v8382_v26 = vmax.f32 %v5332_v15, %v6302_v16 }
 0x571   : > { %v8637_v18 = vmax.f32 %v8381_v13, %v8509_v14 }
 0x573   : > { %v8769_v19 = vadd.f32 %v12926_v33, %v8637_v18 }
 0x575   : > { %v8897_v21 = vmax.f32 %v8769_v19, 0.0 }
 0x576   : > { %v7272_v22 = vpop.f32.mrf.mxu2  ;;  %v8242_v23 = vpop.f32.mrf.mxu3 }
 0x577   : > { %v11489_v24 = vpack.c.bf16 %v8897_v21, %v8896_v20  ;;  %v5334_v38 = vpop.f32.mrf.mxu0  ;;  %v6304_v25 = vpop.f32.mrf.mxu1  ;;  %v8510_v27 = vmax.f32 %v7272_v22, %v8242_v23 }
 0x578   : > { %v8383_v30 = vmax.f32 %v5334_v38, %v6304_v25 }
 0x579   : > { %11569 = vst [vmem:[%s12313_s24 + $0x1d8] sm:$0xff] %v11489_v24   ;;  %v8638_v28 = vmax.f32 %v8382_v26, %v8510_v27 }
 0x57b   : > { %v8770_v35 = vadd.f32 %v12926_v33, %v8638_v28 }
 0x57d   : > { %v8898_v39 = vmax.f32 %v8770_v35, 0.0 }
 0x57e   : > { %v7274_v56 = vpop.f32.mrf.mxu2  ;;  %v8244_v29 = vpop.f32.mrf.mxu3 }
 0x57f   : > { %v8511_v31 = vmax.f32 %v7274_v56, %v8244_v29  ;;  %v5337_v32 = vpop.f32.mrf.mxu0  ;;  %v6307_v34 = vpop.f32.mrf.mxu1 }
 0x580   : > { %v8384_v46 = vmax.f32 %v5337_v32, %v6307_v34 }
 0x581   : > { %v8639_v36 = vmax.f32 %v8383_v30, %v8511_v31 }
 0x583   : > { %v8771_v37 = vadd.f32 %v12926_v33, %v8639_v36 }
 0x585   : > { %v8899_v40 = vmax.f32 %v8771_v37, 0.0 }
 0x586   : > { %v7277_v41 = vpop.f32.mrf.mxu2  ;;  %v8247_v42 = vpop.f32.mrf.mxu3 }
 0x587   : > { %v11494_v43 = vpack.c.bf16 %v8899_v40, %v8898_v39  ;;  %v5339_v44 = vpop.f32.mrf.mxu0  ;;  %v6309_v45 = vpop.f32.mrf.mxu1  ;;  %v8512_v47 = vmax.f32 %v7277_v41, %v8247_v42 }
 0x588   : > { %v8385_v51 = vmax.f32 %v5339_v44, %v6309_v45 }
 0x589   : > { %11570 = vst [vmem:[%s12313_s24 + $0x1e0] sm:$0xff] %v11494_v43   ;;  %v8640_v48 = vmax.f32 %v8384_v46, %v8512_v47 }
 0x58b   : > { %v8772_v55 = vadd.f32 %v12926_v33, %v8640_v48 }
 0x58d   : > { %v8900_v59 = vmax.f32 %v8772_v55, 0.0 }
 0x58e   : > { %v7279_v49 = vpop.f32.mrf.mxu2  ;;  %v8249_v50 = vpop.f32.mrf.mxu3 }
 0x58f   : > { %v8513_v52 = vmax.f32 %v7279_v49, %v8249_v50  ;;  %v5342_v53 = vpop.f32.mrf.mxu0  ;;  %v6312_v54 = vpop.f32.mrf.mxu1 }
 0x590   : > { %v8386_v2 = vmax.f32 %v5342_v53, %v6312_v54 }
 0x591   : > { %v8641_v57 = vmax.f32 %v8385_v51, %v8513_v52 }
 0x593   : > { %v8773_v58 = vadd.f32 %v12926_v33, %v8641_v57 }
 0x595   : > { %v8901_v60 = vmax.f32 %v8773_v58, 0.0 }
 0x596   : > { %v7282_v61 = vpop.f32.mrf.mxu2  ;;  %v8252_v62 = vpop.f32.mrf.mxu3 }
 0x597   : > { %v11499_v63 = vpack.c.bf16 %v8901_v60, %v8900_v59  ;;  %v5344_v0 = vpop.f32.mrf.mxu0  ;;  %v6314_v1 = vpop.f32.mrf.mxu1  ;;  %v8514_v3 = vmax.f32 %v7282_v61, %v8252_v62 }
 0x598   : > { %v8387_v7 = vmax.f32 %v5344_v0, %v6314_v1 }
 0x599   : > { %11571 = vst [vmem:[%s12313_s24 + $0x1e8] sm:$0xff] %v11499_v63   ;;  %v8642_v4 = vmax.f32 %v8386_v2, %v8514_v3 }
 0x59b   : > { %v8774_v9 = vadd.f32 %v12926_v33, %v8642_v4 }
 0x59d   : > { %v8902_v14 = vmax.f32 %v8774_v9, 0.0 }
 0x59e   : > { %v7284_v5 = vpop.f32.mrf.mxu2  ;;  %v8254_v6 = vpop.f32.mrf.mxu3 }
 0x59f   : > { %v8515_v8 = vmax.f32 %v7284_v5, %v8254_v6  ;;  %v5347_v11 = vpop.f32.mrf.mxu0  ;;  %v6317_v12 = vpop.f32.mrf.mxu1 }
 0x5a0   : > { %v8388_v19 = vmax.f32 %v5347_v11, %v6317_v12 }
 0x5a1   : > { %v8643_v10 = vmax.f32 %v8387_v7, %v8515_v8 }
 0x5a3   : > { %v8775_v13 = vadd.f32 %v12926_v33, %v8643_v10 }
 0x5a5   : > { %v8903_v15 = vmax.f32 %v8775_v13, 0.0 }
 0x5a6   : > { %v7287_v16 = vpop.f32.mrf.mxu2  ;;  %v8257_v17 = vpop.f32.mrf.mxu3 }
 0x5a7   : > { %v11504_v18 = vpack.c.bf16 %v8903_v15, %v8902_v14  ;;  %v8516_v20 = vmax.f32 %v7287_v16, %v8257_v17  ;;  %v5349_v21 = vpop.f32.mrf.mxu0  ;;  %v6319_v22 = vpop.f32.mrf.mxu1 }
 0x5a8   : > { %v8389_v25 = vmax.f32 %v5349_v21, %v6319_v22 }
 0x5a9   : > { %11572 = vst [vmem:[%s12313_s24 + $0x1f0] sm:$0xff] %v11504_v18   ;;  %v8644_v23 = vmax.f32 %v8388_v19, %v8516_v20 }
 0x5ab   : > { %v8776_v27 = vadd.f32 %v12926_v33, %v8644_v23 }
 0x5ad   : > { %v8904_v29 = vmax.f32 %v8776_v27, 0.0 }
 0x5ae   : > { %v7289_v24 = vpop.f32.mrf.mxu2  ;;  %v8259_v38 = vpop.f32.mrf.mxu3 }
 0x5af   : > { %v8517_v26 = vmax.f32 %v7289_v24, %v8259_v38 }
 0x5b1   : > { %v8645_v28 = vmax.f32 %v8389_v25, %v8517_v26 }
 0x5b3   : > { %v8777_v56 = vadd.f32 %v12926_v33, %v8645_v28 }
 0x5b5   : > { %v8905_v30 = vmax.f32 %v8777_v56, 0.0 }
 0x5b7   : > { %v11509_v31 = vpack.c.bf16 %v8905_v30, %v8904_v29 }
 0x5b9   : > { %11573 = vst [vmem:[%s12313_s24 + $0x1f8] sm:$0xff] %v11509_v31  }
 0x5ba PF: > { %p10_p9 = scmp.ge.s32.totalorder %s11665_s16, 4   ;;  %s12966_s12 = smov %s11621_s13 }
 0x5bb   : > { %s12967_s13 = smov %s11674_s19  ;;  %s12968_s14 = smov %s11665_s16 }
 0x5bc   :  { %12 = sbr.rel (!%p10_p9) target bundleno = 2 (0x2), region = 126 }

// kernel: net_forward.4
= control target key start
LH: loop header
LB: loop body
LE: loop exit
PB: predicated region body
PF: predicated region fallthrough
CT: control target
= control target key end

     0   :  { %vm400_vm0 = vcmask 1042432   ;;  %vm333_vm1 = vcmask 179200   ;;  %s5599_s1 = inlined_call_operand.vmem [shape: bf16[150,128], index: 1, kind: input, shape index: {}]   ;;  %s5600_s0 = inlined_call_operand.vmem [shape: bf16[4,352,150], index: 0, kind: input, shape index: {}]   ;;  %s5601_s2 = inlined_call_operand.vmem [shape: f32[1,128], index: 2, kind: input, shape index: {}]   ;;  %s5602_s3 = inlined_call_operand.vmem [shape: bf16[352,128], index: 3, kind: output, shape index: {}]  }
   0x1   :  { %v3900_v0 = vld [vmem:[%s5599_s1 + $0x38] sm:$0xff]  ;;  %v33_v1 = vld [vmem:[%s5599_s1 + $0x48] sm:$0x7]  ;;  %v3910_v2 = vld [vmem:[%s5599_s1 + $0x30] sm:$0xff] }
   0x2   :  { %404 = vmatpush.bf16.msra.mxu0 %v3900_v0  ;;  %951 = vmatpush.bf16.msra.mxu2 %v3900_v0  ;;  %v313_v3 = vunpack.c.l.b16 %v33_v1  ;;  %v3564_v5 = vld [vmem:[%s5599_s1 + $0x28] sm:$0xff]  ;;  %v3567_v7 = vld [vmem:[%s5599_s1 + $0x40] sm:$0xff]  ;;  %v3562_v15 = vld [vmem:[%s5599_s1 + $0x18] sm:$0xff] }
   0x3   :  { %v3612_v8 = vld [vmem:[%s5600_s0 + $0x164] sm:$0xf]  ;;  %v2881_v9 = vld [vmem:[%s5600_s0 + $0x168] sm:$0xf0]  ;;  %v3561_v16 = vld [vmem:[%s5599_s1 + $0x10] sm:$0xff] }
   0x4   :  { %v323_v4 = vpack.c.b16 %v313_v3, %v313_v3  ;;  %v3568_v10 = vld [vmem:[%s5600_s0 + $0x4] sm:$0xf]  ;;  %v2603_v11 = vld [vmem:[%s5600_s0 + $0x8] sm:$0xf0]  ;;  %v2884_v13 = vor.u32 %v3612_v8, %v2881_v9  ;;  %v2601_v19 = vld [vmem:[%s5600_s0] sm:$0xf] }
   0x5   :  { %v3563_v12 = vld [vmem:[%s5599_s1 + $0x20] sm:$0xff]  ;;  %v2606_v14 = vor.u32 %v3568_v10, %v2603_v11  ;;  %v3560_v17 = vld [vmem:[%s5599_s1 + $0x8] sm:$0xff]  ;;  %v3614_v20 = vld [vmem:[%s5600_s0 + $0x174] sm:$0xf] }
   0x6   :  { %405 = vmatpush.bf16.msra.mxu0 %v3910_v2  ;;  %952 = vmatpush.bf16.msra.mxu2 %v3910_v2  ;;  %v402_v6 = vsel %vm400_vm0, %v323_v4, 0  ;;  %v3559_v18 = vld [vmem:[%s5599_s1] sm:$0xff]  ;;  %v2889_v21 = vld [vmem:[%s5600_s0 + $0x178] sm:$0xf0]  ;;  %v3570_v22 = vld [vmem:[%s5600_s0 + $0x14] sm:$0xf] }
   0x7   :  { %1076 = vmatpush.bf16.msra.mxu3 %v402_v6  ;;  %529 = vmatpush.bf16.msra.mxu1 %v402_v6  ;;  %v2611_v23 = vld [vmem:[%s5600_s0 + $0x18] sm:$0xf0]  ;;  %v3569_v24 = vld [vmem:[%s5600_s0 + $0x4] sm:$0xf0]  ;;  %v2879_v25 = vld [vmem:[%s5600_s0 + $0x160] sm:$0xf]  ;;  %v2892_v27 = vor.u32 %v3614_v20, %v2889_v21 }
   0x8   :  { %v3613_v26 = vld [vmem:[%s5600_s0 + $0x164] sm:$0xf0]  ;;  %v2614_v28 = vor.u32 %v3570_v22, %v2611_v23  ;;  %v2602_v29 = vor.u32 %v3569_v24, %v2601_v19  ;;  %v2609_v31 = vld [vmem:[%s5600_s0 + $0x10] sm:$0xf]  ;;  %v3616_v32 = vld [vmem:[%s5600_s0 + $0x184] sm:$0xf] }
   0x9   :  { %v2880_v30 = vor.u32 %v3613_v26, %v2879_v25  ;;  %v2897_v33 = vld [vmem:[%s5600_s0 + $0x188] sm:$0xf0]  ;;  %v3572_v34 = vld [vmem:[%s5600_s0 + $0x24] sm:$0xf]  ;;  %v3571_v36 = vld [vmem:[%s5600_s0 + $0x14] sm:$0xf0] }
   0xa   :  { %406 = vmatpush.bf16.msra.mxu0 %v3564_v5  ;;  %953 = vmatpush.bf16.msra.mxu2 %v3564_v5  ;;  %v2619_v35 = vld [vmem:[%s5600_s0 + $0x28] sm:$0xf0]  ;;  %v2887_v37 = vld [vmem:[%s5600_s0 + $0x170] sm:$0xf]  ;;  %v3615_v38 = vld [vmem:[%s5600_s0 + $0x174] sm:$0xf0]  ;;  %v2900_v39 = vor.u32 %v3616_v32, %v2897_v33  ;;  %v2610_v41 = vor.u32 %v3571_v36, %v2609_v31 }
   0xb   :  { %1077 = vmatpush.bf16.msra.mxu3 %v3567_v7  ;;  %530 = vmatpush.bf16.msra.mxu1 %v3567_v7  ;;  %v2622_v40 = vor.u32 %v3572_v34, %v2619_v35  ;;  %v2888_v42 = vor.u32 %v3615_v38, %v2887_v37  ;;  %v2617_v43 = vld [vmem:[%s5600_s0 + $0x20] sm:$0xf]  ;;  %v3618_v44 = vld [vmem:[%s5600_s0 + $0x194] sm:$0xf]  ;;  %v2905_v45 = vld [vmem:[%s5600_s0 + $0x198] sm:$0xf0] }
   0xc   :  { %v3574_v46 = vld [vmem:[%s5600_s0 + $0x34] sm:$0xf]  ;;  %v2627_v47 = vld [vmem:[%s5600_s0 + $0x38] sm:$0xf0]  ;;  %v3573_v48 = vld [vmem:[%s5600_s0 + $0x24] sm:$0xf0]  ;;  %v2908_v51 = vor.u32 %v3618_v44, %v2905_v45 }
   0xd   :  { %v2895_v49 = vld [vmem:[%s5600_s0 + $0x180] sm:$0xf]  ;;  %v3617_v50 = vld [vmem:[%s5600_s0 + $0x184] sm:$0xf0]  ;;  %v2630_v52 = vor.u32 %v3574_v46, %v2627_v47  ;;  %v2618_v53 = vor.u32 %v3573_v48, %v2617_v43  ;;  %v2625_v55 = vld [vmem:[%s5600_s0 + $0x30] sm:$0xf] }
   0xe   :  { %407 = vmatpush.bf16.msra.mxu0 %v3563_v12  ;;  %954 = vmatpush.bf16.msra.mxu2 %v3563_v12  ;;  %v2896_v54 = vor.u32 %v3617_v50, %v2895_v49  ;;  %v3620_v56 = vld [vmem:[%s5600_s0 + $0x1a4] sm:$0xf]  ;;  %v2913_v57 = vld [vmem:[%s5600_s0 + $0x1a8] sm:$0xf0]  ;;  %v3575_v60 = vld [vmem:[%s5600_s0 + $0x34] sm:$0xf0] }
   0xf   :  { %1623 = vmatpush.bf16.msrb.mxu3 %v402_v6  ;;  %1498 = vmatpush.bf16.msrb.mxu1 %v3900_v0  ;;  %v3576_v58 = vld [vmem:[%s5600_s0 + $0x44] sm:$0xf]  ;;  %v2635_v59 = vld [vmem:[%s5600_s0 + $0x48] sm:$0xf0]  ;;  %v2903_v61 = vld [vmem:[%s5600_s0 + $0x190] sm:$0xf]  ;;  %v2916_v63 = vor.u32 %v3620_v56, %v2913_v57  ;;  %v2626_v1 = vor.u32 %v3575_v60, %v2625_v55 }
  0x10   :  { %3053 = vmatmul.msk.bf16.vlgmr.msra.gmra.mxu3 %vm333_vm1, %v2884_v13  ;;  %2811 = vmatmul.msk.bf16.vlgmr.msra.gmra.mxu1 %vm333_vm1, %v2606_v14  ;;  %v3619_v62 = vld [vmem:[%s5600_s0 + $0x194] sm:$0xf0]  ;;  %v2633_v3 = vld [vmem:[%s5600_s0 + $0x40] sm:$0xf]  ;;  %v3622_v4 = vld [vmem:[%s5600_s0 + $0x1b4] sm:$0xf] }
  0x11   :  { %v3577_v8 = vld [vmem:[%s5600_s0 + $0x44] sm:$0xf0]  ;;  %v2911_v9 = vld [vmem:[%s5600_s0 + $0x1a0] sm:$0xf]  ;;  %v2651_v19 = vld [vmem:[%s5600_s0 + $0x68] sm:$0xf0] }
  0x12   :  { %408 = vmatpush.bf16.msra.mxu0 %v3562_v15  ;;  %955 = vmatpush.bf16.msra.mxu2 %v3562_v15  ;;  %v3621_v10 = vld [vmem:[%s5600_s0 + $0x1a4] sm:$0xf0]  ;;  %v2634_v13 = vor.u32 %v3577_v8, %v2633_v3  ;;  %v3579_v20 = vld [vmem:[%s5600_s0 + $0x54] sm:$0xf0]  ;;  %v2919_v21 = vld [vmem:[%s5600_s0 + $0x1b0] sm:$0xf] }
  0x13   :  { %1499 = vmatpush.bf16.msrb.mxu1 %v3910_v2  ;;  %1624 = vmatpush.bf16.msrb.mxu3 %v3567_v7  ;;  %v2912_v14 = vor.u32 %v3621_v10, %v2911_v9  ;;  %v3623_v22 = vld [vmem:[%s5600_s0 + $0x1b4] sm:$0xf0]  ;;  %v2659_v31 = vld [vmem:[%s5600_s0 + $0x78] sm:$0xf0]  ;;  %v3581_v32 = vld [vmem:[%s5600_s0 + $0x64] sm:$0xf0] }
  0x14   :  { %v2920_v26 = vor.u32 %v3623_v22, %v2919_v21  ;;  %v2927_v33 = vld [vmem:[%s5600_s0 + $0x1c0] sm:$0xf]  ;;  %v3625_v34 = vld [vmem:[%s5600_s0 + $0x1c4] sm:$0xf0]  ;;  %v2667_v43 = vld [vmem:[%s5600_s0 + $0x88] sm:$0xf0] }
  0x15   :  { %v2928_v38 = vor.u32 %v3625_v34, %v2927_v33  ;;  %v3583_v44 = vld [vmem:[%s5600_s0 + $0x74] sm:$0xf0]  ;;  %v2935_v45 = vld [vmem:[%s5600_s0 + $0x1d0] sm:$0xf]  ;;  %v3630_v55 = vld [vmem:[%s5600_s0 + $0x1f4] sm:$0xf] }
  0x16   :  { %409 = vmatpush.bf16.msra.mxu0 %v3561_v16  ;;  %956 = vmatpush.bf16.msra.mxu2 %v3561_v16  ;;  %v3627_v46 = vld [vmem:[%s5600_s0 + $0x1d4] sm:$0xf0]  ;;  %v2953_v56 = vld [vmem:[%s5600_s0 + $0x1f8] sm:$0xf0]  ;;  %v3586_v57 = vld [vmem:[%s5600_s0 + $0x94] sm:$0xf] }
  0x17   :  { %1500 = vmatpush.bf16.msrb.mxu1 %v3564_v5  ;;  %v2943_v60 = vld [vmem:[%s5600_s0 + $0x1e0] sm:$0xf] }
  0x1a   :  { %410 = vmatpush.bf16.msra.mxu0 %v3560_v17  ;;  %957 = vmatpush.bf16.msra.mxu2 %v3560_v17 }
  0x1b   :  { %1501 = vmatpush.bf16.msrb.mxu1 %v3563_v12 }
  0x1e   :  { %411 = vmatpush.bf16.msra.mxu0 %v3559_v18  ;;  %958 = vmatpush.bf16.msra.mxu2 %v3559_v18 }
  0x1f   :  { %1502 = vmatpush.bf16.msrb.mxu1 %v3562_v15 }
  0x20   :  { %3054 = vmatmul.msk.bf16.gmra.mxu3 %vm333_vm1, %v2892_v27  ;;  %2812 = vmatmul.msk.bf16.gmra.mxu1 %vm333_vm1, %v2614_v28  ;;  %v2649_v27 = vld [vmem:[%s5600_s0 + $0x60] sm:$0xf]  ;;  %v3626_v28 = vld [vmem:[%s5600_s0 + $0x1d4] sm:$0xf] }
  0x21   :  { %412 = vmatmul.bf16.vlgmr.msra.gmra.mxu0 %v2602_v29  ;;  %959 = vmatmul.bf16.vlgmr.msra.gmra.mxu2 %v2880_v30  ;;  %v2937_v29 = vld [vmem:[%s5600_s0 + $0x1d8] sm:$0xf0]  ;;  %v3582_v30 = vld [vmem:[%s5600_s0 + $0x74] sm:$0xf]  ;;  %v2650_v37 = vor.u32 %v3581_v32, %v2649_v27 }
  0x22   :  { %2170 = vmatpush.bf16.msrb.mxu2 %v402_v6  ;;  %2045 = vmatpush.bf16.msrb.mxu0 %v3900_v0  ;;  %v2638_v0 = vor.u32 %v3576_v58, %v2635_v59  ;;  %v3578_v6 = vld [vmem:[%s5600_s0 + $0x54] sm:$0xf]  ;;  %v2940_v35 = vor.u32 %v3626_v28, %v2937_v29  ;;  %v2662_v36 = vor.u32 %v3582_v30, %v2659_v31  ;;  %v2675_v58 = vld [vmem:[%s5600_s0 + $0x98] sm:$0xf0]  ;;  %v3585_v59 = vld [vmem:[%s5600_s0 + $0x84] sm:$0xf0] }
  0x23   :  { %1503 = vmatpush.bf16.msrb.mxu1 %v3561_v16 }
  0x26   :  { %2046 = vmatpush.bf16.msrb.mxu0 %v3910_v2  ;;  %2171 = vmatpush.bf16.msrb.mxu2 %v3567_v7  ;;  %v2904_v2 = vor.u32 %v3619_v62, %v2903_v61  ;;  %v2643_v7 = vld [vmem:[%s5600_s0 + $0x58] sm:$0xf0]  ;;  %v3629_v61 = vld [vmem:[%s5600_s0 + $0x1e4] sm:$0xf0] }
  0x27   :  { %1504 = vmatpush.bf16.msrb.mxu1 %v3560_v17 }
  0x2a   :  { %2047 = vmatpush.bf16.msrb.mxu0 %v3564_v5  ;;  %v2921_v5 = vld [vmem:[%s5600_s0 + $0x1b8] sm:$0xf0] }
  0x2b   :  { %1505 = vmatpush.bf16.msrb.mxu1 %v3559_v18  ;;  %v2924_v11 = vor.u32 %v3622_v4, %v2921_v5 }
  0x2e   :  { %2048 = vmatpush.bf16.msrb.mxu0 %v3563_v12  ;;  %v2646_v12 = vor.u32 %v3578_v6, %v2643_v7 }
  0x30   :  { %3055 = vmatmul.msk.bf16.gmra.mxu3 %vm333_vm1, %v2900_v39  ;;  %2813 = vmatmul.msk.bf16.gmra.mxu1 %vm333_vm1, %v2622_v40  ;;  %v2657_v39 = vld [vmem:[%s5600_s0 + $0x70] sm:$0xf]  ;;  %v3628_v40 = vld [vmem:[%s5600_s0 + $0x1e4] sm:$0xf] }
  0x31   :  { %417 = vmatmul.bf16.gmra.mxu0 %v2610_v41  ;;  %964 = vmatmul.bf16.gmra.mxu2 %v2888_v42  ;;  %v2945_v41 = vld [vmem:[%s5600_s0 + $0x1e8] sm:$0xf0]  ;;  %v3584_v42 = vld [vmem:[%s5600_s0 + $0x84] sm:$0xf]  ;;  %v2658_v50 = vor.u32 %v3583_v44, %v2657_v39  ;;  %v2681_v39 = vld [vmem:[%s5600_s0 + $0xa0] sm:$0xf] }
  0x32   :  { %2049 = vmatpush.bf16.msrb.mxu0 %v3562_v15  ;;  %v2641_v15 = vld [vmem:[%s5600_s0 + $0x50] sm:$0xf]  ;;  %v2948_v47 = vor.u32 %v3628_v40, %v2945_v41  ;;  %v2670_v49 = vor.u32 %v3584_v42, %v2667_v43  ;;  %v3634_v40 = vld [vmem:[%s5600_s0 + $0x214] sm:$0xf]  ;;  %v2969_v41 = vld [vmem:[%s5600_s0 + $0x218] sm:$0xf0] }
  0x33   :  { %v2642_v25 = vor.u32 %v3579_v20, %v2641_v15  ;;  %v2961_v15 = vld [vmem:[%s5600_s0 + $0x208] sm:$0xf0]  ;;  %v3631_v20 = vld [vmem:[%s5600_s0 + $0x1f4] sm:$0xf0]  ;;  %v3590_v42 = vld [vmem:[%s5600_s0 + $0xb4] sm:$0xf] }
  0x34   :  { %v2691_v43 = vld [vmem:[%s5600_s0 + $0xb8] sm:$0xf0]  ;;  %v3589_v44 = vld [vmem:[%s5600_s0 + $0xa4] sm:$0xf0] }
  0x36   :  { %2050 = vmatpush.bf16.msrb.mxu0 %v3561_v16  ;;  %v3624_v16 = vld [vmem:[%s5600_s0 + $0x1c4] sm:$0xf] }
  0x3a   :  { %2051 = vmatpush.bf16.msrb.mxu0 %v3560_v17  ;;  %v2929_v17 = vld [vmem:[%s5600_s0 + $0x1c8] sm:$0xf0] }
  0x3b   :  { %v2932_v23 = vor.u32 %v3624_v16, %v2929_v17  ;;  %v3588_v16 = vld [vmem:[%s5600_s0 + $0xa4] sm:$0xf]  ;;  %v2683_v17 = vld [vmem:[%s5600_s0 + $0xa8] sm:$0xf0] }
  0x3e   :  { %2052 = vmatpush.bf16.msrb.mxu0 %v3559_v18  ;;  %v3580_v18 = vld [vmem:[%s5600_s0 + $0x64] sm:$0xf] }
  0x3f   :  { %v2654_v24 = vor.u32 %v3580_v18, %v2651_v19  ;;  %v3587_v18 = vld [vmem:[%s5600_s0 + $0x94] sm:$0xf0]  ;;  %v2951_v19 = vld [vmem:[%s5600_s0 + $0x1f0] sm:$0xf] }
  0x40   :  { %3056 = vmatmul.msk.bf16.gmra.mxu3 %vm333_vm1, %v2908_v51  ;;  %2814 = vmatmul.msk.bf16.gmra.mxu1 %vm333_vm1, %v2630_v52  ;;  %v2936_v51 = vor.u32 %v3627_v46, %v2935_v45  ;;  %v2952_v27 = vor.u32 %v3631_v20, %v2951_v19  ;;  %v2959_v45 = vld [vmem:[%s5600_s0 + $0x200] sm:$0xf]  ;;  %v3633_v46 = vld [vmem:[%s5600_s0 + $0x204] sm:$0xf0] }
  0x41   :  { %422 = vmatmul.bf16.gmra.mxu0 %v2618_v53  ;;  %969 = vmatmul.bf16.gmra.mxu2 %v2896_v54  ;;  %v2665_v54 = vld [vmem:[%s5600_s0 + $0x80] sm:$0xf] }
  0x50   :  { %3057 = vmatmul.msk.bf16.gmra.mxu3 %vm333_vm1, %v2916_v63  ;;  %2815 = vmatmul.msk.bf16.gmra.mxu1 %vm333_vm1, %v2638_v0  ;;  %v2956_v63 = vor.u32 %v3630_v55, %v2953_v56  ;;  %v2678_v0 = vor.u32 %v3586_v57, %v2675_v58 }
  0x51   :  { %427 = vmatmul.bf16.gmra.mxu0 %v2626_v1  ;;  %974 = vmatmul.bf16.gmra.mxu2 %v2904_v2  ;;  %v2666_v1 = vor.u32 %v3585_v59, %v2665_v54  ;;  %v2944_v2 = vor.u32 %v3629_v61, %v2943_v60 }
  0x60   :  { %3058 = vmatmul.msk.bf16.gmra.mxu3 %vm333_vm1, %v2924_v11  ;;  %2816 = vmatmul.msk.bf16.gmra.mxu1 %vm333_vm1, %v2646_v12 }
  0x61   :  { %432 = vmatmul.bf16.gmra.mxu0 %v2634_v13  ;;  %979 = vmatmul.bf16.gmra.mxu2 %v2912_v14  ;;  %v2673_v13 = vld [vmem:[%s5600_s0 + $0x90] sm:$0xf]  ;;  %v3632_v14 = vld [vmem:[%s5600_s0 + $0x204] sm:$0xf] }
  0x70   :  { %3059 = vmatmul.msk.bf16.gmra.mxu3 %vm333_vm1, %v2932_v23  ;;  %2817 = vmatmul.msk.bf16.gmra.mxu1 %vm333_vm1, %v2654_v24  ;;  %v2964_v23 = vor.u32 %v3632_v14, %v2961_v15  ;;  %v2686_v24 = vor.u32 %v3588_v16, %v2683_v17 }
  0x71   :  { %437 = vmatmul.bf16.gmra.mxu0 %v2642_v25  ;;  %984 = vmatmul.bf16.gmra.mxu2 %v2920_v26  ;;  %v2674_v26 = vor.u32 %v3587_v18, %v2673_v13 }
  0x80   :  { %3060 = vmatmul.msk.bf16.gmra.mxu3 %vm333_vm1, %v2940_v35  ;;  %2818 = vmatmul.msk.bf16.gmra.mxu1 %vm333_vm1, %v2662_v36 }
  0x81   :  { %442 = vmatmul.bf16.gmra.mxu0 %v2650_v37  ;;  %989 = vmatmul.bf16.gmra.mxu2 %v2928_v38 }
  0x8d   :  { %v532_v48 = vpop.f32.mrf.mxu1 }
  0x90   :  { %3061 = vmatmul.msk.bf16.gmra.mxu3 %vm333_vm1, %v2948_v47  ;;  %2819 = vmatmul.msk.bf16.gmra.mxu1 %vm333_vm1, %v2670_v49  ;;  %v2972_v49 = vor.u32 %v3634_v40, %v2969_v41  ;;  %v3594_v40 = vld [vmem:[%s5600_s0 + $0xd4] sm:$0xf]  ;;  %v2707_v41 = vld [vmem:[%s5600_s0 + $0xd8] sm:$0xf0] }
  0x91   :  { %447 = vmatmul.bf16.gmra.mxu0 %v2658_v50  ;;  %994 = vmatmul.bf16.gmra.mxu2 %v2936_v51  ;;  %v2694_v50 = vor.u32 %v3590_v42, %v2691_v43  ;;  %v3593_v42 = vld [vmem:[%s5600_s0 + $0xc4] sm:$0xf0]  ;;  %v2975_v43 = vld [vmem:[%s5600_s0 + $0x220] sm:$0xf] }
  0x93   :  { %v1079_v52 = vpop.f32.mrf.mxu3 }
  0x95   :  { %v534_v53 = vpop.f32.mrf.mxu1 }
  0x9b   :  { %v1081_v62 = vpop.f32.mrf.mxu3 }
  0x9d   :  { %v537_v3 = vpop.f32.mrf.mxu1 }
  0x9e   :  { %v413_v4 = vpop.f32.mrf.mxu0 }
  0x9f   :  { %v4185_v5 = vadd.f32 %v532_v48, %v413_v4  ;;  %v3592_v4 = vld [vmem:[%s5600_s0 + $0xc4] sm:$0xf] }
  0xa0   :  { %3062 = vmatmul.msk.bf16.gmra.mxu3 %vm333_vm1, %v2956_v63  ;;  %2820 = vmatmul.msk.bf16.gmra.mxu1 %vm333_vm1, %v2678_v0 }
  0xa1   :  { %452 = vmatmul.bf16.gmra.mxu0 %v2666_v1  ;;  %999 = vmatmul.bf16.gmra.mxu2 %v2944_v2  ;;  %v2689_v1 = vld [vmem:[%s5600_s0 + $0xb0] sm:$0xf]  ;;  %v3636_v2 = vld [vmem:[%s5600_s0 + $0x224] sm:$0xf] }
  0xa3   :  { %v1084_v6 = vpop.f32.mrf.mxu3 }
  0xa4   :  { %v960_v7 = vpop.f32.mrf.mxu2 }
  0xa5   :  { %v4189_v8 = vadd.f32 %v1079_v52, %v960_v7  ;;  %v539_v9 = vpop.f32.mrf.mxu1  ;;  %v2682_v52 = vor.u32 %v3589_v44, %v2681_v39  ;;  %v3591_v7 = vld [vmem:[%s5600_s0 + $0xb4] sm:$0xf0]  ;;  %v2985_v39 = vld [vmem:[%s5600_s0 + $0x238] sm:$0xf0]  ;;  %v3637_v44 = vld [vmem:[%s5600_s0 + $0x224] sm:$0xf0] }
  0xa6   :  { %v415_v10 = vpop.f32.mrf.mxu0  ;;  %v2690_v18 = vor.u32 %v3591_v7, %v2689_v1  ;;  %v3640_v7 = vld [vmem:[%s5600_s0 + $0x244] sm:$0xf] }
  0xa7   :  { %v4193_v12 = vadd.f32 %v534_v53, %v415_v10  ;;  %v2960_v53 = vor.u32 %v3633_v46, %v2959_v45  ;;  %v3635_v10 = vld [vmem:[%s5600_s0 + $0x214] sm:$0xf0] }
  0xab   :  { %v1086_v21 = vpop.f32.mrf.mxu3 }
  0xac   :  { %v962_v22 = vpop.f32.mrf.mxu2 }
  0xad   :  { %v4219_v25 = vadd.f32 %v1081_v62, %v962_v22  ;;  %v542_v28 = vpop.f32.mrf.mxu1 }
  0xae   :  { %v418_v29 = vpop.f32.mrf.mxu0 }
  0xaf   :  { %v4223_v31 = vadd.f32 %v537_v3, %v418_v29  ;;  %v2977_v3 = vld [vmem:[%s5600_s0 + $0x228] sm:$0xf0] }
  0xb0   :  { %3063 = vmatmul.msk.bf16.gmra.mxu3 %vm333_vm1, %v2964_v23  ;;  %2821 = vmatmul.msk.bf16.gmra.mxu1 %vm333_vm1, %v2686_v24  ;;  %v2980_v15 = vor.u32 %v3636_v2, %v2977_v3 }
  0xb1   :  { %457 = vmatmul.bf16.gmra.mxu0 %v2674_v26  ;;  %1004 = vmatmul.bf16.gmra.mxu2 %v2952_v27 }
  0xb3   :  { %v1089_v32 = vpop.f32.mrf.mxu3 }
  0xb4   :  { %v965_v33 = vpop.f32.mrf.mxu2 }
  0xb5   :  { %v4227_v34 = vadd.f32 %v1084_v6, %v965_v33  ;;  %v544_v35 = vpop.f32.mrf.mxu1  ;;  %v2699_v6 = vld [vmem:[%s5600_s0 + $0xc8] sm:$0xf0] }
  0xb6   :  { %v420_v36 = vpop.f32.mrf.mxu0  ;;  %v2702_v16 = vor.u32 %v3592_v4, %v2699_v6  ;;  %v2705_v6 = vld [vmem:[%s5600_s0 + $0xd0] sm:$0xf] }
  0xb7   :  { %v4231_v38 = vadd.f32 %v539_v9, %v420_v36  ;;  %v2967_v9 = vld [vmem:[%s5600_s0 + $0x210] sm:$0xf]  ;;  %v3638_v36 = vld [vmem:[%s5600_s0 + $0x234] sm:$0xf] }
  0xb8   :  { %v2968_v19 = vor.u32 %v3635_v10, %v2967_v9  ;;  %v2993_v9 = vld [vmem:[%s5600_s0 + $0x248] sm:$0xf0]  ;;  %v3596_v10 = vld [vmem:[%s5600_s0 + $0xe4] sm:$0xf] }
  0xbb   :  { %v1091_v47 = vpop.f32.mrf.mxu3 }
  0xbc   :  { %v967_v48 = vpop.f32.mrf.mxu2 }
  0xbd   :  { %v4257_v51 = vadd.f32 %v1086_v21, %v967_v48  ;;  %v547_v54 = vpop.f32.mrf.mxu1  ;;  %v2710_v48 = vor.u32 %v3594_v40, %v2707_v41 }
  0xbe   :  { %v423_v55 = vpop.f32.mrf.mxu0 }
  0xbf   :  { %v4261_v57 = vadd.f32 %v542_v28, %v423_v55 }
  0xc0   :  { %3064 = vmatmul.msk.bf16.gmra.mxu3 %vm333_vm1, %v2972_v49  ;;  %2822 = vmatmul.msk.bf16.gmra.mxu1 %vm333_vm1, %v2694_v50 }
  0xc1   :  { %462 = vmatmul.bf16.gmra.mxu0 %v2682_v52  ;;  %1009 = vmatmul.bf16.gmra.mxu2 %v2960_v53  ;;  %v2976_v52 = vor.u32 %v3637_v44, %v2975_v43 }
  0xc3   :  { %v1094_v58 = vpop.f32.mrf.mxu3 }
  0xc4   :  { %v970_v59 = vpop.f32.mrf.mxu2 }
  0xc5   :  { %v4265_v60 = vadd.f32 %v1089_v32, %v970_v59  ;;  %v549_v61 = vpop.f32.mrf.mxu1 }
  0xc6   :  { %v425_v62 = vpop.f32.mrf.mxu0 }
  0xc7   :  { %v4269_v0 = vadd.f32 %v544_v35, %v425_v62  ;;  %v2697_v35 = vld [vmem:[%s5600_s0 + $0xc0] sm:$0xf] }
  0xc8   :  { %v2698_v50 = vor.u32 %v3593_v42, %v2697_v35 }
  0xcb   :  { %v1096_v13 = vpop.f32.mrf.mxu3 }
  0xcc   :  { %v972_v14 = vpop.f32.mrf.mxu2 }
  0xcd   :  { %v4295_v17 = vadd.f32 %v1091_v47, %v972_v14  ;;  %v552_v20 = vpop.f32.mrf.mxu1  ;;  %v2988_v47 = vor.u32 %v3638_v36, %v2985_v39  ;;  %v3595_v14 = vld [vmem:[%s5600_s0 + $0xd4] sm:$0xf0] }
  0xce   :  { %v428_v21 = vpop.f32.mrf.mxu0 }
  0xcf   :  { %v4299_v23 = vadd.f32 %v547_v54, %v428_v21 }
  0xd0   :  { %3065 = vmatmul.msk.bf16.gmra.mxu3 %vm333_vm1, %v2980_v15  ;;  %2823 = vmatmul.msk.bf16.gmra.mxu1 %vm333_vm1, %v2702_v16  ;;  %v2983_v15 = vld [vmem:[%s5600_s0 + $0x230] sm:$0xf]  ;;  %v3639_v16 = vld [vmem:[%s5600_s0 + $0x234] sm:$0xf0] }
  0xd1   :  { %467 = vmatmul.bf16.gmra.mxu0 %v2690_v18  ;;  %1014 = vmatmul.bf16.gmra.mxu2 %v2968_v19 }
  0xd3   :  { %v1099_v24 = vpop.f32.mrf.mxu3 }
  0xd4   :  { %v975_v26 = vpop.f32.mrf.mxu2 }
  0xd5   :  { %v4303_v27 = vadd.f32 %v1094_v58, %v975_v26  ;;  %v554_v28 = vpop.f32.mrf.mxu1  ;;  %v2706_v26 = vor.u32 %v3595_v14, %v2705_v6 }
  0xd6   :  { %v430_v29 = vpop.f32.mrf.mxu0 }
  0xd7   :  { %v4307_v33 = vadd.f32 %v549_v61, %v430_v29 }
  0xdb   :  { %v1101_v45 = vpop.f32.mrf.mxu3 }
  0xdc   :  { %v977_v46 = vpop.f32.mrf.mxu2 }
  0xdd   :  { %v4333_v49 = vadd.f32 %v1096_v13, %v977_v46  ;;  %v557_v53 = vpop.f32.mrf.mxu1  ;;  %v2715_v13 = vld [vmem:[%s5600_s0 + $0xe8] sm:$0xf0] }
  0xde   :  { %v433_v54 = vpop.f32.mrf.mxu0  ;;  %v2718_v21 = vor.u32 %v3596_v10, %v2715_v13 }
  0xdf   :  { %v4337_v58 = vadd.f32 %v552_v20, %v433_v54  ;;  %v2996_v20 = vor.u32 %v3640_v7, %v2993_v9  ;;  %v3597_v54 = vld [vmem:[%s5600_s0 + $0xe4] sm:$0xf0] }
  0xe0   :  { %3066 = vmatmul.msk.bf16.gmra.mxu3 %vm333_vm1, %v2988_v47  ;;  %2824 = vmatmul.msk.bf16.gmra.mxu1 %vm333_vm1, %v2710_v48  ;;  %v2713_v47 = vld [vmem:[%s5600_s0 + $0xe0] sm:$0xf]  ;;  %v3642_v48 = vld [vmem:[%s5600_s0 + $0x254] sm:$0xf] }
  0xe1   :  { %472 = vmatmul.bf16.gmra.mxu0 %v2698_v50  ;;  %1019 = vmatmul.bf16.gmra.mxu2 %v2976_v52  ;;  %v3001_v50 = vld [vmem:[%s5600_s0 + $0x258] sm:$0xf0]  ;;  %v3598_v52 = vld [vmem:[%s5600_s0 + $0xf4] sm:$0xf]  ;;  %v2714_v10 = vor.u32 %v3597_v54, %v2713_v47  ;;  %v3600_v47 = vld [vmem:[%s5600_s0 + $0x104] sm:$0xf] }
  0xe2   :  { %v3004_v6 = vor.u32 %v3642_v48, %v3001_v50  ;;  %v3599_v48 = vld [vmem:[%s5600_s0 + $0xf4] sm:$0xf0]  ;;  %v2999_v50 = vld [vmem:[%s5600_s0 + $0x250] sm:$0xf] }
  0xe3   :  { %v1104_v59 = vpop.f32.mrf.mxu3 }
  0xe4   :  { %v980_v61 = vpop.f32.mrf.mxu2 }
  0xe5   :  { %v4341_v62 = vadd.f32 %v1099_v24, %v980_v61  ;;  %v559_v1 = vpop.f32.mrf.mxu1  ;;  %v3641_v61 = vld [vmem:[%s5600_s0 + $0x244] sm:$0xf0] }
  0xe6   :  { %v435_v2 = vpop.f32.mrf.mxu0 }
  0xe7   :  { %v4345_v4 = vadd.f32 %v554_v28, %v435_v2  ;;  %v2984_v28 = vor.u32 %v3639_v16, %v2983_v15 }
  0xeb   :  { %v1106_v18 = vpop.f32.mrf.mxu3 }
  0xec   :  { %v982_v19 = vpop.f32.mrf.mxu2 }
  0xed   :  { %v4371_v24 = vadd.f32 %v1101_v45, %v982_v19  ;;  %v562_v29 = vpop.f32.mrf.mxu1 }
  0xee   :  { %v438_v35 = vpop.f32.mrf.mxu0 }
  0xef   :  { %v4375_v39 = vadd.f32 %v557_v53, %v438_v35  ;;  %v2723_v53 = vld [vmem:[%s5600_s0 + $0xf8] sm:$0xf0] }
  0xf0   :  { %3067 = vmatmul.msk.bf16.gmra.mxu3 %vm333_vm1, %v2996_v20  ;;  %2825 = vmatmul.msk.bf16.gmra.mxu1 %vm333_vm1, %v2718_v21  ;;  %v2726_v7 = vor.u32 %v3598_v52, %v2723_v53  ;;  %v3643_v52 = vld [vmem:[%s5600_s0 + $0x254] sm:$0xf0] }
  0xf1   :  { %477 = vmatmul.bf16.gmra.mxu0 %v2706_v26  ;;  %1024 = vmatmul.bf16.gmra.mxu2 %v2984_v28 }
  0xf3   :  { %v1109_v40 = vpop.f32.mrf.mxu3 }
  0xf4   :  { %v985_v41 = vpop.f32.mrf.mxu2 }
  0xf5   :  { %v4379_v42 = vadd.f32 %v1104_v59, %v985_v41  ;;  %v564_v43 = vpop.f32.mrf.mxu1  ;;  %v2991_v59 = vld [vmem:[%s5600_s0 + $0x240] sm:$0xf] }
  0xf6   :  { %v440_v44 = vpop.f32.mrf.mxu0  ;;  %v2992_v13 = vor.u32 %v3641_v61, %v2991_v59 }
  0xf7   :  { %v4383_v46 = vadd.f32 %v559_v1, %v440_v44  ;;  %v3644_v44 = vld [vmem:[%s5600_s0 + $0x264] sm:$0xf] }
  0xfb   :  { %v1111_v1 = vpop.f32.mrf.mxu3 }
  0xfc   :  { %v987_v2 = vpop.f32.mrf.mxu2 }
  0xfd   :  { %v4409_v9 = vadd.f32 %v1106_v18, %v987_v2  ;;  %v567_v14 = vpop.f32.mrf.mxu1 }
  0xfe   :  { %v443_v15 = vpop.f32.mrf.mxu0 }
  0xff   :  { %v4413_v19 = vadd.f32 %v562_v29, %v443_v15  ;;  %v2721_v29 = vld [vmem:[%s5600_s0 + $0xf0] sm:$0xf] }
 0x100   :  { %3068 = vmatmul.msk.bf16.gmra.mxu3 %vm333_vm1, %v3004_v6  ;;  %2826 = vmatmul.msk.bf16.gmra.mxu1 %vm333_vm1, %v2726_v7  ;;  %v2722_v6 = vor.u32 %v3599_v48, %v2721_v29  ;;  %v3000_v7 = vor.u32 %v3643_v52, %v2999_v50  ;;  %v3646_v48 = vld [vmem:[%s5600_s0 + $0x274] sm:$0xf]  ;;  %v3601_v52 = vld [vmem:[%s5600_s0 + $0x104] sm:$0xf0] }
 0x101   :  { %482 = vmatmul.bf16.gmra.mxu0 %v2714_v10  ;;  %1029 = vmatmul.bf16.gmra.mxu2 %v2992_v13  ;;  %v3602_v50 = vld [vmem:[%s5600_s0 + $0x114] sm:$0xf] }
 0x103   :  { %v1114_v20 = vpop.f32.mrf.mxu3 }
 0x104   :  { %v990_v21 = vpop.f32.mrf.mxu2 }
 0x105   :  { %v4417_v26 = vadd.f32 %v1109_v40, %v990_v21  ;;  %v569_v18 = vpop.f32.mrf.mxu1  ;;  %v3009_v40 = vld [vmem:[%s5600_s0 + $0x268] sm:$0xf0] }
 0x106   :  { %v445_v28 = vpop.f32.mrf.mxu0  ;;  %v3012_v59 = vor.u32 %v3644_v44, %v3009_v40 }
 0x107   :  { %v4421_v41 = vadd.f32 %v564_v43, %v445_v28  ;;  %v2731_v43 = vld [vmem:[%s5600_s0 + $0x108] sm:$0xf0] }
 0x108   :  { %v2734_v61 = vor.u32 %v3600_v47, %v2731_v43 }
 0x10b   :  { %v1116_v53 = vpop.f32.mrf.mxu3 }
 0x10c   :  { %v992_v54 = vpop.f32.mrf.mxu2 }
 0x10d   :  { %v4447_v2 = vadd.f32 %v1111_v1, %v992_v54  ;;  %v572_v10 = vpop.f32.mrf.mxu1  ;;  %v3007_v54 = vld [vmem:[%s5600_s0 + $0x260] sm:$0xf] }
 0x10e   :  { %v448_v13 = vpop.f32.mrf.mxu0 }
 0x10f   :  { %v4451_v21 = vadd.f32 %v567_v14, %v448_v13  ;;  %v2729_v14 = vld [vmem:[%s5600_s0 + $0x100] sm:$0xf] }
 0x110   :  { %3069 = vmatmul.msk.bf16.gmra.mxu3 %vm333_vm1, %v3012_v59  ;;  %2827 = vmatmul.msk.bf16.gmra.mxu1 %vm333_vm1, %v2734_v61  ;;  %v3645_v59 = vld [vmem:[%s5600_s0 + $0x264] sm:$0xf0] }
 0x111   :  { %487 = vmatmul.bf16.gmra.mxu0 %v2722_v6  ;;  %1034 = vmatmul.bf16.gmra.mxu2 %v3000_v7  ;;  %v3008_v47 = vor.u32 %v3645_v59, %v3007_v54  ;;  %v3015_v54 = vld [vmem:[%s5600_s0 + $0x270] sm:$0xf]  ;;  %v3647_v59 = vld [vmem:[%s5600_s0 + $0x274] sm:$0xf0] }
 0x113   :  { %v1119_v28 = vpop.f32.mrf.mxu3 }
 0x114   :  { %v995_v44 = vpop.f32.mrf.mxu2 }
 0x115   :  { %v4455_v40 = vadd.f32 %v1114_v20, %v995_v44  ;;  %v574_v1 = vpop.f32.mrf.mxu1  ;;  %v3017_v20 = vld [vmem:[%s5600_s0 + $0x278] sm:$0xf0] }
 0x116   :  { %v450_v29 = vpop.f32.mrf.mxu0  ;;  %v3020_v7 = vor.u32 %v3646_v48, %v3017_v20 }
 0x117   :  { %v4459_v43 = vadd.f32 %v569_v18, %v450_v29  ;;  %v2739_v18 = vld [vmem:[%s5600_s0 + $0x118] sm:$0xf0]  ;;  %v2730_v29 = vor.u32 %v3601_v52, %v2729_v14  ;;  %v3603_v52 = vld [vmem:[%s5600_s0 + $0x114] sm:$0xf0] }
 0x118   :  { %v2742_v13 = vor.u32 %v3602_v50, %v2739_v18  ;;  %v3016_v50 = vor.u32 %v3647_v59, %v3015_v54  ;;  %v3023_v54 = vld [vmem:[%s5600_s0 + $0x280] sm:$0xf]  ;;  %v3649_v59 = vld [vmem:[%s5600_s0 + $0x284] sm:$0xf0] }
 0x11b   :  { %v1121_v61 = vpop.f32.mrf.mxu3 }
 0x11c   :  { %v997_v6 = vpop.f32.mrf.mxu2 }
 0x11d   :  { %v4485_v44 = vadd.f32 %v1116_v53, %v997_v6  ;;  %v577_v15 = vpop.f32.mrf.mxu1 }
 0x11e   :  { %v453_v35 = vpop.f32.mrf.mxu0 }
 0x11f   :  { %v4489_v45 = vadd.f32 %v572_v10, %v453_v35  ;;  %v2737_v35 = vld [vmem:[%s5600_s0 + $0x110] sm:$0xf]  ;;  %v3648_v10 = vld [vmem:[%s5600_s0 + $0x284] sm:$0xf] }
 0x120   :  { %3070 = vmatmul.msk.bf16.gmra.mxu3 %vm333_vm1, %v3020_v7  ;;  %2828 = vmatmul.msk.bf16.gmra.mxu1 %vm333_vm1, %v2742_v13 }
 0x121   :  { %492 = vmatmul.bf16.gmra.mxu0 %v2730_v29  ;;  %1039 = vmatmul.bf16.gmra.mxu2 %v3008_v47  ;;  %v3604_v47 = vld [vmem:[%s5600_s0 + $0x124] sm:$0xf] }
 0x123   :  { %v1124_v36 = vpop.f32.mrf.mxu3 }
 0x124   :  { %v1000_v48 = vpop.f32.mrf.mxu2 }
 0x125   :  { %v4493_v20 = vadd.f32 %v1119_v28, %v1000_v48  ;;  %v579_v53 = vpop.f32.mrf.mxu1  ;;  %v3025_v28 = vld [vmem:[%s5600_s0 + $0x288] sm:$0xf0] }
 0x126   :  { %v455_v14 = vpop.f32.mrf.mxu0  ;;  %v3028_v13 = vor.u32 %v3648_v10, %v3025_v28 }
 0x127   :  { %v4497_v18 = vadd.f32 %v574_v1, %v455_v14  ;;  %v2747_v1 = vld [vmem:[%s5600_s0 + $0x128] sm:$0xf0]  ;;  %v2738_v14 = vor.u32 %v3603_v52, %v2737_v35  ;;  %v3605_v52 = vld [vmem:[%s5600_s0 + $0x124] sm:$0xf0] }
 0x128   :  { %v2750_v29 = vor.u32 %v3604_v47, %v2747_v1  ;;  %v3024_v47 = vor.u32 %v3649_v59, %v3023_v54  ;;  %v3031_v54 = vld [vmem:[%s5600_s0 + $0x290] sm:$0xf]  ;;  %v3651_v59 = vld [vmem:[%s5600_s0 + $0x294] sm:$0xf0] }
 0x12b   :  { %v1126_v6 = vpop.f32.mrf.mxu3 }
 0x12c   :  { %v1002_v7 = vpop.f32.mrf.mxu2 }
 0x12d   :  { %v4523_v48 = vadd.f32 %v1121_v61, %v1002_v7  ;;  %v582_v16 = vpop.f32.mrf.mxu1 }
 0x12e   :  { %v458_v3 = vpop.f32.mrf.mxu0 }
 0x12f   :  { %5656 = vst [vmem:[#allocation2_spill] sm:$0xff] %v4523_v48  ;;  %v4527_v32 = vadd.f32 %v577_v15, %v458_v3  ;;  %v2745_v3 = vld [vmem:[%s5600_s0 + $0x120] sm:$0xf]  ;;  %v3650_v15 = vld [vmem:[%s5600_s0 + $0x294] sm:$0xf] }
 0x130   :  { %3071 = vmatmul.msk.bf16.gmra.mxu3 %vm333_vm1, %v3028_v13  ;;  %2829 = vmatmul.msk.bf16.gmra.mxu1 %vm333_vm1, %v2750_v29 }
 0x131   :  { %5657 = vst [vmem:[#allocation3_spill] sm:$0xff] %v4527_v32  ;;  %497 = vmatmul.bf16.gmra.mxu0 %v2738_v14  ;;  %1044 = vmatmul.bf16.gmra.mxu2 %v3016_v50  ;;  %v3606_v50 = vld [vmem:[%s5600_s0 + $0x134] sm:$0xf] }
 0x133   :  { %v1129_v22 = vpop.f32.mrf.mxu3 }
 0x134   :  { %v1005_v10 = vpop.f32.mrf.mxu2 }
 0x135   :  { %v4531_v28 = vadd.f32 %v1124_v36, %v1005_v10  ;;  %v584_v61 = vpop.f32.mrf.mxu1  ;;  %v3033_v36 = vld [vmem:[%s5600_s0 + $0x298] sm:$0xf0] }
 0x136   :  { %v460_v35 = vpop.f32.mrf.mxu0  ;;  %v3036_v29 = vor.u32 %v3650_v15, %v3033_v36 }
 0x137   :  { %5658 = vst [vmem:[#allocation4_spill] sm:$0xff] %v4531_v28  ;;  %v4535_v1 = vadd.f32 %v579_v53, %v460_v35  ;;  %v2755_v53 = vld [vmem:[%s5600_s0 + $0x138] sm:$0xf0]  ;;  %v2746_v35 = vor.u32 %v3605_v52, %v2745_v3  ;;  %v3607_v52 = vld [vmem:[%s5600_s0 + $0x134] sm:$0xf0] }
 0x138   :  { %v2758_v14 = vor.u32 %v3606_v50, %v2755_v53  ;;  %v3032_v50 = vor.u32 %v3651_v59, %v3031_v54  ;;  %v3039_v54 = vld [vmem:[%s5600_s0 + $0x2a0] sm:$0xf]  ;;  %v3653_v59 = vld [vmem:[%s5600_s0 + $0x2a4] sm:$0xf0] }
 0x139   :  { %5659 = vst [vmem:[#allocation5_spill] sm:$0xff] %v4535_v1 }
 0x13b   :  { %v1131_v7 = vpop.f32.mrf.mxu3 }
 0x13c   :  { %v1007_v13 = vpop.f32.mrf.mxu2 }
 0x13d   :  { %v4561_v10 = vadd.f32 %v1126_v6, %v1007_v13  ;;  %v587_v55 = vpop.f32.mrf.mxu1 }
 0x13e   :  { %v463_v63 = vpop.f32.mrf.mxu0 }
 0x13f   :  { %5660 = vst [vmem:[#allocation6_spill] sm:$0xff] %v4561_v10  ;;  %v4565_v37 = vadd.f32 %v582_v16, %v463_v63  ;;  %v2753_v63 = vld [vmem:[%s5600_s0 + $0x130] sm:$0xf]  ;;  %v3652_v16 = vld [vmem:[%s5600_s0 + $0x2a4] sm:$0xf] }
 0x140   :  { %3072 = vmatmul.msk.bf16.gmra.mxu3 %vm333_vm1, %v3036_v29  ;;  %2830 = vmatmul.msk.bf16.gmra.mxu1 %vm333_vm1, %v2758_v14 }
 0x141   :  { %5661 = vst [vmem:[#allocation7_spill] sm:$0xff] %v4565_v37  ;;  %502 = vmatmul.bf16.gmra.mxu0 %v2746_v35  ;;  %1049 = vmatmul.bf16.gmra.mxu2 %v3024_v47  ;;  %v3608_v47 = vld [vmem:[%s5600_s0 + $0x144] sm:$0xf] }
 0x143   :  { %v1134_v30 = vpop.f32.mrf.mxu3 }
 0x144   :  { %v1010_v15 = vpop.f32.mrf.mxu2 }
 0x145   :  { %v4569_v36 = vadd.f32 %v1129_v22, %v1010_v15  ;;  %v589_v6 = vpop.f32.mrf.mxu1  ;;  %v3041_v22 = vld [vmem:[%s5600_s0 + $0x2a8] sm:$0xf0] }
 0x146   :  { %v465_v3 = vpop.f32.mrf.mxu0  ;;  %v3044_v14 = vor.u32 %v3652_v16, %v3041_v22 }
 0x147   :  { %5662 = vst [vmem:[#allocation8_spill] sm:$0xff] %v4569_v36  ;;  %v4573_v53 = vadd.f32 %v584_v61, %v465_v3  ;;  %v2763_v61 = vld [vmem:[%s5600_s0 + $0x148] sm:$0xf0]  ;;  %v2754_v3 = vor.u32 %v3607_v52, %v2753_v63  ;;  %v3609_v52 = vld [vmem:[%s5600_s0 + $0x144] sm:$0xf0] }
 0x148   :  { %v2766_v35 = vor.u32 %v3608_v47, %v2763_v61  ;;  %v3040_v47 = vor.u32 %v3653_v59, %v3039_v54  ;;  %v3047_v54 = vld [vmem:[%s5600_s0 + $0x2b0] sm:$0xf]  ;;  %v3655_v59 = vld [vmem:[%s5600_s0 + $0x2b4] sm:$0xf0] }
 0x149   :  { %5663 = vst [vmem:[#allocation9_spill] sm:$0xff] %v4573_v53 }
 0x14b   :  { %v1136_v13 = vpop.f32.mrf.mxu3 }
 0x14c   :  { %v1012_v29 = vpop.f32.mrf.mxu2 }
 0x14d   :  { %v4599_v15 = vadd.f32 %v1131_v7, %v1012_v29  ;;  %v592_v56 = vpop.f32.mrf.mxu1 }
 0x14e   :  { %v468_v11 = vpop.f32.mrf.mxu0 }
 0x14f   :  { %5664 = vst [vmem:[#allocation10_spill] sm:$0xff] %v4599_v15  ;;  %v4603_v37 = vadd.f32 %v587_v55, %v468_v11  ;;  %v2761_v11 = vld [vmem:[%s5600_s0 + $0x140] sm:$0xf]  ;;  %v3654_v55 = vld [vmem:[%s5600_s0 + $0x2b4] sm:$0xf] }
 0x150   :  { %3073 = vmatmul.msk.bf16.gmra.mxu3 %vm333_vm1, %v3044_v14  ;;  %2831 = vmatmul.msk.bf16.gmra.mxu1 %vm333_vm1, %v2766_v35 }
 0x151   :  { %5665 = vst [vmem:[#allocation11_spill] sm:$0xff] %v4603_v37  ;;  %507 = vmatmul.bf16.gmra.mxu0 %v2754_v3  ;;  %1054 = vmatmul.bf16.gmra.mxu2 %v3032_v50  ;;  %v3610_v50 = vld [vmem:[%s5600_s0 + $0x154] sm:$0xf] }
 0x153   :  { %v1139_v10 = vpop.f32.mrf.mxu3 }
 0x154   :  { %v1015_v16 = vpop.f32.mrf.mxu2 }
 0x155   :  { %v4607_v22 = vadd.f32 %v1134_v30, %v1015_v16  ;;  %v594_v7 = vpop.f32.mrf.mxu1  ;;  %v3049_v30 = vld [vmem:[%s5600_s0 + $0x2b8] sm:$0xf0] }
 0x156   :  { %v470_v63 = vpop.f32.mrf.mxu0  ;;  %v3052_v35 = vor.u32 %v3654_v55, %v3049_v30 }
 0x157   :  { %5666 = vst [vmem:[#allocation12_spill] sm:$0xff] %v4607_v22  ;;  %v4611_v61 = vadd.f32 %v589_v6, %v470_v63  ;;  %v2771_v6 = vld [vmem:[%s5600_s0 + $0x158] sm:$0xf0]  ;;  %v2762_v63 = vor.u32 %v3609_v52, %v2761_v11  ;;  %v3611_v52 = vld [vmem:[%s5600_s0 + $0x154] sm:$0xf0] }
 0x158   :  { %v2774_v3 = vor.u32 %v3610_v50, %v2771_v6  ;;  %v3048_v50 = vor.u32 %v3655_v59, %v3047_v54 }
 0x159   :  { %5667 = vst [vmem:[#allocation13_spill] sm:$0xff] %v4611_v61 }
 0x15b   :  { %v1141_v29 = vpop.f32.mrf.mxu3 }
 0x15c   :  { %v1017_v14 = vpop.f32.mrf.mxu2 }
 0x15d   :  { %v4637_v16 = vadd.f32 %v1136_v13, %v1017_v14  ;;  %v597_v36 = vpop.f32.mrf.mxu1 }
 0x15e   :  { %v473_v22 = vpop.f32.mrf.mxu0 }
 0x15f   :  { %5668 = vst [vmem:[#allocation14_spill] sm:$0xff] %v4637_v16  ;;  %v4641_v15 = vadd.f32 %v592_v56, %v473_v22  ;;  %v2769_v56 = vld [vmem:[%s5600_s0 + $0x150] sm:$0xf]  ;;  %v3656_v22 = vld [vmem:[%s5600_s0 + $0x2c4] sm:$0xf] }
 0x160   :  { %3074 = vmatmul.msk.bf16.gmra.mxu3 %vm333_vm1, %v3052_v35  ;;  %2832 = vmatmul.msk.bf16.gmra.mxu1 %vm333_vm1, %v2774_v3 }
 0x161   :  { %5669 = vst [vmem:[#allocation15_spill] sm:$0xff] %v4641_v15  ;;  %512 = vmatmul.bf16.gmra.mxu0 %v2762_v63  ;;  %1059 = vmatmul.bf16.gmra.mxu2 %v3040_v47  ;;  %v3121_v47 = vld [vmem:[%s5600_s0 + $0x2c0] sm:$0xf] }
 0x163   :  { %v1144_v53 = vpop.f32.mrf.mxu3 }
 0x164   :  { %v1020_v55 = vpop.f32.mrf.mxu2 }
 0x165   :  { %v4645_v30 = vadd.f32 %v1139_v10, %v1020_v55  ;;  %v599_v13 = vpop.f32.mrf.mxu1  ;;  %v3123_v10 = vld [vmem:[%s5600_s0 + $0x2c8] sm:$0xf0] }
 0x166   :  { %v475_v11 = vpop.f32.mrf.mxu0  ;;  %v3126_v3 = vor.u32 %v3656_v22, %v3123_v10 }
 0x167   :  { %5670 = vst [vmem:[#allocation16_spill] sm:$0xff] %v4645_v30  ;;  %v4649_v6 = vadd.f32 %v594_v7, %v475_v11  ;;  %v3657_v7 = vld [vmem:[%s5600_s0 + $0x2c4] sm:$0xf0]  ;;  %v2770_v11 = vor.u32 %v3611_v52, %v2769_v56  ;;  %v3365_v52 = vld [vmem:[%s5600_s0 + $0x428] sm:$0xf0] }
 0x168   :  { %v3122_v63 = vor.u32 %v3657_v7, %v3121_v47  ;;  %v3700_v7 = vld [vmem:[%s5600_s0 + $0x424] sm:$0xf] }
 0x169   :  { %5671 = vst [vmem:[#allocation17_spill] sm:$0xff] %v4649_v6 }
 0x16b   :  { %v1146_v14 = vpop.f32.mrf.mxu3 }
 0x16c   :  { %v1022_v35 = vpop.f32.mrf.mxu2 }
 0x16d   :  { %v4675_v55 = vadd.f32 %v1141_v29, %v1022_v35  ;;  %v602_v37 = vpop.f32.mrf.mxu1 }
 0x16e   :  { %v478_v30 = vpop.f32.mrf.mxu0 }
 0x16f   :  { %5672 = vst [vmem:[#allocation18_spill] sm:$0xff] %v4675_v55  ;;  %v4679_v16 = vadd.f32 %v597_v36, %v478_v30  ;;  %v3363_v36 = vld [vmem:[%s5600_s0 + $0x420] sm:$0xf]  ;;  %v3658_v30 = vld [vmem:[%s5600_s0 + $0x2d4] sm:$0xf] }
 0x170   :  { %3295 = vmatmul.msk.bf16.vlgmr.msrb.gmra.mxu3 %vm333_vm1, %v3126_v3  ;;  %1506 = vmatmul.bf16.vlgmr.msrb.gmra.mxu1 %v3122_v63 }
 0x171   :  { %5673 = vst [vmem:[#allocation19_spill] sm:$0xff] %v4679_v16  ;;  %517 = vmatmul.bf16.gmra.mxu0 %v2770_v11  ;;  %1064 = vmatmul.bf16.gmra.mxu2 %v3048_v50  ;;  %v3701_v50 = vld [vmem:[%s5600_s0 + $0x424] sm:$0xf0] }
 0x172   :  { %v3364_v11 = vor.u32 %v3701_v50, %v3363_v36  ;;  %v3137_v50 = vld [vmem:[%s5600_s0 + $0x2e0] sm:$0xf] }
 0x173   :  { %v1149_v61 = vpop.f32.mrf.mxu3 }
 0x174   :  { %v1025_v1 = vpop.f32.mrf.mxu2 }
 0x175   :  { %v4682_v22 = vadd.f32 %v1144_v53, %v1025_v1  ;;  %v604_v29 = vpop.f32.mrf.mxu1  ;;  %v3131_v1 = vld [vmem:[%s5600_s0 + $0x2d8] sm:$0xf0]  ;;  %v3129_v53 = vld [vmem:[%s5600_s0 + $0x2d0] sm:$0xf] }
 0x176   :  { %v480_v10 = vpop.f32.mrf.mxu0  ;;  %v3134_v35 = vor.u32 %v3658_v30, %v3131_v1 }
 0x177   :  { %5674 = vst [vmem:[#allocation20_spill] sm:$0xff] %v4682_v22  ;;  %v4686_v47 = vadd.f32 %v599_v13, %v480_v10  ;;  %v3659_v13 = vld [vmem:[%s5600_s0 + $0x2d4] sm:$0xf0]  ;;  %v3368_v10 = vor.u32 %v3700_v7, %v3365_v52  ;;  %v3702_v52 = vld [vmem:[%s5600_s0 + $0x434] sm:$0xf] }
 0x178   :  { %v3130_v3 = vor.u32 %v3659_v13, %v3129_v53  ;;  %v3703_v7 = vld [vmem:[%s5600_s0 + $0x434] sm:$0xf0] }
 0x179   :  { %5675 = vst [vmem:[#allocation21_spill] sm:$0xff] %v4686_v47 }
 0x17b   :  { %v1151_v54 = vpop.f32.mrf.mxu3 }
 0x17c   :  { %v1027_v59 = vpop.f32.mrf.mxu2 }
 0x17d   :  { %v4712_v63 = vadd.f32 %v1146_v14, %v1027_v59  ;;  %v607_v56 = vpop.f32.mrf.mxu1  ;;  %v3373_v59 = vld [vmem:[%s5600_s0 + $0x438] sm:$0xf0] }
 0x17e   :  { %v483_v15 = vpop.f32.mrf.mxu0  ;;  %v3376_v53 = vor.u32 %v3702_v52, %v3373_v59  ;;  %v3704_v52 = vld [vmem:[%s5600_s0 + $0x444] sm:$0xf]  ;;  %v3381_v59 = vld [vmem:[%s5600_s0 + $0x448] sm:$0xf0] }
 0x17f   :  { %5676 = vst [vmem:[#allocation22_spill] sm:$0xff] %v4712_v63  ;;  %v4716_v16 = vadd.f32 %v602_v37, %v483_v15  ;;  %v3371_v37 = vld [vmem:[%s5600_s0 + $0x430] sm:$0xf]  ;;  %v3660_v15 = vld [vmem:[%s5600_s0 + $0x2e4] sm:$0xf] }
 0x180   :  { %3296 = vmatmul.msk.bf16.gmra.mxu3 %vm333_vm1, %v3134_v35  ;;  %1511 = vmatmul.bf16.gmra.mxu1 %v3130_v3 }
 0x181   :  { %5677 = vst [vmem:[#allocation23_spill] sm:$0xff] %v4716_v16  ;;  %2053 = vmatmul.bf16.vlgmr.msrb.gmra.mxu0 %v3364_v11  ;;  %3537 = vmatmul.msk.bf16.vlgmr.msrb.gmra.mxu2 %vm333_vm1, %v3368_v10 }
 0x183   :  { %v1154_v55 = vpop.f32.mrf.mxu3 }
 0x184   :  { %v1030_v30 = vpop.f32.mrf.mxu2 }
 0x185   :  { %v4720_v1 = vadd.f32 %v1149_v61, %v1030_v30  ;;  %v609_v14 = vpop.f32.mrf.mxu1  ;;  %v3139_v61 = vld [vmem:[%s5600_s0 + $0x2e8] sm:$0xf0] }
 0x186   :  { %v485_v36 = vpop.f32.mrf.mxu0  ;;  %v3142_v11 = vor.u32 %v3660_v15, %v3139_v61 }
 0x187   :  { %5678 = vst [vmem:[#allocation24_spill] sm:$0xff] %v4720_v1  ;;  %v4724_v13 = vadd.f32 %v604_v29, %v485_v36  ;;  %v3661_v29 = vld [vmem:[%s5600_s0 + $0x2e4] sm:$0xf0]  ;;  %v3372_v36 = vor.u32 %v3703_v7, %v3371_v37 }
 0x188   :  { %v3138_v10 = vor.u32 %v3661_v29, %v3137_v50  ;;  %v3705_v7 = vld [vmem:[%s5600_s0 + $0x444] sm:$0xf0]  ;;  %v3384_v50 = vor.u32 %v3704_v52, %v3381_v59  ;;  %v3706_v52 = vld [vmem:[%s5600_s0 + $0x454] sm:$0xf]  ;;  %v3389_v59 = vld [vmem:[%s5600_s0 + $0x458] sm:$0xf0] }
 0x189   :  { %5679 = vst [vmem:[#allocation25_spill] sm:$0xff] %v4724_v13 }
 0x18b   :  { %v1156_v35 = vpop.f32.mrf.mxu3 }
 0x18c   :  { %v1032_v3 = vpop.f32.mrf.mxu2 }
 0x18d   :  { %v4750_v30 = vadd.f32 %v1151_v54, %v1032_v3  ;;  %v612_v22 = vpop.f32.mrf.mxu1 }
 0x18e   :  { %v488_v1 = vpop.f32.mrf.mxu0 }
 0x18f   :  { %5680 = vst [vmem:[#allocation26_spill] sm:$0xff] %v4750_v30  ;;  %v4754_v63 = vadd.f32 %v607_v56, %v488_v1  ;;  %v3379_v56 = vld [vmem:[%s5600_s0 + $0x440] sm:$0xf]  ;;  %v3662_v1 = vld [vmem:[%s5600_s0 + $0x2f4] sm:$0xf] }
 0x190   :  { %3297 = vmatmul.msk.bf16.gmra.mxu3 %vm333_vm1, %v3142_v11  ;;  %1516 = vmatmul.bf16.gmra.mxu1 %v3138_v10 }
 0x191   :  { %5681 = vst [vmem:[#allocation27_spill] sm:$0xff] %v4754_v63  ;;  %2058 = vmatmul.bf16.gmra.mxu0 %v3372_v36  ;;  %3538 = vmatmul.msk.bf16.gmra.mxu2 %vm333_vm1, %v3376_v53  ;;  %v3145_v53 = vld [vmem:[%s5600_s0 + $0x2f0] sm:$0xf] }
 0x193   :  { %v1159_v47 = vpop.f32.mrf.mxu3 }
 0x194   :  { %v1035_v15 = vpop.f32.mrf.mxu2 }
 0x195   :  { %v4758_v61 = vadd.f32 %v1154_v55, %v1035_v15  ;;  %v614_v54 = vpop.f32.mrf.mxu1  ;;  %v3147_v55 = vld [vmem:[%s5600_s0 + $0x2f8] sm:$0xf0] }
 0x196   :  { %v490_v37 = vpop.f32.mrf.mxu0  ;;  %v3150_v10 = vor.u32 %v3662_v1, %v3147_v55 }
 0x197   :  { %5682 = vst [vmem:[#allocation28_spill] sm:$0xff] %v4758_v61  ;;  %v4762_v29 = vadd.f32 %v609_v14, %v490_v37  ;;  %v3663_v14 = vld [vmem:[%s5600_s0 + $0x2f4] sm:$0xf0]  ;;  %v3380_v37 = vor.u32 %v3705_v7, %v3379_v56 }
 0x198   :  { %v3146_v36 = vor.u32 %v3663_v14, %v3145_v53  ;;  %v3707_v7 = vld [vmem:[%s5600_s0 + $0x454] sm:$0xf0]  ;;  %v3392_v53 = vor.u32 %v3706_v52, %v3389_v59  ;;  %v3708_v52 = vld [vmem:[%s5600_s0 + $0x464] sm:$0xf]  ;;  %v3397_v59 = vld [vmem:[%s5600_s0 + $0x468] sm:$0xf0] }
 0x199   :  { %5683 = vst [vmem:[#allocation29_spill] sm:$0xff] %v4762_v29 }
 0x19b   :  { %v1161_v3 = vpop.f32.mrf.mxu3 }
 0x19c   :  { %v1037_v11 = vpop.f32.mrf.mxu2 }
 0x19d   :  { %v4788_v15 = vadd.f32 %v1156_v35, %v1037_v11  ;;  %v617_v16 = vpop.f32.mrf.mxu1 }
 0x19e   :  { %v493_v61 = vpop.f32.mrf.mxu0 }
 0x19f   :  { %5684 = vst [vmem:[#allocation30_spill] sm:$0xff] %v4788_v15  ;;  %v4792_v30 = vadd.f32 %v612_v22, %v493_v61  ;;  %v3387_v22 = vld [vmem:[%s5600_s0 + $0x450] sm:$0xf]  ;;  %v3664_v61 = vld [vmem:[%s5600_s0 + $0x304] sm:$0xf] }
 0x1a0   :  { %3298 = vmatmul.msk.bf16.gmra.mxu3 %vm333_vm1, %v3150_v10  ;;  %1521 = vmatmul.bf16.gmra.mxu1 %v3146_v36 }
 0x1a1   :  { %5685 = vst [vmem:[#allocation31_spill] sm:$0xff] %v4792_v30  ;;  %2063 = vmatmul.bf16.gmra.mxu0 %v3380_v37  ;;  %3539 = vmatmul.msk.bf16.gmra.mxu2 %vm333_vm1, %v3384_v50  ;;  %v3153_v50 = vld [vmem:[%s5600_s0 + $0x300] sm:$0xf] }
 0x1a3   :  { %v1164_v13 = vpop.f32.mrf.mxu3 }
 0x1a4   :  { %v1040_v1 = vpop.f32.mrf.mxu2 }
 0x1a5   :  { %v4796_v55 = vadd.f32 %v1159_v47, %v1040_v1  ;;  %v619_v35 = vpop.f32.mrf.mxu1  ;;  %v3155_v47 = vld [vmem:[%s5600_s0 + $0x308] sm:$0xf0] }
 0x1a6   :  { %v495_v56 = vpop.f32.mrf.mxu0  ;;  %v3158_v36 = vor.u32 %v3664_v61, %v3155_v47 }
 0x1a7   :  { %5686 = vst [vmem:[#allocation32_spill] sm:$0xff] %v4796_v55  ;;  %v4800_v14 = vadd.f32 %v614_v54, %v495_v56  ;;  %v3665_v54 = vld [vmem:[%s5600_s0 + $0x304] sm:$0xf0]  ;;  %v3388_v56 = vor.u32 %v3707_v7, %v3387_v22 }
 0x1a8   :  { %v3154_v37 = vor.u32 %v3665_v54, %v3153_v50  ;;  %v3709_v7 = vld [vmem:[%s5600_s0 + $0x464] sm:$0xf0]  ;;  %v3400_v50 = vor.u32 %v3708_v52, %v3397_v59  ;;  %v3710_v52 = vld [vmem:[%s5600_s0 + $0x474] sm:$0xf]  ;;  %v3405_v59 = vld [vmem:[%s5600_s0 + $0x478] sm:$0xf0] }
 0x1a9   :  { %5687 = vst [vmem:[#allocation33_spill] sm:$0xff] %v4800_v14 }
 0x1ab   :  { %v1166_v11 = vpop.f32.mrf.mxu3 }
 0x1ac   :  { %v1042_v10 = vpop.f32.mrf.mxu2 }
 0x1ad   :  { %v4826_v1 = vadd.f32 %v1161_v3, %v1042_v10  ;;  %v622_v63 = vpop.f32.mrf.mxu1 }
 0x1ae   :  { %v498_v55 = vpop.f32.mrf.mxu0 }
 0x1af   :  { %5688 = vst [vmem:[#allocation34_spill] sm:$0xff] %v4826_v1  ;;  %v4830_v15 = vadd.f32 %v617_v16, %v498_v55  ;;  %v3395_v16 = vld [vmem:[%s5600_s0 + $0x460] sm:$0xf]  ;;  %v3666_v55 = vld [vmem:[%s5600_s0 + $0x314] sm:$0xf] }
 0x1b0   :  { %3299 = vmatmul.msk.bf16.gmra.mxu3 %vm333_vm1, %v3158_v36  ;;  %1526 = vmatmul.bf16.gmra.mxu1 %v3154_v37 }
 0x1b1   :  { %5689 = vst [vmem:[#allocation35_spill] sm:$0xff] %v4830_v15  ;;  %2068 = vmatmul.bf16.gmra.mxu0 %v3388_v56  ;;  %3540 = vmatmul.msk.bf16.gmra.mxu2 %vm333_vm1, %v3392_v53  ;;  %v3161_v53 = vld [vmem:[%s5600_s0 + $0x310] sm:$0xf] }
 0x1b3   :  { %v1169_v29 = vpop.f32.mrf.mxu3 }
 0x1b4   :  { %v1045_v61 = vpop.f32.mrf.mxu2 }
 0x1b5   :  { %v4834_v47 = vadd.f32 %v1164_v13, %v1045_v61  ;;  %v624_v3 = vpop.f32.mrf.mxu1  ;;  %v3163_v13 = vld [vmem:[%s5600_s0 + $0x318] sm:$0xf0] }
 0x1b6   :  { %v500_v22 = vpop.f32.mrf.mxu0  ;;  %v3166_v37 = vor.u32 %v3666_v55, %v3163_v13 }
 0x1b7   :  { %5690 = vst [vmem:[#allocation36_spill] sm:$0xff] %v4834_v47  ;;  %v4838_v54 = vadd.f32 %v619_v35, %v500_v22  ;;  %v3667_v35 = vld [vmem:[%s5600_s0 + $0x314] sm:$0xf0]  ;;  %v3396_v22 = vor.u32 %v3709_v7, %v3395_v16 }
 0x1b8   :  { %v3162_v56 = vor.u32 %v3667_v35, %v3161_v53  ;;  %v3711_v7 = vld [vmem:[%s5600_s0 + $0x474] sm:$0xf0]  ;;  %v3408_v53 = vor.u32 %v3710_v52, %v3405_v59  ;;  %v3712_v52 = vld [vmem:[%s5600_s0 + $0x484] sm:$0xf]  ;;  %v3413_v59 = vld [vmem:[%s5600_s0 + $0x488] sm:$0xf0] }
 0x1b9   :  { %5691 = vst [vmem:[#allocation37_spill] sm:$0xff] %v4838_v54 }
 0x1bb   :  { %v1171_v10 = vpop.f32.mrf.mxu3 }
 0x1bc   :  { %v1047_v36 = vpop.f32.mrf.mxu2 }
 0x1bd   :  { %v4864_v61 = vadd.f32 %v1166_v11, %v1047_v36  ;;  %v627_v30 = vpop.f32.mrf.mxu1 }
 0x1be   :  { %v503_v47 = vpop.f32.mrf.mxu0 }
 0x1bf   :  { %5692 = vst [vmem:[#allocation38_spill] sm:$0xff] %v4864_v61  ;;  %v4868_v1 = vadd.f32 %v622_v63, %v503_v47  ;;  %v3403_v63 = vld [vmem:[%s5600_s0 + $0x470] sm:$0xf]  ;;  %v3668_v47 = vld [vmem:[%s5600_s0 + $0x324] sm:$0xf] }
 0x1c0   :  { %3300 = vmatmul.msk.bf16.gmra.mxu3 %vm333_vm1, %v3166_v37  ;;  %1531 = vmatmul.bf16.gmra.mxu1 %v3162_v56 }
 0x1c1   :  { %5693 = vst [vmem:[#allocation39_spill] sm:$0xff] %v4868_v1  ;;  %2073 = vmatmul.bf16.gmra.mxu0 %v3396_v22  ;;  %3541 = vmatmul.msk.bf16.gmra.mxu2 %vm333_vm1, %v3400_v50  ;;  %v3169_v50 = vld [vmem:[%s5600_s0 + $0x320] sm:$0xf] }
 0x1c3   :  { %v1174_v14 = vpop.f32.mrf.mxu3 }
 0x1c4   :  { %v1050_v55 = vpop.f32.mrf.mxu2 }
 0x1c5   :  { %v4872_v13 = vadd.f32 %v1169_v29, %v1050_v55  ;;  %v629_v11 = vpop.f32.mrf.mxu1  ;;  %v3171_v29 = vld [vmem:[%s5600_s0 + $0x328] sm:$0xf0] }
 0x1c6   :  { %v505_v16 = vpop.f32.mrf.mxu0  ;;  %v3174_v56 = vor.u32 %v3668_v47, %v3171_v29 }
 0x1c7   :  { %5694 = vst [vmem:[#allocation40_spill] sm:$0xff] %v4872_v13  ;;  %v4876_v35 = vadd.f32 %v624_v3, %v505_v16  ;;  %v3669_v3 = vld [vmem:[%s5600_s0 + $0x324] sm:$0xf0]  ;;  %v3404_v16 = vor.u32 %v3711_v7, %v3403_v63 }
 0x1c8   :  { %v3170_v22 = vor.u32 %v3669_v3, %v3169_v50  ;;  %v3713_v7 = vld [vmem:[%s5600_s0 + $0x484] sm:$0xf0]  ;;  %v3416_v50 = vor.u32 %v3712_v52, %v3413_v59  ;;  %v3714_v52 = vld [vmem:[%s5600_s0 + $0x494] sm:$0xf]  ;;  %v3421_v59 = vld [vmem:[%s5600_s0 + $0x498] sm:$0xf0] }
 0x1c9   :  { %5695 = vst [vmem:[#allocation41_spill] sm:$0xff] %v4876_v35 }
 0x1cb   :  { %v1176_v36 = vpop.f32.mrf.mxu3 }
 0x1cc   :  { %v1052_v37 = vpop.f32.mrf.mxu2 }
 0x1cd   :  { %v4902_v55 = vadd.f32 %v1171_v10, %v1052_v37  ;;  %v632_v15 = vpop.f32.mrf.mxu1 }
 0x1ce   :  { %v508_v13 = vpop.f32.mrf.mxu0 }
 0x1cf   :  { %5696 = vst [vmem:[#allocation42_spill] sm:$0xff] %v4902_v55  ;;  %v4906_v61 = vadd.f32 %v627_v30, %v508_v13  ;;  %v3411_v30 = vld [vmem:[%s5600_s0 + $0x480] sm:$0xf]  ;;  %v3670_v13 = vld [vmem:[%s5600_s0 + $0x334] sm:$0xf] }
 0x1d0   :  { %3301 = vmatmul.msk.bf16.gmra.mxu3 %vm333_vm1, %v3174_v56  ;;  %1536 = vmatmul.bf16.gmra.mxu1 %v3170_v22 }
 0x1d1   :  { %5697 = vst [vmem:[#allocation43_spill] sm:$0xff] %v4906_v61  ;;  %2078 = vmatmul.bf16.gmra.mxu0 %v3404_v16  ;;  %3542 = vmatmul.msk.bf16.gmra.mxu2 %vm333_vm1, %v3408_v53  ;;  %v3177_v53 = vld [vmem:[%s5600_s0 + $0x330] sm:$0xf] }
 0x1d3   :  { %v1179_v54 = vpop.f32.mrf.mxu3 }
 0x1d4   :  { %v1055_v47 = vpop.f32.mrf.mxu2 }
 0x1d5   :  { %v4910_v29 = vadd.f32 %v1174_v14, %v1055_v47  ;;  %v634_v10 = vpop.f32.mrf.mxu1  ;;  %v3179_v14 = vld [vmem:[%s5600_s0 + $0x338] sm:$0xf0] }
 0x1d6   :  { %v510_v63 = vpop.f32.mrf.mxu0  ;;  %v3182_v22 = vor.u32 %v3670_v13, %v3179_v14 }
 0x1d7   :  { %5698 = vst [vmem:[#allocation44_spill] sm:$0xff] %v4910_v29  ;;  %v4914_v3 = vadd.f32 %v629_v11, %v510_v63  ;;  %v3671_v11 = vld [vmem:[%s5600_s0 + $0x334] sm:$0xf0]  ;;  %v3412_v63 = vor.u32 %v3713_v7, %v3411_v30 }
 0x1d8   :  { %v3178_v16 = vor.u32 %v3671_v11, %v3177_v53  ;;  %v3715_v7 = vld [vmem:[%s5600_s0 + $0x494] sm:$0xf0]  ;;  %v3424_v53 = vor.u32 %v3714_v52, %v3421_v59  ;;  %v3716_v52 = vld [vmem:[%s5600_s0 + $0x4a4] sm:$0xf]  ;;  %v3429_v59 = vld [vmem:[%s5600_s0 + $0x4a8] sm:$0xf0] }
 0x1d9   :  { %5699 = vst [vmem:[#allocation45_spill] sm:$0xff] %v4914_v3 }
 0x1db   :  { %v1181_v37 = vpop.f32.mrf.mxu3 }
 0x1dc   :  { %v1057_v56 = vpop.f32.mrf.mxu2 }
 0x1dd   :  { %v4940_v47 = vadd.f32 %v1176_v36, %v1057_v56  ;;  %v637_v1 = vpop.f32.mrf.mxu1 }
 0x1de   :  { %v513_v29 = vpop.f32.mrf.mxu0 }
 0x1df   :  { %5700 = vst [vmem:[#allocation46_spill] sm:$0xff] %v4940_v47  ;;  %v4944_v55 = vadd.f32 %v632_v15, %v513_v29  ;;  %v3419_v15 = vld [vmem:[%s5600_s0 + $0x490] sm:$0xf]  ;;  %v3672_v29 = vld [vmem:[%s5600_s0 + $0x344] sm:$0xf] }
 0x1e0   :  { %3302 = vmatmul.msk.bf16.gmra.mxu3 %vm333_vm1, %v3182_v22  ;;  %1541 = vmatmul.bf16.gmra.mxu1 %v3178_v16 }
 0x1e1   :  { %5701 = vst [vmem:[#allocation47_spill] sm:$0xff] %v4944_v55  ;;  %2083 = vmatmul.bf16.gmra.mxu0 %v3412_v63  ;;  %3543 = vmatmul.msk.bf16.gmra.mxu2 %vm333_vm1, %v3416_v50  ;;  %v3185_v50 = vld [vmem:[%s5600_s0 + $0x340] sm:$0xf] }
 0x1e3   :  { %v1184_v35 = vpop.f32.mrf.mxu3 }
 0x1e4   :  { %v1060_v13 = vpop.f32.mrf.mxu2 }
 0x1e5   :  { %v4948_v14 = vadd.f32 %v1179_v54, %v1060_v13  ;;  %v639_v36 = vpop.f32.mrf.mxu1  ;;  %v3187_v54 = vld [vmem:[%s5600_s0 + $0x348] sm:$0xf0] }
 0x1e6   :  { %v515_v30 = vpop.f32.mrf.mxu0  ;;  %v3190_v16 = vor.u32 %v3672_v29, %v3187_v54 }
 0x1e7   :  { %5702 = vst [vmem:[#allocation48_spill] sm:$0xff] %v4948_v14  ;;  %v4952_v11 = vadd.f32 %v634_v10, %v515_v30  ;;  %v3673_v10 = vld [vmem:[%s5600_s0 + $0x344] sm:$0xf0]  ;;  %v3420_v30 = vor.u32 %v3715_v7, %v3419_v15 }
 0x1e8   :  { %v3186_v63 = vor.u32 %v3673_v10, %v3185_v50  ;;  %v3717_v7 = vld [vmem:[%s5600_s0 + $0x4a4] sm:$0xf0]  ;;  %v3432_v50 = vor.u32 %v3716_v52, %v3429_v59 }
 0x1e9   :  { %5703 = vst [vmem:[#allocation49_spill] sm:$0xff] %v4952_v11 }
 0x1eb   :  { %v1186_v56 = vpop.f32.mrf.mxu3 }
 0x1ec   :  { %v1062_v22 = vpop.f32.mrf.mxu2 }
 0x1ed   :  { %v4978_v13 = vadd.f32 %v1181_v37, %v1062_v22  ;;  %v1507_v61 = vpop.f32.mrf.mxu1 }
 0x1ee   :  { %v518_v14 = vpop.f32.mrf.mxu0 }
 0x1ef   :  { %5704 = vst [vmem:[#allocation50_spill] sm:$0xff] %v4978_v13  ;;  %v4982_v47 = vadd.f32 %v637_v1, %v518_v14  ;;  %v3427_v1 = vld [vmem:[%s5600_s0 + $0x4a0] sm:$0xf]  ;;  %v3674_v14 = vld [vmem:[%s5600_s0 + $0x354] sm:$0xf] }
 0x1f0   :  { %3303 = vmatmul.msk.bf16.gmra.mxu3 %vm333_vm1, %v3190_v16  ;;  %1546 = vmatmul.bf16.gmra.mxu1 %v3186_v63 }
 0x1f1   :  { %5705 = vst [vmem:[#allocation51_spill] sm:$0xff] %v4982_v47  ;;  %2088 = vmatmul.bf16.gmra.mxu0 %v3420_v30  ;;  %3544 = vmatmul.msk.bf16.gmra.mxu2 %vm333_vm1, %v3424_v53  ;;  %v3193_v53 = vld [vmem:[%s5600_s0 + $0x350] sm:$0xf]  ;;  %v5052_v47 = vld [vmem:[%s5601_s2] ss:$0 sm:$0xff] }
 0x1f3   :  { %v1626_v3 = vpop.f32.mrf.mxu3 }
 0x1f4   :  { %v1065_v29 = vpop.f32.mrf.mxu2  ;;  %v1627_v6 = vadd.f32 %v1626_v3, %v1507_v61  ;;  %v3203_v61 = vld [vmem:[%s5600_s0 + $0x368] sm:$0xf0]  ;;  %v3201_v3 = vld [vmem:[%s5600_s0 + $0x360] sm:$0xf] }
 0x1f5   :  { %v4986_v54 = vadd.f32 %v1184_v35, %v1065_v29  ;;  %v1509_v37 = vpop.f32.mrf.mxu1  ;;  %v3195_v35 = vld [vmem:[%s5600_s0 + $0x358] sm:$0xf0] }
 0x1f6   :  { %v520_v15 = vpop.f32.mrf.mxu0  ;;  %v3198_v63 = vor.u32 %v3674_v14, %v3195_v35 }
 0x1f7   :  { %5706 = vst [vmem:[#allocation52_spill] sm:$0xff] %v4986_v54  ;;  %v4990_v10 = vadd.f32 %v639_v36, %v520_v15  ;;  %v3675_v36 = vld [vmem:[%s5600_s0 + $0x354] sm:$0xf0]  ;;  %v3428_v15 = vor.u32 %v3717_v7, %v3427_v1  ;;  %v3435_v1 = vld [vmem:[%s5600_s0 + $0x4b0] sm:$0xf] }
 0x1f8   :  { %v3194_v30 = vor.u32 %v3675_v36, %v3193_v53  ;;  %v3719_v53 = vld [vmem:[%s5600_s0 + $0x4b4] sm:$0xf0]  ;;  %v3676_v36 = vld [vmem:[%s5600_s0 + $0x364] sm:$0xf] }
 0x1f9   :  { %5707 = vst [vmem:[#allocation53_spill] sm:$0xff] %v4990_v10  ;;  %v3436_v59 = vor.u32 %v3719_v53, %v3435_v1 }
 0x1fb   :  { %v1628_v22 = vpop.f32.mrf.mxu3 }
 0x1fc   :  { %v1067_v16 = vpop.f32.mrf.mxu2 }
 0x1fd   :  { %v5016_v29 = vadd.f32 %v1186_v56, %v1067_v16  ;;  %v1512_v55 = vpop.f32.mrf.mxu1  ;;  %v3206_v16 = vor.u32 %v3676_v36, %v3203_v61 }
 0x1fe   :  { %v2054_v54 = vpop.f32.mrf.mxu0 }
 0x1ff   :  { %5708 = vst [vmem:[#allocation54_spill] sm:$0xff] %v5016_v29 }
 0x200   :  { %3304 = vmatmul.msk.bf16.gmra.mxu3 %vm333_vm1, %v3198_v63  ;;  %1551 = vmatmul.bf16.gmra.mxu1 %v3194_v30  ;;  %v1629_v30 = vadd.f32 %v1628_v22, %v1509_v37  ;;  %v5710_v37 = vmax.f32 %v4193_v12, %v4219_v25  ;;  %v3721_v12 = vld [vmem:[%s5600_s0 + $0x4c4] sm:$0xf0]  ;;  %v3678_v25 = vld [vmem:[%s5600_s0 + $0x374] sm:$0xf] }
 0x201   :  { %2093 = vmatmul.bf16.gmra.mxu0 %v3428_v15  ;;  %3545 = vmatmul.msk.bf16.gmra.mxu2 %vm333_vm1, %v3432_v50  ;;  %v5709_v15 = vmax.f32 %v4185_v5, %v4189_v8 }
 0x203   :  { %v1631_v13 = vpop.f32.mrf.mxu3 }
 0x204   :  { %v2173_v11 = vpop.f32.mrf.mxu2  ;;  %v1632_v36 = vadd.f32 %v1631_v13, %v1512_v55  ;;  %v3209_v55 = vld [vmem:[%s5600_s0 + $0x370] sm:$0xf]  ;;  %v3679_v13 = vld [vmem:[%s5600_s0 + $0x374] sm:$0xf0] }
 0x205   :  { %v2174_v14 = vadd.f32 %v2173_v11, %v2054_v54  ;;  %v1514_v35 = vpop.f32.mrf.mxu1  ;;  %v3677_v11 = vld [vmem:[%s5600_s0 + $0x364] sm:$0xf0]  ;;  %v3718_v54 = vld [vmem:[%s5600_s0 + $0x4b4] sm:$0xf] }
 0x206   :  { %v2056_v56 = vpop.f32.mrf.mxu0  ;;  %v3202_v63 = vor.u32 %v3677_v11, %v3201_v3 }
 0x207   :  { %v2327_v7 = vmax.f32 %v1627_v6, %v2174_v14  ;;  %v3437_v6 = vld [vmem:[%s5600_s0 + $0x4b8] sm:$0xf0] }
 0x208   :  { %v3440_v10 = vor.u32 %v3718_v54, %v3437_v6  ;;  %v3443_v54 = vld [vmem:[%s5600_s0 + $0x4c0] sm:$0xf]  ;;  %v3445_v6 = vld [vmem:[%s5600_s0 + $0x4c8] sm:$0xf0] }
 0x209   :  { %v2371_v14 = vmax.f32 %v5709_v15, %v2327_v7 }
 0x20b   :  { %v1633_v50 = vpop.f32.mrf.mxu3  ;;  %v2419_v1 = vadd.f32 %v5052_v47, %v2371_v14  ;;  %v5711_v14 = vmax.f32 %v4223_v31, %v4227_v34 }
 0x20c   :  { %v2175_v52 = vpop.f32.mrf.mxu2  ;;  %v1634_v15 = vadd.f32 %v1633_v50, %v1514_v35 }
 0x20d   :  { %v2176_v29 = vadd.f32 %v2175_v52, %v2056_v56  ;;  %v1517_v28 = vpop.f32.mrf.mxu1  ;;  %v2463_v53 = vmax.f32 %v2419_v1, 0.0 }
 0x20e   :  { %v2059_v32 = vpop.f32.mrf.mxu0 }
 0x20f   :  { %v2328_v48 = vmax.f32 %v1629_v30, %v2176_v29  ;;  %v3210_v30 = vor.u32 %v3679_v13, %v3209_v55  ;;  %v3217_v55 = vld [vmem:[%s5600_s0 + $0x380] sm:$0xf]  ;;  %v3681_v13 = vld [vmem:[%s5600_s0 + $0x384] sm:$0xf0] }
 0x210   :  { %3305 = vmatmul.msk.bf16.gmra.mxu3 %vm333_vm1, %v3206_v16  ;;  %1556 = vmatmul.bf16.gmra.mxu1 %v3202_v63  ;;  %v3444_v16 = vor.u32 %v3721_v12, %v3443_v54 }
 0x211   :  { %v2372_v5 = vmax.f32 %v5710_v37, %v2328_v48  ;;  %2098 = vmatmul.bf16.gmra.mxu0 %v3436_v59  ;;  %3546 = vmatmul.msk.bf16.gmra.mxu2 %vm333_vm1, %v3440_v10  ;;  %v3211_v48 = vld [vmem:[%s5600_s0 + $0x378] sm:$0xf0]  ;;  %v3720_v10 = vld [vmem:[%s5600_s0 + $0x4c4] sm:$0xf] }
 0x212   :  { %v3214_v63 = vor.u32 %v3678_v25, %v3211_v48  ;;  %v3451_v48 = vld [vmem:[%s5600_s0 + $0x4d0] sm:$0xf] }
 0x213   :  { %v2420_v8 = vadd.f32 %v5052_v47, %v2372_v5  ;;  %v1636_v22 = vpop.f32.mrf.mxu3  ;;  %v3448_v5 = vor.u32 %v3720_v10, %v3445_v6  ;;  %v3722_v10 = vld [vmem:[%s5600_s0 + $0x4d4] sm:$0xf]  ;;  %v3453_v6 = vld [vmem:[%s5600_s0 + $0x4d8] sm:$0xf0] }
 0x214   :  { %v2178_v56 = vpop.f32.mrf.mxu2 }
 0x215   :  { %v2464_v7 = vmax.f32 %v2420_v8, 0.0  ;;  %v2179_v29 = vadd.f32 %v2178_v56, %v2059_v32  ;;  %v1519_v61 = vpop.f32.mrf.mxu1 }
 0x216   :  { %v2061_v3 = vpop.f32.mrf.mxu0 }
 0x217   :  { %v3747_v11 = vpack.c.bf16 %v2464_v7, %v2463_v53  ;;  %v2329_v32 = vmax.f32 %v1632_v36, %v2179_v29  ;;  %v5712_v7 = vmax.f32 %v4231_v38, %v4257_v51  ;;  %v3723_v38 = vld [vmem:[%s5600_s0 + $0x4d4] sm:$0xf0]  ;;  %v3680_v51 = vld [vmem:[%s5600_s0 + $0x384] sm:$0xf] }
 0x219   :  { %3748 = vst [vmem:[%s5602_s3] sm:$0xff] %v3747_v11   ;;  %v2373_v1 = vmax.f32 %v5711_v14, %v2329_v32 }
 0x21b   :  { %v1638_v52 = vpop.f32.mrf.mxu3  ;;  %v2421_v36 = vadd.f32 %v5052_v47, %v2373_v1  ;;  %v5713_v1 = vmax.f32 %v4261_v57, %v4265_v60 }
 0x21c   :  { %v2180_v59 = vpop.f32.mrf.mxu2  ;;  %v1639_v14 = vadd.f32 %v1638_v52, %v1519_v61 }
 0x21d   :  { %v2181_v37 = vadd.f32 %v2180_v59, %v2061_v3  ;;  %v1522_v8 = vpop.f32.mrf.mxu1  ;;  %v2465_v50 = vmax.f32 %v2421_v36, 0.0  ;;  %v1637_v3 = vadd.f32 %v1636_v22, %v1517_v28  ;;  %v3219_v28 = vld [vmem:[%s5600_s0 + $0x388] sm:$0xf0] }
 0x21e   :  { %v2064_v56 = vpop.f32.mrf.mxu0 }
 0x21f   :  { %v2330_v53 = vmax.f32 %v1634_v15, %v2181_v37  ;;  %v3218_v15 = vor.u32 %v3681_v13, %v3217_v55 }
 0x220   :  { %3306 = vmatmul.msk.bf16.gmra.mxu3 %vm333_vm1, %v3214_v63  ;;  %1561 = vmatmul.bf16.gmra.mxu1 %v3210_v30  ;;  %v3452_v63 = vor.u32 %v3723_v38, %v3451_v48  ;;  %v3222_v30 = vor.u32 %v3680_v51, %v3219_v28  ;;  %v3459_v48 = vld [vmem:[%s5600_s0 + $0x4e0] sm:$0xf]  ;;  %v3225_v38 = vld [vmem:[%s5600_s0 + $0x390] sm:$0xf]  ;;  %v3683_v51 = vld [vmem:[%s5600_s0 + $0x394] sm:$0xf0] }
 0x221   :  { %v2374_v29 = vmax.f32 %v5712_v7, %v2330_v53  ;;  %2103 = vmatmul.bf16.gmra.mxu0 %v3444_v16  ;;  %3547 = vmatmul.msk.bf16.gmra.mxu2 %vm333_vm1, %v3448_v5  ;;  %v3724_v28 = vld [vmem:[%s5600_s0 + $0x4e4] sm:$0xf] }
 0x223   :  { %v2422_v31 = vadd.f32 %v5052_v47, %v2374_v29  ;;  %v1641_v34 = vpop.f32.mrf.mxu3 }
 0x224   :  { %v2183_v35 = vpop.f32.mrf.mxu2 }
 0x225   :  { %v2466_v11 = vmax.f32 %v2422_v31, 0.0  ;;  %v2184_v54 = vadd.f32 %v2183_v35, %v2064_v56  ;;  %v1524_v12 = vpop.f32.mrf.mxu1  ;;  %v3456_v56 = vor.u32 %v3722_v10, %v3453_v6  ;;  %v5714_v31 = vmax.f32 %v4269_v0, %v4295_v17  ;;  %v3725_v0 = vld [vmem:[%s5600_s0 + $0x4e4] sm:$0xf0]  ;;  %v3682_v17 = vld [vmem:[%s5600_s0 + $0x394] sm:$0xf] }
 0x226   :  { %v2066_v25 = vpop.f32.mrf.mxu0  ;;  %v3460_v10 = vor.u32 %v3725_v0, %v3459_v48  ;;  %v3469_v48 = vld [vmem:[%s5600_s0 + $0x4f8] sm:$0xf0] }
 0x227   :  { %v3752_v32 = vpack.c.bf16 %v2466_v11, %v2465_v50  ;;  %v2331_v22 = vmax.f32 %v1637_v3, %v2184_v54  ;;  %v1642_v50 = vadd.f32 %v1641_v34, %v1522_v8  ;;  %v3227_v8 = vld [vmem:[%s5600_s0 + $0x398] sm:$0xf0] }
 0x228   :  { %v3230_v6 = vor.u32 %v3682_v17, %v3227_v8 }
 0x229   :  { %3854 = vst [vmem:[%s5602_s3 + $0x8] sm:$0xff] %v3752_v32   ;;  %v2375_v37 = vmax.f32 %v5713_v1, %v2331_v22  ;;  %v3461_v22 = vld [vmem:[%s5600_s0 + $0x4e8] sm:$0xf0] }
 0x22a   :  { %v3464_v1 = vor.u32 %v3724_v28, %v3461_v22  ;;  %v5717_v28 = vmax.f32 %v4337_v58, %v4341_v62 }
 0x22b   :  { %v1643_v59 = vpop.f32.mrf.mxu3  ;;  %v2423_v29 = vadd.f32 %v5052_v47, %v2375_v37 }
 0x22c   :  { %v2185_v16 = vpop.f32.mrf.mxu2 }
 0x22d   :  { %v2186_v5 = vadd.f32 %v2185_v16, %v2066_v25  ;;  %v1527_v53 = vpop.f32.mrf.mxu1  ;;  %v2467_v52 = vmax.f32 %v2423_v29, 0.0  ;;  %v3226_v16 = vor.u32 %v3683_v51, %v3225_v38 }
 0x22e   :  { %v2069_v36 = vpop.f32.mrf.mxu0 }
 0x22f   :  { %v2332_v7 = vmax.f32 %v1639_v14, %v2186_v5 }
 0x230   :  { %3307 = vmatmul.msk.bf16.gmra.mxu3 %vm333_vm1, %v3222_v30  ;;  %1566 = vmatmul.bf16.gmra.mxu1 %v3218_v15  ;;  %v5715_v30 = vmax.f32 %v4299_v23, %v4303_v27 }
 0x231   :  { %v2376_v35 = vmax.f32 %v5714_v31, %v2332_v7  ;;  %2108 = vmatmul.bf16.gmra.mxu0 %v3452_v63  ;;  %3548 = vmatmul.msk.bf16.gmra.mxu2 %vm333_vm1, %v3456_v56  ;;  %v1644_v63 = vadd.f32 %v1643_v59, %v1524_v12  ;;  %v5716_v7 = vmax.f32 %v4307_v33, %v4333_v49  ;;  %v3727_v33 = vld [vmem:[%s5600_s0 + $0x4f4] sm:$0xf0]  ;;  %v3684_v49 = vld [vmem:[%s5600_s0 + $0x3a4] sm:$0xf] }
 0x233   :  { %v2424_v57 = vadd.f32 %v5052_v47, %v2376_v35  ;;  %v1646_v60 = vpop.f32.mrf.mxu3 }
 0x234   :  { %v2188_v61 = vpop.f32.mrf.mxu2  ;;  %v1647_v31 = vadd.f32 %v1646_v60, %v1527_v53  ;;  %v3235_v53 = vld [vmem:[%s5600_s0 + $0x3a8] sm:$0xf0] }
 0x235   :  { %v2468_v3 = vmax.f32 %v2424_v57, 0.0  ;;  %v2189_v11 = vadd.f32 %v2188_v61, %v2069_v36  ;;  %v1529_v54 = vpop.f32.mrf.mxu1 }
 0x236   :  { %v2071_v25 = vpop.f32.mrf.mxu0 }
 0x237   :  { %v3757_v32 = vpack.c.bf16 %v2468_v3, %v2467_v52  ;;  %v2333_v34 = vmax.f32 %v1642_v50, %v2189_v11  ;;  %v3467_v3 = vld [vmem:[%s5600_s0 + $0x4f0] sm:$0xf]  ;;  %v3233_v11 = vld [vmem:[%s5600_s0 + $0x3a0] sm:$0xf] }
 0x238   :  { %v3468_v8 = vor.u32 %v3727_v33, %v3467_v3 }
 0x239   :  { %3855 = vst [vmem:[%s5602_s3 + $0x10] sm:$0xff] %v3757_v32   ;;  %v2377_v15 = vmax.f32 %v5715_v30, %v2333_v34  ;;  %v3726_v32 = vld [vmem:[%s5600_s0 + $0x4f4] sm:$0xf]  ;;  %v3238_v34 = vor.u32 %v3684_v49, %v3235_v53  ;;  %v5719_v53 = vmax.f32 %v4375_v39, %v4379_v42 }
 0x23b   :  { %v1648_v55 = vpop.f32.mrf.mxu3  ;;  %v2425_v36 = vadd.f32 %v5052_v47, %v2377_v15  ;;  %v5718_v15 = vmax.f32 %v4345_v4, %v4371_v24  ;;  %v3729_v4 = vld [vmem:[%s5600_s0 + $0x504] sm:$0xf0]  ;;  %v3686_v24 = vld [vmem:[%s5600_s0 + $0x3b4] sm:$0xf] }
 0x23c   :  { %v2190_v13 = vpop.f32.mrf.mxu2  ;;  %v1649_v51 = vadd.f32 %v1648_v55, %v1529_v54 }
 0x23d   :  { %v2191_v14 = vadd.f32 %v2190_v13, %v2071_v25  ;;  %v1532_v37 = vpop.f32.mrf.mxu1  ;;  %v2469_v59 = vmax.f32 %v2425_v36, 0.0  ;;  %v3685_v25 = vld [vmem:[%s5600_s0 + $0x3a4] sm:$0xf0] }
 0x23e   :  { %v2074_v5 = vpop.f32.mrf.mxu0  ;;  %v3234_v38 = vor.u32 %v3685_v25, %v3233_v11 }
 0x23f   :  { %v2334_v56 = vmax.f32 %v1644_v63, %v2191_v14 }
 0x240   :  { %3308 = vmatmul.msk.bf16.gmra.mxu3 %vm333_vm1, %v3230_v6  ;;  %1571 = vmatmul.bf16.gmra.mxu1 %v3226_v16 }
 0x241   :  { %v2378_v29 = vmax.f32 %v5716_v7, %v2334_v56  ;;  %2113 = vmatmul.bf16.gmra.mxu0 %v3460_v10  ;;  %3549 = vmatmul.msk.bf16.gmra.mxu2 %vm333_vm1, %v3464_v1  ;;  %v3472_v10 = vor.u32 %v3726_v32, %v3469_v48 }
 0x243   :  { %v2426_v23 = vadd.f32 %v5052_v47, %v2378_v29  ;;  %v1651_v27 = vpop.f32.mrf.mxu3 }
 0x244   :  { %v2193_v12 = vpop.f32.mrf.mxu2  ;;  %v1652_v1 = vadd.f32 %v1651_v27, %v1532_v37  ;;  %v3243_v37 = vld [vmem:[%s5600_s0 + $0x3b8] sm:$0xf0] }
 0x245   :  { %v2470_v35 = vmax.f32 %v2426_v23, 0.0  ;;  %v2194_v57 = vadd.f32 %v2193_v12, %v2074_v5  ;;  %v1534_v61 = vpop.f32.mrf.mxu1  ;;  %v3475_v23 = vld [vmem:[%s5600_s0 + $0x500] sm:$0xf]  ;;  %v3241_v12 = vld [vmem:[%s5600_s0 + $0x3b0] sm:$0xf]  ;;  %v3246_v3 = vor.u32 %v3686_v24, %v3243_v37 }
 0x246   :  { %v2076_v52 = vpop.f32.mrf.mxu0 }
 0x247   :  { %v3762_v50 = vpack.c.bf16 %v2470_v35, %v2469_v59  ;;  %v2335_v60 = vmax.f32 %v1647_v31, %v2194_v57  ;;  %v3687_v59 = vld [vmem:[%s5600_s0 + $0x3b4] sm:$0xf0]  ;;  %v3728_v31 = vld [vmem:[%s5600_s0 + $0x504] sm:$0xf]  ;;  %v3477_v35 = vld [vmem:[%s5600_s0 + $0x508] sm:$0xf0] }
 0x248   :  { %v3242_v33 = vor.u32 %v3687_v59, %v3241_v12  ;;  %v3480_v25 = vor.u32 %v3728_v31, %v3477_v35  ;;  %v5722_v31 = vmax.f32 %v4421_v41, %v4447_v2  ;;  %v3733_v41 = vld [vmem:[%s5600_s0 + $0x524] sm:$0xf0]  ;;  %v3690_v2 = vld [vmem:[%s5600_s0 + $0x3d4] sm:$0xf] }
 0x249   :  { %3856 = vst [vmem:[%s5602_s3 + $0x18] sm:$0xff] %v3762_v50   ;;  %v2379_v22 = vmax.f32 %v5717_v28, %v2335_v60  ;;  %v3476_v50 = vor.u32 %v3729_v4, %v3475_v23 }
 0x24b   :  { %v1653_v0 = vpop.f32.mrf.mxu3  ;;  %v2427_v30 = vadd.f32 %v5052_v47, %v2379_v22 }
 0x24c   :  { %v2195_v17 = vpop.f32.mrf.mxu2  ;;  %v1654_v49 = vadd.f32 %v1653_v0, %v1534_v61 }
 0x24d   :  { %v2196_v13 = vadd.f32 %v2195_v17, %v2076_v52  ;;  %v1537_v6 = vpop.f32.mrf.mxu1  ;;  %v2471_v55 = vmax.f32 %v2427_v30, 0.0 }
 0x24e   :  { %v2079_v16 = vpop.f32.mrf.mxu0 }
 0x24f   :  { %v2336_v63 = vmax.f32 %v1649_v51, %v2196_v13 }
 0x250   :  { %3309 = vmatmul.msk.bf16.gmra.mxu3 %vm333_vm1, %v3238_v34  ;;  %1576 = vmatmul.bf16.gmra.mxu1 %v3234_v38  ;;  %v5720_v34 = vmax.f32 %v4383_v46, %v4409_v9  ;;  %v3731_v46 = vld [vmem:[%s5600_s0 + $0x514] sm:$0xf0]  ;;  %v3688_v9 = vld [vmem:[%s5600_s0 + $0x3c4] sm:$0xf] }
 0x251   :  { %v2380_v14 = vmax.f32 %v5718_v15, %v2336_v63  ;;  %2118 = vmatmul.bf16.gmra.mxu0 %v3468_v8  ;;  %3550 = vmatmul.msk.bf16.gmra.mxu2 %vm333_vm1, %v3472_v10  ;;  %v3483_v63 = vld [vmem:[%s5600_s0 + $0x510] sm:$0xf]  ;;  %v3249_v15 = vld [vmem:[%s5600_s0 + $0x3c0] sm:$0xf] }
 0x253   :  { %v2428_v58 = vadd.f32 %v5052_v47, %v2380_v14  ;;  %v1656_v62 = vpop.f32.mrf.mxu3  ;;  %v3689_v14 = vld [vmem:[%s5600_s0 + $0x3c4] sm:$0xf0] }
 0x254   :  { %v2198_v54 = vpop.f32.mrf.mxu2  ;;  %v1657_v51 = vadd.f32 %v1656_v62, %v1537_v6  ;;  %v3251_v6 = vld [vmem:[%s5600_s0 + $0x3c8] sm:$0xf0]  ;;  %v3485_v62 = vld [vmem:[%s5600_s0 + $0x518] sm:$0xf0] }
 0x255   :  { %v2472_v5 = vmax.f32 %v2428_v58, 0.0  ;;  %v2199_v56 = vadd.f32 %v2198_v54, %v2079_v16  ;;  %v1539_v36 = vpop.f32.mrf.mxu1  ;;  %v3730_v58 = vld [vmem:[%s5600_s0 + $0x514] sm:$0xf] }
 0x256   :  { %v2081_v7 = vpop.f32.mrf.mxu0  ;;  %v3488_v24 = vor.u32 %v3730_v58, %v3485_v62 }
 0x257   :  { %v3767_v29 = vpack.c.bf16 %v2472_v5, %v2471_v55  ;;  %v2337_v27 = vmax.f32 %v1652_v1, %v2199_v56  ;;  %v3484_v1 = vor.u32 %v3731_v46, %v3483_v63  ;;  %v3254_v5 = vor.u32 %v3688_v9, %v3251_v6 }
 0x258   :  { %v3250_v56 = vor.u32 %v3689_v14, %v3249_v15  ;;  %v5724_v6 = vmax.f32 %v4459_v43, %v4485_v44  ;;  %v3735_v43 = vld [vmem:[%s5600_s0 + $0x534] sm:$0xf0]  ;;  %v3692_v44 = vld [vmem:[%s5600_s0 + $0x3e4] sm:$0xf] }
 0x259   :  { %3857 = vst [vmem:[%s5602_s3 + $0x20] sm:$0xff] %v3767_v29   ;;  %v2381_v60 = vmax.f32 %v5719_v53, %v2337_v27  ;;  %v5721_v29 = vmax.f32 %v4413_v19, %v4417_v26 }
 0x25b   :  { %v1658_v57 = vpop.f32.mrf.mxu3  ;;  %v2429_v8 = vadd.f32 %v5052_v47, %v2381_v60  ;;  %v3491_v60 = vld [vmem:[%s5600_s0 + $0x520] sm:$0xf] }
 0x25c   :  { %v2200_v52 = vpop.f32.mrf.mxu2 }
 0x25d   :  { %v2201_v11 = vadd.f32 %v2200_v52, %v2081_v7  ;;  %v1542_v32 = vpop.f32.mrf.mxu1  ;;  %v2473_v0 = vmax.f32 %v2429_v8, 0.0  ;;  %v1659_v7 = vadd.f32 %v1658_v57, %v1539_v36  ;;  %v3493_v8 = vld [vmem:[%s5600_s0 + $0x528] sm:$0xf0] }
 0x25e   :  { %v2084_v48 = vpop.f32.mrf.mxu0 }
 0x25f   :  { %v2338_v17 = vmax.f32 %v1654_v49, %v2201_v11  ;;  %v3259_v11 = vld [vmem:[%s5600_s0 + $0x3d8] sm:$0xf0] }
 0x260   :  { %3310 = vmatmul.msk.bf16.gmra.mxu3 %vm333_vm1, %v3246_v3  ;;  %1581 = vmatmul.bf16.gmra.mxu1 %v3242_v33 }
 0x261   :  { %v2382_v38 = vmax.f32 %v5720_v34, %v2338_v17  ;;  %2123 = vmatmul.bf16.gmra.mxu0 %v3476_v50  ;;  %3551 = vmatmul.msk.bf16.gmra.mxu2 %vm333_vm1, %v3480_v25  ;;  %v3732_v17 = vld [vmem:[%s5600_s0 + $0x524] sm:$0xf] }
 0x263   :  { %v2430_v39 = vadd.f32 %v5052_v47, %v2382_v38  ;;  %v1661_v42 = vpop.f32.mrf.mxu3 }
 0x264   :  { %v2203_v61 = vpop.f32.mrf.mxu2  ;;  %v1662_v52 = vadd.f32 %v1661_v42, %v1542_v32  ;;  %v3257_v32 = vld [vmem:[%s5600_s0 + $0x3d0] sm:$0xf]  ;;  %v3262_v42 = vor.u32 %v3690_v2, %v3259_v11 }
 0x265   :  { %v2474_v28 = vmax.f32 %v2430_v39, 0.0  ;;  %v2204_v22 = vadd.f32 %v2203_v61, %v2084_v48  ;;  %v1544_v13 = vpop.f32.mrf.mxu1  ;;  %v3691_v48 = vld [vmem:[%s5600_s0 + $0x3d4] sm:$0xf0]  ;;  %v3492_v39 = vor.u32 %v3733_v41, %v3491_v60 }
 0x266   :  { %v2086_v10 = vpop.f32.mrf.mxu0  ;;  %v3258_v61 = vor.u32 %v3691_v48, %v3257_v32 }
 0x267   :  { %v3772_v16 = vpack.c.bf16 %v2474_v28, %v2473_v0  ;;  %v2339_v30 = vmax.f32 %v1657_v51, %v2204_v22  ;;  %v5723_v51 = vmax.f32 %v4451_v21, %v4455_v40 }
 0x269   :  { %3858 = vst [vmem:[%s5602_s3 + $0x28] sm:$0xff] %v3772_v16   ;;  %v2383_v23 = vmax.f32 %v5721_v29, %v2339_v30  ;;  %v3265_v29 = vld [vmem:[%s5600_s0 + $0x3e0] sm:$0xf] }
 0x26b   :  { %v1663_v54 = vpop.f32.mrf.mxu3  ;;  %v2431_v59 = vadd.f32 %v5052_v47, %v2383_v23  ;;  %v3693_v23 = vld [vmem:[%s5600_s0 + $0x3e4] sm:$0xf0] }
 0x26c   :  { %v2205_v55 = vpop.f32.mrf.mxu2  ;;  %v1664_v0 = vadd.f32 %v1663_v54, %v1544_v13 }
 0x26d   :  { %v2206_v4 = vadd.f32 %v2205_v55, %v2086_v10  ;;  %v1547_v37 = vpop.f32.mrf.mxu1  ;;  %v2475_v57 = vmax.f32 %v2431_v59, 0.0  ;;  %v3496_v10 = vor.u32 %v3732_v17, %v3493_v8 }
 0x26e   :  { %v2089_v27 = vpop.f32.mrf.mxu0 }
 0x26f   :  { %v2340_v12 = vmax.f32 %v1659_v7, %v2206_v4  ;;  %v3734_v4 = vld [vmem:[%s5600_s0 + $0x534] sm:$0xf] }
 0x270   :  { %3311 = vmatmul.msk.bf16.gmra.mxu3 %vm333_vm1, %v3254_v5  ;;  %1586 = vmatmul.bf16.gmra.mxu1 %v3250_v56  ;;  %v3499_v5 = vld [vmem:[%s5600_s0 + $0x530] sm:$0xf]  ;;  %v3267_v56 = vld [vmem:[%s5600_s0 + $0x3e8] sm:$0xf0] }
 0x271   :  { %v2384_v35 = vmax.f32 %v5722_v31, %v2340_v12  ;;  %2128 = vmatmul.bf16.gmra.mxu0 %v3484_v1  ;;  %3552 = vmatmul.msk.bf16.gmra.mxu2 %vm333_vm1, %v3488_v24  ;;  %v3501_v24 = vld [vmem:[%s5600_s0 + $0x538] sm:$0xf0]  ;;  %v3500_v12 = vor.u32 %v3735_v43, %v3499_v5  ;;  %v3270_v59 = vor.u32 %v3692_v44, %v3267_v56  ;;  %v5732_v5 = vld [vmem:[#allocation6_spill] sm:$0xff] }
 0x272   :  { %v3266_v31 = vor.u32 %v3693_v23, %v3265_v29 }
 0x273   :  { %v2432_v19 = vadd.f32 %v5052_v47, %v2384_v35  ;;  %v1666_v26 = vpop.f32.mrf.mxu3 }
 0x274   :  { %v2208_v36 = vpop.f32.mrf.mxu2  ;;  %v1667_v14 = vadd.f32 %v1666_v26, %v1547_v37 }
 0x275   :  { %v2476_v50 = vmax.f32 %v2432_v19, 0.0  ;;  %v2209_v3 = vadd.f32 %v2208_v36, %v2089_v27  ;;  %v1549_v33 = vpop.f32.mrf.mxu1  ;;  %v5725_v19 = vmax.f32 %v4489_v45, %v4493_v20 }
 0x276   :  { %v2091_v49 = vpop.f32.mrf.mxu0 }
 0x277   :  { %v3777_v53 = vpack.c.bf16 %v2476_v50, %v2475_v57  ;;  %v2341_v25 = vmax.f32 %v1662_v52, %v2209_v3  ;;  %v3504_v57 = vor.u32 %v3734_v4, %v3501_v24 }
 0x279   :  { %3859 = vst [vmem:[%s5602_s3 + $0x30] sm:$0xff] %v3777_v53   ;;  %v2385_v28 = vmax.f32 %v5723_v51, %v2341_v25  ;;  %v5726_v53 = vld [vmem:[#allocation2_spill] sm:$0xff] }
 0x27a   :  { %v5727_v60 = vmax.f32 %v4497_v18, %v5726_v53  ;;  %v3737_v18 = vld [vmem:[%s5600_s0 + $0x544] sm:$0xf0]  ;;  %v3736_v51 = vld [vmem:[%s5600_s0 + $0x544] sm:$0xf] }
 0x27b   :  { %v1668_v34 = vpop.f32.mrf.mxu3  ;;  %v2433_v9 = vadd.f32 %v5052_v47, %v2385_v28  ;;  %v3509_v28 = vld [vmem:[%s5600_s0 + $0x548] sm:$0xf0] }
 0x27c   :  { %v2210_v38 = vpop.f32.mrf.mxu2  ;;  %v1669_v35 = vadd.f32 %v1668_v34, %v1549_v33  ;;  %v3507_v34 = vld [vmem:[%s5600_s0 + $0x540] sm:$0xf] }
 0x27d   :  { %v2211_v22 = vadd.f32 %v2210_v38, %v2091_v49  ;;  %v1552_v16 = vpop.f32.mrf.mxu1  ;;  %v2477_v15 = vmax.f32 %v2433_v9, 0.0  ;;  %v3694_v38 = vld [vmem:[%s5600_s0 + $0x3f4] sm:$0xf] }
 0x27e   :  { %v2094_v63 = vpop.f32.mrf.mxu0 }
 0x27f   :  { %v2342_v46 = vmax.f32 %v1664_v0, %v2211_v22  ;;  %v3695_v0 = vld [vmem:[%s5600_s0 + $0x3f4] sm:$0xf0] }
 0x280   :  { %3312 = vmatmul.msk.bf16.gmra.mxu3 %vm333_vm1, %v3262_v42  ;;  %1591 = vmatmul.bf16.gmra.mxu1 %v3258_v61  ;;  %v3273_v61 = vld [vmem:[%s5600_s0 + $0x3f0] sm:$0xf] }
 0x281   :  { %v2386_v30 = vmax.f32 %v5724_v6, %v2342_v46  ;;  %2133 = vmatmul.bf16.gmra.mxu0 %v3492_v39  ;;  %3553 = vmatmul.msk.bf16.gmra.mxu2 %vm333_vm1, %v3496_v10  ;;  %v3275_v39 = vld [vmem:[%s5600_s0 + $0x3f8] sm:$0xf0]  ;;  %v3274_v46 = vor.u32 %v3695_v0, %v3273_v61  ;;  %v5728_v6 = vld [vmem:[#allocation3_spill] sm:$0xff] }
 0x283   :  { %v2434_v21 = vadd.f32 %v5052_v47, %v2386_v30  ;;  %v1671_v40 = vpop.f32.mrf.mxu3  ;;  %v5729_v30 = vld [vmem:[#allocation4_spill] sm:$0xff] }
 0x284   :  { %v2213_v13 = vpop.f32.mrf.mxu2  ;;  %v1672_v11 = vadd.f32 %v1671_v40, %v1552_v16  ;;  %v3508_v16 = vor.u32 %v3737_v18, %v3507_v34 }
 0x285   :  { %v2478_v58 = vmax.f32 %v2434_v21, 0.0  ;;  %v2214_v62 = vadd.f32 %v2213_v13, %v2094_v63  ;;  %v1554_v54 = vpop.f32.mrf.mxu1  ;;  %v3278_v63 = vor.u32 %v3694_v38, %v3275_v39  ;;  %v5730_v21 = vmax.f32 %v5728_v6, %v5729_v30  ;;  %v5737_v38 = vld [vmem:[#allocation9_spill] sm:$0xff]  ;;  %v5738_v39 = vld [vmem:[#allocation10_spill] sm:$0xff]  ;;  %v3741_v30 = vld [vmem:[%s5600_s0 + $0x564] sm:$0xf0] }
 0x286   :  { %v2096_v55 = vpop.f32.mrf.mxu0  ;;  %v3523_v6 = vld [vmem:[%s5600_s0 + $0x560] sm:$0xf] }
 0x287   :  { %v3782_v1 = vpack.c.bf16 %v2478_v58, %v2477_v15  ;;  %v2343_v7 = vmax.f32 %v1667_v14, %v2214_v62  ;;  %v3512_v15 = vor.u32 %v3736_v51, %v3509_v28 }
 0x289   :  { %3860 = vst [vmem:[%s5602_s3 + $0x38] sm:$0xff] %v3782_v1   ;;  %v2387_v26 = vmax.f32 %v5725_v19, %v2343_v7  ;;  %v5731_v1 = vld [vmem:[#allocation5_spill] sm:$0xff]  ;;  %v3283_v19 = vld [vmem:[%s5600_s0 + $0x408] sm:$0xf0] }
 0x28a   :  { %v5733_v43 = vmax.f32 %v5731_v1, %v5732_v5  ;;  %v3524_v5 = vor.u32 %v3741_v30, %v3523_v6 }
 0x28b   :  { %v1673_v37 = vpop.f32.mrf.mxu3  ;;  %v2435_v49 = vadd.f32 %v5052_v47, %v2387_v26 }
 0x28c   :  { %v2215_v27 = vpop.f32.mrf.mxu2  ;;  %v1674_v9 = vadd.f32 %v1673_v37, %v1554_v54 }
 0x28d   :  { %v2216_v36 = vadd.f32 %v2215_v27, %v2096_v55  ;;  %v1557_v52 = vpop.f32.mrf.mxu1  ;;  %v2479_v2 = vmax.f32 %v2435_v49, 0.0 }
 0x28e   :  { %v2099_v50 = vpop.f32.mrf.mxu0 }
 0x28f   :  { %v2344_v3 = vmax.f32 %v1669_v35, %v2216_v36  ;;  %v3696_v35 = vld [vmem:[%s5600_s0 + $0x404] sm:$0xf]  ;;  %v3281_v36 = vld [vmem:[%s5600_s0 + $0x400] sm:$0xf] }
 0x290   :  { %3313 = vmatmul.msk.bf16.gmra.mxu3 %vm333_vm1, %v3270_v59  ;;  %1596 = vmatmul.bf16.gmra.mxu1 %v3266_v31  ;;  %v3515_v59 = vld [vmem:[%s5600_s0 + $0x550] sm:$0xf]  ;;  %v3739_v31 = vld [vmem:[%s5600_s0 + $0x554] sm:$0xf0] }
 0x291   :  { %v2388_v41 = vmax.f32 %v5727_v60, %v2344_v3  ;;  %2138 = vmatmul.bf16.gmra.mxu0 %v3500_v12  ;;  %3554 = vmatmul.msk.bf16.gmra.mxu2 %vm333_vm1, %v3504_v57  ;;  %v3697_v57 = vld [vmem:[%s5600_s0 + $0x404] sm:$0xf0]  ;;  %v3516_v53 = vor.u32 %v3739_v31, %v3515_v59  ;;  %v3286_v60 = vor.u32 %v3696_v35, %v3283_v19  ;;  %v5743_v35 = vld [vmem:[#allocation13_spill] sm:$0xff]  ;;  %v5744_v19 = vld [vmem:[#allocation14_spill] sm:$0xff] }
 0x293   :  { %v2436_v45 = vadd.f32 %v5052_v47, %v2388_v41  ;;  %v1676_v20 = vpop.f32.mrf.mxu3  ;;  %v3282_v41 = vor.u32 %v3697_v57, %v3281_v36 }
 0x294   :  { %v2218_v33 = vpop.f32.mrf.mxu2  ;;  %v1677_v23 = vadd.f32 %v1676_v20, %v1557_v52  ;;  %v3738_v52 = vld [vmem:[%s5600_s0 + $0x554] sm:$0xf]  ;;  %v5734_v20 = vld [vmem:[#allocation7_spill] sm:$0xff] }
 0x295   :  { %v2480_v25 = vmax.f32 %v2436_v45, 0.0  ;;  %v2219_v32 = vadd.f32 %v2218_v33, %v2099_v50  ;;  %v1559_v48 = vpop.f32.mrf.mxu1  ;;  %v3517_v50 = vld [vmem:[%s5600_s0 + $0x558] sm:$0xf0]  ;;  %v5735_v33 = vld [vmem:[#allocation8_spill] sm:$0xff] }
 0x296   :  { %v2101_v17 = vpop.f32.mrf.mxu0 }
 0x297   :  { %v3787_v8 = vpack.c.bf16 %v2480_v25, %v2479_v2  ;;  %v2345_v42 = vmax.f32 %v1672_v11, %v2219_v32  ;;  %v5736_v2 = vmax.f32 %v5734_v20, %v5735_v33  ;;  %v3520_v32 = vor.u32 %v3738_v52, %v3517_v50  ;;  %v3531_v33 = vld [vmem:[%s5600_s0 + $0x570] sm:$0xf] }
 0x299   :  { %3861 = vst [vmem:[%s5602_s3 + $0x40] sm:$0xff] %v3787_v8   ;;  %v2389_v40 = vmax.f32 %v5730_v21, %v2345_v42  ;;  %v5739_v42 = vmax.f32 %v5737_v38, %v5738_v39  ;;  %v3698_v21 = vld [vmem:[%s5600_s0 + $0x414] sm:$0xf] }
 0x29a   :  { %v5747_v38 = vld [vmem:[#allocation16_spill] sm:$0xff] }
 0x29b   :  { %v1678_v22 = vpop.f32.mrf.mxu3  ;;  %v2437_v55 = vadd.f32 %v5052_v47, %v2389_v40  ;;  %v3291_v40 = vld [vmem:[%s5600_s0 + $0x418] sm:$0xf0] }
 0x29c   :  { %v2220_v10 = vpop.f32.mrf.mxu2  ;;  %v1679_v45 = vadd.f32 %v1678_v22, %v1559_v48 }
 0x29d   :  { %v2221_v13 = vadd.f32 %v2220_v10, %v2101_v17  ;;  %v1562_v14 = vpop.f32.mrf.mxu1  ;;  %v2481_v29 = vmax.f32 %v2437_v55, 0.0 }
 0x29e   :  { %v2104_v58 = vpop.f32.mrf.mxu0 }
 0x29f   :  { %v2346_v62 = vmax.f32 %v1674_v9, %v2221_v13 }
 0x2a0   :  { %3314 = vmatmul.msk.bf16.gmra.mxu3 %vm333_vm1, %v3278_v63  ;;  %1601 = vmatmul.bf16.gmra.mxu1 %v3274_v46 }
 0x2a1   :  { %v2390_v44 = vmax.f32 %v5733_v43, %v2346_v62  ;;  %2143 = vmatmul.bf16.gmra.mxu0 %v3508_v16  ;;  %3555 = vmatmul.msk.bf16.gmra.mxu2 %vm333_vm1, %v3512_v15  ;;  %v3289_v15 = vld [vmem:[%s5600_s0 + $0x410] sm:$0xf]  ;;  %v3525_v62 = vld [vmem:[%s5600_s0 + $0x568] sm:$0xf0]  ;;  %v3294_v43 = vor.u32 %v3698_v21, %v3291_v40 }
 0x2a3   :  { %v2438_v54 = vadd.f32 %v5052_v47, %v2390_v44  ;;  %v1681_v56 = vpop.f32.mrf.mxu3 }
 0x2a4   :  { %v2223_v7 = vpop.f32.mrf.mxu2  ;;  %v1682_v22 = vadd.f32 %v1681_v56, %v1562_v14  ;;  %v3699_v14 = vld [vmem:[%s5600_s0 + $0x414] sm:$0xf0]  ;;  %v5740_v56 = vld [vmem:[#allocation11_spill] sm:$0xff] }
 0x2a5   :  { %v2482_v4 = vmax.f32 %v2438_v54, 0.0  ;;  %v2224_v24 = vadd.f32 %v2223_v7, %v2104_v58  ;;  %v1564_v37 = vpop.f32.mrf.mxu1  ;;  %v3740_v58 = vld [vmem:[%s5600_s0 + $0x564] sm:$0xf]  ;;  %v3290_v44 = vor.u32 %v3699_v14, %v3289_v15  ;;  %v5741_v7 = vld [vmem:[#allocation12_spill] sm:$0xff] }
 0x2a6   :  { %v2106_v27 = vpop.f32.mrf.mxu0 }
 0x2a7   :  { %v3792_v12 = vpack.c.bf16 %v2482_v4, %v2481_v29  ;;  %v2347_v26 = vmax.f32 %v1677_v23, %v2224_v24  ;;  %v5742_v29 = vmax.f32 %v5740_v56, %v5741_v7  ;;  %v3528_v24 = vor.u32 %v3740_v58, %v3525_v62 }
 0x2a9   :  { %3862 = vst [vmem:[%s5602_s3 + $0x48] sm:$0xff] %v3792_v12   ;;  %v2391_v11 = vmax.f32 %v5736_v2, %v2347_v26  ;;  %v5745_v26 = vmax.f32 %v5743_v35, %v5744_v19  ;;  %v3743_v2 = vld [vmem:[%s5600_s0 + $0x574] sm:$0xf0] }
 0x2ab   :  { %v1683_v3 = vpop.f32.mrf.mxu3  ;;  %v2439_v18 = vadd.f32 %v5052_v47, %v2391_v11  ;;  %v3742_v11 = vld [vmem:[%s5600_s0 + $0x574] sm:$0xf] }
 0x2ac   :  { %v2225_v49 = vpop.f32.mrf.mxu2  ;;  %v1684_v54 = vadd.f32 %v1683_v3, %v1564_v37 }
 0x2ad   :  { %v2226_v25 = vadd.f32 %v2225_v49, %v2106_v27  ;;  %v1567_v17 = vpop.f32.mrf.mxu1  ;;  %v2483_v28 = vmax.f32 %v2439_v18, 0.0  ;;  %v5746_v18 = vld [vmem:[#allocation15_spill] sm:$0xff] }
 0x2ae   :  { %v2109_v8 = vpop.f32.mrf.mxu0  ;;  %v5748_v39 = vmax.f32 %v5746_v18, %v5747_v38  ;;  %v5761_v38 = vld [vmem:[#allocation25_spill] sm:$0xff] }
 0x2af   :  { %v2348_v34 = vmax.f32 %v1679_v45, %v2226_v25  ;;  %v3533_v25 = vld [vmem:[%s5600_s0 + $0x578] sm:$0xf0] }
 0x2b0   :  { %3315 = vmatmul.msk.bf16.gmra.mxu3 %vm333_vm1, %v3286_v60  ;;  %1606 = vmatmul.bf16.gmra.mxu1 %v3282_v41 }
 0x2b1   :  { %v2392_v61 = vmax.f32 %v5739_v42, %v2348_v34  ;;  %2148 = vmatmul.bf16.gmra.mxu0 %v3516_v53  ;;  %3556 = vmatmul.msk.bf16.gmra.mxu2 %vm333_vm1, %v3520_v32 }
 0x2b3   :  { %v2440_v48 = vadd.f32 %v5052_v47, %v2392_v61  ;;  %v1686_v0 = vpop.f32.mrf.mxu3 }
 0x2b4   :  { %v2228_v51 = vpop.f32.mrf.mxu2  ;;  %v1687_v3 = vadd.f32 %v1686_v0, %v1567_v17 }
 0x2b5   :  { %v2484_v10 = vmax.f32 %v2440_v48, 0.0  ;;  %v2229_v16 = vadd.f32 %v2228_v51, %v2109_v8  ;;  %v1569_v63 = vpop.f32.mrf.mxu1  ;;  %v3532_v8 = vor.u32 %v3743_v2, %v3531_v33  ;;  %v3536_v48 = vor.u32 %v3742_v11, %v3533_v25  ;;  %v5758_v33 = vld [vmem:[#allocation23_spill] sm:$0xff]  ;;  %v5759_v2 = vld [vmem:[#allocation24_spill] sm:$0xff] }
 0x2b6   :  { %v2111_v46 = vpop.f32.mrf.mxu0  ;;  %v5760_v11 = vmax.f32 %v5758_v33, %v5759_v2  ;;  %v5774_v33 = vld [vmem:[#allocation34_spill] sm:$0xff] }
 0x2b7   :  { %v3797_v9 = vpack.c.bf16 %v2484_v10, %v2483_v28  ;;  %v2349_v13 = vmax.f32 %v1682_v22, %v2229_v16  ;;  %v5749_v10 = vld [vmem:[#allocation17_spill] sm:$0xff]  ;;  %v5750_v16 = vld [vmem:[#allocation18_spill] sm:$0xff] }
 0x2b9   :  { %3863 = vst [vmem:[%s5602_s3 + $0x50] sm:$0xff] %v3797_v9   ;;  %v2393_v23 = vmax.f32 %v5742_v29, %v2349_v13 }
 0x2bb   :  { %v1688_v55 = vpop.f32.mrf.mxu3  ;;  %v2441_v31 = vadd.f32 %v5052_v47, %v2393_v23 }
 0x2bc   :  { %v2230_v1 = vpop.f32.mrf.mxu2  ;;  %v1689_v34 = vadd.f32 %v1688_v55, %v1569_v63 }
 0x2bd   :  { %v2231_v4 = vadd.f32 %v2230_v1, %v2111_v46  ;;  %v1572_v27 = vpop.f32.mrf.mxu1  ;;  %v2485_v50 = vmax.f32 %v2441_v31, 0.0  ;;  %v5751_v46 = vmax.f32 %v5749_v10, %v5750_v16 }
 0x2be   :  { %v2114_v12 = vpop.f32.mrf.mxu0 }
 0x2bf   :  { %v2350_v59 = vmax.f32 %v1684_v54, %v2231_v4  ;;  %v5753_v54 = vld [vmem:[#allocation20_spill] sm:$0xff] }
 0x2c0   :  { %3316 = vmatmul.msk.bf16.gmra.mxu3 %vm333_vm1, %v3294_v43  ;;  %1611 = vmatmul.bf16.gmra.mxu1 %v3290_v44  ;;  %v5752_v44 = vld [vmem:[#allocation19_spill] sm:$0xff] }
 0x2c1   :  { %v2394_v36 = vmax.f32 %v5745_v26, %v2350_v59  ;;  %2153 = vmatmul.bf16.gmra.mxu0 %v3524_v5  ;;  %3557 = vmatmul.msk.bf16.gmra.mxu2 %vm333_vm1, %v3528_v24  ;;  %v5754_v56 = vmax.f32 %v5752_v44, %v5753_v54  ;;  %v5756_v59 = vld [vmem:[#allocation22_spill] sm:$0xff]  ;;  %v5767_v44 = vld [vmem:[#allocation29_spill] sm:$0xff] }
 0x2c2   :  { %v5768_v54 = vld [vmem:[#allocation30_spill] sm:$0xff] }
 0x2c3   :  { %v2442_v37 = vadd.f32 %v5052_v47, %v2394_v36  ;;  %v1691_v57 = vpop.f32.mrf.mxu3 }
 0x2c4   :  { %v2233_v52 = vpop.f32.mrf.mxu2  ;;  %v1692_v40 = vadd.f32 %v1691_v57, %v1572_v27 }
 0x2c5   :  { %v2486_v49 = vmax.f32 %v2442_v37, 0.0  ;;  %v2234_v53 = vadd.f32 %v2233_v52, %v2114_v12  ;;  %v1574_v60 = vpop.f32.mrf.mxu1  ;;  %v5755_v12 = vld [vmem:[#allocation21_spill] sm:$0xff] }
 0x2c6   :  { %v2116_v41 = vpop.f32.mrf.mxu0  ;;  %v5757_v31 = vmax.f32 %v5755_v12, %v5756_v59 }
 0x2c7   :  { %v3802_v45 = vpack.c.bf16 %v2486_v49, %v2485_v50  ;;  %v2351_v20 = vmax.f32 %v1687_v3, %v2234_v53 }
 0x2c9   :  { %3864 = vst [vmem:[%s5602_s3 + $0x58] sm:$0xff] %v3802_v45   ;;  %v2395_v42 = vmax.f32 %v5748_v39, %v2351_v20  ;;  %v5762_v39 = vld [vmem:[#allocation26_spill] sm:$0xff] }
 0x2cb   :  { %v1693_v32 = vpop.f32.mrf.mxu3  ;;  %v2443_v22 = vadd.f32 %v5052_v47, %v2395_v42  ;;  %v5763_v42 = vmax.f32 %v5761_v38, %v5762_v39 }
 0x2cc   :  { %v2235_v17 = vpop.f32.mrf.mxu2  ;;  %v1694_v43 = vadd.f32 %v1693_v32, %v1574_v60 }
 0x2cd   :  { %v2236_v61 = vadd.f32 %v2235_v17, %v2116_v41  ;;  %v1577_v0 = vpop.f32.mrf.mxu1  ;;  %v2487_v21 = vmax.f32 %v2443_v22, 0.0 }
 0x2ce   :  { %v2119_v51 = vpop.f32.mrf.mxu0 }
 0x2cf   :  { %v2352_v28 = vmax.f32 %v1689_v34, %v2236_v61 }
 0x2d1   :  { %v2396_v9 = vmax.f32 %v5751_v46, %v2352_v28  ;;  %2158 = vmatmul.bf16.gmra.mxu0 %v3532_v8  ;;  %3558 = vmatmul.msk.bf16.gmra.mxu2 %vm333_vm1, %v3536_v48 }
 0x2d3   :  { %v2444_v63 = vadd.f32 %v5052_v47, %v2396_v9  ;;  %v1696_v6 = vpop.f32.mrf.mxu3 }
 0x2d4   :  { %v2238_v30 = vpop.f32.mrf.mxu2  ;;  %v1697_v57 = vadd.f32 %v1696_v6, %v1577_v0 }
 0x2d5   :  { %v2488_v13 = vmax.f32 %v2444_v63, 0.0  ;;  %v2239_v15 = vadd.f32 %v2238_v30, %v2119_v51  ;;  %v1579_v14 = vpop.f32.mrf.mxu1 }
 0x2d6   :  { %v2121_v58 = vpop.f32.mrf.mxu0 }
 0x2d7   :  { %v3807_v62 = vpack.c.bf16 %v2488_v13, %v2487_v21  ;;  %v2353_v55 = vmax.f32 %v1692_v40, %v2239_v15  ;;  %v5764_v13 = vld [vmem:[#allocation27_spill] sm:$0xff]  ;;  %v5765_v15 = vld [vmem:[#allocation28_spill] sm:$0xff] }
 0x2d9   :  { %3865 = vst [vmem:[%s5602_s3 + $0x60] sm:$0xff] %v3807_v62   ;;  %v2397_v7 = vmax.f32 %v5754_v56, %v2353_v55  ;;  %v5769_v56 = vmax.f32 %v5767_v44, %v5768_v54 }
 0x2db   :  { %v1698_v1 = vpop.f32.mrf.mxu3  ;;  %v2445_v27 = vadd.f32 %v5052_v47, %v2397_v7 }
 0x2dc   :  { %v2240_v5 = vpop.f32.mrf.mxu2  ;;  %v1699_v20 = vadd.f32 %v1698_v1, %v1579_v14 }
 0x2dd   :  { %v2241_v29 = vadd.f32 %v2240_v5, %v2121_v58  ;;  %v1582_v23 = vpop.f32.mrf.mxu1  ;;  %v2489_v37 = vmax.f32 %v2445_v27, 0.0  ;;  %v5523_v5 = vld [vmem:[%s5601_s2] ss:$0 sm:$0xff] }
 0x2de   :  { %v2124_v4 = vpop.f32.mrf.mxu0 }
 0x2df   :  { %v2354_v24 = vmax.f32 %v1694_v43, %v2241_v29 }
 0x2e1   :  { %v2398_v35 = vmax.f32 %v5757_v31, %v2354_v24 }
 0x2e3   :  { %v2446_v19 = vadd.f32 %v5052_v47, %v2398_v35  ;;  %v1701_v26 = vpop.f32.mrf.mxu3 }
 0x2e4   :  { %v2243_v36 = vpop.f32.mrf.mxu2  ;;  %v1702_v22 = vadd.f32 %v1701_v26, %v1582_v23 }
 0x2e5   :  { %v2490_v52 = vmax.f32 %v2446_v19, 0.0  ;;  %v2244_v50 = vadd.f32 %v2243_v36, %v2124_v4  ;;  %v1584_v3 = vpop.f32.mrf.mxu1 }
 0x2e6   :  { %v2126_v49 = vpop.f32.mrf.mxu0 }
 0x2e7   :  { %v3812_v53 = vpack.c.bf16 %v2490_v52, %v2489_v37  ;;  %v2355_v60 = vmax.f32 %v1697_v57, %v2244_v50  ;;  %v5770_v52 = vld [vmem:[#allocation31_spill] sm:$0xff]  ;;  %v5771_v50 = vld [vmem:[#allocation32_spill] sm:$0xff] }
 0x2e9   :  { %3866 = vst [vmem:[%s5602_s3 + $0x68] sm:$0xff] %v3812_v53   ;;  %v2399_v25 = vmax.f32 %v5760_v11, %v2355_v60 }
 0x2eb   :  { %v1703_v41 = vpop.f32.mrf.mxu3  ;;  %v2447_v18 = vadd.f32 %v5052_v47, %v2399_v25 }
 0x2ec   :  { %v2245_v45 = vpop.f32.mrf.mxu2  ;;  %v1704_v40 = vadd.f32 %v1703_v41, %v1584_v3  ;;  %v5772_v3 = vmax.f32 %v5770_v52, %v5771_v50 }
 0x2ed   :  { %v2246_v32 = vadd.f32 %v2245_v45, %v2126_v49  ;;  %v1587_v17 = vpop.f32.mrf.mxu1  ;;  %v2491_v28 = vmax.f32 %v2447_v18, 0.0 }
 0x2ee   :  { %v2129_v8 = vpop.f32.mrf.mxu0 }
 0x2ef   :  { %v2356_v34 = vmax.f32 %v1699_v20, %v2246_v32  ;;  %v5773_v20 = vld [vmem:[#allocation33_spill] sm:$0xff] }
 0x2f0   :  { %v5775_v2 = vmax.f32 %v5773_v20, %v5774_v33 }
 0x2f1   :  { %v2400_v61 = vmax.f32 %v5763_v42, %v2356_v34 }
 0x2f3   :  { %v2448_v48 = vadd.f32 %v5052_v47, %v2400_v61  ;;  %v1706_v0 = vpop.f32.mrf.mxu3  ;;  %v5766_v47 = vmax.f32 %v5764_v13, %v5765_v15  ;;  %v5780_v13 = vld [vmem:[#allocation38_spill] sm:$0xff] }
 0x2f4   :  { %v2248_v51 = vpop.f32.mrf.mxu2  ;;  %v1707_v27 = vadd.f32 %v1706_v0, %v1587_v17 }
 0x2f5   :  { %v2492_v10 = vmax.f32 %v2448_v48, 0.0  ;;  %v2249_v16 = vadd.f32 %v2248_v51, %v2129_v8  ;;  %v1589_v46 = vpop.f32.mrf.mxu1 }
 0x2f6   :  { %v2131_v9 = vpop.f32.mrf.mxu0 }
 0x2f7   :  { %v3817_v63 = vpack.c.bf16 %v2492_v10, %v2491_v28  ;;  %v2357_v6 = vmax.f32 %v1702_v22, %v2249_v16  ;;  %v5776_v28 = vld [vmem:[#allocation35_spill] sm:$0xff]  ;;  %v5777_v22 = vld [vmem:[#allocation36_spill] sm:$0xff] }
 0x2f8   :  { %v5778_v10 = vmax.f32 %v5776_v28, %v5777_v22  ;;  %v5792_v28 = vld [vmem:[#allocation46_spill] sm:$0xff] }
 0x2f9   :  { %3867 = vst [vmem:[%s5602_s3 + $0x70] sm:$0xff] %v3817_v63   ;;  %v2401_v14 = vmax.f32 %v5766_v47, %v2357_v6 }
 0x2fb   :  { %v1708_v30 = vpop.f32.mrf.mxu3  ;;  %v2449_v43 = vadd.f32 %v5523_v5, %v2401_v14 }
 0x2fc   :  { %v2250_v21 = vpop.f32.mrf.mxu2  ;;  %v1709_v57 = vadd.f32 %v1708_v30, %v1589_v46 }
 0x2fd   :  { %v2251_v58 = vadd.f32 %v2250_v21, %v2131_v9  ;;  %v1592_v1 = vpop.f32.mrf.mxu1  ;;  %v2493_v24 = vmax.f32 %v2449_v43, 0.0 }
 0x2fe   :  { %v2134_v62 = vpop.f32.mrf.mxu0 }
 0x2ff   :  { %v2358_v55 = vmax.f32 %v1704_v40, %v2251_v58  ;;  %v5779_v40 = vld [vmem:[#allocation37_spill] sm:$0xff] }
 0x300   :  { %v5781_v15 = vmax.f32 %v5779_v40, %v5780_v13 }
 0x301   :  { %v2402_v7 = vmax.f32 %v5769_v56, %v2358_v55 }
 0x303   :  { %v2450_v29 = vadd.f32 %v5523_v5, %v2402_v7  ;;  %v1711_v23 = vpop.f32.mrf.mxu3 }
 0x304   :  { %v2253_v4 = vpop.f32.mrf.mxu2  ;;  %v1712_v18 = vadd.f32 %v1711_v23, %v1592_v1 }
 0x305   :  { %v2494_v12 = vmax.f32 %v2450_v29, 0.0  ;;  %v2254_v59 = vadd.f32 %v2253_v4, %v2134_v62  ;;  %v1594_v26 = vpop.f32.mrf.mxu1 }
 0x306   :  { %v2136_v31 = vpop.f32.mrf.mxu0 }
 0x307   :  { %v3822_v35 = vpack.c.bf16 %v2494_v12, %v2493_v24  ;;  %v2359_v19 = vmax.f32 %v1707_v27, %v2254_v59  ;;  %v5782_v24 = vld [vmem:[#allocation39_spill] sm:$0xff]  ;;  %v5783_v27 = vld [vmem:[#allocation40_spill] sm:$0xff] }
 0x308   :  { %v5784_v12 = vmax.f32 %v5782_v24, %v5783_v27 }
 0x309   :  { %3868 = vst [vmem:[%s5602_s3 + $0x78] sm:$0xff] %v3822_v35   ;;  %v2403_v49 = vmax.f32 %v5772_v3, %v2359_v19 }
 0x30b   :  { %v1713_v36 = vpop.f32.mrf.mxu3  ;;  %v2451_v45 = vadd.f32 %v5523_v5, %v2403_v49 }
 0x30c   :  { %v2255_v37 = vpop.f32.mrf.mxu2  ;;  %v1714_v51 = vadd.f32 %v1713_v36, %v1594_v26  ;;  %v5785_v36 = vld [vmem:[#allocation41_spill] sm:$0xff] }
 0x30d   :  { %v2256_v53 = vadd.f32 %v2255_v37, %v2136_v31  ;;  %v1597_v32 = vpop.f32.mrf.mxu1  ;;  %v2495_v34 = vmax.f32 %v2451_v45, 0.0  ;;  %v5786_v37 = vld [vmem:[#allocation42_spill] sm:$0xff] }
 0x30e   :  { %v2139_v60 = vpop.f32.mrf.mxu0 }
 0x30f   :  { %v2360_v41 = vmax.f32 %v1709_v57, %v2256_v53  ;;  %v5787_v57 = vmax.f32 %v5785_v36, %v5786_v37 }
 0x311   :  { %v2404_v11 = vmax.f32 %v5775_v2, %v2360_v41 }
 0x313   :  { %v2452_v25 = vadd.f32 %v5523_v5, %v2404_v11  ;;  %v1716_v8 = vpop.f32.mrf.mxu3 }
 0x314   :  { %v2258_v17 = vpop.f32.mrf.mxu2  ;;  %v1717_v55 = vadd.f32 %v1716_v8, %v1597_v32 }
 0x315   :  { %v2496_v38 = vmax.f32 %v2452_v25, 0.0  ;;  %v2259_v39 = vadd.f32 %v2258_v17, %v2139_v60  ;;  %v1599_v9 = vpop.f32.mrf.mxu1 }
 0x316   :  { %v2141_v42 = vpop.f32.mrf.mxu0 }
 0x317   :  { %v3827_v61 = vpack.c.bf16 %v2496_v38, %v2495_v34  ;;  %v2361_v48 = vmax.f32 %v1712_v18, %v2259_v39  ;;  %v5788_v34 = vld [vmem:[#allocation43_spill] sm:$0xff]  ;;  %v5789_v18 = vld [vmem:[#allocation44_spill] sm:$0xff] }
 0x318   :  { %v5790_v38 = vmax.f32 %v5788_v34, %v5789_v18 }
 0x319   :  { %3869 = vst [vmem:[%s5602_s3 + $0x80] sm:$0xff] %v3827_v61   ;;  %v2405_v16 = vmax.f32 %v5778_v10, %v2361_v48 }
 0x31b   :  { %v1718_v6 = vpop.f32.mrf.mxu3  ;;  %v2453_v21 = vadd.f32 %v5523_v5, %v2405_v16 }
 0x31c   :  { %v2260_v0 = vpop.f32.mrf.mxu2  ;;  %v1719_v4 = vadd.f32 %v1718_v6, %v1599_v9 }
 0x31d   :  { %v2261_v46 = vadd.f32 %v2260_v0, %v2141_v42  ;;  %v2497_v62 = vmax.f32 %v2453_v21, 0.0  ;;  %v1602_v56 = vpop.f32.mrf.mxu1 }
 0x31e   :  { %v2144_v63 = vpop.f32.mrf.mxu0 }
 0x31f   :  { %v2362_v30 = vmax.f32 %v1714_v51, %v2261_v46  ;;  %v5791_v51 = vld [vmem:[#allocation45_spill] sm:$0xff] }
 0x320   :  { %v5793_v22 = vmax.f32 %v5791_v51, %v5792_v28 }
 0x321   :  { %v2406_v47 = vmax.f32 %v5781_v15, %v2362_v30 }
 0x323   :  { %v2454_v14 = vadd.f32 %v5523_v5, %v2406_v47  ;;  %v1721_v7 = vpop.f32.mrf.mxu3 }
 0x324   :  { %v2263_v58 = vpop.f32.mrf.mxu2  ;;  %v1722_v41 = vadd.f32 %v1721_v7, %v1602_v56 }
 0x325   :  { %v2498_v1 = vmax.f32 %v2454_v14, 0.0  ;;  %v2264_v43 = vadd.f32 %v2263_v58, %v2144_v63  ;;  %v1604_v50 = vpop.f32.mrf.mxu1 }
 0x326   :  { %v2146_v44 = vpop.f32.mrf.mxu0 }
 0x327   :  { %v3832_v54 = vpack.c.bf16 %v2498_v1, %v2497_v62  ;;  %v2363_v29 = vmax.f32 %v1717_v55, %v2264_v43  ;;  %v5794_v62 = vld [vmem:[#allocation47_spill] sm:$0xff]  ;;  %v5795_v55 = vld [vmem:[#allocation48_spill] sm:$0xff] }
 0x328   :  { %v5796_v1 = vmax.f32 %v5794_v62, %v5795_v55 }
 0x329   :  { %3870 = vst [vmem:[%s5602_s3 + $0x88] sm:$0xff] %v3832_v54   ;;  %v2407_v59 = vmax.f32 %v5784_v12, %v2363_v29 }
 0x32b   :  { %v2455_v26 = vadd.f32 %v5523_v5, %v2407_v59  ;;  %v1723_v3 = vpop.f32.mrf.mxu3 }
 0x32c   :  { %v2265_v23 = vpop.f32.mrf.mxu2  ;;  %v1724_v8 = vadd.f32 %v1723_v3, %v1604_v50 }
 0x32d   :  { %v2266_v31 = vadd.f32 %v2265_v23, %v2146_v44  ;;  %v2499_v60 = vmax.f32 %v2455_v26, 0.0  ;;  %v1607_v25 = vpop.f32.mrf.mxu1  ;;  %v5797_v23 = vld [vmem:[#allocation49_spill] sm:$0xff] }
 0x32e   :  { %v2149_v35 = vpop.f32.mrf.mxu0 }
 0x32f   :  { %v2364_v19 = vmax.f32 %v1719_v4, %v2266_v31  ;;  %v5798_v4 = vld [vmem:[#allocation50_spill] sm:$0xff] }
 0x330   :  { %v5799_v24 = vmax.f32 %v5797_v23, %v5798_v4 }
 0x331   :  { %v2408_v52 = vmax.f32 %v5787_v57, %v2364_v19 }
 0x333   :  { %v2456_v49 = vadd.f32 %v5523_v5, %v2408_v52  ;;  %v1726_v32 = vpop.f32.mrf.mxu3 }
 0x334   :  { %v2268_v53 = vpop.f32.mrf.mxu2  ;;  %v1727_v63 = vadd.f32 %v1726_v32, %v1607_v25  ;;  %v5803_v25 = vld [vmem:[#allocation53_spill] sm:$0xff]  ;;  %v5804_v32 = vld [vmem:[#allocation54_spill] sm:$0xff] }
 0x335   :  { %v2500_v45 = vmax.f32 %v2456_v49, 0.0  ;;  %v2269_v20 = vadd.f32 %v2268_v53, %v2149_v35  ;;  %v1609_v21 = vpop.f32.mrf.mxu1 }
 0x336   :  { %v2151_v33 = vpop.f32.mrf.mxu0 }
 0x337   :  { %v3837_v2 = vpack.c.bf16 %v2500_v45, %v2499_v60  ;;  %v2365_v11 = vmax.f32 %v1722_v41, %v2269_v20  ;;  %v5800_v60 = vld [vmem:[#allocation51_spill] sm:$0xff]  ;;  %v5801_v41 = vld [vmem:[#allocation52_spill] sm:$0xff] }
 0x338   :  { %v5802_v45 = vmax.f32 %v5800_v60, %v5801_v41 }
 0x339   :  { %3871 = vst [vmem:[%s5602_s3 + $0x90] sm:$0xff] %v3837_v2   ;;  %v2409_v39 = vmax.f32 %v5790_v38, %v2365_v11 }
 0x33b   :  { %v2457_v0 = vadd.f32 %v5523_v5, %v2409_v39  ;;  %v1728_v40 = vpop.f32.mrf.mxu3 }
 0x33c   :  { %v2270_v17 = vpop.f32.mrf.mxu2  ;;  %v1729_v58 = vadd.f32 %v1728_v40, %v1609_v21 }
 0x33d   :  { %v2271_v42 = vadd.f32 %v2270_v17, %v2151_v33  ;;  %v2501_v9 = vmax.f32 %v2457_v0, 0.0  ;;  %v1612_v56 = vpop.f32.mrf.mxu1  ;;  %v5805_v17 = vmax.f32 %v5803_v25, %v5804_v32 }
 0x33e   :  { %v2154_v61 = vpop.f32.mrf.mxu0 }
 0x33f   :  { %v2366_v48 = vmax.f32 %v1724_v8, %v2271_v42 }
 0x341   :  { %v2410_v10 = vmax.f32 %v5793_v22, %v2366_v48 }
 0x343   :  { %v2458_v16 = vadd.f32 %v5523_v5, %v2410_v10  ;;  %v1731_v7 = vpop.f32.mrf.mxu3 }
 0x344   :  { %v2273_v46 = vpop.f32.mrf.mxu2  ;;  %v1732_v19 = vadd.f32 %v1731_v7, %v1612_v56 }
 0x345   :  { %v2502_v6 = vmax.f32 %v2458_v16, 0.0  ;;  %v2274_v30 = vadd.f32 %v2273_v46, %v2154_v61  ;;  %v1614_v52 = vpop.f32.mrf.mxu1 }
 0x346   :  { %v2156_v15 = vpop.f32.mrf.mxu0 }
 0x347   :  { %v3842_v13 = vpack.c.bf16 %v2502_v6, %v2501_v9  ;;  %v2367_v47 = vmax.f32 %v1727_v63, %v2274_v30 }
 0x349   :  { %3872 = vst [vmem:[%s5602_s3 + $0x98] sm:$0xff] %v3842_v13   ;;  %v2411_v43 = vmax.f32 %v5796_v1, %v2367_v47 }
 0x34b   :  { %v2459_v29 = vadd.f32 %v5523_v5, %v2411_v43  ;;  %v1733_v50 = vpop.f32.mrf.mxu3 }
 0x34c   :  { %v2275_v14 = vpop.f32.mrf.mxu2  ;;  %v1734_v53 = vadd.f32 %v1733_v50, %v1614_v52 }
 0x34d   :  { %v2276_v44 = vadd.f32 %v2275_v14, %v2156_v15  ;;  %v2503_v35 = vmax.f32 %v2459_v29, 0.0 }
 0x34e   :  { %v2159_v12 = vpop.f32.mrf.mxu0 }
 0x34f   :  { %v2368_v54 = vmax.f32 %v1729_v58, %v2276_v44 }
 0x351   :  { %v2412_v27 = vmax.f32 %v5799_v24, %v2368_v54 }
 0x353   :  { %v2460_v59 = vadd.f32 %v5523_v5, %v2412_v27 }
 0x354   :  { %v2278_v31 = vpop.f32.mrf.mxu2 }
 0x355   :  { %v2504_v26 = vmax.f32 %v2460_v59, 0.0  ;;  %v2279_v36 = vadd.f32 %v2278_v31, %v2159_v12 }
 0x356   :  { %v2161_v3 = vpop.f32.mrf.mxu0 }
 0x357   :  { %v3847_v37 = vpack.c.bf16 %v2504_v26, %v2503_v35  ;;  %v2369_v57 = vmax.f32 %v1732_v19, %v2279_v36 }
 0x359   :  { %3873 = vst [vmem:[%s5602_s3 + $0xa0] sm:$0xff] %v3847_v37   ;;  %v2413_v20 = vmax.f32 %v5802_v45, %v2369_v57 }
 0x35b   :  { %v2461_v11 = vadd.f32 %v5523_v5, %v2413_v20 }
 0x35c   :  { %v2280_v49 = vpop.f32.mrf.mxu2 }
 0x35d   :  { %v2281_v33 = vadd.f32 %v2280_v49, %v2161_v3  ;;  %v2505_v18 = vmax.f32 %v2461_v11, 0.0 }
 0x35f   :  { %v2370_v2 = vmax.f32 %v1734_v53, %v2281_v33 }
 0x361   :  { %v2414_v8 = vmax.f32 %v5805_v17, %v2370_v2 }
 0x363   :  { %v2462_v34 = vadd.f32 %v5523_v5, %v2414_v8 }
 0x365   :  { %v2506_v38 = vmax.f32 %v2462_v34, 0.0 }
 0x367   :  { %v3852_v39 = vpack.c.bf16 %v2506_v38, %v2505_v18 }
 0x369   :  { %3874 = vst [vmem:[%s5602_s3 + $0xa8] sm:$0xff] %v3852_v39  }

// kernel: net_forward.5
= control target key start
LH: loop header
LB: loop body
LE: loop exit
PB: predicated region body
PF: predicated region fallthrough
CT: control target
= control target key end

     0   :  { %s3493_s0 = inlined_call_operand.vmem [shape: bf16[2,2704], index: 0, kind: input, shape index: {}]   ;;  %s3494_s1 = inlined_call_operand.vmem [shape: bf16[2704,128], index: 1, kind: input, shape index: {}]   ;;  %s3495_s2 = inlined_call_operand.vmem [shape: f32[1,128], index: 2, kind: input, shape index: {}]   ;;  %s3496_s3 = inlined_call_operand.vmem [shape: bf16[128,128], index: 3, kind: input, shape index: {}]   ;;  %s3497_s4 = inlined_call_operand.vmem [shape: f32[1,128], index: 4, kind: input, shape index: {}]   ;;  %s3498_s5 = inlined_call_operand.vmem [shape: bf16[128,128], index: 5, kind: input, shape index: {}]   ;;  %s3499_s6 = inlined_call_operand.vmem [shape: f32[1,128], index: 6, kind: input, shape index: {}]   ;;  %s3500_s7 = inlined_call_operand.hbm [shape: f32[2,128], index: 7, kind: output, shape index: {}]  }
   0x1   :  { %v2656_v0 = vld [vmem:[%s3494_s1 + $0x38] sm:$0xff]  ;;  %v2655_v4 = vld [vmem:[%s3494_s1 + $0x30] sm:$0xff]  ;;  %v2654_v8 = vld [vmem:[%s3494_s1 + $0x28] sm:$0xff] }
   0x2   :  { %v2672_v1 = vld [vmem:[%s3494_s1 + $0xb8] sm:$0xff]  ;;  %1439 = vmatpush.bf16.msra.mxu0 %v2656_v0  ;;  %v2671_v5 = vld [vmem:[%s3494_s1 + $0xb0] sm:$0xff]  ;;  %v2670_v9 = vld [vmem:[%s3494_s1 + $0xa8] sm:$0xff] }
   0x3   :  { %v2664_v2 = vld [vmem:[%s3494_s1 + $0x78] sm:$0xff]  ;;  %1465 = vmatpush.bf16.msra.mxu2 %v2672_v1  ;;  %v2663_v6 = vld [vmem:[%s3494_s1 + $0x70] sm:$0xff]  ;;  %v2662_v10 = vld [vmem:[%s3494_s1 + $0x68] sm:$0xff] }
   0x4   :  { %v2680_v3 = vld [vmem:[%s3494_s1 + $0xf8] sm:$0xff]  ;;  %1452 = vmatpush.bf16.msra.mxu1 %v2664_v2  ;;  %v2679_v7 = vld [vmem:[%s3494_s1 + $0xf0] sm:$0xff]  ;;  %v2678_v11 = vld [vmem:[%s3494_s1 + $0xe8] sm:$0xff] }
   0x5   :  { %1478 = vmatpush.bf16.msra.mxu3 %v2680_v3  ;;  %v2653_v12 = vld [vmem:[%s3494_s1 + $0x20] sm:$0xff]  ;;  %v2652_v16 = vld [vmem:[%s3494_s1 + $0x18] sm:$0xff]  ;;  %v2651_v21 = vld [vmem:[%s3494_s1 + $0x10] sm:$0xff] }
   0x6   :  { %1440 = vmatpush.bf16.msra.mxu0 %v2655_v4  ;;  %v2669_v13 = vld [vmem:[%s3494_s1 + $0xa0] sm:$0xff]  ;;  %v2668_v17 = vld [vmem:[%s3494_s1 + $0x98] sm:$0xff]  ;;  %v2667_v22 = vld [vmem:[%s3494_s1 + $0x90] sm:$0xff] }
   0x7   :  { %1466 = vmatpush.bf16.msra.mxu2 %v2671_v5  ;;  %v2661_v14 = vld [vmem:[%s3494_s1 + $0x60] sm:$0xff]  ;;  %v2660_v18 = vld [vmem:[%s3494_s1 + $0x58] sm:$0xff]  ;;  %v2659_v23 = vld [vmem:[%s3494_s1 + $0x50] sm:$0xff] }
   0x8   :  { %1453 = vmatpush.bf16.msra.mxu1 %v2663_v6  ;;  %v2677_v15 = vld [vmem:[%s3494_s1 + $0xe0] sm:$0xff]  ;;  %v2676_v19 = vld [vmem:[%s3494_s1 + $0xd8] sm:$0xff]  ;;  %v2675_v24 = vld [vmem:[%s3494_s1 + $0xd0] sm:$0xff] }
   0x9   :  { %1479 = vmatpush.bf16.msra.mxu3 %v2679_v7  ;;  %v28_v20 = vld [vmem:[%s3493_s0] sm:$0xff] }
   0xa   :  { %1441 = vmatpush.bf16.msra.mxu0 %v2654_v8  ;;  %374 = vst [vmem:[#allocation1] ss:$9 sm:$0xff] %v28_v20 }
   0xb   :  { %1467 = vmatpush.bf16.msra.mxu2 %v2670_v9 }
   0xc   :  { %1454 = vmatpush.bf16.msra.mxu1 %v2662_v10 }
   0xd   :  { %1480 = vmatpush.bf16.msra.mxu3 %v2678_v11 }
   0xe   :  { %1442 = vmatpush.bf16.msra.mxu0 %v2653_v12 }
   0xf   :  { %1468 = vmatpush.bf16.msra.mxu2 %v2669_v13 }
  0x10   :  { %1455 = vmatpush.bf16.msra.mxu1 %v2661_v14 }
  0x11   :  { %1481 = vmatpush.bf16.msra.mxu3 %v2677_v15 }
  0x12   :  { %1443 = vmatpush.bf16.msra.mxu0 %v2652_v16 }
  0x13   :  { %1469 = vmatpush.bf16.msra.mxu2 %v2668_v17 }
  0x14   :  { %1456 = vmatpush.bf16.msra.mxu1 %v2660_v18 }
  0x15   :  { %1482 = vmatpush.bf16.msra.mxu3 %v2676_v19 }
  0x16   :  { %12 = vsyncpa [#allocation3], 0  ;;  %1444 = vmatpush.bf16.msra.mxu0 %v2651_v21  ;;  %v2650_v25 = vld [vmem:[%s3494_s1 + $0x8] sm:$0xff]  ;;  %v2649_v29 = vld [vmem:[%s3494_s1] sm:$0xff]  ;;  %vm1436_vm0 = vcmask 130048   ;;  %s2864_s28 = smov [#allocation2]  }
  0x17   :  { %1470 = vmatpush.bf16.msra.mxu2 %v2667_v22  ;;  %v2666_v26 = vld [vmem:[%s3494_s1 + $0x88] sm:$0xff]  ;;  %v2665_v30 = vld [vmem:[%s3494_s1 + $0x80] sm:$0xff]  ;;  %v2688_v31 = vld [vmem:[%s3494_s1 + $0x138] sm:$0xff] }
  0x18   :  { %1457 = vmatpush.bf16.msra.mxu1 %v2659_v23  ;;  %v2658_v27 = vld [vmem:[%s3494_s1 + $0x48] sm:$0xff]  ;;  %v2704_v32 = vld [vmem:[%s3494_s1 + $0x1b8] sm:$0xff]  ;;  %v2657_v33 = vld [vmem:[%s3494_s1 + $0x40] sm:$0xff] }
  0x19   :  { %1483 = vmatpush.bf16.msra.mxu3 %v2675_v24  ;;  %v2674_v28 = vld [vmem:[%s3494_s1 + $0xc8] sm:$0xff]  ;;  %v2673_v34 = vld [vmem:[%s3494_s1 + $0xc0] sm:$0xff]  ;;  %v2696_v35 = vld [vmem:[%s3494_s1 + $0x178] sm:$0xff] }
  0x1a   :  { %1445 = vmatpush.bf16.msra.mxu0 %v2650_v25  ;;  %v2712_v36 = vld [vmem:[%s3494_s1 + $0x1f8] sm:$0xff]  ;;  %v2687_v37 = vld [vmem:[%s3494_s1 + $0x130] sm:$0xff]  ;;  %v375_v40 = vld [vmem:[#allocation1] sm:$0xff] }
  0x1b   :  { %1471 = vmatpush.bf16.msra.mxu2 %v2666_v26  ;;  %v2703_v38 = vld [vmem:[%s3494_s1 + $0x1b0] sm:$0xff]  ;;  %v378_v43 = vld [vmem:[#allocation1 + $0x1b] sm:$0xff]  ;;  %v2686_v45 = vld [vmem:[%s3494_s1 + $0x128] sm:$0xff] }
  0x1c   :  { %1458 = vmatpush.bf16.msra.mxu1 %v2658_v27  ;;  %v377_v39 = vld [vmem:[#allocation1 + $0x12] sm:$0xff]  ;;  %v376_v44 = vld [vmem:[#allocation1 + $0x9] sm:$0xff]  ;;  %v3038_v49 = vld [vmem:[#allocation1 + $0x3f] sm:$0xff] }
  0x1d   :  { %1484 = vmatpush.bf16.msra.mxu3 %v2674_v28  ;;  %v2695_v41 = vld [vmem:[%s3494_s1 + $0x170] sm:$0xff]  ;;  %v2702_v46 = vld [vmem:[%s3494_s1 + $0x1a8] sm:$0xff]  ;;  %v2685_v54 = vld [vmem:[%s3494_s1 + $0x120] sm:$0xff] }
  0x1e   :  { %1446 = vmatpush.bf16.msra.mxu0 %v2649_v29  ;;  %v2711_v42 = vld [vmem:[%s3494_s1 + $0x1f0] sm:$0xff]  ;;  %v3036_v48 = vld [vmem:[#allocation1 + $0x24] sm:$0xff]  ;;  %v2684_v58 = vld [vmem:[%s3494_s1 + $0x118] sm:$0xff] }
  0x1f   :  { %1472 = vmatpush.bf16.msra.mxu2 %v2665_v30  ;;  %v3034_v47 = vld [vmem:[#allocation1 + $0x36] sm:$0xff]  ;;  %v29_v50 = vld [vmem:[%s3493_s0 + $0x8] sm:$0xff]  ;;  %v2701_v55 = vld [vmem:[%s3494_s1 + $0x1a0] sm:$0xff] }
  0x20   :  { %1459 = vmatpush.bf16.msra.mxu1 %v2657_v33  ;;  %v3043_v51 = vld [vmem:[#allocation1 + $0x2d] sm:$0xff]  ;;  %v2693_v56 = vld [vmem:[%s3494_s1 + $0x160] sm:$0xff]  ;;  %v2700_v59 = vld [vmem:[%s3494_s1 + $0x198] sm:$0xff] }
  0x21   :  { %1485 = vmatpush.bf16.msra.mxu3 %v2673_v34  ;;  %1447 = vmatmul.bf16.vlgmr.msra.gmra.mxu0 %v375_v40  ;;  %v2694_v52 = vld [vmem:[%s3494_s1 + $0x168] sm:$0xff]  ;;  %384 = vst [vmem:[#allocation1] ss:$9 sm:$0xff] %v29_v50  ;;  %v2709_v57 = vld [vmem:[%s3494_s1 + $0x1e0] sm:$0xff]  ;;  %v2692_v60 = vld [vmem:[%s3494_s1 + $0x158] sm:$0xff] }
  0x22   :  { %1491 = vmatpush.bf16.msrb.mxu0 %v2688_v31  ;;  %1473 = vmatmul.bf16.vlgmr.msra.gmra.mxu2 %v377_v39  ;;  %v2710_v53 = vld [vmem:[%s3494_s1 + $0x1e8] sm:$0xff]  ;;  %v2708_v61 = vld [vmem:[%s3494_s1 + $0x1d8] sm:$0xff]  ;;  %v2683_v62 = vld [vmem:[%s3494_s1 + $0x110] sm:$0xff] }
  0x23   :  { %1517 = vmatpush.bf16.msrb.mxu2 %v2704_v32  ;;  %1460 = vmatmul.bf16.vlgmr.msra.gmra.mxu1 %v376_v44  ;;  %v2699_v63 = vld [vmem:[%s3494_s1 + $0x190] sm:$0xff]  ;;  %v2682_v2 = vld [vmem:[%s3494_s1 + $0x108] sm:$0xff]  ;;  %v2681_v6 = vld [vmem:[%s3494_s1 + $0x100] sm:$0xff] }
  0x24   :  { %1504 = vmatpush.bf16.msrb.mxu1 %v2696_v35  ;;  %1486 = vmatmul.bf16.vlgmr.msra.gmra.mxu3 %v378_v43  ;;  %v2691_v0 = vld [vmem:[%s3494_s1 + $0x150] sm:$0xff]  ;;  %v2698_v3 = vld [vmem:[%s3494_s1 + $0x188] sm:$0xff]  ;;  %v2697_v7 = vld [vmem:[%s3494_s1 + $0x180] sm:$0xff] }
  0x25   :  { %1530 = vmatpush.bf16.msrb.mxu3 %v2712_v36  ;;  %v2707_v1 = vld [vmem:[%s3494_s1 + $0x1d0] sm:$0xff]  ;;  %v2690_v4 = vld [vmem:[%s3494_s1 + $0x148] sm:$0xff]  ;;  %v2720_v8 = vld [vmem:[%s3494_s1 + $0x238] sm:$0xff] }
  0x26   :  { %1492 = vmatpush.bf16.msrb.mxu0 %v2687_v37  ;;  %v2706_v5 = vld [vmem:[%s3494_s1 + $0x1c8] sm:$0xff]  ;;  %v2736_v9 = vld [vmem:[%s3494_s1 + $0x2b8] sm:$0xff]  ;;  %v2689_v10 = vld [vmem:[%s3494_s1 + $0x140] sm:$0xff] }
  0x27   :  { %1518 = vmatpush.bf16.msrb.mxu2 %v2703_v38  ;;  %v2705_v11 = vld [vmem:[%s3494_s1 + $0x1c0] sm:$0xff]  ;;  %v2728_v12 = vld [vmem:[%s3494_s1 + $0x278] sm:$0xff]  ;;  %v2719_v14 = vld [vmem:[%s3494_s1 + $0x230] sm:$0xff] }
  0x28   :  { %1505 = vmatpush.bf16.msrb.mxu1 %v2695_v41  ;;  %v2744_v13 = vld [vmem:[%s3494_s1 + $0x2f8] sm:$0xff]  ;;  %v2735_v15 = vld [vmem:[%s3494_s1 + $0x2b0] sm:$0xff]  ;;  %v2718_v18 = vld [vmem:[%s3494_s1 + $0x228] sm:$0xff] }
  0x29   :  { %1531 = vmatpush.bf16.msrb.mxu3 %v2711_v42  ;;  %v2727_v16 = vld [vmem:[%s3494_s1 + $0x270] sm:$0xff]  ;;  %v2734_v19 = vld [vmem:[%s3494_s1 + $0x2a8] sm:$0xff]  ;;  %v2717_v22 = vld [vmem:[%s3494_s1 + $0x220] sm:$0xff] }
  0x2a   :  { %1493 = vmatpush.bf16.msrb.mxu0 %v2686_v45  ;;  %v2743_v17 = vld [vmem:[%s3494_s1 + $0x2f0] sm:$0xff]  ;;  %v2726_v20 = vld [vmem:[%s3494_s1 + $0x268] sm:$0xff]  ;;  %v2733_v23 = vld [vmem:[%s3494_s1 + $0x2a0] sm:$0xff] }
  0x2b   :  { %1519 = vmatpush.bf16.msrb.mxu2 %v2702_v46  ;;  %v2742_v21 = vld [vmem:[%s3494_s1 + $0x2e8] sm:$0xff]  ;;  %v2725_v24 = vld [vmem:[%s3494_s1 + $0x260] sm:$0xff]  ;;  %v2716_v26 = vld [vmem:[%s3494_s1 + $0x218] sm:$0xff] }
  0x2c   :  { %1506 = vmatpush.bf16.msrb.mxu1 %v2694_v52  ;;  %v2741_v25 = vld [vmem:[%s3494_s1 + $0x2e0] sm:$0xff]  ;;  %v2732_v27 = vld [vmem:[%s3494_s1 + $0x298] sm:$0xff]  ;;  %v2715_v30 = vld [vmem:[%s3494_s1 + $0x210] sm:$0xff] }
  0x2d   :  { %1532 = vmatpush.bf16.msrb.mxu3 %v2710_v53  ;;  %v2724_v28 = vld [vmem:[%s3494_s1 + $0x258] sm:$0xff]  ;;  %v2731_v31 = vld [vmem:[%s3494_s1 + $0x290] sm:$0xff]  ;;  %v2714_v34 = vld [vmem:[%s3494_s1 + $0x208] sm:$0xff] }
  0x2e   :  { %1494 = vmatpush.bf16.msrb.mxu0 %v2685_v54  ;;  %v2740_v29 = vld [vmem:[%s3494_s1 + $0x2d8] sm:$0xff]  ;;  %v2723_v32 = vld [vmem:[%s3494_s1 + $0x250] sm:$0xff]  ;;  %v2730_v35 = vld [vmem:[%s3494_s1 + $0x288] sm:$0xff] }
  0x2f   :  { %1520 = vmatpush.bf16.msrb.mxu2 %v2701_v55  ;;  %v2739_v33 = vld [vmem:[%s3494_s1 + $0x2d0] sm:$0xff]  ;;  %v2722_v36 = vld [vmem:[%s3494_s1 + $0x248] sm:$0xff]  ;;  %v2713_v38 = vld [vmem:[%s3494_s1 + $0x200] sm:$0xff] }
  0x30   :  { %1507 = vmatpush.bf16.msrb.mxu1 %v2693_v56  ;;  %v2738_v37 = vld [vmem:[%s3494_s1 + $0x2c8] sm:$0xff]  ;;  %v2729_v39 = vld [vmem:[%s3494_s1 + $0x280] sm:$0xff]  ;;  %v2752_v40 = vld [vmem:[%s3494_s1 + $0x338] sm:$0xff] }
  0x31   :  { %1533 = vmatpush.bf16.msrb.mxu3 %v2709_v57  ;;  %v2768_v41 = vld [vmem:[%s3494_s1 + $0x3b8] sm:$0xff]  ;;  %v2721_v42 = vld [vmem:[%s3494_s1 + $0x240] sm:$0xff]  ;;  %v2751_v50 = vld [vmem:[%s3494_s1 + $0x330] sm:$0xff] }
  0x32   :  { %1495 = vmatpush.bf16.msrb.mxu0 %v2684_v58  ;;  %v2737_v43 = vld [vmem:[%s3494_s1 + $0x2c0] sm:$0xff]  ;;  %v2760_v44 = vld [vmem:[%s3494_s1 + $0x378] sm:$0xff]  ;;  %v2759_v52 = vld [vmem:[%s3494_s1 + $0x370] sm:$0xff] }
  0x33   :  { %1521 = vmatpush.bf16.msrb.mxu2 %v2700_v59  ;;  %v385_v45 = vld [vmem:[#allocation1] sm:$0xff]  ;;  %v387_v46 = vld [vmem:[#allocation1 + $0x12] sm:$0xff]  ;;  %v2750_v54 = vld [vmem:[%s3494_s1 + $0x328] sm:$0xff] }
  0x34   :  { %1508 = vmatpush.bf16.msrb.mxu1 %v2692_v60  ;;  %v2775_v53 = vld [vmem:[%s3494_s1 + $0x3f0] sm:$0xff]  ;;  %v2766_v55 = vld [vmem:[%s3494_s1 + $0x3a8] sm:$0xff]  ;;  %v2749_v58 = vld [vmem:[%s3494_s1 + $0x320] sm:$0xff] }
  0x35   :  { %1534 = vmatpush.bf16.msrb.mxu3 %v2708_v61  ;;  %v2758_v56 = vld [vmem:[%s3494_s1 + $0x368] sm:$0xff]  ;;  %v2765_v59 = vld [vmem:[%s3494_s1 + $0x3a0] sm:$0xff] }
  0x36   :  { %1496 = vmatpush.bf16.msrb.mxu0 %v2683_v62  ;;  %v2774_v57 = vld [vmem:[%s3494_s1 + $0x3e8] sm:$0xff]  ;;  %v2757_v60 = vld [vmem:[%s3494_s1 + $0x360] sm:$0xff]  ;;  %v2748_v62 = vld [vmem:[%s3494_s1 + $0x318] sm:$0xff] }
  0x37   :  { %1522 = vmatpush.bf16.msrb.mxu2 %v2699_v63  ;;  %v2773_v61 = vld [vmem:[%s3494_s1 + $0x3e0] sm:$0xff]  ;;  %v2764_v63 = vld [vmem:[%s3494_s1 + $0x398] sm:$0xff] }
  0x38   :  { %1509 = vmatpush.bf16.msrb.mxu1 %v2691_v0  ;;  %v2756_v0 = vld [vmem:[%s3494_s1 + $0x358] sm:$0xff] }
  0x39   :  { %1535 = vmatpush.bf16.msrb.mxu3 %v2707_v1  ;;  %v2772_v1 = vld [vmem:[%s3494_s1 + $0x3d8] sm:$0xff] }
  0x3a   :  { %1497 = vmatpush.bf16.msrb.mxu0 %v2682_v2  ;;  %v2747_v2 = vld [vmem:[%s3494_s1 + $0x310] sm:$0xff] }
  0x3b   :  { %1523 = vmatpush.bf16.msrb.mxu2 %v2698_v3  ;;  %v2763_v3 = vld [vmem:[%s3494_s1 + $0x390] sm:$0xff] }
  0x3c   :  { %1510 = vmatpush.bf16.msrb.mxu1 %v2690_v4  ;;  %v2755_v4 = vld [vmem:[%s3494_s1 + $0x350] sm:$0xff] }
  0x3d   :  { %1536 = vmatpush.bf16.msrb.mxu3 %v2706_v5  ;;  %v2771_v5 = vld [vmem:[%s3494_s1 + $0x3d0] sm:$0xff] }
  0x3e   :  { %1498 = vmatpush.bf16.msrb.mxu0 %v2681_v6  ;;  %v2746_v6 = vld [vmem:[%s3494_s1 + $0x308] sm:$0xff] }
  0x3f   :  { %1524 = vmatpush.bf16.msrb.mxu2 %v2697_v7  ;;  %v2762_v7 = vld [vmem:[%s3494_s1 + $0x388] sm:$0xff] }
  0x40   :  { %1511 = vmatpush.bf16.msrb.mxu1 %v2689_v10  ;;  %v390_v10 = vld [vmem:[#allocation1 + $0x2d] sm:$0xff] }
  0x41   :  { %1537 = vmatpush.bf16.msrb.mxu3 %v2705_v11  ;;  %1499 = vmatmul.bf16.vlgmr.msrb.gmra.mxu0 %v3036_v48  ;;  %v386_v48 = vld [vmem:[#allocation1 + $0x9] sm:$0xff]  ;;  %v392_v11 = vld [vmem:[#allocation1 + $0x3f] sm:$0xff] }
  0x42   :  { %1543 = vmatpush.bf16.msra.mxu0 %v2720_v8  ;;  %1525 = vmatmul.bf16.vlgmr.msrb.gmra.mxu2 %v3034_v47  ;;  %v2776_v47 = vld [vmem:[%s3494_s1 + $0x3f8] sm:$0xff]  ;;  %v389_v8 = vld [vmem:[#allocation1 + $0x24] sm:$0xff] }
  0x43   :  { %1569 = vmatpush.bf16.msra.mxu2 %v2736_v9  ;;  %1512 = vmatmul.bf16.vlgmr.msrb.gmra.mxu1 %v3043_v51  ;;  %v2767_v51 = vld [vmem:[%s3494_s1 + $0x3b0] sm:$0xff] }
  0x44   :  { %1556 = vmatpush.bf16.msra.mxu1 %v2728_v12  ;;  %1538 = vmatmul.bf16.vlgmr.msrb.gmra.mxu3 %v3038_v49  ;;  %v388_v49 = vld [vmem:[#allocation1 + $0x1b] sm:$0xff]  ;;  %v30_v12 = vld [vmem:[%s3493_s0 + $0x10] sm:$0x3f]  ;;  %s1897_s0 = sshll.u32 %s2864_s28, 4  ;;  %s1898_s0 = int_to_ptr.vmem [resolvable:$true] %s1897_s0 }
  0x45   :  { %1582 = vmatpush.bf16.msra.mxu3 %v2744_v13  ;;  %v391_v9 = vld [vmem:[#allocation1 + $0x36] sm:$0xff]  ;;  %v2754_v13 = vld [vmem:[%s3494_s1 + $0x348] sm:$0xff] }
  0x46   :  { %1544 = vmatpush.bf16.msra.mxu0 %v2719_v14  ;;  %394 = vst [vmem:[#allocation1] ss:$9 sm:$0xff] %v30_v12  ;;  %v2770_v14 = vld [vmem:[%s3494_s1 + $0x3c8] sm:$0xff]  ;;  %v2809_v12 = vld [vmem:[%s3494_s1 + $0x500] sm:$0xff] }
  0x47   :  { %1570 = vmatpush.bf16.msra.mxu2 %v2735_v15  ;;  %v2745_v15 = vld [vmem:[%s3494_s1 + $0x300] sm:$0xff] }
  0x48   :  { %1557 = vmatpush.bf16.msra.mxu1 %v2727_v16  ;;  %v2761_v16 = vld [vmem:[%s3494_s1 + $0x380] sm:$0xff] }
  0x49   :  { %1583 = vmatpush.bf16.msra.mxu3 %v2743_v17  ;;  %v2784_v17 = vld [vmem:[%s3494_s1 + $0x438] sm:$0xff] }
  0x4a   :  { %1545 = vmatpush.bf16.msra.mxu0 %v2718_v18  ;;  %v2800_v18 = vld [vmem:[%s3494_s1 + $0x4b8] sm:$0xff] }
  0x4b   :  { %1571 = vmatpush.bf16.msra.mxu2 %v2734_v19  ;;  %v2753_v19 = vld [vmem:[%s3494_s1 + $0x340] sm:$0xff] }
  0x4c   :  { %1558 = vmatpush.bf16.msra.mxu1 %v2726_v20  ;;  %v2769_v20 = vld [vmem:[%s3494_s1 + $0x3c0] sm:$0xff] }
  0x4d   :  { %1584 = vmatpush.bf16.msra.mxu3 %v2742_v21  ;;  %v2792_v21 = vld [vmem:[%s3494_s1 + $0x478] sm:$0xff] }
  0x4e   :  { %1546 = vmatpush.bf16.msra.mxu0 %v2717_v22  ;;  %v2808_v22 = vld [vmem:[%s3494_s1 + $0x4f8] sm:$0xff] }
  0x4f   :  { %1572 = vmatpush.bf16.msra.mxu2 %v2733_v23  ;;  %v2783_v23 = vld [vmem:[%s3494_s1 + $0x430] sm:$0xff] }
  0x50   :  { %1559 = vmatpush.bf16.msra.mxu1 %v2725_v24  ;;  %v2799_v24 = vld [vmem:[%s3494_s1 + $0x4b0] sm:$0xff] }
  0x51   :  { %1585 = vmatpush.bf16.msra.mxu3 %v2741_v25  ;;  %v2791_v25 = vld [vmem:[%s3494_s1 + $0x470] sm:$0xff] }
  0x52   :  { %1547 = vmatpush.bf16.msra.mxu0 %v2716_v26  ;;  %v2807_v26 = vld [vmem:[%s3494_s1 + $0x4f0] sm:$0xff] }
  0x53   :  { %1573 = vmatpush.bf16.msra.mxu2 %v2732_v27  ;;  %v2782_v27 = vld [vmem:[%s3494_s1 + $0x428] sm:$0xff] }
  0x54   :  { %1560 = vmatpush.bf16.msra.mxu1 %v2724_v28  ;;  %v2798_v28 = vld [vmem:[%s3494_s1 + $0x4a8] sm:$0xff] }
  0x55   :  { %1586 = vmatpush.bf16.msra.mxu3 %v2740_v29  ;;  %v2790_v29 = vld [vmem:[%s3494_s1 + $0x468] sm:$0xff] }
  0x56   :  { %1548 = vmatpush.bf16.msra.mxu0 %v2715_v30  ;;  %v2806_v30 = vld [vmem:[%s3494_s1 + $0x4e8] sm:$0xff] }
  0x57   :  { %1574 = vmatpush.bf16.msra.mxu2 %v2731_v31  ;;  %v2781_v31 = vld [vmem:[%s3494_s1 + $0x420] sm:$0xff] }
  0x58   :  { %1561 = vmatpush.bf16.msra.mxu1 %v2723_v32  ;;  %v2797_v32 = vld [vmem:[%s3494_s1 + $0x4a0] sm:$0xff] }
  0x59   :  { %1587 = vmatpush.bf16.msra.mxu3 %v2739_v33  ;;  %v2789_v33 = vld [vmem:[%s3494_s1 + $0x460] sm:$0xff] }
  0x5a   :  { %1549 = vmatpush.bf16.msra.mxu0 %v2714_v34  ;;  %v2805_v34 = vld [vmem:[%s3494_s1 + $0x4e0] sm:$0xff] }
  0x5b   :  { %1575 = vmatpush.bf16.msra.mxu2 %v2730_v35  ;;  %v2780_v35 = vld [vmem:[%s3494_s1 + $0x418] sm:$0xff] }
  0x5c   :  { %1562 = vmatpush.bf16.msra.mxu1 %v2722_v36  ;;  %v2796_v36 = vld [vmem:[%s3494_s1 + $0x498] sm:$0xff] }
  0x5d   :  { %1588 = vmatpush.bf16.msra.mxu3 %v2738_v37  ;;  %v2788_v37 = vld [vmem:[%s3494_s1 + $0x458] sm:$0xff] }
  0x5e   :  { %1550 = vmatpush.bf16.msra.mxu0 %v2713_v38  ;;  %v2804_v38 = vld [vmem:[%s3494_s1 + $0x4d8] sm:$0xff] }
  0x5f   :  { %1576 = vmatpush.bf16.msra.mxu2 %v2729_v39  ;;  %v2779_v39 = vld [vmem:[%s3494_s1 + $0x410] sm:$0xff] }
  0x60   :  { %1563 = vmatpush.bf16.msra.mxu1 %v2721_v42  ;;  %v2803_v42 = vld [vmem:[%s3494_s1 + $0x4d0] sm:$0xff] }
  0x61   :  { %1589 = vmatpush.bf16.msra.mxu3 %v2737_v43  ;;  %1551 = vmatmul.bf16.vlgmr.msra.gmra.mxu0 %v385_v45  ;;  %v2778_v43 = vld [vmem:[%s3494_s1 + $0x408] sm:$0xff] }
  0x62   :  { %1595 = vmatpush.bf16.msrb.mxu0 %v2752_v40  ;;  %1577 = vmatmul.bf16.vlgmr.msra.gmra.mxu2 %v387_v46  ;;  %v2795_v40 = vld [vmem:[%s3494_s1 + $0x490] sm:$0xff]  ;;  %v2786_v45 = vld [vmem:[%s3494_s1 + $0x448] sm:$0xff] }
  0x63   :  { %1621 = vmatpush.bf16.msrb.mxu2 %v2768_v41  ;;  %1564 = vmatmul.bf16.vlgmr.msra.gmra.mxu1 %v386_v48  ;;  %v2787_v41 = vld [vmem:[%s3494_s1 + $0x450] sm:$0xff]  ;;  %v2802_v46 = vld [vmem:[%s3494_s1 + $0x4c8] sm:$0xff]  ;;  %v2793_v48 = vld [vmem:[%s3494_s1 + $0x480] sm:$0xff] }
  0x64   :  { %1608 = vmatpush.bf16.msrb.mxu1 %v2760_v44  ;;  %1590 = vmatmul.bf16.vlgmr.msra.gmra.mxu3 %v388_v49  ;;  %v2794_v44 = vld [vmem:[%s3494_s1 + $0x488] sm:$0xff]  ;;  %v2816_v49 = vld [vmem:[%s3494_s1 + $0x538] sm:$0xff] }
  0x65   :  { %1634 = vmatpush.bf16.msrb.mxu3 %v2776_v47  ;;  %v2777_v47 = vld [vmem:[%s3494_s1 + $0x400] sm:$0xff] }
  0x66   :  { %1596 = vmatpush.bf16.msrb.mxu0 %v2751_v50  ;;  %v2785_v50 = vld [vmem:[%s3494_s1 + $0x440] sm:$0xff] }
  0x67   :  { %1622 = vmatpush.bf16.msrb.mxu2 %v2767_v51  ;;  %v2801_v51 = vld [vmem:[%s3494_s1 + $0x4c0] sm:$0xff] }
  0x68   :  { %1609 = vmatpush.bf16.msrb.mxu1 %v2759_v52  ;;  %v395_v52 = vld [vmem:[#allocation1] sm:$0xff] }
  0x69   :  { %1635 = vmatpush.bf16.msrb.mxu3 %v2775_v53  ;;  %v397_v53 = vld [vmem:[#allocation1 + $0x12] sm:$0xff] }
  0x6a   :  { %1597 = vmatpush.bf16.msrb.mxu0 %v2750_v54  ;;  %v2817_v54 = vld [vmem:[%s3494_s1 + $0x540] sm:$0xff] }
  0x6b   :  { %1623 = vmatpush.bf16.msrb.mxu2 %v2766_v55  ;;  %v396_v55 = vld [vmem:[#allocation1 + $0x9] sm:$0xff] }
  0x6c   :  { %1610 = vmatpush.bf16.msrb.mxu1 %v2758_v56  ;;  %v398_v56 = vld [vmem:[#allocation1 + $0x1b] sm:$0xff] }
  0x6d   :  { %1636 = vmatpush.bf16.msrb.mxu3 %v2774_v57  ;;  %v2815_v57 = vld [vmem:[%s3494_s1 + $0x530] sm:$0xff] }
  0x6e   :  { %1598 = vmatpush.bf16.msrb.mxu0 %v2749_v58  ;;  %v2814_v58 = vld [vmem:[%s3494_s1 + $0x528] sm:$0xff] }
  0x6f   :  { %1624 = vmatpush.bf16.msrb.mxu2 %v2765_v59  ;;  %v2835_v59 = vld [vmem:[%s3495_s2] ss:$0 sm:$0xff] }
  0x70   :  { %1611 = vmatpush.bf16.msrb.mxu1 %v2757_v60  ;;  %v2813_v60 = vld [vmem:[%s3494_s1 + $0x520] sm:$0xff] }
  0x71   :  { %1637 = vmatpush.bf16.msrb.mxu3 %v2773_v61 }
  0x72   :  { %1599 = vmatpush.bf16.msrb.mxu0 %v2748_v62 }
  0x73   :  { %1625 = vmatpush.bf16.msrb.mxu2 %v2764_v63 }
  0x74   :  { %1612 = vmatpush.bf16.msrb.mxu1 %v2756_v0  ;;  %v2812_v0 = vld [vmem:[%s3494_s1 + $0x518] sm:$0xff] }
  0x75   :  { %1638 = vmatpush.bf16.msrb.mxu3 %v2772_v1 }
  0x76   :  { %1600 = vmatpush.bf16.msrb.mxu0 %v2747_v2 }
  0x77   :  { %1626 = vmatpush.bf16.msrb.mxu2 %v2763_v3  ;;  %v2811_v3 = vld [vmem:[%s3494_s1 + $0x510] sm:$0xff] }
  0x78   :  { %1613 = vmatpush.bf16.msrb.mxu1 %v2755_v4  ;;  %v400_v4 = vld [vmem:[#allocation1 + $0x2d] sm:$0xff] }
  0x79   :  { %1639 = vmatpush.bf16.msrb.mxu3 %v2771_v5 }
  0x7a   :  { %1601 = vmatpush.bf16.msrb.mxu0 %v2746_v6 }
  0x7b   :  { %1627 = vmatpush.bf16.msrb.mxu2 %v2762_v7 }
  0x7c   :  { %1614 = vmatpush.bf16.msrb.mxu1 %v2754_v13 }
  0x7d   :  { %1640 = vmatpush.bf16.msrb.mxu3 %v2770_v14  ;;  %v399_v14 = vld [vmem:[#allocation1 + $0x24] sm:$0xff] }
  0x7e   :  { %1602 = vmatpush.bf16.msrb.mxu0 %v2745_v15 }
  0x7f   :  { %1628 = vmatpush.bf16.msrb.mxu2 %v2761_v16 }
  0x80   :  { %1615 = vmatpush.bf16.msrb.mxu1 %v2753_v19 }
  0x81   :  { %1641 = vmatpush.bf16.msrb.mxu3 %v2769_v20  ;;  %1603 = vmatmul.bf16.vlgmr.msrb.gmra.mxu0 %v389_v8 }
  0x82   :  { %1647 = vmatpush.bf16.msra.mxu0 %v2784_v17  ;;  %1629 = vmatmul.bf16.vlgmr.msrb.gmra.mxu2 %v391_v9 }
  0x83   :  { %1673 = vmatpush.bf16.msra.mxu2 %v2800_v18  ;;  %1616 = vmatmul.bf16.vlgmr.msrb.gmra.mxu1 %v390_v10  ;;  %v2810_v10 = vld [vmem:[%s3494_s1 + $0x508] sm:$0xff] }
  0x84   :  { %1660 = vmatpush.bf16.msra.mxu1 %v2792_v21  ;;  %1642 = vmatmul.bf16.vlgmr.msrb.gmra.mxu3 %v392_v11 }
  0x85   :  { %1686 = vmatpush.bf16.msra.mxu3 %v2808_v22 }
  0x86   :  { %1648 = vmatpush.bf16.msra.mxu0 %v2783_v23 }
  0x87   :  { %1674 = vmatpush.bf16.msra.mxu2 %v2799_v24 }
  0x88   :  { %1661 = vmatpush.bf16.msra.mxu1 %v2791_v25 }
  0x89   :  { %1687 = vmatpush.bf16.msra.mxu3 %v2807_v26 }
  0x8a   :  { %1649 = vmatpush.bf16.msra.mxu0 %v2782_v27 }
  0x8b   :  { %1675 = vmatpush.bf16.msra.mxu2 %v2798_v28 }
  0x8c   :  { %1662 = vmatpush.bf16.msra.mxu1 %v2790_v29 }
  0x8d   :  { %1688 = vmatpush.bf16.msra.mxu3 %v2806_v30 }
  0x8e   :  { %1650 = vmatpush.bf16.msra.mxu0 %v2781_v31 }
  0x8f   :  { %1676 = vmatpush.bf16.msra.mxu2 %v2797_v32 }
  0x90   :  { %1663 = vmatpush.bf16.msra.mxu1 %v2789_v33 }
  0x91   :  { %1689 = vmatpush.bf16.msra.mxu3 %v2805_v34 }
  0x92   :  { %1651 = vmatpush.bf16.msra.mxu0 %v2780_v35 }
  0x93   :  { %1677 = vmatpush.bf16.msra.mxu2 %v2796_v36 }
  0x94   :  { %1664 = vmatpush.bf16.msra.mxu1 %v2788_v37 }
  0x95   :  { %1690 = vmatpush.bf16.msra.mxu3 %v2804_v38 }
  0x96   :  { %1652 = vmatpush.bf16.msra.mxu0 %v2779_v39 }
  0x97   :  { %1678 = vmatpush.bf16.msra.mxu2 %v2795_v40 }
  0x98   :  { %1665 = vmatpush.bf16.msra.mxu1 %v2787_v41  ;;  %v2825_v41 = vld [vmem:[%s3496_s3 + $0x38] sm:$0xff] }
  0x99   :  { %1691 = vmatpush.bf16.msra.mxu3 %v2803_v42 }
  0x9a   :  { %1653 = vmatpush.bf16.msra.mxu0 %v2778_v43  ;;  %v2824_v43 = vld [vmem:[%s3496_s3 + $0x30] sm:$0xff] }
  0x9b   :  { %1679 = vmatpush.bf16.msra.mxu2 %v2794_v44 }
  0x9c   :  { %1666 = vmatpush.bf16.msra.mxu1 %v2786_v45 }
  0x9d   :  { %1692 = vmatpush.bf16.msra.mxu3 %v2802_v46 }
  0x9e   :  { %1654 = vmatpush.bf16.msra.mxu0 %v2777_v47  ;;  %v1448_v61 = vpop.f32.mrf.mxu0  ;;  %v2823_v47 = vld [vmem:[%s3496_s3 + $0x28] sm:$0xff] }
  0x9f   :  { %1680 = vmatpush.bf16.msra.mxu2 %v2793_v48  ;;  %v1449_v62 = vadd.f32 %v2835_v59, %v1448_v61  ;;  %v2833_v59 = vld [vmem:[%s3498_s5 + $0x38] sm:$0xff] }
  0xa0   :  { %1667 = vmatpush.bf16.msra.mxu1 %v2785_v50  ;;  %v1461_v63 = vpop.f32.mrf.mxu1 }
  0xa1   :  { %1693 = vmatpush.bf16.msra.mxu3 %v2801_v51  ;;  %1655 = vmatmul.bf16.vlgmr.msra.gmra.mxu0 %v395_v52  ;;  %v1462_v1 = vadd.f32 %v1461_v63, %v1449_v62  ;;  %v2821_v51 = vld [vmem:[%s3496_s3 + $0x18] sm:$0xff]  ;;  %v2820_v52 = vld [vmem:[%s3496_s3 + $0x10] sm:$0xff] }
  0xa2   :  { %1699 = vmatpush.bf16.msrb.mxu0 %v2816_v49  ;;  %1681 = vmatmul.bf16.vlgmr.msra.gmra.mxu2 %v397_v53  ;;  %v2822_v49 = vld [vmem:[%s3496_s3 + $0x20] sm:$0xff]  ;;  %v2819_v53 = vld [vmem:[%s3496_s3 + $0x8] sm:$0xff]  ;;  %v2832_v62 = vld [vmem:[%s3498_s5 + $0x30] sm:$0xff] }
  0xa3   :  { %1668 = vmatmul.bf16.vlgmr.msra.gmra.mxu1 %v396_v55  ;;  %1795 = vmatpush.bf16.msrb.mxu2 %v2825_v41 }
  0xa4   :  { %1719 = vmatpush.bf16.msrb.mxu1 %v2817_v54  ;;  %1694 = vmatmul.bf16.vlgmr.msra.gmra.mxu3 %v398_v56  ;;  %v2818_v56 = vld [vmem:[%s3496_s3] sm:$0xff] }
  0xa5   :  { %v1474_v2 = vpop.f32.mrf.mxu2  ;;  %1878 = vmatpush.bf16.msrb.mxu3 %v2833_v59 }
  0xa6   :  { %1700 = vmatpush.bf16.msrb.mxu0 %v2815_v57  ;;  %v1475_v5 = vadd.f32 %v1474_v2, %v1462_v1  ;;  %v1450_v7 = vpop.f32.mrf.mxu0  ;;  %v2831_v2 = vld [vmem:[%s3498_s5 + $0x28] sm:$0xff] }
  0xa7   :  { %v1487_v6 = vpop.f32.mrf.mxu3  ;;  %1796 = vmatpush.bf16.msrb.mxu2 %v2824_v43 }
  0xa8   :  { %v1488_v8 = vadd.f32 %v1487_v6, %v1475_v5  ;;  %v1463_v9 = vpop.f32.mrf.mxu1  ;;  %v2830_v6 = vld [vmem:[%s3498_s5 + $0x20] sm:$0xff] }
  0xa9   :  { %1879 = vmatpush.bf16.msrb.mxu3 %v2832_v62  ;;  %v2829_v9 = vld [vmem:[%s3498_s5 + $0x18] sm:$0xff] }
  0xaa   :  { %1701 = vmatpush.bf16.msrb.mxu0 %v2814_v58 }
  0xab   :  { %1797 = vmatpush.bf16.msrb.mxu2 %v2823_v47 }
  0xad   :  { %v1476_v11 = vpop.f32.mrf.mxu2  ;;  %1880 = vmatpush.bf16.msrb.mxu3 %v2831_v2 }
  0xae   :  { %1702 = vmatpush.bf16.msrb.mxu0 %v2813_v60 }
  0xaf   :  { %v1489_v13 = vpop.f32.mrf.mxu3  ;;  %1798 = vmatpush.bf16.msrb.mxu2 %v2822_v49 }
  0xb1   :  { %1881 = vmatpush.bf16.msrb.mxu3 %v2830_v6 }
  0xb2   :  { %1703 = vmatpush.bf16.msrb.mxu0 %v2812_v0 }
  0xb3   :  { %2584 = vmatmul.msk.bf16.vlgmr.msrb.gmra.mxu1 %vm1436_vm0, %v400_v4  ;;  %1799 = vmatpush.bf16.msrb.mxu2 %v2821_v51 }
  0xb5   :  { %1882 = vmatpush.bf16.msrb.mxu3 %v2829_v9 }
  0xb6   :  { %1704 = vmatpush.bf16.msrb.mxu0 %v2811_v3 }
  0xb7   :  { %1800 = vmatpush.bf16.msrb.mxu2 %v2820_v52 }
  0xba   :  { %1705 = vmatpush.bf16.msrb.mxu0 %v2810_v10 }
  0xbb   :  { %1801 = vmatpush.bf16.msrb.mxu2 %v2819_v53 }
  0xbe   :  { %1706 = vmatpush.bf16.msrb.mxu0 %v2809_v12  ;;  %v1500_v15 = vpop.f32.mrf.mxu0  ;;  %v2828_v12 = vld [vmem:[%s3498_s5 + $0x10] sm:$0xff] }
  0xbf   :  { %v1501_v16 = vadd.f32 %v1500_v15, %v1488_v8  ;;  %1802 = vmatpush.bf16.msrb.mxu2 %v2818_v56  ;;  %1883 = vmatpush.bf16.msrb.mxu3 %v2828_v12 }
  0xc0   :  { %v1513_v17 = vpop.f32.mrf.mxu1 }
  0xc1   :  { %1707 = vmatmul.bf16.vlgmr.msrb.gmra.mxu0 %v399_v14  ;;  %v1514_v18 = vadd.f32 %v1513_v17, %v1501_v16 }
  0xc5   :  { %v1526_v19 = vpop.f32.mrf.mxu2 }
  0xc6   :  { %v1527_v20 = vadd.f32 %v1526_v19, %v1514_v18  ;;  %v1502_v22 = vpop.f32.mrf.mxu0 }
  0xc7   :  { %v1539_v21 = vpop.f32.mrf.mxu3  ;;  %v2826_v22 = vld [vmem:[%s3498_s5] sm:$0xff] }
  0xc8   :  { %v1540_v23 = vadd.f32 %v1539_v21, %v1527_v20  ;;  %v1515_v24 = vpop.f32.mrf.mxu1  ;;  %v2827_v21 = vld [vmem:[%s3498_s5 + $0x8] sm:$0xff]  ;;  %s1899_s5 = sshll.u32 %s3500_s7, 4  ;;  %s1900_s5 = int_to_ptr.hbm [resolvable:$true] %s1899_s5 }
  0xc9   :  { %1884 = vmatpush.bf16.msrb.mxu3 %v2827_v21 }
  0xcd   :  { %v1528_v25 = vpop.f32.mrf.mxu2  ;;  %1885 = vmatpush.bf16.msrb.mxu3 %v2826_v22 }
  0xcf   :  { %v1541_v26 = vpop.f32.mrf.mxu3 }
  0xde   :  { %v1552_v27 = vpop.f32.mrf.mxu0 }
  0xdf   :  { %v1553_v28 = vadd.f32 %v1552_v27, %v1540_v23  ;;  %v2836_v23 = vld [vmem:[%s3497_s4] ss:$0 sm:$0xff] }
  0xe0   :  { %v1565_v29 = vpop.f32.mrf.mxu1 }
  0xe1   :  { %v1566_v30 = vadd.f32 %v1565_v29, %v1553_v28  ;;  %v2837_v29 = vld [vmem:[%s3499_s6] ss:$0 sm:$0xff] }
  0xe5   :  { %v1578_v31 = vpop.f32.mrf.mxu2 }
  0xe6   :  { %v1579_v32 = vadd.f32 %v1578_v31, %v1566_v30  ;;  %v1554_v34 = vpop.f32.mrf.mxu0 }
  0xe7   :  { %v1591_v33 = vpop.f32.mrf.mxu3 }
  0xe8   :  { %v1592_v35 = vadd.f32 %v1591_v33, %v1579_v32  ;;  %v1567_v36 = vpop.f32.mrf.mxu1 }
  0xed   :  { %v1580_v37 = vpop.f32.mrf.mxu2 }
  0xef   :  { %v1593_v38 = vpop.f32.mrf.mxu3 }
  0xfe   :  { %v1604_v39 = vpop.f32.mrf.mxu0 }
  0xff   :  { %v1605_v58 = vadd.f32 %v1604_v39, %v1592_v35 }
 0x100   :  { %v1617_v40 = vpop.f32.mrf.mxu1 }
 0x101   :  { %v1618_v0 = vadd.f32 %v1617_v40, %v1605_v58 }
 0x105   :  { %v1630_v42 = vpop.f32.mrf.mxu2 }
 0x106   :  { %v1606_v45 = vpop.f32.mrf.mxu0  ;;  %v1631_v1 = vadd.f32 %v1630_v42, %v1618_v0 }
 0x107   :  { %v1643_v44 = vpop.f32.mrf.mxu3 }
 0x108   :  { %v1619_v46 = vpop.f32.mrf.mxu1  ;;  %v1644_v5 = vadd.f32 %v1643_v44, %v1631_v1 }
 0x10d   :  { %v1632_v48 = vpop.f32.mrf.mxu2 }
 0x10f   :  { %v1645_v50 = vpop.f32.mrf.mxu3 }
 0x11e   :  { %v1656_v54 = vpop.f32.mrf.mxu0 }
 0x11f   :  { %v1657_v8 = vadd.f32 %v1656_v54, %v1644_v5 }
 0x120   :  { %v1669_v55 = vpop.f32.mrf.mxu1 }
 0x121   :  { %v1670_v10 = vadd.f32 %v1669_v55, %v1657_v8 }
 0x125   :  { %v1682_v57 = vpop.f32.mrf.mxu2 }
 0x126   :  { %v1658_v61 = vpop.f32.mrf.mxu0  ;;  %v1683_v11 = vadd.f32 %v1682_v57, %v1670_v10 }
 0x127   :  { %v1695_v60 = vpop.f32.mrf.mxu3 }
 0x128   :  { %v1671_v63 = vpop.f32.mrf.mxu1  ;;  %v1696_v14 = vadd.f32 %v1695_v60, %v1683_v11 }
 0x12d   :  { %v1684_v3 = vpop.f32.mrf.mxu2 }
 0x12f   :  { %v1697_v4 = vpop.f32.mrf.mxu3 }
 0x130   :  { %v1721_v7 = vpop.f32.mrf.mxu1 }
 0x138   :  { %v1723_v13 = vpop.f32.mrf.mxu1 }
 0x13e   :  { %v1708_v15 = vpop.f32.mrf.mxu0 }
 0x13f   :  { %v1709_v16 = vadd.f32 %v1708_v15, %v1696_v14 }
 0x141   :  { %v1722_v17 = vadd.f32 %v1721_v7, %v1709_v16 }
 0x143   :  { %v1725_v18 = vmax.f32 %v1722_v17, 0.0 }
 0x145   :  { %v1726_v19 = vpack.c.bf16 %v1725_v18, %v1725_v18 }
 0x146   :  { %v1710_v20 = vpop.f32.mrf.mxu0 }
 0x147   :  { %1803 = vmatmul.bf16.vlgmr.msrb.gmra.mxu2 %v1726_v19 }
 0x1ca   :  { %v1804_v24 = vpop.f32.mrf.mxu2 }
 0x1cb   :  { %v1805_v25 = vadd.f32 %v2836_v23, %v1804_v24 }
 0x1cd   :  { %v1808_v26 = vmax.f32 %v1805_v25, 0.0 }
 0x1cf   :  { %v1809_v27 = vpack.c.bf16 %v1808_v26, %v1808_v26 }
 0x1d1   :  { %1886 = vmatmul.bf16.vlgmr.msrb.gmra.mxu3 %v1809_v27 }
 0x1d2   :  { %v1806_v28 = vpop.f32.mrf.mxu2 }
 0x254   :  { %v1887_v30 = vpop.f32.mrf.mxu3 }
 0x255   :  { %v1888_v31 = vadd.f32 %v2837_v29, %v1887_v30 }
 0x257   :  { %1891 = vst [vmem:[#allocation2] sm:$0x3] %v1888_v31 }
 0x258   :  { %1902 = dma.vmem_to_hbm [thread:$0]  %s1898_s0, 32, %s1900_s5, [#allocation3]  }
 0x25c   :  { %v1889_v32 = vpop.f32.mrf.mxu3 }
 0x25d   :  { %2862 = dma.done.wait [#allocation3], 32  }
 0x25e   :  { %2863 = vsyncadd [#allocation3], 4294967264 }
 0x25f   :  { %1907 = vsyncpa [#allocation3], 1 }

</bundles_post_ra>
